<compile_context>
chip_gen: v7x
topology: tpu7x:2x2x1
jax: 0.10.0
libtpu: 0.0.40
codegen_flags: <defaults>
</compile_context>

<pallas_src>
import functools
import math

import jax
import jax.numpy as jnp
from jax.experimental import pallas as pl
from jax.experimental.pallas import tpu as pltpu

# ---------------- synthetic model config (small analogue of the HF LM) ------
VOCAB = 256
D_MODEL = 128
N_HEADS = 4
HEAD_DIM = D_MODEL // N_HEADS
N_LAYERS = 2
D_MLP = 256
Z_DIM = 64
Z_PAD = 128            # latent output padded to a full 128-lane vreg
LORA_R = 4
LORA_ALPHA = 8.0
RMS_EPS = 1e-6
NEG_INF = -1e9


# ---------------- in-kernel helpers (traced inside kernels, f32 math) -------
def _rms(x, gamma):
    # x: (rows, D) f32, gamma: (1, D) f32 — statistics kept in f32 (v5e-safe).
    var = jnp.mean(x * x, axis=-1, keepdims=True)
    return x * jax.lax.rsqrt(var + RMS_EPS) * gamma


def _run_stack(h, keybias, cos, sin,
               ln1_ref, ln2_ref, wqkv_ref, wo_ref, wgu_ref, wd_ref,
               *, batch, seq, causal):
    """All transformer layers on a flattened (batch*seq, D) residual stream."""
    D = D_MODEL
    scale = 1.0 / math.sqrt(HEAD_DIM)

    # Per-batch additive attention bias, built in-kernel (no (B,S,S) HBM traffic).
    if causal:
        qi = jax.lax.broadcasted_iota(jnp.int32, (seq, seq), 0)
        ki = jax.lax.broadcasted_iota(jnp.int32, (seq, seq), 1)
        causal_bias = jnp.where(qi >= ki, 0.0, NEG_INF)
        biases = [keybias[b] + causal_bias for b in range(batch)]     # (seq, seq)
    else:
        biases = [keybias[b] for b in range(batch)]                   # (1, seq)

    n_layers = wqkv_ref.shape[0]
    for l in range(n_layers):
        ln1 = ln1_ref[l]
        ln2 = ln2_ref[l]
        wqkv = wqkv_ref[l]              # (D, 5D) bf16: [Wq | Wq_rot | Wk | Wk_rot | Wv]
        wo = wo_ref[l]                  # (D, D)   bf16
        wgu = wgu_ref[l]                # (D, 2*D_MLP) bf16
        wd = wd_ref[l]                  # (D_MLP, D)   bf16
        wo_heads = [wo[hh * HEAD_DIM:(hh + 1) * HEAD_DIM, :] for hh in range(N_HEADS)]

        # ---- attention block (RoPE folded into the QKV weights) ------------
        xn = _rms(h, ln1)
        qkv = jnp.dot(xn.astype(jnp.bfloat16), wqkv,
                      preferred_element_type=jnp.float32)             # (rows, 5D) f32
        q = (qkv[:, 0 * D:1 * D] * cos + qkv[:, 1 * D:2 * D] * sin).astype(jnp.bfloat16)
        k = (qkv[:, 2 * D:3 * D] * cos + qkv[:, 3 * D:4 * D] * sin).astype(jnp.bfloat16)
        v = qkv[:, 4 * D:5 * D].astype(jnp.bfloat16)

        attn_parts = []
        for b in range(batch):
            r0 = b * seq
            qb = q[r0:r0 + seq]
            kb = k[r0:r0 + seq]
            vb = v[r0:r0 + seq]
            bias_b = biases[b]
            acc = jnp.zeros((seq, D), jnp.float32)
            for hh in range(N_HEADS):
                lo = hh * HEAD_DIM
                qh = qb[:, lo:lo + HEAD_DIM]
                kh = kb[:, lo:lo + HEAD_DIM]
                vh = vb[:, lo:lo + HEAD_DIM]
                # scores via dot_general contracting the head dim (no explicit kh.T)
                s = jax.lax.dot_general(
                    qh, kh, (((1,), (1,)), ((), ())),
                    preferred_element_type=jnp.float32) * scale + bias_b
                m = jnp.max(s, axis=-1, keepdims=True)
                p = jnp.exp(s - m)                     # >=1 entry is exactly 1
                p = p / jnp.sum(p, axis=-1, keepdims=True)   # exact division
                pv = jnp.dot(p.astype(jnp.bfloat16), vh,
                             preferred_element_type=jnp.float32)       # (seq, Dh)
                # per-head Wo slice + f32 accumulation: no head-output concat.
                acc = acc + jnp.dot(pv.astype(jnp.bfloat16), wo_heads[hh],
                                    preferred_element_type=jnp.float32)
            attn_parts.append(acc)
        attn = attn_parts[0] if batch == 1 else jnp.concatenate(attn_parts, axis=0)
        h = h + attn

        # ---- MLP block (SwiGLU), flattened over batch -----------------------
        xn = _rms(h, ln2)
        gu = jnp.dot(xn.astype(jnp.bfloat16), wgu,
                     preferred_element_type=jnp.float32)               # (rows, 2*D_MLP)
        g = gu[:, :D_MLP]
        u = gu[:, D_MLP:]
        act = (g / (1.0 + jnp.exp(-g))) * u                            # exact SiLU, f32
        h = h + jnp.dot(act.astype(jnp.bfloat16), wd,
                        preferred_element_type=jnp.float32)
    return h


# ---------------- fused encoder kernel: layers + ln_f + VAE pool + w_e ------
def _encoder_kernel(h_ref, keybias_ref, poolbias_ref, cos_ref, sin_ref,
                    ln1_ref, ln2_ref, wqkv_ref, wo_ref, wgu_ref, wd_ref,
                    lnf_ref, fw_ref, fb_ref, wenc_ref, benc_ref,
                    mean_ref, *, batch, seq):
    h = _run_stack(h_ref[...], keybias_ref[...], cos_ref[...], sin_ref[...],
                   ln1_ref, ln2_ref, wqkv_ref, wo_ref, wgu_ref, wd_ref,
                   batch=batch, seq=seq, causal=False)
    hn = _rms(h, lnf_ref[...])                                         # (rows, D)
    fw = fw_ref[...]                                                   # (1, D)
    fb = fb_ref[...]                                                   # (1, 1)
    poolbias = poolbias_ref[...]                                       # (batch, seq, 1)
    wenc = wenc_ref[...]                                               # (D, Z_PAD)
    benc = benc_ref[...]                                               # (1, Z_PAD)
    means = []
    for b in range(batch):
        hb = hn[b * seq:(b + 1) * seq]                                 # (seq, D)
        sc = jnp.sum(hb * fw, axis=-1, keepdims=True) + fb + poolbias[b]   # (seq, 1)
        m = jnp.max(sc, axis=0, keepdims=True)
        w = jnp.exp(sc - m)
        w = w / jnp.sum(w, axis=0, keepdims=True)
        pooled = jax.lax.dot_general(w, hb, (((0,), (0,)), ((), ())),
                                     preferred_element_type=jnp.float32)   # (1, D)
        means.append(jnp.dot(pooled, wenc,
                             preferred_element_type=jnp.float32) + benc)   # (1, Z_PAD)
    mean_ref[...] = means[0] if batch == 1 else jnp.concatenate(means, axis=0)


# ---------------- fused decoder kernel: layers + ln_f + lm_head --------------
def _decoder_kernel(h_ref, keybias_ref, cos_ref, sin_ref,
                    ln1_ref, ln2_ref, wqkv_ref, wo_ref, wgu_ref, wd_ref,
                    lnf_ref, lm_ref,
                    hid_ref, logits_ref, *, batch, seq):
    h = _run_stack(h_ref[...], keybias_ref[...], cos_ref[...], sin_ref[...],
                   ln1_ref, ln2_ref, wqkv_ref, wo_ref, wgu_ref, wd_ref,
                   batch=batch, seq=seq, causal=True)
    hn = _rms(h, lnf_ref[...])
    hid_ref[...] = hn
    logits_ref[...] = jnp.dot(hn.astype(jnp.bfloat16), lm_ref[...],
                              preferred_element_type=jnp.float32)


# ---------------- pallas_call wrappers ---------------------------------------
def _fs(shape):
    # full-array block, grid=(1,)
    return pl.BlockSpec(shape, lambda i: (0,) * len(shape))


def encode_stack(prep, h_flat, keybias, poolbias, cos, sin, batch, seq):
    enc = prep["encoder"]
    L = enc["wqkv"].shape[0]
    kernel = functools.partial(_encoder_kernel, batch=batch, seq=seq)
    mean_pad = pl.pallas_call(
        kernel,
        grid=(1,),
        in_specs=[
            _fs((batch * seq, D_MODEL)),          # h (flattened residual stream)
            _fs((batch, 1, seq)),                 # additive key mask
            _fs((batch, seq, 1)),                 # additive pool mask (pre-shaped)
            _fs((batch * seq, D_MODEL)),          # cos (full-width, batch-tiled)
            _fs((batch * seq, D_MODEL)),          # sin
            _fs((L, 1, D_MODEL)),                 # ln1 (stacked per layer)
            _fs((L, 1, D_MODEL)),                 # ln2
            _fs((L, D_MODEL, 5 * D_MODEL)),       # Wq|Wq_rot|Wk|Wk_rot|Wv
            _fs((L, D_MODEL, D_MODEL)),           # Wo
            _fs((L, D_MODEL, 2 * D_MLP)),         # Wg|Wu
            _fs((L, D_MLP, D_MODEL)),             # Wd
            _fs((1, D_MODEL)),                    # ln_f
            _fs((1, D_MODEL)),                    # f.weight
            _fs((1, 1)),                          # f.bias
            _fs((D_MODEL, Z_PAD)),                # w_e (lane-padded)
            _fs((1, Z_PAD)),                      # b_e (lane-padded)
        ],
        out_specs=_fs((batch, Z_PAD)),
        out_shape=jax.ShapeDtypeStruct((batch, Z_PAD), jnp.float32),
        compiler_params=pltpu.CompilerParams(dimension_semantics=("arbitrary",)),
    )(h_flat, keybias, poolbias, cos, sin,
      enc["ln1"], enc["ln2"], enc["wqkv"], enc["wo"], enc["wgu"], enc["wd"],
      prep["ln_f"], prep["f_w"], prep["f_b"], prep["w_enc"], prep["b_e"])
    return mean_pad[:, :Z_DIM]


def decode_stack(prep, h_flat, keybias, cos, sin, batch, seq):
    dec = prep["decoder"]
    L = dec["wqkv"].shape[0]
    rows = batch * seq
    kernel = functools.partial(_decoder_kernel, batch=batch, seq=seq)
    hid, logits = pl.pallas_call(
        kernel,
        grid=(1,),
        in_specs=[
            _fs((rows, D_MODEL)),
            _fs((batch, 1, seq)),
            _fs((rows, D_MODEL)),
            _fs((rows, D_MODEL)),
            _fs((L, 1, D_MODEL)),
            _fs((L, 1, D_MODEL)),
            _fs((L, D_MODEL, 5 * D_MODEL)),
            _fs((L, D_MODEL, D_MODEL)),
            _fs((L, D_MODEL, 2 * D_MLP)),
            _fs((L, D_MLP, D_MODEL)),
            _fs((1, D_MODEL)),
            _fs((D_MODEL, VOCAB)),
        ],
        out_specs=(_fs((rows, D_MODEL)), _fs((rows, VOCAB))),
        out_shape=(jax.ShapeDtypeStruct((rows, D_MODEL), jnp.float32),
                   jax.ShapeDtypeStruct((rows, VOCAB), jnp.float32)),
        compiler_params=pltpu.CompilerParams(dimension_semantics=("arbitrary",)),
    )(h_flat, keybias, cos, sin,
      dec["ln1"], dec["ln2"], dec["wqkv"], dec["wo"], dec["wgu"], dec["wd"],
      prep["ln_f"], prep["lm_head"])
    return hid, logits


# ---------------- parameter preparation (runs once, outside forward) ---------
def _rotate_half_cols(w):
    """Permute/negate columns per head so that x @ w_rot == rotate_half(x @ w)."""
    din = w.shape[0]
    w4 = w.reshape(din, N_HEADS, 2, HEAD_DIM // 2)
    w_rot = jnp.concatenate([-w4[:, :, 1], w4[:, :, 0]], axis=2)
    return w_rot.reshape(din, N_HEADS * HEAD_DIM)


def merged_weights(layer, adapter):
    """Merge LoRA adapter into base weights: W' = W + (alpha/r) * (B @ A).T."""
    scale = LORA_ALPHA / LORA_R
    out = {}
    for name in ("wq", "wk", "wv", "wo", "wg", "wu", "wd"):
        a = layer[f"{name}_lora_A_{adapter}"]   # (r, in)
        b = layer[f"{name}_lora_B_{adapter}"]   # (out, r)
        out[name] = layer[name] + scale * (b @ a).T
    return out


def prepare_model(params):
    """One-time prep: LoRA merge, QKV(+RoPE-rot)/gate-up concat, bf16 cast, padding."""
    prep = {
        "embed": params["embed"],                                    # f32, gathered
        "ln_f": params["ln_f"].reshape(1, D_MODEL),
        "lm_head": params["lm_head"].astype(jnp.bfloat16),           # (D, VOCAB)
        "f_w": params["vae"]["f_w"].reshape(1, D_MODEL),
        "f_b": params["vae"]["f_b"].reshape(1, 1),
        "w_enc": jnp.pad(params["vae"]["w_e"].T,
                         ((0, 0), (0, Z_PAD - Z_DIM))),              # (D, Z_PAD)
        "b_e": jnp.pad(params["vae"]["b_e"],
                       (0, Z_PAD - Z_DIM)).reshape(1, Z_PAD),
        "w_dec": params["vae"]["w_e"],           # (Z, D): w_d.weight == w_e.weight.T
        "b_d": params["vae"]["b_d"],
    }
    for adapter in ("encoder", "decoder"):
        ln1, ln2, wqkv, wo, wgu, wd = [], [], [], [], [], []
        for layer in params["layers"]:
            w = merged_weights(layer, adapter)
            wqkv.append(jnp.concatenate(
                [w["wq"], _rotate_half_cols(w["wq"]),
                 w["wk"], _rotate_half_cols(w["wk"]),
                 w["wv"]], axis=1).astype(jnp.bfloat16))             # (D, 5D)
            wo.append(w["wo"].astype(jnp.bfloat16))
            wgu.append(jnp.concatenate([w["wg"], w["wu"]],
                                       axis=1).astype(jnp.bfloat16)) # (D, 2*D_MLP)
            wd.append(w["wd"].astype(jnp.bfloat16))
            ln1.append(layer["ln1"].reshape(1, D_MODEL))
            ln2.append(layer["ln2"].reshape(1, D_MODEL))
        prep[adapter] = {
            "ln1": jnp.stack(ln1), "ln2": jnp.stack(ln2),
            "wqkv": jnp.stack(wqkv), "wo": jnp.stack(wo),
            "wgu": jnp.stack(wgu), "wd": jnp.stack(wd),
        }
    return prep


def rope_tables_flat(seq, batch):
    """Full-width (batch*seq, D) cos/sin tables (same table tiled per head/batch)."""
    inv = 1.0 / (10000.0 ** (jnp.arange(0, HEAD_DIM, 2, dtype=jnp.float32) / HEAD_DIM))
    t = jnp.arange(seq, dtype=jnp.float32)[:, None] * inv[None, :]     # (seq, Dh/2)
    cos = jnp.concatenate([jnp.cos(t), jnp.cos(t)], axis=-1)           # (seq, Dh)
    sin = jnp.concatenate([jnp.sin(t), jnp.sin(t)], axis=-1)
    return jnp.tile(cos, (batch, N_HEADS)), jnp.tile(sin, (batch, N_HEADS))


def add_rope_tables(prep, batch, s_enc, s_dec):
    prep = dict(prep)
    prep["rope_enc"] = rope_tables_flat(s_enc, batch)
    prep["rope_dec"] = rope_tables_flat(s_dec, batch)
    return prep


# ---------------- JAX glue ----------------------------------------------------
def _pad8(n):
    return ((n + 7) // 8) * 8


def _pad_seq(x, target):
    if x.shape[1] == target:
        return x
    pad = [(0, 0)] * x.ndim
    pad[1] = (0, target - x.shape[1])
    return jnp.pad(x, pad)


def _additive_mask(mask, target):
    mask = _pad_seq(mask, target)
    return jnp.where(mask > 0, 0.0, NEG_INF).astype(jnp.float32)


# ---------------- full forward pass --------------------------------------------
def forward(prep, sample_key, input_ids, attention_mask,
            decoder_prefix_ids, decoder_prefix_mask):
    B, S = input_ids.shape

    # -------- encode: 'encoder' adapter, causal mask disabled -------------------
    s_enc = _pad8(S)
    h = jnp.take(prep["embed"], input_ids, axis=0)          # gather, no one-hot matmul
    h = _pad_seq(h, s_enc).reshape(B * s_enc, D_MODEL)
    add_mask = _additive_mask(attention_mask, s_enc)         # (B, s_enc) 0 / -1e9
    cos_e, sin_e = prep["rope_enc"]
    mean = encode_stack(prep, h,
                        add_mask.reshape(B, 1, s_enc),       # key mask
                        add_mask.reshape(B, s_enc, 1),       # pool mask (pre-shaped)
                        cos_e, sin_e, B, s_enc)

    # -------- sample: z = mean + randn * tau**0.5 (tau = 1) ---------------------
    z = mean + jax.random.normal(sample_key, mean.shape, jnp.float32)

    # -------- decode: 'decoder' adapter, causal mask ----------------------------
    input_ids_all = jnp.concatenate([decoder_prefix_ids, input_ids], axis=1)
    attn_mask_all = jnp.concatenate([decoder_prefix_mask, attention_mask], axis=1)
    # vae.decode is a (B,64)@(64,128): plain jnp, XLA fuses it with the concat below.
    z_embed = (jnp.dot(z, prep["w_dec"]) + prep["b_d"])[:, None, :]        # (B, 1, D)
    tok = jnp.take(prep["embed"], input_ids_all, axis=0)
    hdec = jnp.concatenate([z_embed, tok], axis=1)                          # (B, Sd, D)
    s_real = hdec.shape[1]
    s_dec = _pad8(s_real)
    hdec = _pad_seq(hdec, s_dec).reshape(B * s_dec, D_MODEL)
    dec_mask = jnp.concatenate(
        [jnp.ones((B, 1), attn_mask_all.dtype), attn_mask_all], axis=1)
    add_mask_d = _additive_mask(dec_mask, s_dec)
    cos_d, sin_d = prep["rope_dec"]
    hid, logits = decode_stack(prep, hdec, add_mask_d.reshape(B, 1, s_dec),
                               cos_d, sin_d, B, s_dec)
    logits = logits.reshape(B, s_dec, VOCAB)[:, :s_real]
    dec_hidden = hid.reshape(B, s_dec, D_MODEL)[:, :s_real]
    return logits, dec_hidden, mean


# ---------------- deterministic parameter init ---------------------------------
def init_params(key):
    keys = iter(jax.random.split(key, 512))

    def nrm(shape, scale=0.02):
        return scale * jax.random.normal(next(keys), shape, jnp.float32)

    params = {
        "embed": nrm((VOCAB, D_MODEL)),
        "lm_head": nrm((D_MODEL, VOCAB)),
        "ln_f": jnp.ones((D_MODEL,), jnp.float32),
        "layers": [],
    }
    dims = {
        "wq": (D_MODEL, D_MODEL), "wk": (D_MODEL, D_MODEL),
        "wv": (D_MODEL, D_MODEL), "wo": (D_MODEL, D_MODEL),
        "wg": (D_MODEL, D_MLP), "wu": (D_MODEL, D_MLP), "wd": (D_MLP, D_MODEL),
    }
    for _ in range(N_LAYERS):
        layer = {"ln1": jnp.ones((D_MODEL,), jnp.float32),
                 "ln2": jnp.ones((D_MODEL,), jnp.float32)}
        for name, (din, dout) in dims.items():
            layer[name] = nrm((din, dout))
            for adapter in ("encoder", "decoder"):
                # NOTE: PEFT zero-inits lora_B; use small random so adapters differ.
                layer[f"{name}_lora_A_{adapter}"] = nrm((LORA_R, din))
                layer[f"{name}_lora_B_{adapter}"] = nrm((dout, LORA_R))
        params["layers"].append(layer)

    # VAE component: f (D->1), w_e orthogonal (z_dim, D), w_d.weight = w_e.weight.T
    q, _ = jnp.linalg.qr(jax.random.normal(next(keys), (D_MODEL, Z_DIM), jnp.float32))
    params["vae"] = {
        "f_w": nrm((D_MODEL,)),
        "f_b": jnp.zeros((), jnp.float32),
        "w_e": q.T,                                 # (Z_DIM, D_MODEL), orthonormal rows
        "b_e": jnp.zeros((Z_DIM,), jnp.float32),
        "b_d": jnp.zeros((D_MODEL,), jnp.float32),
    }
    return params


# ---------------- main ----------------------------------------------------------
if __name__ == "__main__":
    B, S, P = 2, 8, 8
    key = jax.random.PRNGKey(0)
    kp, kids, kpre, ksample = jax.random.split(key, 4)

    params = init_params(kp)
    prep = prepare_model(params)                 # LoRA merge / concat / bf16: once
    prep = add_rope_tables(prep, batch=B, s_enc=_pad8(S), s_dec=_pad8(1 + P + S))

    input_ids = jax.random.randint(kids, (B, S), 0, VOCAB, dtype=jnp.int32)
    decoder_prefix_ids = jax.random.randint(kpre, (B, P), 0, VOCAB, dtype=jnp.int32)
    attention_mask = jnp.ones((B, S), jnp.int32).at[1, -2:].set(0)
    decoder_prefix_mask = jnp.ones((B, P), jnp.int32).at[1, -1:].set(0)

    fwd = jax.jit(forward)
    logits, dec_hidden, mean = fwd(
        prep, ksample, input_ids, attention_mask,
        decoder_prefix_ids, decoder_prefix_mask)
    jax.block_until_ready((logits, dec_hidden, mean))

    assert logits.shape == (B, 1 + P + S, VOCAB)
    assert dec_hidden.shape == (B, 1 + P + S, D_MODEL)
    assert mean.shape == (B, Z_DIM)
    assert bool(jnp.all(jnp.isfinite(logits))) and bool(jnp.all(jnp.isfinite(mean)))
    print("KERNEL_OK")
</pallas_src>

<mosaic_0001>
module attributes {stable_mosaic.version = 11 : i64} {
  func.func @_encoder_kernel(%arg0: i32, %arg1: memref<16x128xf32, #tpu.memory_space<vmem>>, %arg2: memref<2x1x8xf32, #tpu.memory_space<vmem>>, %arg3: memref<2x8x1xf32, #tpu.memory_space<vmem>>, %arg4: memref<16x128xf32, #tpu.memory_space<vmem>>, %arg5: memref<16x128xf32, #tpu.memory_space<vmem>>, %arg6: memref<2x1x128xf32, #tpu.memory_space<vmem>>, %arg7: memref<2x1x128xf32, #tpu.memory_space<vmem>>, %arg8: memref<2x128x640xbf16, #tpu.memory_space<vmem>>, %arg9: memref<2x128x128xbf16, #tpu.memory_space<vmem>>, %arg10: memref<2x128x512xbf16, #tpu.memory_space<vmem>>, %arg11: memref<2x256x128xbf16, #tpu.memory_space<vmem>>, %arg12: memref<1x128xf32, #tpu.memory_space<vmem>>, %arg13: memref<1x128xf32, #tpu.memory_space<vmem>>, %arg14: memref<1x1xf32, #tpu.memory_space<vmem>>, %arg15: memref<128x128xf32, #tpu.memory_space<vmem>>, %arg16: memref<1x128xf32, #tpu.memory_space<vmem>>, %arg17: memref<2x128xf32, #tpu.memory_space<vmem>>) attributes {dimension_semantics = [#tpu.dimension_semantics<arbitrary>], iteration_bounds = array<i64: 1>, scalar_prefetch = 0 : i64, scratch_operands = 0 : i64, tpu.core_type = #tpu.core_type<tc>, window_params = [{pipeline_mode = #tpu.pipeline_mode<synchronous>, transform_indices = @transform_0, window_bounds = array<i64: 16, 128>}, {pipeline_mode = #tpu.pipeline_mode<synchronous>, transform_indices = @transform_1, window_bounds = array<i64: 2, 1, 8>}, {pipeline_mode = #tpu.pipeline_mode<synchronous>, transform_indices = @transform_2, window_bounds = array<i64: 2, 8, 1>}, {pipeline_mode = #tpu.pipeline_mode<synchronous>, transform_indices = @transform_3, window_bounds = array<i64: 16, 128>}, {pipeline_mode = #tpu.pipeline_mode<synchronous>, transform_indices = @transform_4, window_bounds = array<i64: 16, 128>}, {pipeline_mode = #tpu.pipeline_mode<synchronous>, transform_indices = @transform_5, window_bounds = array<i64: 2, 1, 128>}, {pipeline_mode = #tpu.pipeline_mode<synchronous>, transform_indices = @transform_6, window_bounds = array<i64: 2, 1, 128>}, {pipeline_mode = #tpu.pipeline_mode<synchronous>, transform_indices = @transform_7, window_bounds = array<i64: 2, 128, 640>}, {pipeline_mode = #tpu.pipeline_mode<synchronous>, transform_indices = @transform_8, window_bounds = array<i64: 2, 128, 128>}, {pipeline_mode = #tpu.pipeline_mode<synchronous>, transform_indices = @transform_9, window_bounds = array<i64: 2, 128, 512>}, {pipeline_mode = #tpu.pipeline_mode<synchronous>, transform_indices = @transform_10, window_bounds = array<i64: 2, 256, 128>}, {pipeline_mode = #tpu.pipeline_mode<synchronous>, transform_indices = @transform_11, window_bounds = array<i64: 1, 128>}, {pipeline_mode = #tpu.pipeline_mode<synchronous>, transform_indices = @transform_12, window_bounds = array<i64: 1, 128>}, {pipeline_mode = #tpu.pipeline_mode<synchronous>, transform_indices = @transform_13, window_bounds = array<i64: 1, 1>}, {pipeline_mode = #tpu.pipeline_mode<synchronous>, transform_indices = @transform_14, window_bounds = array<i64: 128, 128>}, {pipeline_mode = #tpu.pipeline_mode<synchronous>, transform_indices = @transform_15, window_bounds = array<i64: 1, 128>}, {pipeline_mode = #tpu.pipeline_mode<synchronous>, transform_indices = @transform_16, window_bounds = array<i64: 2, 128>}]} {
    %c0 = arith.constant 0 : index
    %c0_0 = arith.constant 0 : index
    %0 = vector.load %arg1[%c0, %c0_0] : memref<16x128xf32, #tpu.memory_space<vmem>>, vector<16x128xf32>
    %c0_1 = arith.constant 0 : index
    %c0_2 = arith.constant 0 : index
    %c0_3 = arith.constant 0 : index
    %1 = vector.load %arg2[%c0_1, %c0_2, %c0_3] : memref<2x1x8xf32, #tpu.memory_space<vmem>>, vector<2x1x8xf32>
    %c0_4 = arith.constant 0 : index
    %c0_5 = arith.constant 0 : index
    %2 = vector.load %arg4[%c0_4, %c0_5] : memref<16x128xf32, #tpu.memory_space<vmem>>, vector<16x128xf32>
    %c0_6 = arith.constant 0 : index
    %c0_7 = arith.constant 0 : index
    %3 = vector.load %arg5[%c0_6, %c0_7] : memref<16x128xf32, #tpu.memory_space<vmem>>, vector<16x128xf32>
    %4 = vector.extract_strided_slice %1 {offsets = [0, 0, 0], sizes = [1, 1, 8], strides = [1, 1, 1]} : vector<2x1x8xf32> to vector<1x1x8xf32>
    %5 = vector.shape_cast %4 : vector<1x1x8xf32> to vector<1x8xf32>
    %6 = vector.extract_strided_slice %1 {offsets = [1, 0, 0], sizes = [1, 1, 8], strides = [1, 1, 1]} : vector<2x1x8xf32> to vector<1x1x8xf32>
    %7 = vector.shape_cast %6 : vector<1x1x8xf32> to vector<1x8xf32>
    %c0_8 = arith.constant 0 : index
    %c0_9 = arith.constant 0 : index
    %c0_10 = arith.constant 0 : index
    %8 = vector.load %arg6[%c0_8, %c0_9, %c0_10] : memref<2x1x128xf32, #tpu.memory_space<vmem>>, vector<1x1x128xf32>
    %9 = vector.shape_cast %8 : vector<1x1x128xf32> to vector<1x128xf32>
    %c0_11 = arith.constant 0 : index
    %c0_12 = arith.constant 0 : index
    %c0_13 = arith.constant 0 : index
    %10 = vector.load %arg7[%c0_11, %c0_12, %c0_13] : memref<2x1x128xf32, #tpu.memory_space<vmem>>, vector<1x1x128xf32>
    %11 = vector.shape_cast %10 : vector<1x1x128xf32> to vector<1x128xf32>
    %c0_14 = arith.constant 0 : index
    %c0_15 = arith.constant 0 : index
    %c0_16 = arith.constant 0 : index
    %12 = vector.load %arg8[%c0_14, %c0_15, %c0_16] : memref<2x128x640xbf16, #tpu.memory_space<vmem>>, vector<1x128x640xbf16>
    %13 = vector.shape_cast %12 : vector<1x128x640xbf16> to vector<128x640xbf16>
    %c0_17 = arith.constant 0 : index
    %c0_18 = arith.constant 0 : index
    %c0_19 = arith.constant 0 : index
    %14 = vector.load %arg9[%c0_17, %c0_18, %c0_19] : memref<2x128x128xbf16, #tpu.memory_space<vmem>>, vector<1x128x128xbf16>
    %15 = vector.shape_cast %14 : vector<1x128x128xbf16> to vector<128x128xbf16>
    %c0_20 = arith.constant 0 : index
    %c0_21 = arith.constant 0 : index
    %c0_22 = arith.constant 0 : index
    %16 = vector.load %arg10[%c0_20, %c0_21, %c0_22] : memref<2x128x512xbf16, #tpu.memory_space<vmem>>, vector<1x128x512xbf16>
    %17 = vector.shape_cast %16 : vector<1x128x512xbf16> to vector<128x512xbf16>
    %c0_23 = arith.constant 0 : index
    %c0_24 = arith.constant 0 : index
    %c0_25 = arith.constant 0 : index
    %18 = vector.load %arg11[%c0_23, %c0_24, %c0_25] : memref<2x256x128xbf16, #tpu.memory_space<vmem>>, vector<1x256x128xbf16>
    %19 = vector.shape_cast %18 : vector<1x256x128xbf16> to vector<256x128xbf16>
    %20 = vector.extract_strided_slice %15 {offsets = [0, 0], sizes = [32, 128], strides = [1, 1]} : vector<128x128xbf16> to vector<32x128xbf16>
    %21 = vector.extract_strided_slice %15 {offsets = [32, 0], sizes = [32, 128], strides = [1, 1]} : vector<128x128xbf16> to vector<32x128xbf16>
    %22 = vector.extract_strided_slice %15 {offsets = [64, 0], sizes = [32, 128], strides = [1, 1]} : vector<128x128xbf16> to vector<32x128xbf16>
    %23 = vector.extract_strided_slice %15 {offsets = [96, 0], sizes = [32, 128], strides = [1, 1]} : vector<128x128xbf16> to vector<32x128xbf16>
    %24 = arith.mulf %0, %0 : vector<16x128xf32>
    %cst = arith.constant dense<0.000000e+00> : vector<16xf32>
    %25 = vector.multi_reduction <add>, %24, %cst [1] : vector<16x128xf32> to vector<16xf32>
    %26 = vector.shape_cast %25 : vector<16xf32> to vector<16x1xf32>
    %cst_26 = arith.constant 1.280000e+02 : f32
    %27 = vector.broadcast %cst_26 : f32 to vector<16x1xf32>
    %28 = arith.divf %26, %27 : vector<16x1xf32>
    %cst_27 = arith.constant 9.99999997E-7 : f32
    %29 = vector.broadcast %cst_27 : f32 to vector<16x1xf32>
    %30 = arith.addf %28, %29 : vector<16x1xf32>
    %31 = math.rsqrt %30 : vector<16x1xf32>
    %32 = vector.broadcast %31 : vector<16x1xf32> to vector<16x128xf32>
    %33 = arith.mulf %0, %32 : vector<16x128xf32>
    %34 = vector.broadcast %9 : vector<1x128xf32> to vector<16x128xf32>
    %35 = arith.mulf %33, %34 : vector<16x128xf32>
    %36 = arith.truncf %35 : vector<16x128xf32> to vector<16x128xbf16>
    %cst_28 = arith.constant dense<0.000000e+00> : vector<16x640xf32>
    %37 = tpu.matmul %36, %13, %cst_28 {dimension_numbers = #tpu.dot_dimension_numbers<[1], [0], [0], [1], [0, 0, 1, 1], [], []>} : vector<16x128xbf16>, vector<128x640xbf16>, vector<16x640xf32> -> vector<16x640xf32>
    %38 = vector.extract_strided_slice %37 {offsets = [0, 0], sizes = [16, 128], strides = [1, 1]} : vector<16x640xf32> to vector<16x128xf32>
    %39 = arith.mulf %38, %2 : vector<16x128xf32>
    %40 = vector.extract_strided_slice %37 {offsets = [0, 128], sizes = [16, 128], strides = [1, 1]} : vector<16x640xf32> to vector<16x128xf32>
    %41 = arith.mulf %40, %3 : vector<16x128xf32>
    %42 = arith.addf %39, %41 : vector<16x128xf32>
    %43 = arith.truncf %42 : vector<16x128xf32> to vector<16x128xbf16>
    %44 = vector.extract_strided_slice %37 {offsets = [0, 256], sizes = [16, 128], strides = [1, 1]} : vector<16x640xf32> to vector<16x128xf32>
    %45 = arith.mulf %44, %2 : vector<16x128xf32>
    %46 = vector.extract_strided_slice %37 {offsets = [0, 384], sizes = [16, 128], strides = [1, 1]} : vector<16x640xf32> to vector<16x128xf32>
    %47 = arith.mulf %46, %3 : vector<16x128xf32>
    %48 = arith.addf %45, %47 : vector<16x128xf32>
    %49 = arith.truncf %48 : vector<16x128xf32> to vector<16x128xbf16>
    %50 = vector.extract_strided_slice %37 {offsets = [0, 512], sizes = [16, 128], strides = [1, 1]} : vector<16x640xf32> to vector<16x128xf32>
    %51 = arith.truncf %50 : vector<16x128xf32> to vector<16x128xbf16>
    %52 = vector.extract_strided_slice %43 {offsets = [0, 0], sizes = [8, 128], strides = [1, 1]} : vector<16x128xbf16> to vector<8x128xbf16>
    %53 = vector.extract_strided_slice %49 {offsets = [0, 0], sizes = [8, 128], strides = [1, 1]} : vector<16x128xbf16> to vector<8x128xbf16>
    %54 = vector.extract_strided_slice %51 {offsets = [0, 0], sizes = [8, 128], strides = [1, 1]} : vector<16x128xbf16> to vector<8x128xbf16>
    %cst_29 = arith.constant 0.000000e+00 : f32
    %55 = vector.broadcast %cst_29 : f32 to vector<8x128xf32>
    %56 = vector.extract_strided_slice %52 {offsets = [0, 0], sizes = [8, 32], strides = [1, 1]} : vector<8x128xbf16> to vector<8x32xbf16>
    %57 = vector.extract_strided_slice %53 {offsets = [0, 0], sizes = [8, 32], strides = [1, 1]} : vector<8x128xbf16> to vector<8x32xbf16>
    %58 = vector.extract_strided_slice %54 {offsets = [0, 0], sizes = [8, 32], strides = [1, 1]} : vector<8x128xbf16> to vector<8x32xbf16>
    %cst_30 = arith.constant dense<0.000000e+00> : vector<8x8xf32>
    %59 = tpu.matmul %56, %57, %cst_30 {dimension_numbers = #tpu.dot_dimension_numbers<[1], [1], [0], [0], [0, 0, 1, 0], [], []>} : vector<8x32xbf16>, vector<8x32xbf16>, vector<8x8xf32> -> vector<8x8xf32>
    %cst_31 = arith.constant 0.176776692 : f32
    %60 = vector.broadcast %cst_31 : f32 to vector<8x8xf32>
    %61 = arith.mulf %59, %60 : vector<8x8xf32>
    %62 = vector.broadcast %5 : vector<1x8xf32> to vector<8x8xf32>
    %63 = arith.addf %61, %62 : vector<8x8xf32>
    %cst_32 = arith.constant dense<0xFF800000> : vector<8xf32>
    %64 = vector.multi_reduction <maximumf>, %63, %cst_32 [1] : vector<8x8xf32> to vector<8xf32>
    %65 = vector.shape_cast %64 : vector<8xf32> to vector<8x1xf32>
    %66 = vector.broadcast %65 : vector<8x1xf32> to vector<8x8xf32>
    %67 = arith.subf %63, %66 : vector<8x8xf32>
    %68 = math.exp %67 : vector<8x8xf32>
    %cst_33 = arith.constant dense<0.000000e+00> : vector<8xf32>
    %69 = vector.multi_reduction <add>, %68, %cst_33 [1] : vector<8x8xf32> to vector<8xf32>
    %70 = vector.shape_cast %69 : vector<8xf32> to vector<8x1xf32>
    %71 = vector.broadcast %70 : vector<8x1xf32> to vector<8x8xf32>
    %72 = arith.divf %68, %71 : vector<8x8xf32>
    %73 = arith.truncf %72 : vector<8x8xf32> to vector<8x8xbf16>
    %cst_34 = arith.constant dense<0.000000e+00> : vector<8x32xf32>
    %74 = tpu.matmul %73, %58, %cst_34 {dimension_numbers = #tpu.dot_dimension_numbers<[1], [0], [0], [1], [0, 0, 1, 1], [], []>} : vector<8x8xbf16>, vector<8x32xbf16>, vector<8x32xf32> -> vector<8x32xf32>
    %75 = arith.truncf %74 : vector<8x32xf32> to vector<8x32xbf16>
    %cst_35 = arith.constant dense<0.000000e+00> : vector<8x128xf32>
    %76 = tpu.matmul %75, %20, %cst_35 {dimension_numbers = #tpu.dot_dimension_numbers<[1], [0], [0], [1], [0, 0, 1, 1], [], []>} : vector<8x32xbf16>, vector<32x128xbf16>, vector<8x128xf32> -> vector<8x128xf32>
    %77 = arith.addf %55, %76 : vector<8x128xf32>
    %78 = vector.extract_strided_slice %52 {offsets = [0, 32], sizes = [8, 32], strides = [1, 1]} : vector<8x128xbf16> to vector<8x32xbf16>
    %79 = vector.extract_strided_slice %53 {offsets = [0, 32], sizes = [8, 32], strides = [1, 1]} : vector<8x128xbf16> to vector<8x32xbf16>
    %80 = vector.extract_strided_slice %54 {offsets = [0, 32], sizes = [8, 32], strides = [1, 1]} : vector<8x128xbf16> to vector<8x32xbf16>
    %cst_36 = arith.constant dense<0.000000e+00> : vector<8x8xf32>
    %81 = tpu.matmul %78, %79, %cst_36 {dimension_numbers = #tpu.dot_dimension_numbers<[1], [1], [0], [0], [0, 0, 1, 0], [], []>} : vector<8x32xbf16>, vector<8x32xbf16>, vector<8x8xf32> -> vector<8x8xf32>
    %cst_37 = arith.constant 0.176776692 : f32
    %82 = vector.broadcast %cst_37 : f32 to vector<8x8xf32>
    %83 = arith.mulf %81, %82 : vector<8x8xf32>
    %84 = vector.broadcast %5 : vector<1x8xf32> to vector<8x8xf32>
    %85 = arith.addf %83, %84 : vector<8x8xf32>
    %cst_38 = arith.constant dense<0xFF800000> : vector<8xf32>
    %86 = vector.multi_reduction <maximumf>, %85, %cst_38 [1] : vector<8x8xf32> to vector<8xf32>
    %87 = vector.shape_cast %86 : vector<8xf32> to vector<8x1xf32>
    %88 = vector.broadcast %87 : vector<8x1xf32> to vector<8x8xf32>
    %89 = arith.subf %85, %88 : vector<8x8xf32>
    %90 = math.exp %89 : vector<8x8xf32>
    %cst_39 = arith.constant dense<0.000000e+00> : vector<8xf32>
    %91 = vector.multi_reduction <add>, %90, %cst_39 [1] : vector<8x8xf32> to vector<8xf32>
    %92 = vector.shape_cast %91 : vector<8xf32> to vector<8x1xf32>
    %93 = vector.broadcast %92 : vector<8x1xf32> to vector<8x8xf32>
    %94 = arith.divf %90, %93 : vector<8x8xf32>
    %95 = arith.truncf %94 : vector<8x8xf32> to vector<8x8xbf16>
    %cst_40 = arith.constant dense<0.000000e+00> : vector<8x32xf32>
    %96 = tpu.matmul %95, %80, %cst_40 {dimension_numbers = #tpu.dot_dimension_numbers<[1], [0], [0], [1], [0, 0, 1, 1], [], []>} : vector<8x8xbf16>, vector<8x32xbf16>, vector<8x32xf32> -> vector<8x32xf32>
    %97 = arith.truncf %96 : vector<8x32xf32> to vector<8x32xbf16>
    %cst_41 = arith.constant dense<0.000000e+00> : vector<8x128xf32>
    %98 = tpu.matmul %97, %21, %cst_41 {dimension_numbers = #tpu.dot_dimension_numbers<[1], [0], [0], [1], [0, 0, 1, 1], [], []>} : vector<8x32xbf16>, vector<32x128xbf16>, vector<8x128xf32> -> vector<8x128xf32>
    %99 = arith.addf %77, %98 : vector<8x128xf32>
    %100 = vector.extract_strided_slice %52 {offsets = [0, 64], sizes = [8, 32], strides = [1, 1]} : vector<8x128xbf16> to vector<8x32xbf16>
    %101 = vector.extract_strided_slice %53 {offsets = [0, 64], sizes = [8, 32], strides = [1, 1]} : vector<8x128xbf16> to vector<8x32xbf16>
    %102 = vector.extract_strided_slice %54 {offsets = [0, 64], sizes = [8, 32], strides = [1, 1]} : vector<8x128xbf16> to vector<8x32xbf16>
    %cst_42 = arith.constant dense<0.000000e+00> : vector<8x8xf32>
    %103 = tpu.matmul %100, %101, %cst_42 {dimension_numbers = #tpu.dot_dimension_numbers<[1], [1], [0], [0], [0, 0, 1, 0], [], []>} : vector<8x32xbf16>, vector<8x32xbf16>, vector<8x8xf32> -> vector<8x8xf32>
    %cst_43 = arith.constant 0.176776692 : f32
    %104 = vector.broadcast %cst_43 : f32 to vector<8x8xf32>
    %105 = arith.mulf %103, %104 : vector<8x8xf32>
    %106 = vector.broadcast %5 : vector<1x8xf32> to vector<8x8xf32>
    %107 = arith.addf %105, %106 : vector<8x8xf32>
    %cst_44 = arith.constant dense<0xFF800000> : vector<8xf32>
    %108 = vector.multi_reduction <maximumf>, %107, %cst_44 [1] : vector<8x8xf32> to vector<8xf32>
    %109 = vector.shape_cast %108 : vector<8xf32> to vector<8x1xf32>
    %110 = vector.broadcast %109 : vector<8x1xf32> to vector<8x8xf32>
    %111 = arith.subf %107, %110 : vector<8x8xf32>
    %112 = math.exp %111 : vector<8x8xf32>
    %cst_45 = arith.constant dense<0.000000e+00> : vector<8xf32>
    %113 = vector.multi_reduction <add>, %112, %cst_45 [1] : vector<8x8xf32> to vector<8xf32>
    %114 = vector.shape_cast %113 : vector<8xf32> to vector<8x1xf32>
    %115 = vector.broadcast %114 : vector<8x1xf32> to vector<8x8xf32>
    %116 = arith.divf %112, %115 : vector<8x8xf32>
    %117 = arith.truncf %116 : vector<8x8xf32> to vector<8x8xbf16>
    %cst_46 = arith.constant dense<0.000000e+00> : vector<8x32xf32>
    %118 = tpu.matmul %117, %102, %cst_46 {dimension_numbers = #tpu.dot_dimension_numbers<[1], [0], [0], [1], [0, 0, 1, 1], [], []>} : vector<8x8xbf16>, vector<8x32xbf16>, vector<8x32xf32> -> vector<8x32xf32>
    %119 = arith.truncf %118 : vector<8x32xf32> to vector<8x32xbf16>
    %cst_47 = arith.constant dense<0.000000e+00> : vector<8x128xf32>
    %120 = tpu.matmul %119, %22, %cst_47 {dimension_numbers = #tpu.dot_dimension_numbers<[1], [0], [0], [1], [0, 0, 1, 1], [], []>} : vector<8x32xbf16>, vector<32x128xbf16>, vector<8x128xf32> -> vector<8x128xf32>
    %121 = arith.addf %99, %120 : vector<8x128xf32>
    %122 = vector.extract_strided_slice %52 {offsets = [0, 96], sizes = [8, 32], strides = [1, 1]} : vector<8x128xbf16> to vector<8x32xbf16>
    %123 = vector.extract_strided_slice %53 {offsets = [0, 96], sizes = [8, 32], strides = [1, 1]} : vector<8x128xbf16> to vector<8x32xbf16>
    %124 = vector.extract_strided_slice %54 {offsets = [0, 96], sizes = [8, 32], strides = [1, 1]} : vector<8x128xbf16> to vector<8x32xbf16>
    %cst_48 = arith.constant dense<0.000000e+00> : vector<8x8xf32>
    %125 = tpu.matmul %122, %123, %cst_48 {dimension_numbers = #tpu.dot_dimension_numbers<[1], [1], [0], [0], [0, 0, 1, 0], [], []>} : vector<8x32xbf16>, vector<8x32xbf16>, vector<8x8xf32> -> vector<8x8xf32>
    %cst_49 = arith.constant 0.176776692 : f32
    %126 = vector.broadcast %cst_49 : f32 to vector<8x8xf32>
    %127 = arith.mulf %125, %126 : vector<8x8xf32>
    %128 = vector.broadcast %5 : vector<1x8xf32> to vector<8x8xf32>
    %129 = arith.addf %127, %128 : vector<8x8xf32>
    %cst_50 = arith.constant dense<0xFF800000> : vector<8xf32>
    %130 = vector.multi_reduction <maximumf>, %129, %cst_50 [1] : vector<8x8xf32> to vector<8xf32>
    %131 = vector.shape_cast %130 : vector<8xf32> to vector<8x1xf32>
    %132 = vector.broadcast %131 : vector<8x1xf32> to vector<8x8xf32>
    %133 = arith.subf %129, %132 : vector<8x8xf32>
    %134 = math.exp %133 : vector<8x8xf32>
    %cst_51 = arith.constant dense<0.000000e+00> : vector<8xf32>
    %135 = vector.multi_reduction <add>, %134, %cst_51 [1] : vector<8x8xf32> to vector<8xf32>
    %136 = vector.shape_cast %135 : vector<8xf32> to vector<8x1xf32>
    %137 = vector.broadcast %136 : vector<8x1xf32> to vector<8x8xf32>
    %138 = arith.divf %134, %137 : vector<8x8xf32>
    %139 = arith.truncf %138 : vector<8x8xf32> to vector<8x8xbf16>
    %cst_52 = arith.constant dense<0.000000e+00> : vector<8x32xf32>
    %140 = tpu.matmul %139, %124, %cst_52 {dimension_numbers = #tpu.dot_dimension_numbers<[1], [0], [0], [1], [0, 0, 1, 1], [], []>} : vector<8x8xbf16>, vector<8x32xbf16>, vector<8x32xf32> -> vector<8x32xf32>
    %141 = arith.truncf %140 : vector<8x32xf32> to vector<8x32xbf16>
    %cst_53 = arith.constant dense<0.000000e+00> : vector<8x128xf32>
    %142 = tpu.matmul %141, %23, %cst_53 {dimension_numbers = #tpu.dot_dimension_numbers<[1], [0], [0], [1], [0, 0, 1, 1], [], []>} : vector<8x32xbf16>, vector<32x128xbf16>, vector<8x128xf32> -> vector<8x128xf32>
    %143 = arith.addf %121, %142 : vector<8x128xf32>
    %144 = vector.extract_strided_slice %43 {offsets = [8, 0], sizes = [8, 128], strides = [1, 1]} : vector<16x128xbf16> to vector<8x128xbf16>
    %145 = vector.extract_strided_slice %49 {offsets = [8, 0], sizes = [8, 128], strides = [1, 1]} : vector<16x128xbf16> to vector<8x128xbf16>
    %146 = vector.extract_strided_slice %51 {offsets = [8, 0], sizes = [8, 128], strides = [1, 1]} : vector<16x128xbf16> to vector<8x128xbf16>
    %cst_54 = arith.constant 0.000000e+00 : f32
    %147 = vector.broadcast %cst_54 : f32 to vector<8x128xf32>
    %148 = vector.extract_strided_slice %144 {offsets = [0, 0], sizes = [8, 32], strides = [1, 1]} : vector<8x128xbf16> to vector<8x32xbf16>
    %149 = vector.extract_strided_slice %145 {offsets = [0, 0], sizes = [8, 32], strides = [1, 1]} : vector<8x128xbf16> to vector<8x32xbf16>
    %150 = vector.extract_strided_slice %146 {offsets = [0, 0], sizes = [8, 32], strides = [1, 1]} : vector<8x128xbf16> to vector<8x32xbf16>
    %cst_55 = arith.constant dense<0.000000e+00> : vector<8x8xf32>
    %151 = tpu.matmul %148, %149, %cst_55 {dimension_numbers = #tpu.dot_dimension_numbers<[1], [1], [0], [0], [0, 0, 1, 0], [], []>} : vector<8x32xbf16>, vector<8x32xbf16>, vector<8x8xf32> -> vector<8x8xf32>
    %cst_56 = arith.constant 0.176776692 : f32
    %152 = vector.broadcast %cst_56 : f32 to vector<8x8xf32>
    %153 = arith.mulf %151, %152 : vector<8x8xf32>
    %154 = vector.broadcast %7 : vector<1x8xf32> to vector<8x8xf32>
    %155 = arith.addf %153, %154 : vector<8x8xf32>
    %cst_57 = arith.constant dense<0xFF800000> : vector<8xf32>
    %156 = vector.multi_reduction <maximumf>, %155, %cst_57 [1] : vector<8x8xf32> to vector<8xf32>
    %157 = vector.shape_cast %156 : vector<8xf32> to vector<8x1xf32>
    %158 = vector.broadcast %157 : vector<8x1xf32> to vector<8x8xf32>
    %159 = arith.subf %155, %158 : vector<8x8xf32>
    %160 = math.exp %159 : vector<8x8xf32>
    %cst_58 = arith.constant dense<0.000000e+00> : vector<8xf32>
    %161 = vector.multi_reduction <add>, %160, %cst_58 [1] : vector<8x8xf32> to vector<8xf32>
    %162 = vector.shape_cast %161 : vector<8xf32> to vector<8x1xf32>
    %163 = vector.broadcast %162 : vector<8x1xf32> to vector<8x8xf32>
    %164 = arith.divf %160, %163 : vector<8x8xf32>
    %165 = arith.truncf %164 : vector<8x8xf32> to vector<8x8xbf16>
    %cst_59 = arith.constant dense<0.000000e+00> : vector<8x32xf32>
    %166 = tpu.matmul %165, %150, %cst_59 {dimension_numbers = #tpu.dot_dimension_numbers<[1], [0], [0], [1], [0, 0, 1, 1], [], []>} : vector<8x8xbf16>, vector<8x32xbf16>, vector<8x32xf32> -> vector<8x32xf32>
    %167 = arith.truncf %166 : vector<8x32xf32> to vector<8x32xbf16>
    %cst_60 = arith.constant dense<0.000000e+00> : vector<8x128xf32>
    %168 = tpu.matmul %167, %20, %cst_60 {dimension_numbers = #tpu.dot_dimension_numbers<[1], [0], [0], [1], [0, 0, 1, 1], [], []>} : vector<8x32xbf16>, vector<32x128xbf16>, vector<8x128xf32> -> vector<8x128xf32>
    %169 = arith.addf %147, %168 : vector<8x128xf32>
    %170 = vector.extract_strided_slice %144 {offsets = [0, 32], sizes = [8, 32], strides = [1, 1]} : vector<8x128xbf16> to vector<8x32xbf16>
    %171 = vector.extract_strided_slice %145 {offsets = [0, 32], sizes = [8, 32], strides = [1, 1]} : vector<8x128xbf16> to vector<8x32xbf16>
    %172 = vector.extract_strided_slice %146 {offsets = [0, 32], sizes = [8, 32], strides = [1, 1]} : vector<8x128xbf16> to vector<8x32xbf16>
    %cst_61 = arith.constant dense<0.000000e+00> : vector<8x8xf32>
    %173 = tpu.matmul %170, %171, %cst_61 {dimension_numbers = #tpu.dot_dimension_numbers<[1], [1], [0], [0], [0, 0, 1, 0], [], []>} : vector<8x32xbf16>, vector<8x32xbf16>, vector<8x8xf32> -> vector<8x8xf32>
    %cst_62 = arith.constant 0.176776692 : f32
    %174 = vector.broadcast %cst_62 : f32 to vector<8x8xf32>
    %175 = arith.mulf %173, %174 : vector<8x8xf32>
    %176 = vector.broadcast %7 : vector<1x8xf32> to vector<8x8xf32>
    %177 = arith.addf %175, %176 : vector<8x8xf32>
    %cst_63 = arith.constant dense<0xFF800000> : vector<8xf32>
    %178 = vector.multi_reduction <maximumf>, %177, %cst_63 [1] : vector<8x8xf32> to vector<8xf32>
    %179 = vector.shape_cast %178 : vector<8xf32> to vector<8x1xf32>
    %180 = vector.broadcast %179 : vector<8x1xf32> to vector<8x8xf32>
    %181 = arith.subf %177, %180 : vector<8x8xf32>
    %182 = math.exp %181 : vector<8x8xf32>
    %cst_64 = arith.constant dense<0.000000e+00> : vector<8xf32>
    %183 = vector.multi_reduction <add>, %182, %cst_64 [1] : vector<8x8xf32> to vector<8xf32>
    %184 = vector.shape_cast %183 : vector<8xf32> to vector<8x1xf32>
    %185 = vector.broadcast %184 : vector<8x1xf32> to vector<8x8xf32>
    %186 = arith.divf %182, %185 : vector<8x8xf32>
    %187 = arith.truncf %186 : vector<8x8xf32> to vector<8x8xbf16>
    %cst_65 = arith.constant dense<0.000000e+00> : vector<8x32xf32>
    %188 = tpu.matmul %187, %172, %cst_65 {dimension_numbers = #tpu.dot_dimension_numbers<[1], [0], [0], [1], [0, 0, 1, 1], [], []>} : vector<8x8xbf16>, vector<8x32xbf16>, vector<8x32xf32> -> vector<8x32xf32>
    %189 = arith.truncf %188 : vector<8x32xf32> to vector<8x32xbf16>
    %cst_66 = arith.constant dense<0.000000e+00> : vector<8x128xf32>
    %190 = tpu.matmul %189, %21, %cst_66 {dimension_numbers = #tpu.dot_dimension_numbers<[1], [0], [0], [1], [0, 0, 1, 1], [], []>} : vector<8x32xbf16>, vector<32x128xbf16>, vector<8x128xf32> -> vector<8x128xf32>
    %191 = arith.addf %169, %190 : vector<8x128xf32>
    %192 = vector.extract_strided_slice %144 {offsets = [0, 64], sizes = [8, 32], strides = [1, 1]} : vector<8x128xbf16> to vector<8x32xbf16>
    %193 = vector.extract_strided_slice %145 {offsets = [0, 64], sizes = [8, 32], strides = [1, 1]} : vector<8x128xbf16> to vector<8x32xbf16>
    %194 = vector.extract_strided_slice %146 {offsets = [0, 64], sizes = [8, 32], strides = [1, 1]} : vector<8x128xbf16> to vector<8x32xbf16>
    %cst_67 = arith.constant dense<0.000000e+00> : vector<8x8xf32>
    %195 = tpu.matmul %192, %193, %cst_67 {dimension_numbers = #tpu.dot_dimension_numbers<[1], [1], [0], [0], [0, 0, 1, 0], [], []>} : vector<8x32xbf16>, vector<8x32xbf16>, vector<8x8xf32> -> vector<8x8xf32>
    %cst_68 = arith.constant 0.176776692 : f32
    %196 = vector.broadcast %cst_68 : f32 to vector<8x8xf32>
    %197 = arith.mulf %195, %196 : vector<8x8xf32>
    %198 = vector.broadcast %7 : vector<1x8xf32> to vector<8x8xf32>
    %199 = arith.addf %197, %198 : vector<8x8xf32>
    %cst_69 = arith.constant dense<0xFF800000> : vector<8xf32>
    %200 = vector.multi_reduction <maximumf>, %199, %cst_69 [1] : vector<8x8xf32> to vector<8xf32>
    %201 = vector.shape_cast %200 : vector<8xf32> to vector<8x1xf32>
    %202 = vector.broadcast %201 : vector<8x1xf32> to vector<8x8xf32>
    %203 = arith.subf %199, %202 : vector<8x8xf32>
    %204 = math.exp %203 : vector<8x8xf32>
    %cst_70 = arith.constant dense<0.000000e+00> : vector<8xf32>
    %205 = vector.multi_reduction <add>, %204, %cst_70 [1] : vector<8x8xf32> to vector<8xf32>
    %206 = vector.shape_cast %205 : vector<8xf32> to vector<8x1xf32>
    %207 = vector.broadcast %206 : vector<8x1xf32> to vector<8x8xf32>
    %208 = arith.divf %204, %207 : vector<8x8xf32>
    %209 = arith.truncf %208 : vector<8x8xf32> to vector<8x8xbf16>
    %cst_71 = arith.constant dense<0.000000e+00> : vector<8x32xf32>
    %210 = tpu.matmul %209, %194, %cst_71 {dimension_numbers = #tpu.dot_dimension_numbers<[1], [0], [0], [1], [0, 0, 1, 1], [], []>} : vector<8x8xbf16>, vector<8x32xbf16>, vector<8x32xf32> -> vector<8x32xf32>
    %211 = arith.truncf %210 : vector<8x32xf32> to vector<8x32xbf16>
    %cst_72 = arith.constant dense<0.000000e+00> : vector<8x128xf32>
    %212 = tpu.matmul %211, %22, %cst_72 {dimension_numbers = #tpu.dot_dimension_numbers<[1], [0], [0], [1], [0, 0, 1, 1], [], []>} : vector<8x32xbf16>, vector<32x128xbf16>, vector<8x128xf32> -> vector<8x128xf32>
    %213 = arith.addf %191, %212 : vector<8x128xf32>
    %214 = vector.extract_strided_slice %144 {offsets = [0, 96], sizes = [8, 32], strides = [1, 1]} : vector<8x128xbf16> to vector<8x32xbf16>
    %215 = vector.extract_strided_slice %145 {offsets = [0, 96], sizes = [8, 32], strides = [1, 1]} : vector<8x128xbf16> to vector<8x32xbf16>
    %216 = vector.extract_strided_slice %146 {offsets = [0, 96], sizes = [8, 32], strides = [1, 1]} : vector<8x128xbf16> to vector<8x32xbf16>
    %cst_73 = arith.constant dense<0.000000e+00> : vector<8x8xf32>
    %217 = tpu.matmul %214, %215, %cst_73 {dimension_numbers = #tpu.dot_dimension_numbers<[1], [1], [0], [0], [0, 0, 1, 0], [], []>} : vector<8x32xbf16>, vector<8x32xbf16>, vector<8x8xf32> -> vector<8x8xf32>
    %cst_74 = arith.constant 0.176776692 : f32
    %218 = vector.broadcast %cst_74 : f32 to vector<8x8xf32>
    %219 = arith.mulf %217, %218 : vector<8x8xf32>
    %220 = vector.broadcast %7 : vector<1x8xf32> to vector<8x8xf32>
    %221 = arith.addf %219, %220 : vector<8x8xf32>
    %cst_75 = arith.constant dense<0xFF800000> : vector<8xf32>
    %222 = vector.multi_reduction <maximumf>, %221, %cst_75 [1] : vector<8x8xf32> to vector<8xf32>
    %223 = vector.shape_cast %222 : vector<8xf32> to vector<8x1xf32>
    %224 = vector.broadcast %223 : vector<8x1xf32> to vector<8x8xf32>
    %225 = arith.subf %221, %224 : vector<8x8xf32>
    %226 = math.exp %225 : vector<8x8xf32>
    %cst_76 = arith.constant dense<0.000000e+00> : vector<8xf32>
    %227 = vector.multi_reduction <add>, %226, %cst_76 [1] : vector<8x8xf32> to vector<8xf32>
    %228 = vector.shape_cast %227 : vector<8xf32> to vector<8x1xf32>
    %229 = vector.broadcast %228 : vector<8x1xf32> to vector<8x8xf32>
    %230 = arith.divf %226, %229 : vector<8x8xf32>
    %231 = arith.truncf %230 : vector<8x8xf32> to vector<8x8xbf16>
    %cst_77 = arith.constant dense<0.000000e+00> : vector<8x32xf32>
    %232 = tpu.matmul %231, %216, %cst_77 {dimension_numbers = #tpu.dot_dimension_numbers<[1], [0], [0], [1], [0, 0, 1, 1], [], []>} : vector<8x8xbf16>, vector<8x32xbf16>, vector<8x32xf32> -> vector<8x32xf32>
    %233 = arith.truncf %232 : vector<8x32xf32> to vector<8x32xbf16>
    %cst_78 = arith.constant dense<0.000000e+00> : vector<8x128xf32>
    %234 = tpu.matmul %233, %23, %cst_78 {dimension_numbers = #tpu.dot_dimension_numbers<[1], [0], [0], [1], [0, 0, 1, 1], [], []>} : vector<8x32xbf16>, vector<32x128xbf16>, vector<8x128xf32> -> vector<8x128xf32>
    %235 = arith.addf %213, %234 : vector<8x128xf32>
    %236 = tpu.concatenate %143, %235 in 0 : vector<8x128xf32>, vector<8x128xf32> -> vector<16x128xf32>
    %237 = arith.addf %0, %236 : vector<16x128xf32>
    %238 = arith.mulf %237, %237 : vector<16x128xf32>
    %cst_79 = arith.constant dense<0.000000e+00> : vector<16xf32>
    %239 = vector.multi_reduction <add>, %238, %cst_79 [1] : vector<16x128xf32> to vector<16xf32>
    %240 = vector.shape_cast %239 : vector<16xf32> to vector<16x1xf32>
    %cst_80 = arith.constant 1.280000e+02 : f32
    %241 = vector.broadcast %cst_80 : f32 to vector<16x1xf32>
    %242 = arith.divf %240, %241 : vector<16x1xf32>
    %cst_81 = arith.constant 9.99999997E-7 : f32
    %243 = vector.broadcast %cst_81 : f32 to vector<16x1xf32>
    %244 = arith.addf %242, %243 : vector<16x1xf32>
    %245 = math.rsqrt %244 : vector<16x1xf32>
    %246 = vector.broadcast %245 : vector<16x1xf32> to vector<16x128xf32>
    %247 = arith.mulf %237, %246 : vector<16x128xf32>
    %248 = vector.broadcast %11 : vector<1x128xf32> to vector<16x128xf32>
    %249 = arith.mulf %247, %248 : vector<16x128xf32>
    %250 = arith.truncf %249 : vector<16x128xf32> to vector<16x128xbf16>
    %cst_82 = arith.constant dense<0.000000e+00> : vector<16x512xf32>
    %251 = tpu.matmul %250, %17, %cst_82 {dimension_numbers = #tpu.dot_dimension_numbers<[1], [0], [0], [1], [0, 0, 1, 1], [], []>} : vector<16x128xbf16>, vector<128x512xbf16>, vector<16x512xf32> -> vector<16x512xf32>
    %252 = vector.extract_strided_slice %251 {offsets = [0, 0], sizes = [16, 256], strides = [1, 1]} : vector<16x512xf32> to vector<16x256xf32>
    %253 = vector.extract_strided_slice %251 {offsets = [0, 256], sizes = [16, 256], strides = [1, 1]} : vector<16x512xf32> to vector<16x256xf32>
    %cst_83 = arith.constant 0.000000e+00 : f32
    %254 = vector.broadcast %cst_83 : f32 to vector<16x256xf32>
    %255 = arith.subf %254, %252 : vector<16x256xf32>
    %256 = math.exp %255 : vector<16x256xf32>
    %cst_84 = arith.constant 1.000000e+00 : f32
    %257 = vector.broadcast %cst_84 : f32 to vector<16x256xf32>
    %258 = arith.addf %257, %256 : vector<16x256xf32>
    %259 = arith.divf %252, %258 : vector<16x256xf32>
    %260 = arith.mulf %259, %253 : vector<16x256xf32>
    %261 = arith.truncf %260 : vector<16x256xf32> to vector<16x256xbf16>
    %cst_85 = arith.constant dense<0.000000e+00> : vector<16x128xf32>
    %262 = tpu.matmul %261, %19, %cst_85 {dimension_numbers = #tpu.dot_dimension_numbers<[1], [0], [0], [1], [0, 0, 1, 1], [], []>} : vector<16x256xbf16>, vector<256x128xbf16>, vector<16x128xf32> -> vector<16x128xf32>
    %263 = arith.addf %237, %262 : vector<16x128xf32>
    %c1 = arith.constant 1 : index
    %c0_86 = arith.constant 0 : index
    %c0_87 = arith.constant 0 : index
    %264 = vector.load %arg6[%c1, %c0_86, %c0_87] : memref<2x1x128xf32, #tpu.memory_space<vmem>>, vector<1x1x128xf32>
    %265 = vector.shape_cast %264 : vector<1x1x128xf32> to vector<1x128xf32>
    %c1_88 = arith.constant 1 : index
    %c0_89 = arith.constant 0 : index
    %c0_90 = arith.constant 0 : index
    %266 = vector.load %arg7[%c1_88, %c0_89, %c0_90] : memref<2x1x128xf32, #tpu.memory_space<vmem>>, vector<1x1x128xf32>
    %267 = vector.shape_cast %266 : vector<1x1x128xf32> to vector<1x128xf32>
    %c1_91 = arith.constant 1 : index
    %c0_92 = arith.constant 0 : index
    %c0_93 = arith.constant 0 : index
    %268 = vector.load %arg8[%c1_91, %c0_92, %c0_93] : memref<2x128x640xbf16, #tpu.memory_space<vmem>>, vector<1x128x640xbf16>
    %269 = vector.shape_cast %268 : vector<1x128x640xbf16> to vector<128x640xbf16>
    %c1_94 = arith.constant 1 : index
    %c0_95 = arith.constant 0 : index
    %c0_96 = arith.constant 0 : index
    %270 = vector.load %arg9[%c1_94, %c0_95, %c0_96] : memref<2x128x128xbf16, #tpu.memory_space<vmem>>, vector<1x128x128xbf16>
    %271 = vector.shape_cast %270 : vector<1x128x128xbf16> to vector<128x128xbf16>
    %c1_97 = arith.constant 1 : index
    %c0_98 = arith.constant 0 : index
    %c0_99 = arith.constant 0 : index
    %272 = vector.load %arg10[%c1_97, %c0_98, %c0_99] : memref<2x128x512xbf16, #tpu.memory_space<vmem>>, vector<1x128x512xbf16>
    %273 = vector.shape_cast %272 : vector<1x128x512xbf16> to vector<128x512xbf16>
    %c1_100 = arith.constant 1 : index
    %c0_101 = arith.constant 0 : index
    %c0_102 = arith.constant 0 : index
    %274 = vector.load %arg11[%c1_100, %c0_101, %c0_102] : memref<2x256x128xbf16, #tpu.memory_space<vmem>>, vector<1x256x128xbf16>
    %275 = vector.shape_cast %274 : vector<1x256x128xbf16> to vector<256x128xbf16>
    %276 = vector.extract_strided_slice %271 {offsets = [0, 0], sizes = [32, 128], strides = [1, 1]} : vector<128x128xbf16> to vector<32x128xbf16>
    %277 = vector.extract_strided_slice %271 {offsets = [32, 0], sizes = [32, 128], strides = [1, 1]} : vector<128x128xbf16> to vector<32x128xbf16>
    %278 = vector.extract_strided_slice %271 {offsets = [64, 0], sizes = [32, 128], strides = [1, 1]} : vector<128x128xbf16> to vector<32x128xbf16>
    %279 = vector.extract_strided_slice %271 {offsets = [96, 0], sizes = [32, 128], strides = [1, 1]} : vector<128x128xbf16> to vector<32x128xbf16>
    %280 = arith.mulf %263, %263 : vector<16x128xf32>
    %cst_103 = arith.constant dense<0.000000e+00> : vector<16xf32>
    %281 = vector.multi_reduction <add>, %280, %cst_103 [1] : vector<16x128xf32> to vector<16xf32>
    %282 = vector.shape_cast %281 : vector<16xf32> to vector<16x1xf32>
    %cst_104 = arith.constant 1.280000e+02 : f32
    %283 = vector.broadcast %cst_104 : f32 to vector<16x1xf32>
    %284 = arith.divf %282, %283 : vector<16x1xf32>
    %cst_105 = arith.constant 9.99999997E-7 : f32
    %285 = vector.broadcast %cst_105 : f32 to vector<16x1xf32>
    %286 = arith.addf %284, %285 : vector<16x1xf32>
    %287 = math.rsqrt %286 : vector<16x1xf32>
    %288 = vector.broadcast %287 : vector<16x1xf32> to vector<16x128xf32>
    %289 = arith.mulf %263, %288 : vector<16x128xf32>
    %290 = vector.broadcast %265 : vector<1x128xf32> to vector<16x128xf32>
    %291 = arith.mulf %289, %290 : vector<16x128xf32>
    %292 = arith.truncf %291 : vector<16x128xf32> to vector<16x128xbf16>
    %cst_106 = arith.constant dense<0.000000e+00> : vector<16x640xf32>
    %293 = tpu.matmul %292, %269, %cst_106 {dimension_numbers = #tpu.dot_dimension_numbers<[1], [0], [0], [1], [0, 0, 1, 1], [], []>} : vector<16x128xbf16>, vector<128x640xbf16>, vector<16x640xf32> -> vector<16x640xf32>
    %294 = vector.extract_strided_slice %293 {offsets = [0, 0], sizes = [16, 128], strides = [1, 1]} : vector<16x640xf32> to vector<16x128xf32>
    %295 = arith.mulf %294, %2 : vector<16x128xf32>
    %296 = vector.extract_strided_slice %293 {offsets = [0, 128], sizes = [16, 128], strides = [1, 1]} : vector<16x640xf32> to vector<16x128xf32>
    %297 = arith.mulf %296, %3 : vector<16x128xf32>
    %298 = arith.addf %295, %297 : vector<16x128xf32>
    %299 = arith.truncf %298 : vector<16x128xf32> to vector<16x128xbf16>
    %300 = vector.extract_strided_slice %293 {offsets = [0, 256], sizes = [16, 128], strides = [1, 1]} : vector<16x640xf32> to vector<16x128xf32>
    %301 = arith.mulf %300, %2 : vector<16x128xf32>
    %302 = vector.extract_strided_slice %293 {offsets = [0, 384], sizes = [16, 128], strides = [1, 1]} : vector<16x640xf32> to vector<16x128xf32>
    %303 = arith.mulf %302, %3 : vector<16x128xf32>
    %304 = arith.addf %301, %303 : vector<16x128xf32>
    %305 = arith.truncf %304 : vector<16x128xf32> to vector<16x128xbf16>
    %306 = vector.extract_strided_slice %293 {offsets = [0, 512], sizes = [16, 128], strides = [1, 1]} : vector<16x640xf32> to vector<16x128xf32>
    %307 = arith.truncf %306 : vector<16x128xf32> to vector<16x128xbf16>
    %308 = vector.extract_strided_slice %299 {offsets = [0, 0], sizes = [8, 128], strides = [1, 1]} : vector<16x128xbf16> to vector<8x128xbf16>
    %309 = vector.extract_strided_slice %305 {offsets = [0, 0], sizes = [8, 128], strides = [1, 1]} : vector<16x128xbf16> to vector<8x128xbf16>
    %310 = vector.extract_strided_slice %307 {offsets = [0, 0], sizes = [8, 128], strides = [1, 1]} : vector<16x128xbf16> to vector<8x128xbf16>
    %cst_107 = arith.constant 0.000000e+00 : f32
    %311 = vector.broadcast %cst_107 : f32 to vector<8x128xf32>
    %312 = vector.extract_strided_slice %308 {offsets = [0, 0], sizes = [8, 32], strides = [1, 1]} : vector<8x128xbf16> to vector<8x32xbf16>
    %313 = vector.extract_strided_slice %309 {offsets = [0, 0], sizes = [8, 32], strides = [1, 1]} : vector<8x128xbf16> to vector<8x32xbf16>
    %314 = vector.extract_strided_slice %310 {offsets = [0, 0], sizes = [8, 32], strides = [1, 1]} : vector<8x128xbf16> to vector<8x32xbf16>
    %cst_108 = arith.constant dense<0.000000e+00> : vector<8x8xf32>
    %315 = tpu.matmul %312, %313, %cst_108 {dimension_numbers = #tpu.dot_dimension_numbers<[1], [1], [0], [0], [0, 0, 1, 0], [], []>} : vector<8x32xbf16>, vector<8x32xbf16>, vector<8x8xf32> -> vector<8x8xf32>
    %cst_109 = arith.constant 0.176776692 : f32
    %316 = vector.broadcast %cst_109 : f32 to vector<8x8xf32>
    %317 = arith.mulf %315, %316 : vector<8x8xf32>
    %318 = vector.broadcast %5 : vector<1x8xf32> to vector<8x8xf32>
    %319 = arith.addf %317, %318 : vector<8x8xf32>
    %cst_110 = arith.constant dense<0xFF800000> : vector<8xf32>
    %320 = vector.multi_reduction <maximumf>, %319, %cst_110 [1] : vector<8x8xf32> to vector<8xf32>
    %321 = vector.shape_cast %320 : vector<8xf32> to vector<8x1xf32>
    %322 = vector.broadcast %321 : vector<8x1xf32> to vector<8x8xf32>
    %323 = arith.subf %319, %322 : vector<8x8xf32>
    %324 = math.exp %323 : vector<8x8xf32>
    %cst_111 = arith.constant dense<0.000000e+00> : vector<8xf32>
    %325 = vector.multi_reduction <add>, %324, %cst_111 [1] : vector<8x8xf32> to vector<8xf32>
    %326 = vector.shape_cast %325 : vector<8xf32> to vector<8x1xf32>
    %327 = vector.broadcast %326 : vector<8x1xf32> to vector<8x8xf32>
    %328 = arith.divf %324, %327 : vector<8x8xf32>
    %329 = arith.truncf %328 : vector<8x8xf32> to vector<8x8xbf16>
    %cst_112 = arith.constant dense<0.000000e+00> : vector<8x32xf32>
    %330 = tpu.matmul %329, %314, %cst_112 {dimension_numbers = #tpu.dot_dimension_numbers<[1], [0], [0], [1], [0, 0, 1, 1], [], []>} : vector<8x8xbf16>, vector<8x32xbf16>, vector<8x32xf32> -> vector<8x32xf32>
    %331 = arith.truncf %330 : vector<8x32xf32> to vector<8x32xbf16>
    %cst_113 = arith.constant dense<0.000000e+00> : vector<8x128xf32>
    %332 = tpu.matmul %331, %276, %cst_113 {dimension_numbers = #tpu.dot_dimension_numbers<[1], [0], [0], [1], [0, 0, 1, 1], [], []>} : vector<8x32xbf16>, vector<32x128xbf16>, vector<8x128xf32> -> vector<8x128xf32>
    %333 = arith.addf %311, %332 : vector<8x128xf32>
    %334 = vector.extract_strided_slice %308 {offsets = [0, 32], sizes = [8, 32], strides = [1, 1]} : vector<8x128xbf16> to vector<8x32xbf16>
    %335 = vector.extract_strided_slice %309 {offsets = [0, 32], sizes = [8, 32], strides = [1, 1]} : vector<8x128xbf16> to vector<8x32xbf16>
    %336 = vector.extract_strided_slice %310 {offsets = [0, 32], sizes = [8, 32], strides = [1, 1]} : vector<8x128xbf16> to vector<8x32xbf16>
    %cst_114 = arith.constant dense<0.000000e+00> : vector<8x8xf32>
    %337 = tpu.matmul %334, %335, %cst_114 {dimension_numbers = #tpu.dot_dimension_numbers<[1], [1], [0], [0], [0, 0, 1, 0], [], []>} : vector<8x32xbf16>, vector<8x32xbf16>, vector<8x8xf32> -> vector<8x8xf32>
    %cst_115 = arith.constant 0.176776692 : f32
    %338 = vector.broadcast %cst_115 : f32 to vector<8x8xf32>
    %339 = arith.mulf %337, %338 : vector<8x8xf32>
    %340 = vector.broadcast %5 : vector<1x8xf32> to vector<8x8xf32>
    %341 = arith.addf %339, %340 : vector<8x8xf32>
    %cst_116 = arith.constant dense<0xFF800000> : vector<8xf32>
    %342 = vector.multi_reduction <maximumf>, %341, %cst_116 [1] : vector<8x8xf32> to vector<8xf32>
    %343 = vector.shape_cast %342 : vector<8xf32> to vector<8x1xf32>
    %344 = vector.broadcast %343 : vector<8x1xf32> to vector<8x8xf32>
    %345 = arith.subf %341, %344 : vector<8x8xf32>
    %346 = math.exp %345 : vector<8x8xf32>
    %cst_117 = arith.constant dense<0.000000e+00> : vector<8xf32>
    %347 = vector.multi_reduction <add>, %346, %cst_117 [1] : vector<8x8xf32> to vector<8xf32>
    %348 = vector.shape_cast %347 : vector<8xf32> to vector<8x1xf32>
    %349 = vector.broadcast %348 : vector<8x1xf32> to vector<8x8xf32>
    %350 = arith.divf %346, %349 : vector<8x8xf32>
    %351 = arith.truncf %350 : vector<8x8xf32> to vector<8x8xbf16>
    %cst_118 = arith.constant dense<0.000000e+00> : vector<8x32xf32>
    %352 = tpu.matmul %351, %336, %cst_118 {dimension_numbers = #tpu.dot_dimension_numbers<[1], [0], [0], [1], [0, 0, 1, 1], [], []>} : vector<8x8xbf16>, vector<8x32xbf16>, vector<8x32xf32> -> vector<8x32xf32>
    %353 = arith.truncf %352 : vector<8x32xf32> to vector<8x32xbf16>
    %cst_119 = arith.constant dense<0.000000e+00> : vector<8x128xf32>
    %354 = tpu.matmul %353, %277, %cst_119 {dimension_numbers = #tpu.dot_dimension_numbers<[1], [0], [0], [1], [0, 0, 1, 1], [], []>} : vector<8x32xbf16>, vector<32x128xbf16>, vector<8x128xf32> -> vector<8x128xf32>
    %355 = arith.addf %333, %354 : vector<8x128xf32>
    %356 = vector.extract_strided_slice %308 {offsets = [0, 64], sizes = [8, 32], strides = [1, 1]} : vector<8x128xbf16> to vector<8x32xbf16>
    %357 = vector.extract_strided_slice %309 {offsets = [0, 64], sizes = [8, 32], strides = [1, 1]} : vector<8x128xbf16> to vector<8x32xbf16>
    %358 = vector.extract_strided_slice %310 {offsets = [0, 64], sizes = [8, 32], strides = [1, 1]} : vector<8x128xbf16> to vector<8x32xbf16>
    %cst_120 = arith.constant dense<0.000000e+00> : vector<8x8xf32>
    %359 = tpu.matmul %356, %357, %cst_120 {dimension_numbers = #tpu.dot_dimension_numbers<[1], [1], [0], [0], [0, 0, 1, 0], [], []>} : vector<8x32xbf16>, vector<8x32xbf16>, vector<8x8xf32> -> vector<8x8xf32>
    %cst_121 = arith.constant 0.176776692 : f32
    %360 = vector.broadcast %cst_121 : f32 to vector<8x8xf32>
    %361 = arith.mulf %359, %360 : vector<8x8xf32>
    %362 = vector.broadcast %5 : vector<1x8xf32> to vector<8x8xf32>
    %363 = arith.addf %361, %362 : vector<8x8xf32>
    %cst_122 = arith.constant dense<0xFF800000> : vector<8xf32>
    %364 = vector.multi_reduction <maximumf>, %363, %cst_122 [1] : vector<8x8xf32> to vector<8xf32>
    %365 = vector.shape_cast %364 : vector<8xf32> to vector<8x1xf32>
    %366 = vector.broadcast %365 : vector<8x1xf32> to vector<8x8xf32>
    %367 = arith.subf %363, %366 : vector<8x8xf32>
    %368 = math.exp %367 : vector<8x8xf32>
    %cst_123 = arith.constant dense<0.000000e+00> : vector<8xf32>
    %369 = vector.multi_reduction <add>, %368, %cst_123 [1] : vector<8x8xf32> to vector<8xf32>
    %370 = vector.shape_cast %369 : vector<8xf32> to vector<8x1xf32>
    %371 = vector.broadcast %370 : vector<8x1xf32> to vector<8x8xf32>
    %372 = arith.divf %368, %371 : vector<8x8xf32>
    %373 = arith.truncf %372 : vector<8x8xf32> to vector<8x8xbf16>
    %cst_124 = arith.constant dense<0.000000e+00> : vector<8x32xf32>
    %374 = tpu.matmul %373, %358, %cst_124 {dimension_numbers = #tpu.dot_dimension_numbers<[1], [0], [0], [1], [0, 0, 1, 1], [], []>} : vector<8x8xbf16>, vector<8x32xbf16>, vector<8x32xf32> -> vector<8x32xf32>
    %375 = arith.truncf %374 : vector<8x32xf32> to vector<8x32xbf16>
    %cst_125 = arith.constant dense<0.000000e+00> : vector<8x128xf32>
    %376 = tpu.matmul %375, %278, %cst_125 {dimension_numbers = #tpu.dot_dimension_numbers<[1], [0], [0], [1], [0, 0, 1, 1], [], []>} : vector<8x32xbf16>, vector<32x128xbf16>, vector<8x128xf32> -> vector<8x128xf32>
    %377 = arith.addf %355, %376 : vector<8x128xf32>
    %378 = vector.extract_strided_slice %308 {offsets = [0, 96], sizes = [8, 32], strides = [1, 1]} : vector<8x128xbf16> to vector<8x32xbf16>
    %379 = vector.extract_strided_slice %309 {offsets = [0, 96], sizes = [8, 32], strides = [1, 1]} : vector<8x128xbf16> to vector<8x32xbf16>
    %380 = vector.extract_strided_slice %310 {offsets = [0, 96], sizes = [8, 32], strides = [1, 1]} : vector<8x128xbf16> to vector<8x32xbf16>
    %cst_126 = arith.constant dense<0.000000e+00> : vector<8x8xf32>
    %381 = tpu.matmul %378, %379, %cst_126 {dimension_numbers = #tpu.dot_dimension_numbers<[1], [1], [0], [0], [0, 0, 1, 0], [], []>} : vector<8x32xbf16>, vector<8x32xbf16>, vector<8x8xf32> -> vector<8x8xf32>
    %cst_127 = arith.constant 0.176776692 : f32
    %382 = vector.broadcast %cst_127 : f32 to vector<8x8xf32>
    %383 = arith.mulf %381, %382 : vector<8x8xf32>
    %384 = vector.broadcast %5 : vector<1x8xf32> to vector<8x8xf32>
    %385 = arith.addf %383, %384 : vector<8x8xf32>
    %cst_128 = arith.constant dense<0xFF800000> : vector<8xf32>
    %386 = vector.multi_reduction <maximumf>, %385, %cst_128 [1] : vector<8x8xf32> to vector<8xf32>
    %387 = vector.shape_cast %386 : vector<8xf32> to vector<8x1xf32>
    %388 = vector.broadcast %387 : vector<8x1xf32> to vector<8x8xf32>
    %389 = arith.subf %385, %388 : vector<8x8xf32>
    %390 = math.exp %389 : vector<8x8xf32>
    %cst_129 = arith.constant dense<0.000000e+00> : vector<8xf32>
    %391 = vector.multi_reduction <add>, %390, %cst_129 [1] : vector<8x8xf32> to vector<8xf32>
    %392 = vector.shape_cast %391 : vector<8xf32> to vector<8x1xf32>
    %393 = vector.broadcast %392 : vector<8x1xf32> to vector<8x8xf32>
    %394 = arith.divf %390, %393 : vector<8x8xf32>
    %395 = arith.truncf %394 : vector<8x8xf32> to vector<8x8xbf16>
    %cst_130 = arith.constant dense<0.000000e+00> : vector<8x32xf32>
    %396 = tpu.matmul %395, %380, %cst_130 {dimension_numbers = #tpu.dot_dimension_numbers<[1], [0], [0], [1], [0, 0, 1, 1], [], []>} : vector<8x8xbf16>, vector<8x32xbf16>, vector<8x32xf32> -> vector<8x32xf32>
    %397 = arith.truncf %396 : vector<8x32xf32> to vector<8x32xbf16>
    %cst_131 = arith.constant dense<0.000000e+00> : vector<8x128xf32>
    %398 = tpu.matmul %397, %279, %cst_131 {dimension_numbers = #tpu.dot_dimension_numbers<[1], [0], [0], [1], [0, 0, 1, 1], [], []>} : vector<8x32xbf16>, vector<32x128xbf16>, vector<8x128xf32> -> vector<8x128xf32>
    %399 = arith.addf %377, %398 : vector<8x128xf32>
    %400 = vector.extract_strided_slice %299 {offsets = [8, 0], sizes = [8, 128], strides = [1, 1]} : vector<16x128xbf16> to vector<8x128xbf16>
    %401 = vector.extract_strided_slice %305 {offsets = [8, 0], sizes = [8, 128], strides = [1, 1]} : vector<16x128xbf16> to vector<8x128xbf16>
    %402 = vector.extract_strided_slice %307 {offsets = [8, 0], sizes = [8, 128], strides = [1, 1]} : vector<16x128xbf16> to vector<8x128xbf16>
    %cst_132 = arith.constant 0.000000e+00 : f32
    %403 = vector.broadcast %cst_132 : f32 to vector<8x128xf32>
    %404 = vector.extract_strided_slice %400 {offsets = [0, 0], sizes = [8, 32], strides = [1, 1]} : vector<8x128xbf16> to vector<8x32xbf16>
    %405 = vector.extract_strided_slice %401 {offsets = [0, 0], sizes = [8, 32], strides = [1, 1]} : vector<8x128xbf16> to vector<8x32xbf16>
    %406 = vector.extract_strided_slice %402 {offsets = [0, 0], sizes = [8, 32], strides = [1, 1]} : vector<8x128xbf16> to vector<8x32xbf16>
    %cst_133 = arith.constant dense<0.000000e+00> : vector<8x8xf32>
    %407 = tpu.matmul %404, %405, %cst_133 {dimension_numbers = #tpu.dot_dimension_numbers<[1], [1], [0], [0], [0, 0, 1, 0], [], []>} : vector<8x32xbf16>, vector<8x32xbf16>, vector<8x8xf32> -> vector<8x8xf32>
    %cst_134 = arith.constant 0.176776692 : f32
    %408 = vector.broadcast %cst_134 : f32 to vector<8x8xf32>
    %409 = arith.mulf %407, %408 : vector<8x8xf32>
    %410 = vector.broadcast %7 : vector<1x8xf32> to vector<8x8xf32>
    %411 = arith.addf %409, %410 : vector<8x8xf32>
    %cst_135 = arith.constant dense<0xFF800000> : vector<8xf32>
    %412 = vector.multi_reduction <maximumf>, %411, %cst_135 [1] : vector<8x8xf32> to vector<8xf32>
    %413 = vector.shape_cast %412 : vector<8xf32> to vector<8x1xf32>
    %414 = vector.broadcast %413 : vector<8x1xf32> to vector<8x8xf32>
    %415 = arith.subf %411, %414 : vector<8x8xf32>
    %416 = math.exp %415 : vector<8x8xf32>
    %cst_136 = arith.constant dense<0.000000e+00> : vector<8xf32>
    %417 = vector.multi_reduction <add>, %416, %cst_136 [1] : vector<8x8xf32> to vector<8xf32>
    %418 = vector.shape_cast %417 : vector<8xf32> to vector<8x1xf32>
    %419 = vector.broadcast %418 : vector<8x1xf32> to vector<8x8xf32>
    %420 = arith.divf %416, %419 : vector<8x8xf32>
    %421 = arith.truncf %420 : vector<8x8xf32> to vector<8x8xbf16>
    %cst_137 = arith.constant dense<0.000000e+00> : vector<8x32xf32>
    %422 = tpu.matmul %421, %406, %cst_137 {dimension_numbers = #tpu.dot_dimension_numbers<[1], [0], [0], [1], [0, 0, 1, 1], [], []>} : vector<8x8xbf16>, vector<8x32xbf16>, vector<8x32xf32> -> vector<8x32xf32>
    %423 = arith.truncf %422 : vector<8x32xf32> to vector<8x32xbf16>
    %cst_138 = arith.constant dense<0.000000e+00> : vector<8x128xf32>
    %424 = tpu.matmul %423, %276, %cst_138 {dimension_numbers = #tpu.dot_dimension_numbers<[1], [0], [0], [1], [0, 0, 1, 1], [], []>} : vector<8x32xbf16>, vector<32x128xbf16>, vector<8x128xf32> -> vector<8x128xf32>
    %425 = arith.addf %403, %424 : vector<8x128xf32>
    %426 = vector.extract_strided_slice %400 {offsets = [0, 32], sizes = [8, 32], strides = [1, 1]} : vector<8x128xbf16> to vector<8x32xbf16>
    %427 = vector.extract_strided_slice %401 {offsets = [0, 32], sizes = [8, 32], strides = [1, 1]} : vector<8x128xbf16> to vector<8x32xbf16>
    %428 = vector.extract_strided_slice %402 {offsets = [0, 32], sizes = [8, 32], strides = [1, 1]} : vector<8x128xbf16> to vector<8x32xbf16>
    %cst_139 = arith.constant dense<0.000000e+00> : vector<8x8xf32>
    %429 = tpu.matmul %426, %427, %cst_139 {dimension_numbers = #tpu.dot_dimension_numbers<[1], [1], [0], [0], [0, 0, 1, 0], [], []>} : vector<8x32xbf16>, vector<8x32xbf16>, vector<8x8xf32> -> vector<8x8xf32>
    %cst_140 = arith.constant 0.176776692 : f32
    %430 = vector.broadcast %cst_140 : f32 to vector<8x8xf32>
    %431 = arith.mulf %429, %430 : vector<8x8xf32>
    %432 = vector.broadcast %7 : vector<1x8xf32> to vector<8x8xf32>
    %433 = arith.addf %431, %432 : vector<8x8xf32>
    %cst_141 = arith.constant dense<0xFF800000> : vector<8xf32>
    %434 = vector.multi_reduction <maximumf>, %433, %cst_141 [1] : vector<8x8xf32> to vector<8xf32>
    %435 = vector.shape_cast %434 : vector<8xf32> to vector<8x1xf32>
    %436 = vector.broadcast %435 : vector<8x1xf32> to vector<8x8xf32>
    %437 = arith.subf %433, %436 : vector<8x8xf32>
    %438 = math.exp %437 : vector<8x8xf32>
    %cst_142 = arith.constant dense<0.000000e+00> : vector<8xf32>
    %439 = vector.multi_reduction <add>, %438, %cst_142 [1] : vector<8x8xf32> to vector<8xf32>
    %440 = vector.shape_cast %439 : vector<8xf32> to vector<8x1xf32>
    %441 = vector.broadcast %440 : vector<8x1xf32> to vector<8x8xf32>
    %442 = arith.divf %438, %441 : vector<8x8xf32>
    %443 = arith.truncf %442 : vector<8x8xf32> to vector<8x8xbf16>
    %cst_143 = arith.constant dense<0.000000e+00> : vector<8x32xf32>
    %444 = tpu.matmul %443, %428, %cst_143 {dimension_numbers = #tpu.dot_dimension_numbers<[1], [0], [0], [1], [0, 0, 1, 1], [], []>} : vector<8x8xbf16>, vector<8x32xbf16>, vector<8x32xf32> -> vector<8x32xf32>
    %445 = arith.truncf %444 : vector<8x32xf32> to vector<8x32xbf16>
    %cst_144 = arith.constant dense<0.000000e+00> : vector<8x128xf32>
    %446 = tpu.matmul %445, %277, %cst_144 {dimension_numbers = #tpu.dot_dimension_numbers<[1], [0], [0], [1], [0, 0, 1, 1], [], []>} : vector<8x32xbf16>, vector<32x128xbf16>, vector<8x128xf32> -> vector<8x128xf32>
    %447 = arith.addf %425, %446 : vector<8x128xf32>
    %448 = vector.extract_strided_slice %400 {offsets = [0, 64], sizes = [8, 32], strides = [1, 1]} : vector<8x128xbf16> to vector<8x32xbf16>
    %449 = vector.extract_strided_slice %401 {offsets = [0, 64], sizes = [8, 32], strides = [1, 1]} : vector<8x128xbf16> to vector<8x32xbf16>
    %450 = vector.extract_strided_slice %402 {offsets = [0, 64], sizes = [8, 32], strides = [1, 1]} : vector<8x128xbf16> to vector<8x32xbf16>
    %cst_145 = arith.constant dense<0.000000e+00> : vector<8x8xf32>
    %451 = tpu.matmul %448, %449, %cst_145 {dimension_numbers = #tpu.dot_dimension_numbers<[1], [1], [0], [0], [0, 0, 1, 0], [], []>} : vector<8x32xbf16>, vector<8x32xbf16>, vector<8x8xf32> -> vector<8x8xf32>
    %cst_146 = arith.constant 0.176776692 : f32
    %452 = vector.broadcast %cst_146 : f32 to vector<8x8xf32>
    %453 = arith.mulf %451, %452 : vector<8x8xf32>
    %454 = vector.broadcast %7 : vector<1x8xf32> to vector<8x8xf32>
    %455 = arith.addf %453, %454 : vector<8x8xf32>
    %cst_147 = arith.constant dense<0xFF800000> : vector<8xf32>
    %456 = vector.multi_reduction <maximumf>, %455, %cst_147 [1] : vector<8x8xf32> to vector<8xf32>
    %457 = vector.shape_cast %456 : vector<8xf32> to vector<8x1xf32>
    %458 = vector.broadcast %457 : vector<8x1xf32> to vector<8x8xf32>
    %459 = arith.subf %455, %458 : vector<8x8xf32>
    %460 = math.exp %459 : vector<8x8xf32>
    %cst_148 = arith.constant dense<0.000000e+00> : vector<8xf32>
    %461 = vector.multi_reduction <add>, %460, %cst_148 [1] : vector<8x8xf32> to vector<8xf32>
    %462 = vector.shape_cast %461 : vector<8xf32> to vector<8x1xf32>
    %463 = vector.broadcast %462 : vector<8x1xf32> to vector<8x8xf32>
    %464 = arith.divf %460, %463 : vector<8x8xf32>
    %465 = arith.truncf %464 : vector<8x8xf32> to vector<8x8xbf16>
    %cst_149 = arith.constant dense<0.000000e+00> : vector<8x32xf32>
    %466 = tpu.matmul %465, %450, %cst_149 {dimension_numbers = #tpu.dot_dimension_numbers<[1], [0], [0], [1], [0, 0, 1, 1], [], []>} : vector<8x8xbf16>, vector<8x32xbf16>, vector<8x32xf32> -> vector<8x32xf32>
    %467 = arith.truncf %466 : vector<8x32xf32> to vector<8x32xbf16>
    %cst_150 = arith.constant dense<0.000000e+00> : vector<8x128xf32>
    %468 = tpu.matmul %467, %278, %cst_150 {dimension_numbers = #tpu.dot_dimension_numbers<[1], [0], [0], [1], [0, 0, 1, 1], [], []>} : vector<8x32xbf16>, vector<32x128xbf16>, vector<8x128xf32> -> vector<8x128xf32>
    %469 = arith.addf %447, %468 : vector<8x128xf32>
    %470 = vector.extract_strided_slice %400 {offsets = [0, 96], sizes = [8, 32], strides = [1, 1]} : vector<8x128xbf16> to vector<8x32xbf16>
    %471 = vector.extract_strided_slice %401 {offsets = [0, 96], sizes = [8, 32], strides = [1, 1]} : vector<8x128xbf16> to vector<8x32xbf16>
    %472 = vector.extract_strided_slice %402 {offsets = [0, 96], sizes = [8, 32], strides = [1, 1]} : vector<8x128xbf16> to vector<8x32xbf16>
    %cst_151 = arith.constant dense<0.000000e+00> : vector<8x8xf32>
    %473 = tpu.matmul %470, %471, %cst_151 {dimension_numbers = #tpu.dot_dimension_numbers<[1], [1], [0], [0], [0, 0, 1, 0], [], []>} : vector<8x32xbf16>, vector<8x32xbf16>, vector<8x8xf32> -> vector<8x8xf32>
    %cst_152 = arith.constant 0.176776692 : f32
    %474 = vector.broadcast %cst_152 : f32 to vector<8x8xf32>
    %475 = arith.mulf %473, %474 : vector<8x8xf32>
    %476 = vector.broadcast %7 : vector<1x8xf32> to vector<8x8xf32>
    %477 = arith.addf %475, %476 : vector<8x8xf32>
    %cst_153 = arith.constant dense<0xFF800000> : vector<8xf32>
    %478 = vector.multi_reduction <maximumf>, %477, %cst_153 [1] : vector<8x8xf32> to vector<8xf32>
    %479 = vector.shape_cast %478 : vector<8xf32> to vector<8x1xf32>
    %480 = vector.broadcast %479 : vector<8x1xf32> to vector<8x8xf32>
    %481 = arith.subf %477, %480 : vector<8x8xf32>
    %482 = math.exp %481 : vector<8x8xf32>
    %cst_154 = arith.constant dense<0.000000e+00> : vector<8xf32>
    %483 = vector.multi_reduction <add>, %482, %cst_154 [1] : vector<8x8xf32> to vector<8xf32>
    %484 = vector.shape_cast %483 : vector<8xf32> to vector<8x1xf32>
    %485 = vector.broadcast %484 : vector<8x1xf32> to vector<8x8xf32>
    %486 = arith.divf %482, %485 : vector<8x8xf32>
    %487 = arith.truncf %486 : vector<8x8xf32> to vector<8x8xbf16>
    %cst_155 = arith.constant dense<0.000000e+00> : vector<8x32xf32>
    %488 = tpu.matmul %487, %472, %cst_155 {dimension_numbers = #tpu.dot_dimension_numbers<[1], [0], [0], [1], [0, 0, 1, 1], [], []>} : vector<8x8xbf16>, vector<8x32xbf16>, vector<8x32xf32> -> vector<8x32xf32>
    %489 = arith.truncf %488 : vector<8x32xf32> to vector<8x32xbf16>
    %cst_156 = arith.constant dense<0.000000e+00> : vector<8x128xf32>
    %490 = tpu.matmul %489, %279, %cst_156 {dimension_numbers = #tpu.dot_dimension_numbers<[1], [0], [0], [1], [0, 0, 1, 1], [], []>} : vector<8x32xbf16>, vector<32x128xbf16>, vector<8x128xf32> -> vector<8x128xf32>
    %491 = arith.addf %469, %490 : vector<8x128xf32>
    %492 = tpu.concatenate %399, %491 in 0 : vector<8x128xf32>, vector<8x128xf32> -> vector<16x128xf32>
    %493 = arith.addf %263, %492 : vector<16x128xf32>
    %494 = arith.mulf %493, %493 : vector<16x128xf32>
    %cst_157 = arith.constant dense<0.000000e+00> : vector<16xf32>
    %495 = vector.multi_reduction <add>, %494, %cst_157 [1] : vector<16x128xf32> to vector<16xf32>
    %496 = vector.shape_cast %495 : vector<16xf32> to vector<16x1xf32>
    %cst_158 = arith.constant 1.280000e+02 : f32
    %497 = vector.broadcast %cst_158 : f32 to vector<16x1xf32>
    %498 = arith.divf %496, %497 : vector<16x1xf32>
    %cst_159 = arith.constant 9.99999997E-7 : f32
    %499 = vector.broadcast %cst_159 : f32 to vector<16x1xf32>
    %500 = arith.addf %498, %499 : vector<16x1xf32>
    %501 = math.rsqrt %500 : vector<16x1xf32>
    %502 = vector.broadcast %501 : vector<16x1xf32> to vector<16x128xf32>
    %503 = arith.mulf %493, %502 : vector<16x128xf32>
    %504 = vector.broadcast %267 : vector<1x128xf32> to vector<16x128xf32>
    %505 = arith.mulf %503, %504 : vector<16x128xf32>
    %506 = arith.truncf %505 : vector<16x128xf32> to vector<16x128xbf16>
    %cst_160 = arith.constant dense<0.000000e+00> : vector<16x512xf32>
    %507 = tpu.matmul %506, %273, %cst_160 {dimension_numbers = #tpu.dot_dimension_numbers<[1], [0], [0], [1], [0, 0, 1, 1], [], []>} : vector<16x128xbf16>, vector<128x512xbf16>, vector<16x512xf32> -> vector<16x512xf32>
    %508 = vector.extract_strided_slice %507 {offsets = [0, 0], sizes = [16, 256], strides = [1, 1]} : vector<16x512xf32> to vector<16x256xf32>
    %509 = vector.extract_strided_slice %507 {offsets = [0, 256], sizes = [16, 256], strides = [1, 1]} : vector<16x512xf32> to vector<16x256xf32>
    %cst_161 = arith.constant 0.000000e+00 : f32
    %510 = vector.broadcast %cst_161 : f32 to vector<16x256xf32>
    %511 = arith.subf %510, %508 : vector<16x256xf32>
    %512 = math.exp %511 : vector<16x256xf32>
    %cst_162 = arith.constant 1.000000e+00 : f32
    %513 = vector.broadcast %cst_162 : f32 to vector<16x256xf32>
    %514 = arith.addf %513, %512 : vector<16x256xf32>
    %515 = arith.divf %508, %514 : vector<16x256xf32>
    %516 = arith.mulf %515, %509 : vector<16x256xf32>
    %517 = arith.truncf %516 : vector<16x256xf32> to vector<16x256xbf16>
    %cst_163 = arith.constant dense<0.000000e+00> : vector<16x128xf32>
    %518 = tpu.matmul %517, %275, %cst_163 {dimension_numbers = #tpu.dot_dimension_numbers<[1], [0], [0], [1], [0, 0, 1, 1], [], []>} : vector<16x256xbf16>, vector<256x128xbf16>, vector<16x128xf32> -> vector<16x128xf32>
    %519 = arith.addf %493, %518 : vector<16x128xf32>
    %c0_164 = arith.constant 0 : index
    %c0_165 = arith.constant 0 : index
    %520 = vector.load %arg12[%c0_164, %c0_165] : memref<1x128xf32, #tpu.memory_space<vmem>>, vector<1x128xf32>
    %521 = arith.mulf %519, %519 : vector<16x128xf32>
    %cst_166 = arith.constant dense<0.000000e+00> : vector<16xf32>
    %522 = vector.multi_reduction <add>, %521, %cst_166 [1] : vector<16x128xf32> to vector<16xf32>
    %523 = vector.shape_cast %522 : vector<16xf32> to vector<16x1xf32>
    %cst_167 = arith.constant 1.280000e+02 : f32
    %524 = vector.broadcast %cst_167 : f32 to vector<16x1xf32>
    %525 = arith.divf %523, %524 : vector<16x1xf32>
    %cst_168 = arith.constant 9.99999997E-7 : f32
    %526 = vector.broadcast %cst_168 : f32 to vector<16x1xf32>
    %527 = arith.addf %525, %526 : vector<16x1xf32>
    %528 = math.rsqrt %527 : vector<16x1xf32>
    %529 = vector.broadcast %528 : vector<16x1xf32> to vector<16x128xf32>
    %530 = arith.mulf %519, %529 : vector<16x128xf32>
    %531 = vector.broadcast %520 : vector<1x128xf32> to vector<16x128xf32>
    %532 = arith.mulf %530, %531 : vector<16x128xf32>
    %c0_169 = arith.constant 0 : index
    %c0_170 = arith.constant 0 : index
    %533 = vector.load %arg13[%c0_169, %c0_170] : memref<1x128xf32, #tpu.memory_space<vmem>>, vector<1x128xf32>
    %c0_171 = arith.constant 0 : index
    %c0_172 = arith.constant 0 : index
    %534 = vector.load %arg14[%c0_171, %c0_172] : memref<1x1xf32, #tpu.memory_space<vmem>>, vector<1x1xf32>
    %c0_173 = arith.constant 0 : index
    %c0_174 = arith.constant 0 : index
    %c0_175 = arith.constant 0 : index
    %535 = vector.load %arg3[%c0_173, %c0_174, %c0_175] : memref<2x8x1xf32, #tpu.memory_space<vmem>>, vector<2x8x1xf32>
    %c0_176 = arith.constant 0 : index
    %c0_177 = arith.constant 0 : index
    %536 = vector.load %arg15[%c0_176, %c0_177] : memref<128x128xf32, #tpu.memory_space<vmem>>, vector<128x128xf32>
    %c0_178 = arith.constant 0 : index
    %c0_179 = arith.constant 0 : index
    %537 = vector.load %arg16[%c0_178, %c0_179] : memref<1x128xf32, #tpu.memory_space<vmem>>, vector<1x128xf32>
    %538 = vector.extract_strided_slice %532 {offsets = [0, 0], sizes = [8, 128], strides = [1, 1]} : vector<16x128xf32> to vector<8x128xf32>
    %539 = vector.broadcast %533 : vector<1x128xf32> to vector<8x128xf32>
    %540 = arith.mulf %538, %539 : vector<8x128xf32>
    %cst_180 = arith.constant dense<0.000000e+00> : vector<8xf32>
    %541 = vector.multi_reduction <add>, %540, %cst_180 [1] : vector<8x128xf32> to vector<8xf32>
    %542 = vector.shape_cast %541 : vector<8xf32> to vector<8x1xf32>
    %543 = vector.broadcast %534 : vector<1x1xf32> to vector<8x1xf32>
    %544 = arith.addf %542, %543 : vector<8x1xf32>
    %545 = vector.extract_strided_slice %535 {offsets = [0, 0, 0], sizes = [1, 8, 1], strides = [1, 1, 1]} : vector<2x8x1xf32> to vector<1x8x1xf32>
    %546 = vector.shape_cast %545 : vector<1x8x1xf32> to vector<8x1xf32>
    %547 = arith.addf %544, %546 : vector<8x1xf32>
    %cst_181 = arith.constant dense<0xFF800000> : vector<1xf32>
    %548 = vector.multi_reduction <maximumf>, %547, %cst_181 [0] : vector<8x1xf32> to vector<1xf32>
    %549 = vector.shape_cast %548 : vector<1xf32> to vector<1x1xf32>
    %550 = vector.broadcast %549 : vector<1x1xf32> to vector<8x1xf32>
    %551 = arith.subf %547, %550 : vector<8x1xf32>
    %552 = math.exp %551 : vector<8x1xf32>
    %cst_182 = arith.constant dense<0.000000e+00> : vector<1xf32>
    %553 = vector.multi_reduction <add>, %552, %cst_182 [0] : vector<8x1xf32> to vector<1xf32>
    %554 = vector.shape_cast %553 : vector<1xf32> to vector<1x1xf32>
    %555 = vector.broadcast %554 : vector<1x1xf32> to vector<8x1xf32>
    %556 = arith.divf %552, %555 : vector<8x1xf32>
    %cst_183 = arith.constant dense<0.000000e+00> : vector<1x128xf32>
    %557 = tpu.matmul %556, %538, %cst_183 {dimension_numbers = #tpu.dot_dimension_numbers<[0], [0], [1], [1], [0, 1, 1, 1], [], []>} : vector<8x1xf32>, vector<8x128xf32>, vector<1x128xf32> -> vector<1x128xf32>
    %cst_184 = arith.constant dense<0.000000e+00> : vector<1x128xf32>
    %558 = tpu.matmul %557, %536, %cst_184 {dimension_numbers = #tpu.dot_dimension_numbers<[1], [0], [0], [1], [0, 0, 1, 1], [], []>} : vector<1x128xf32>, vector<128x128xf32>, vector<1x128xf32> -> vector<1x128xf32>
    %559 = arith.addf %558, %537 : vector<1x128xf32>
    %560 = vector.extract_strided_slice %532 {offsets = [8, 0], sizes = [8, 128], strides = [1, 1]} : vector<16x128xf32> to vector<8x128xf32>
    %561 = vector.broadcast %533 : vector<1x128xf32> to vector<8x128xf32>
    %562 = arith.mulf %560, %561 : vector<8x128xf32>
    %cst_185 = arith.constant dense<0.000000e+00> : vector<8xf32>
    %563 = vector.multi_reduction <add>, %562, %cst_185 [1] : vector<8x128xf32> to vector<8xf32>
    %564 = vector.shape_cast %563 : vector<8xf32> to vector<8x1xf32>
    %565 = vector.broadcast %534 : vector<1x1xf32> to vector<8x1xf32>
    %566 = arith.addf %564, %565 : vector<8x1xf32>
    %567 = vector.extract_strided_slice %535 {offsets = [1, 0, 0], sizes = [1, 8, 1], strides = [1, 1, 1]} : vector<2x8x1xf32> to vector<1x8x1xf32>
    %568 = vector.shape_cast %567 : vector<1x8x1xf32> to vector<8x1xf32>
    %569 = arith.addf %566, %568 : vector<8x1xf32>
    %cst_186 = arith.constant dense<0xFF800000> : vector<1xf32>
    %570 = vector.multi_reduction <maximumf>, %569, %cst_186 [0] : vector<8x1xf32> to vector<1xf32>
    %571 = vector.shape_cast %570 : vector<1xf32> to vector<1x1xf32>
    %572 = vector.broadcast %571 : vector<1x1xf32> to vector<8x1xf32>
    %573 = arith.subf %569, %572 : vector<8x1xf32>
    %574 = math.exp %573 : vector<8x1xf32>
    %cst_187 = arith.constant dense<0.000000e+00> : vector<1xf32>
    %575 = vector.multi_reduction <add>, %574, %cst_187 [0] : vector<8x1xf32> to vector<1xf32>
    %576 = vector.shape_cast %575 : vector<1xf32> to vector<1x1xf32>
    %577 = vector.broadcast %576 : vector<1x1xf32> to vector<8x1xf32>
    %578 = arith.divf %574, %577 : vector<8x1xf32>
    %cst_188 = arith.constant dense<0.000000e+00> : vector<1x128xf32>
    %579 = tpu.matmul %578, %560, %cst_188 {dimension_numbers = #tpu.dot_dimension_numbers<[0], [0], [1], [1], [0, 1, 1, 1], [], []>} : vector<8x1xf32>, vector<8x128xf32>, vector<1x128xf32> -> vector<1x128xf32>
    %cst_189 = arith.constant dense<0.000000e+00> : vector<1x128xf32>
    %580 = tpu.matmul %579, %536, %cst_189 {dimension_numbers = #tpu.dot_dimension_numbers<[1], [0], [0], [1], [0, 0, 1, 1], [], []>} : vector<1x128xf32>, vector<128x128xf32>, vector<1x128xf32> -> vector<1x128xf32>
    %581 = arith.addf %580, %537 : vector<1x128xf32>
    %582 = tpu.concatenate %559, %581 in 0 : vector<1x128xf32>, vector<1x128xf32> -> vector<2x128xf32>
    %c0_190 = arith.constant 0 : index
    %c0_191 = arith.constant 0 : index
    %583 = vector.load %arg17[%c0_190, %c0_191] : memref<2x128xf32, #tpu.memory_space<vmem>>, vector<2x128xf32>
    tpu.vector_store %arg17[%c0_190, %c0_191], %582 {strides = array<i32>} : memref<2x128xf32, #tpu.memory_space<vmem>>, vector<2x128xf32>,
    return
  }
  func.func @transform_0(%arg0: i32) -> (i32, i32) {
    %c0_i32 = arith.constant 0 : i32
    %c0_i32_0 = arith.constant 0 : i32
    %c0_i32_1 = arith.constant 0 : i32
    return %c0_i32, %c0_i32_0 : i32, i32
  }
  func.func @transform_1(%arg0: i32) -> (i32, i32, i32) {
    %c0_i32 = arith.constant 0 : i32
    %c0_i32_0 = arith.constant 0 : i32
    %c0_i32_1 = arith.constant 0 : i32
    %c0_i32_2 = arith.constant 0 : i32
    return %c0_i32, %c0_i32_0, %c0_i32_1 : i32, i32, i32
  }
  func.func @transform_2(%arg0: i32) -> (i32, i32, i32) {
    %c0_i32 = arith.constant 0 : i32
    %c0_i32_0 = arith.constant 0 : i32
    %c0_i32_1 = arith.constant 0 : i32
    %c0_i32_2 = arith.constant 0 : i32
    return %c0_i32, %c0_i32_0, %c0_i32_1 : i32, i32, i32
  }
  func.func @transform_3(%arg0: i32) -> (i32, i32) {
    %c0_i32 = arith.constant 0 : i32
    %c0_i32_0 = arith.constant 0 : i32
    %c0_i32_1 = arith.constant 0 : i32
    return %c0_i32, %c0_i32_0 : i32, i32
  }
  func.func @transform_4(%arg0: i32) -> (i32, i32) {
    %c0_i32 = arith.constant 0 : i32
    %c0_i32_0 = arith.constant 0 : i32
    %c0_i32_1 = arith.constant 0 : i32
    return %c0_i32, %c0_i32_0 : i32, i32
  }
  func.func @transform_5(%arg0: i32) -> (i32, i32, i32) {
    %c0_i32 = arith.constant 0 : i32
    %c0_i32_0 = arith.constant 0 : i32
    %c0_i32_1 = arith.constant 0 : i32
    %c0_i32_2 = arith.constant 0 : i32
    return %c0_i32, %c0_i32_0, %c0_i32_1 : i32, i32, i32
  }
  func.func @transform_6(%arg0: i32) -> (i32, i32, i32) {
    %c0_i32 = arith.constant 0 : i32
    %c0_i32_0 = arith.constant 0 : i32
    %c0_i32_1 = arith.constant 0 : i32
    %c0_i32_2 = arith.constant 0 : i32
    return %c0_i32, %c0_i32_0, %c0_i32_1 : i32, i32, i32
  }
  func.func @transform_7(%arg0: i32) -> (i32, i32, i32) {
    %c0_i32 = arith.constant 0 : i32
    %c0_i32_0 = arith.constant 0 : i32
    %c0_i32_1 = arith.constant 0 : i32
    %c0_i32_2 = arith.constant 0 : i32
    return %c0_i32, %c0_i32_0, %c0_i32_1 : i32, i32, i32
  }
  func.func @transform_8(%arg0: i32) -> (i32, i32, i32) {
    %c0_i32 = arith.constant 0 : i32
    %c0_i32_0 = arith.constant 0 : i32
    %c0_i32_1 = arith.constant 0 : i32
    %c0_i32_2 = arith.constant 0 : i32
    return %c0_i32, %c0_i32_0, %c0_i32_1 : i32, i32, i32
  }
  func.func @transform_9(%arg0: i32) -> (i32, i32, i32) {
    %c0_i32 = arith.constant 0 : i32
    %c0_i32_0 = arith.constant 0 : i32
    %c0_i32_1 = arith.constant 0 : i32
    %c0_i32_2 = arith.constant 0 : i32
    return %c0_i32, %c0_i32_0, %c0_i32_1 : i32, i32, i32
  }
  func.func @transform_10(%arg0: i32) -> (i32, i32, i32) {
    %c0_i32 = arith.constant 0 : i32
    %c0_i32_0 = arith.constant 0 : i32
    %c0_i32_1 = arith.constant 0 : i32
    %c0_i32_2 = arith.constant 0 : i32
    return %c0_i32, %c0_i32_0, %c0_i32_1 : i32, i32, i32
  }
  func.func @transform_11(%arg0: i32) -> (i32, i32) {
    %c0_i32 = arith.constant 0 : i32
    %c0_i32_0 = arith.constant 0 : i32
    %c0_i32_1 = arith.constant 0 : i32
    return %c0_i32, %c0_i32_0 : i32, i32
  }
  func.func @transform_12(%arg0: i32) -> (i32, i32) {
    %c0_i32 = arith.constant 0 : i32
    %c0_i32_0 = arith.constant 0 : i32
    %c0_i32_1 = arith.constant 0 : i32
    return %c0_i32, %c0_i32_0 : i32, i32
  }
  func.func @transform_13(%arg0: i32) -> (i32, i32) {
    %c0_i32 = arith.constant 0 : i32
    %c0_i32_0 = arith.constant 0 : i32
    %c0_i32_1 = arith.constant 0 : i32
    return %c0_i32, %c0_i32_0 : i32, i32
  }
  func.func @transform_14(%arg0: i32) -> (i32, i32) {
    %c0_i32 = arith.constant 0 : i32
    %c0_i32_0 = arith.constant 0 : i32
    %c0_i32_1 = arith.constant 0 : i32
    return %c0_i32, %c0_i32_0 : i32, i32
  }
  func.func @transform_15(%arg0: i32) -> (i32, i32) {
    %c0_i32 = arith.constant 0 : i32
    %c0_i32_0 = arith.constant 0 : i32
    %c0_i32_1 = arith.constant 0 : i32
    return %c0_i32, %c0_i32_0 : i32, i32
  }
  func.func @transform_16(%arg0: i32) -> (i32, i32) {
    %c0_i32 = arith.constant 0 : i32
    %c0_i32_0 = arith.constant 0 : i32
    %c0_i32_1 = arith.constant 0 : i32
    return %c0_i32, %c0_i32_0 : i32, i32
  }
}

module attributes {stable_mosaic.version = 11 : i64} {
  func.func @_decoder_kernel(%arg0: i32, %arg1: memref<48x128xf32, #tpu.memory_space<vmem>>, %arg2: memref<2x1x24xf32, #tpu.memory_space<vmem>>, %arg3: memref<48x128xf32, #tpu.memory_space<vmem>>, %arg4: memref<48x128xf32, #tpu.memory_space<vmem>>, %arg5: memref<2x1x128xf32, #tpu.memory_space<vmem>>, %arg6: memref<2x1x128xf32, #tpu.memory_space<vmem>>, %arg7: memref<2x128x640xbf16, #tpu.memory_space<vmem>>, %arg8: memref<2x128x128xbf16, #tpu.memory_space<vmem>>, %arg9: memref<2x128x512xbf16, #tpu.memory_space<vmem>>, %arg10: memref<2x256x128xbf16, #tpu.memory_space<vmem>>, %arg11: memref<1x128xf32, #tpu.memory_space<vmem>>, %arg12: memref<128x256xbf16, #tpu.memory_space<vmem>>, %arg13: memref<48x128xf32, #tpu.memory_space<vmem>>, %arg14: memref<48x256xf32, #tpu.memory_space<vmem>>) attributes {dimension_semantics = [#tpu.dimension_semantics<arbitrary>], iteration_bounds = array<i64: 1>, scalar_prefetch = 0 : i64, scratch_operands = 0 : i64, tpu.core_type = #tpu.core_type<tc>, window_params = [{pipeline_mode = #tpu.pipeline_mode<synchronous>, transform_indices = @transform_0, window_bounds = array<i64: 48, 128>}, {pipeline_mode = #tpu.pipeline_mode<synchronous>, transform_indices = @transform_1, window_bounds = array<i64: 2, 1, 24>}, {pipeline_mode = #tpu.pipeline_mode<synchronous>, transform_indices = @transform_2, window_bounds = array<i64: 48, 128>}, {pipeline_mode = #tpu.pipeline_mode<synchronous>, transform_indices = @transform_3, window_bounds = array<i64: 48, 128>}, {pipeline_mode = #tpu.pipeline_mode<synchronous>, transform_indices = @transform_4, window_bounds = array<i64: 2, 1, 128>}, {pipeline_mode = #tpu.pipeline_mode<synchronous>, transform_indices = @transform_5, window_bounds = array<i64: 2, 1, 128>}, {pipeline_mode = #tpu.pipeline_mode<synchronous>, transform_indices = @transform_6, window_bounds = array<i64: 2, 128, 640>}, {pipeline_mode = #tpu.pipeline_mode<synchronous>, transform_indices = @transform_7, window_bounds = array<i64: 2, 128, 128>}, {pipeline_mode = #tpu.pipeline_mode<synchronous>, transform_indices = @transform_8, window_bounds = array<i64: 2, 128, 512>}, {pipeline_mode = #tpu.pipeline_mode<synchronous>, transform_indices = @transform_9, window_bounds = array<i64: 2, 256, 128>}, {pipeline_mode = #tpu.pipeline_mode<synchronous>, transform_indices = @transform_10, window_bounds = array<i64: 1, 128>}, {pipeline_mode = #tpu.pipeline_mode<synchronous>, transform_indices = @transform_11, window_bounds = array<i64: 128, 256>}, {pipeline_mode = #tpu.pipeline_mode<synchronous>, transform_indices = @transform_12, window_bounds = array<i64: 48, 128>}, {pipeline_mode = #tpu.pipeline_mode<synchronous>, transform_indices = @transform_13, window_bounds = array<i64: 48, 256>}]} {
    %c0 = arith.constant 0 : index
    %c0_0 = arith.constant 0 : index
    %0 = vector.load %arg1[%c0, %c0_0] : memref<48x128xf32, #tpu.memory_space<vmem>>, vector<48x128xf32>
    %c0_1 = arith.constant 0 : index
    %c0_2 = arith.constant 0 : index
    %c0_3 = arith.constant 0 : index
    %1 = vector.load %arg2[%c0_1, %c0_2, %c0_3] : memref<2x1x24xf32, #tpu.memory_space<vmem>>, vector<2x1x24xf32>
    %c0_4 = arith.constant 0 : index
    %c0_5 = arith.constant 0 : index
    %2 = vector.load %arg3[%c0_4, %c0_5] : memref<48x128xf32, #tpu.memory_space<vmem>>, vector<48x128xf32>
    %c0_6 = arith.constant 0 : index
    %c0_7 = arith.constant 0 : index
    %3 = vector.load %arg4[%c0_6, %c0_7] : memref<48x128xf32, #tpu.memory_space<vmem>>, vector<48x128xf32>
    %4 = tpu.iota {dimensions = array<i32: 0>} : vector<24x24xi32>
    %5 = tpu.iota {dimensions = array<i32: 1>} : vector<24x24xi32>
    %6 = arith.cmpi sge, %4, %5 : vector<24x24xi32>
    %cst = arith.constant 0.000000e+00 : f32
    %cst_8 = arith.constant -1.000000e+09 : f32
    %7 = vector.broadcast %cst : f32 to vector<24x24xf32>
    %8 = vector.broadcast %cst_8 : f32 to vector<24x24xf32>
    %9 = arith.select %6, %7, %8 : vector<24x24xi1>, vector<24x24xf32>
    %10 = vector.extract_strided_slice %1 {offsets = [0, 0, 0], sizes = [1, 1, 24], strides = [1, 1, 1]} : vector<2x1x24xf32> to vector<1x1x24xf32>
    %11 = vector.shape_cast %10 : vector<1x1x24xf32> to vector<1x24xf32>
    %12 = vector.broadcast %11 : vector<1x24xf32> to vector<24x24xf32>
    %13 = arith.addf %12, %9 : vector<24x24xf32>
    %14 = vector.extract_strided_slice %1 {offsets = [1, 0, 0], sizes = [1, 1, 24], strides = [1, 1, 1]} : vector<2x1x24xf32> to vector<1x1x24xf32>
    %15 = vector.shape_cast %14 : vector<1x1x24xf32> to vector<1x24xf32>
    %16 = vector.broadcast %15 : vector<1x24xf32> to vector<24x24xf32>
    %17 = arith.addf %16, %9 : vector<24x24xf32>
    %c0_9 = arith.constant 0 : index
    %c0_10 = arith.constant 0 : index
    %c0_11 = arith.constant 0 : index
    %18 = vector.load %arg5[%c0_9, %c0_10, %c0_11] : memref<2x1x128xf32, #tpu.memory_space<vmem>>, vector<1x1x128xf32>
    %19 = vector.shape_cast %18 : vector<1x1x128xf32> to vector<1x128xf32>
    %c0_12 = arith.constant 0 : index
    %c0_13 = arith.constant 0 : index
    %c0_14 = arith.constant 0 : index
    %20 = vector.load %arg6[%c0_12, %c0_13, %c0_14] : memref<2x1x128xf32, #tpu.memory_space<vmem>>, vector<1x1x128xf32>
    %21 = vector.shape_cast %20 : vector<1x1x128xf32> to vector<1x128xf32>
    %c0_15 = arith.constant 0 : index
    %c0_16 = arith.constant 0 : index
    %c0_17 = arith.constant 0 : index
    %22 = vector.load %arg7[%c0_15, %c0_16, %c0_17] : memref<2x128x640xbf16, #tpu.memory_space<vmem>>, vector<1x128x640xbf16>
    %23 = vector.shape_cast %22 : vector<1x128x640xbf16> to vector<128x640xbf16>
    %c0_18 = arith.constant 0 : index
    %c0_19 = arith.constant 0 : index
    %c0_20 = arith.constant 0 : index
    %24 = vector.load %arg8[%c0_18, %c0_19, %c0_20] : memref<2x128x128xbf16, #tpu.memory_space<vmem>>, vector<1x128x128xbf16>
    %25 = vector.shape_cast %24 : vector<1x128x128xbf16> to vector<128x128xbf16>
    %c0_21 = arith.constant 0 : index
    %c0_22 = arith.constant 0 : index
    %c0_23 = arith.constant 0 : index
    %26 = vector.load %arg9[%c0_21, %c0_22, %c0_23] : memref<2x128x512xbf16, #tpu.memory_space<vmem>>, vector<1x128x512xbf16>
    %27 = vector.shape_cast %26 : vector<1x128x512xbf16> to vector<128x512xbf16>
    %c0_24 = arith.constant 0 : index
    %c0_25 = arith.constant 0 : index
    %c0_26 = arith.constant 0 : index
    %28 = vector.load %arg10[%c0_24, %c0_25, %c0_26] : memref<2x256x128xbf16, #tpu.memory_space<vmem>>, vector<1x256x128xbf16>
    %29 = vector.shape_cast %28 : vector<1x256x128xbf16> to vector<256x128xbf16>
    %30 = vector.extract_strided_slice %25 {offsets = [0, 0], sizes = [32, 128], strides = [1, 1]} : vector<128x128xbf16> to vector<32x128xbf16>
    %31 = vector.extract_strided_slice %25 {offsets = [32, 0], sizes = [32, 128], strides = [1, 1]} : vector<128x128xbf16> to vector<32x128xbf16>
    %32 = vector.extract_strided_slice %25 {offsets = [64, 0], sizes = [32, 128], strides = [1, 1]} : vector<128x128xbf16> to vector<32x128xbf16>
    %33 = vector.extract_strided_slice %25 {offsets = [96, 0], sizes = [32, 128], strides = [1, 1]} : vector<128x128xbf16> to vector<32x128xbf16>
    %34 = arith.mulf %0, %0 : vector<48x128xf32>
    %cst_27 = arith.constant dense<0.000000e+00> : vector<48xf32>
    %35 = vector.multi_reduction <add>, %34, %cst_27 [1] : vector<48x128xf32> to vector<48xf32>
    %36 = vector.shape_cast %35 : vector<48xf32> to vector<48x1xf32>
    %cst_28 = arith.constant 1.280000e+02 : f32
    %37 = vector.broadcast %cst_28 : f32 to vector<48x1xf32>
    %38 = arith.divf %36, %37 : vector<48x1xf32>
    %cst_29 = arith.constant 9.99999997E-7 : f32
    %39 = vector.broadcast %cst_29 : f32 to vector<48x1xf32>
    %40 = arith.addf %38, %39 : vector<48x1xf32>
    %41 = math.rsqrt %40 : vector<48x1xf32>
    %42 = vector.broadcast %41 : vector<48x1xf32> to vector<48x128xf32>
    %43 = arith.mulf %0, %42 : vector<48x128xf32>
    %44 = vector.broadcast %19 : vector<1x128xf32> to vector<48x128xf32>
    %45 = arith.mulf %43, %44 : vector<48x128xf32>
    %46 = arith.truncf %45 : vector<48x128xf32> to vector<48x128xbf16>
    %cst_30 = arith.constant dense<0.000000e+00> : vector<48x640xf32>
    %47 = tpu.matmul %46, %23, %cst_30 {dimension_numbers = #tpu.dot_dimension_numbers<[1], [0], [0], [1], [0, 0, 1, 1], [], []>} : vector<48x128xbf16>, vector<128x640xbf16>, vector<48x640xf32> -> vector<48x640xf32>
    %48 = vector.extract_strided_slice %47 {offsets = [0, 0], sizes = [48, 128], strides = [1, 1]} : vector<48x640xf32> to vector<48x128xf32>
    %49 = arith.mulf %48, %2 : vector<48x128xf32>
    %50 = vector.extract_strided_slice %47 {offsets = [0, 128], sizes = [48, 128], strides = [1, 1]} : vector<48x640xf32> to vector<48x128xf32>
    %51 = arith.mulf %50, %3 : vector<48x128xf32>
    %52 = arith.addf %49, %51 : vector<48x128xf32>
    %53 = arith.truncf %52 : vector<48x128xf32> to vector<48x128xbf16>
    %54 = vector.extract_strided_slice %47 {offsets = [0, 256], sizes = [48, 128], strides = [1, 1]} : vector<48x640xf32> to vector<48x128xf32>
    %55 = arith.mulf %54, %2 : vector<48x128xf32>
    %56 = vector.extract_strided_slice %47 {offsets = [0, 384], sizes = [48, 128], strides = [1, 1]} : vector<48x640xf32> to vector<48x128xf32>
    %57 = arith.mulf %56, %3 : vector<48x128xf32>
    %58 = arith.addf %55, %57 : vector<48x128xf32>
    %59 = arith.truncf %58 : vector<48x128xf32> to vector<48x128xbf16>
    %60 = vector.extract_strided_slice %47 {offsets = [0, 512], sizes = [48, 128], strides = [1, 1]} : vector<48x640xf32> to vector<48x128xf32>
    %61 = arith.truncf %60 : vector<48x128xf32> to vector<48x128xbf16>
    %62 = vector.extract_strided_slice %53 {offsets = [0, 0], sizes = [24, 128], strides = [1, 1]} : vector<48x128xbf16> to vector<24x128xbf16>
    %63 = vector.extract_strided_slice %59 {offsets = [0, 0], sizes = [24, 128], strides = [1, 1]} : vector<48x128xbf16> to vector<24x128xbf16>
    %64 = vector.extract_strided_slice %61 {offsets = [0, 0], sizes = [24, 128], strides = [1, 1]} : vector<48x128xbf16> to vector<24x128xbf16>
    %cst_31 = arith.constant 0.000000e+00 : f32
    %65 = vector.broadcast %cst_31 : f32 to vector<24x128xf32>
    %66 = vector.extract_strided_slice %62 {offsets = [0, 0], sizes = [24, 32], strides = [1, 1]} : vector<24x128xbf16> to vector<24x32xbf16>
    %67 = vector.extract_strided_slice %63 {offsets = [0, 0], sizes = [24, 32], strides = [1, 1]} : vector<24x128xbf16> to vector<24x32xbf16>
    %68 = vector.extract_strided_slice %64 {offsets = [0, 0], sizes = [24, 32], strides = [1, 1]} : vector<24x128xbf16> to vector<24x32xbf16>
    %cst_32 = arith.constant dense<0.000000e+00> : vector<24x24xf32>
    %69 = tpu.matmul %66, %67, %cst_32 {dimension_numbers = #tpu.dot_dimension_numbers<[1], [1], [0], [0], [0, 0, 1, 0], [], []>} : vector<24x32xbf16>, vector<24x32xbf16>, vector<24x24xf32> -> vector<24x24xf32>
    %cst_33 = arith.constant 0.176776692 : f32
    %70 = vector.broadcast %cst_33 : f32 to vector<24x24xf32>
    %71 = arith.mulf %69, %70 : vector<24x24xf32>
    %72 = arith.addf %71, %13 : vector<24x24xf32>
    %cst_34 = arith.constant dense<0xFF800000> : vector<24xf32>
    %73 = vector.multi_reduction <maximumf>, %72, %cst_34 [1] : vector<24x24xf32> to vector<24xf32>
    %74 = vector.shape_cast %73 : vector<24xf32> to vector<24x1xf32>
    %75 = vector.broadcast %74 : vector<24x1xf32> to vector<24x24xf32>
    %76 = arith.subf %72, %75 : vector<24x24xf32>
    %77 = math.exp %76 : vector<24x24xf32>
    %cst_35 = arith.constant dense<0.000000e+00> : vector<24xf32>
    %78 = vector.multi_reduction <add>, %77, %cst_35 [1] : vector<24x24xf32> to vector<24xf32>
    %79 = vector.shape_cast %78 : vector<24xf32> to vector<24x1xf32>
    %80 = vector.broadcast %79 : vector<24x1xf32> to vector<24x24xf32>
    %81 = arith.divf %77, %80 : vector<24x24xf32>
    %82 = arith.truncf %81 : vector<24x24xf32> to vector<24x24xbf16>
    %cst_36 = arith.constant dense<0.000000e+00> : vector<24x32xf32>
    %83 = tpu.matmul %82, %68, %cst_36 {dimension_numbers = #tpu.dot_dimension_numbers<[1], [0], [0], [1], [0, 0, 1, 1], [], []>} : vector<24x24xbf16>, vector<24x32xbf16>, vector<24x32xf32> -> vector<24x32xf32>
    %84 = arith.truncf %83 : vector<24x32xf32> to vector<24x32xbf16>
    %cst_37 = arith.constant dense<0.000000e+00> : vector<24x128xf32>
    %85 = tpu.matmul %84, %30, %cst_37 {dimension_numbers = #tpu.dot_dimension_numbers<[1], [0], [0], [1], [0, 0, 1, 1], [], []>} : vector<24x32xbf16>, vector<32x128xbf16>, vector<24x128xf32> -> vector<24x128xf32>
    %86 = arith.addf %65, %85 : vector<24x128xf32>
    %87 = vector.extract_strided_slice %62 {offsets = [0, 32], sizes = [24, 32], strides = [1, 1]} : vector<24x128xbf16> to vector<24x32xbf16>
    %88 = vector.extract_strided_slice %63 {offsets = [0, 32], sizes = [24, 32], strides = [1, 1]} : vector<24x128xbf16> to vector<24x32xbf16>
    %89 = vector.extract_strided_slice %64 {offsets = [0, 32], sizes = [24, 32], strides = [1, 1]} : vector<24x128xbf16> to vector<24x32xbf16>
    %cst_38 = arith.constant dense<0.000000e+00> : vector<24x24xf32>
    %90 = tpu.matmul %87, %88, %cst_38 {dimension_numbers = #tpu.dot_dimension_numbers<[1], [1], [0], [0], [0, 0, 1, 0], [], []>} : vector<24x32xbf16>, vector<24x32xbf16>, vector<24x24xf32> -> vector<24x24xf32>
    %cst_39 = arith.constant 0.176776692 : f32
    %91 = vector.broadcast %cst_39 : f32 to vector<24x24xf32>
    %92 = arith.mulf %90, %91 : vector<24x24xf32>
    %93 = arith.addf %92, %13 : vector<24x24xf32>
    %cst_40 = arith.constant dense<0xFF800000> : vector<24xf32>
    %94 = vector.multi_reduction <maximumf>, %93, %cst_40 [1] : vector<24x24xf32> to vector<24xf32>
    %95 = vector.shape_cast %94 : vector<24xf32> to vector<24x1xf32>
    %96 = vector.broadcast %95 : vector<24x1xf32> to vector<24x24xf32>
    %97 = arith.subf %93, %96 : vector<24x24xf32>
    %98 = math.exp %97 : vector<24x24xf32>
    %cst_41 = arith.constant dense<0.000000e+00> : vector<24xf32>
    %99 = vector.multi_reduction <add>, %98, %cst_41 [1] : vector<24x24xf32> to vector<24xf32>
    %100 = vector.shape_cast %99 : vector<24xf32> to vector<24x1xf32>
    %101 = vector.broadcast %100 : vector<24x1xf32> to vector<24x24xf32>
    %102 = arith.divf %98, %101 : vector<24x24xf32>
    %103 = arith.truncf %102 : vector<24x24xf32> to vector<24x24xbf16>
    %cst_42 = arith.constant dense<0.000000e+00> : vector<24x32xf32>
    %104 = tpu.matmul %103, %89, %cst_42 {dimension_numbers = #tpu.dot_dimension_numbers<[1], [0], [0], [1], [0, 0, 1, 1], [], []>} : vector<24x24xbf16>, vector<24x32xbf16>, vector<24x32xf32> -> vector<24x32xf32>
    %105 = arith.truncf %104 : vector<24x32xf32> to vector<24x32xbf16>
    %cst_43 = arith.constant dense<0.000000e+00> : vector<24x128xf32>
    %106 = tpu.matmul %105, %31, %cst_43 {dimension_numbers = #tpu.dot_dimension_numbers<[1], [0], [0], [1], [0, 0, 1, 1], [], []>} : vector<24x32xbf16>, vector<32x128xbf16>, vector<24x128xf32> -> vector<24x128xf32>
    %107 = arith.addf %86, %106 : vector<24x128xf32>
    %108 = vector.extract_strided_slice %62 {offsets = [0, 64], sizes = [24, 32], strides = [1, 1]} : vector<24x128xbf16> to vector<24x32xbf16>
    %109 = vector.extract_strided_slice %63 {offsets = [0, 64], sizes = [24, 32], strides = [1, 1]} : vector<24x128xbf16> to vector<24x32xbf16>
    %110 = vector.extract_strided_slice %64 {offsets = [0, 64], sizes = [24, 32], strides = [1, 1]} : vector<24x128xbf16> to vector<24x32xbf16>
    %cst_44 = arith.constant dense<0.000000e+00> : vector<24x24xf32>
    %111 = tpu.matmul %108, %109, %cst_44 {dimension_numbers = #tpu.dot_dimension_numbers<[1], [1], [0], [0], [0, 0, 1, 0], [], []>} : vector<24x32xbf16>, vector<24x32xbf16>, vector<24x24xf32> -> vector<24x24xf32>
    %cst_45 = arith.constant 0.176776692 : f32
    %112 = vector.broadcast %cst_45 : f32 to vector<24x24xf32>
    %113 = arith.mulf %111, %112 : vector<24x24xf32>
    %114 = arith.addf %113, %13 : vector<24x24xf32>
    %cst_46 = arith.constant dense<0xFF800000> : vector<24xf32>
    %115 = vector.multi_reduction <maximumf>, %114, %cst_46 [1] : vector<24x24xf32> to vector<24xf32>
    %116 = vector.shape_cast %115 : vector<24xf32> to vector<24x1xf32>
    %117 = vector.broadcast %116 : vector<24x1xf32> to vector<24x24xf32>
    %118 = arith.subf %114, %117 : vector<24x24xf32>
    %119 = math.exp %118 : vector<24x24xf32>
    %cst_47 = arith.constant dense<0.000000e+00> : vector<24xf32>
    %120 = vector.multi_reduction <add>, %119, %cst_47 [1] : vector<24x24xf32> to vector<24xf32>
    %121 = vector.shape_cast %120 : vector<24xf32> to vector<24x1xf32>
    %122 = vector.broadcast %121 : vector<24x1xf32> to vector<24x24xf32>
    %123 = arith.divf %119, %122 : vector<24x24xf32>
    %124 = arith.truncf %123 : vector<24x24xf32> to vector<24x24xbf16>
    %cst_48 = arith.constant dense<0.000000e+00> : vector<24x32xf32>
    %125 = tpu.matmul %124, %110, %cst_48 {dimension_numbers = #tpu.dot_dimension_numbers<[1], [0], [0], [1], [0, 0, 1, 1], [], []>} : vector<24x24xbf16>, vector<24x32xbf16>, vector<24x32xf32> -> vector<24x32xf32>
    %126 = arith.truncf %125 : vector<24x32xf32> to vector<24x32xbf16>
    %cst_49 = arith.constant dense<0.000000e+00> : vector<24x128xf32>
    %127 = tpu.matmul %126, %32, %cst_49 {dimension_numbers = #tpu.dot_dimension_numbers<[1], [0], [0], [1], [0, 0, 1, 1], [], []>} : vector<24x32xbf16>, vector<32x128xbf16>, vector<24x128xf32> -> vector<24x128xf32>
    %128 = arith.addf %107, %127 : vector<24x128xf32>
    %129 = vector.extract_strided_slice %62 {offsets = [0, 96], sizes = [24, 32], strides = [1, 1]} : vector<24x128xbf16> to vector<24x32xbf16>
    %130 = vector.extract_strided_slice %63 {offsets = [0, 96], sizes = [24, 32], strides = [1, 1]} : vector<24x128xbf16> to vector<24x32xbf16>
    %131 = vector.extract_strided_slice %64 {offsets = [0, 96], sizes = [24, 32], strides = [1, 1]} : vector<24x128xbf16> to vector<24x32xbf16>
    %cst_50 = arith.constant dense<0.000000e+00> : vector<24x24xf32>
    %132 = tpu.matmul %129, %130, %cst_50 {dimension_numbers = #tpu.dot_dimension_numbers<[1], [1], [0], [0], [0, 0, 1, 0], [], []>} : vector<24x32xbf16>, vector<24x32xbf16>, vector<24x24xf32> -> vector<24x24xf32>
    %cst_51 = arith.constant 0.176776692 : f32
    %133 = vector.broadcast %cst_51 : f32 to vector<24x24xf32>
    %134 = arith.mulf %132, %133 : vector<24x24xf32>
    %135 = arith.addf %134, %13 : vector<24x24xf32>
    %cst_52 = arith.constant dense<0xFF800000> : vector<24xf32>
    %136 = vector.multi_reduction <maximumf>, %135, %cst_52 [1] : vector<24x24xf32> to vector<24xf32>
    %137 = vector.shape_cast %136 : vector<24xf32> to vector<24x1xf32>
    %138 = vector.broadcast %137 : vector<24x1xf32> to vector<24x24xf32>
    %139 = arith.subf %135, %138 : vector<24x24xf32>
    %140 = math.exp %139 : vector<24x24xf32>
    %cst_53 = arith.constant dense<0.000000e+00> : vector<24xf32>
    %141 = vector.multi_reduction <add>, %140, %cst_53 [1] : vector<24x24xf32> to vector<24xf32>
    %142 = vector.shape_cast %141 : vector<24xf32> to vector<24x1xf32>
    %143 = vector.broadcast %142 : vector<24x1xf32> to vector<24x24xf32>
    %144 = arith.divf %140, %143 : vector<24x24xf32>
    %145 = arith.truncf %144 : vector<24x24xf32> to vector<24x24xbf16>
    %cst_54 = arith.constant dense<0.000000e+00> : vector<24x32xf32>
    %146 = tpu.matmul %145, %131, %cst_54 {dimension_numbers = #tpu.dot_dimension_numbers<[1], [0], [0], [1], [0, 0, 1, 1], [], []>} : vector<24x24xbf16>, vector<24x32xbf16>, vector<24x32xf32> -> vector<24x32xf32>
    %147 = arith.truncf %146 : vector<24x32xf32> to vector<24x32xbf16>
    %cst_55 = arith.constant dense<0.000000e+00> : vector<24x128xf32>
    %148 = tpu.matmul %147, %33, %cst_55 {dimension_numbers = #tpu.dot_dimension_numbers<[1], [0], [0], [1], [0, 0, 1, 1], [], []>} : vector<24x32xbf16>, vector<32x128xbf16>, vector<24x128xf32> -> vector<24x128xf32>
    %149 = arith.addf %128, %148 : vector<24x128xf32>
    %150 = vector.extract_strided_slice %53 {offsets = [24, 0], sizes = [24, 128], strides = [1, 1]} : vector<48x128xbf16> to vector<24x128xbf16>
    %151 = vector.extract_strided_slice %59 {offsets = [24, 0], sizes = [24, 128], strides = [1, 1]} : vector<48x128xbf16> to vector<24x128xbf16>
    %152 = vector.extract_strided_slice %61 {offsets = [24, 0], sizes = [24, 128], strides = [1, 1]} : vector<48x128xbf16> to vector<24x128xbf16>
    %cst_56 = arith.constant 0.000000e+00 : f32
    %153 = vector.broadcast %cst_56 : f32 to vector<24x128xf32>
    %154 = vector.extract_strided_slice %150 {offsets = [0, 0], sizes = [24, 32], strides = [1, 1]} : vector<24x128xbf16> to vector<24x32xbf16>
    %155 = vector.extract_strided_slice %151 {offsets = [0, 0], sizes = [24, 32], strides = [1, 1]} : vector<24x128xbf16> to vector<24x32xbf16>
    %156 = vector.extract_strided_slice %152 {offsets = [0, 0], sizes = [24, 32], strides = [1, 1]} : vector<24x128xbf16> to vector<24x32xbf16>
    %cst_57 = arith.constant dense<0.000000e+00> : vector<24x24xf32>
    %157 = tpu.matmul %154, %155, %cst_57 {dimension_numbers = #tpu.dot_dimension_numbers<[1], [1], [0], [0], [0, 0, 1, 0], [], []>} : vector<24x32xbf16>, vector<24x32xbf16>, vector<24x24xf32> -> vector<24x24xf32>
    %cst_58 = arith.constant 0.176776692 : f32
    %158 = vector.broadcast %cst_58 : f32 to vector<24x24xf32>
    %159 = arith.mulf %157, %158 : vector<24x24xf32>
    %160 = arith.addf %159, %17 : vector<24x24xf32>
    %cst_59 = arith.constant dense<0xFF800000> : vector<24xf32>
    %161 = vector.multi_reduction <maximumf>, %160, %cst_59 [1] : vector<24x24xf32> to vector<24xf32>
    %162 = vector.shape_cast %161 : vector<24xf32> to vector<24x1xf32>
    %163 = vector.broadcast %162 : vector<24x1xf32> to vector<24x24xf32>
    %164 = arith.subf %160, %163 : vector<24x24xf32>
    %165 = math.exp %164 : vector<24x24xf32>
    %cst_60 = arith.constant dense<0.000000e+00> : vector<24xf32>
    %166 = vector.multi_reduction <add>, %165, %cst_60 [1] : vector<24x24xf32> to vector<24xf32>
    %167 = vector.shape_cast %166 : vector<24xf32> to vector<24x1xf32>
    %168 = vector.broadcast %167 : vector<24x1xf32> to vector<24x24xf32>
    %169 = arith.divf %165, %168 : vector<24x24xf32>
    %170 = arith.truncf %169 : vector<24x24xf32> to vector<24x24xbf16>
    %cst_61 = arith.constant dense<0.000000e+00> : vector<24x32xf32>
    %171 = tpu.matmul %170, %156, %cst_61 {dimension_numbers = #tpu.dot_dimension_numbers<[1], [0], [0], [1], [0, 0, 1, 1], [], []>} : vector<24x24xbf16>, vector<24x32xbf16>, vector<24x32xf32> -> vector<24x32xf32>
    %172 = arith.truncf %171 : vector<24x32xf32> to vector<24x32xbf16>
    %cst_62 = arith.constant dense<0.000000e+00> : vector<24x128xf32>
    %173 = tpu.matmul %172, %30, %cst_62 {dimension_numbers = #tpu.dot_dimension_numbers<[1], [0], [0], [1], [0, 0, 1, 1], [], []>} : vector<24x32xbf16>, vector<32x128xbf16>, vector<24x128xf32> -> vector<24x128xf32>
    %174 = arith.addf %153, %173 : vector<24x128xf32>
    %175 = vector.extract_strided_slice %150 {offsets = [0, 32], sizes = [24, 32], strides = [1, 1]} : vector<24x128xbf16> to vector<24x32xbf16>
    %176 = vector.extract_strided_slice %151 {offsets = [0, 32], sizes = [24, 32], strides = [1, 1]} : vector<24x128xbf16> to vector<24x32xbf16>
    %177 = vector.extract_strided_slice %152 {offsets = [0, 32], sizes = [24, 32], strides = [1, 1]} : vector<24x128xbf16> to vector<24x32xbf16>
    %cst_63 = arith.constant dense<0.000000e+00> : vector<24x24xf32>
    %178 = tpu.matmul %175, %176, %cst_63 {dimension_numbers = #tpu.dot_dimension_numbers<[1], [1], [0], [0], [0, 0, 1, 0], [], []>} : vector<24x32xbf16>, vector<24x32xbf16>, vector<24x24xf32> -> vector<24x24xf32>
    %cst_64 = arith.constant 0.176776692 : f32
    %179 = vector.broadcast %cst_64 : f32 to vector<24x24xf32>
    %180 = arith.mulf %178, %179 : vector<24x24xf32>
    %181 = arith.addf %180, %17 : vector<24x24xf32>
    %cst_65 = arith.constant dense<0xFF800000> : vector<24xf32>
    %182 = vector.multi_reduction <maximumf>, %181, %cst_65 [1] : vector<24x24xf32> to vector<24xf32>
    %183 = vector.shape_cast %182 : vector<24xf32> to vector<24x1xf32>
    %184 = vector.broadcast %183 : vector<24x1xf32> to vector<24x24xf32>
    %185 = arith.subf %181, %184 : vector<24x24xf32>
    %186 = math.exp %185 : vector<24x24xf32>
    %cst_66 = arith.constant dense<0.000000e+00> : vector<24xf32>
    %187 = vector.multi_reduction <add>, %186, %cst_66 [1] : vector<24x24xf32> to vector<24xf32>
    %188 = vector.shape_cast %187 : vector<24xf32> to vector<24x1xf32>
    %189 = vector.broadcast %188 : vector<24x1xf32> to vector<24x24xf32>
    %190 = arith.divf %186, %189 : vector<24x24xf32>
    %191 = arith.truncf %190 : vector<24x24xf32> to vector<24x24xbf16>
    %cst_67 = arith.constant dense<0.000000e+00> : vector<24x32xf32>
    %192 = tpu.matmul %191, %177, %cst_67 {dimension_numbers = #tpu.dot_dimension_numbers<[1], [0], [0], [1], [0, 0, 1, 1], [], []>} : vector<24x24xbf16>, vector<24x32xbf16>, vector<24x32xf32> -> vector<24x32xf32>
    %193 = arith.truncf %192 : vector<24x32xf32> to vector<24x32xbf16>
    %cst_68 = arith.constant dense<0.000000e+00> : vector<24x128xf32>
    %194 = tpu.matmul %193, %31, %cst_68 {dimension_numbers = #tpu.dot_dimension_numbers<[1], [0], [0], [1], [0, 0, 1, 1], [], []>} : vector<24x32xbf16>, vector<32x128xbf16>, vector<24x128xf32> -> vector<24x128xf32>
    %195 = arith.addf %174, %194 : vector<24x128xf32>
    %196 = vector.extract_strided_slice %150 {offsets = [0, 64], sizes = [24, 32], strides = [1, 1]} : vector<24x128xbf16> to vector<24x32xbf16>
    %197 = vector.extract_strided_slice %151 {offsets = [0, 64], sizes = [24, 32], strides = [1, 1]} : vector<24x128xbf16> to vector<24x32xbf16>
    %198 = vector.extract_strided_slice %152 {offsets = [0, 64], sizes = [24, 32], strides = [1, 1]} : vector<24x128xbf16> to vector<24x32xbf16>
    %cst_69 = arith.constant dense<0.000000e+00> : vector<24x24xf32>
    %199 = tpu.matmul %196, %197, %cst_69 {dimension_numbers = #tpu.dot_dimension_numbers<[1], [1], [0], [0], [0, 0, 1, 0], [], []>} : vector<24x32xbf16>, vector<24x32xbf16>, vector<24x24xf32> -> vector<24x24xf32>
    %cst_70 = arith.constant 0.176776692 : f32
    %200 = vector.broadcast %cst_70 : f32 to vector<24x24xf32>
    %201 = arith.mulf %199, %200 : vector<24x24xf32>
    %202 = arith.addf %201, %17 : vector<24x24xf32>
    %cst_71 = arith.constant dense<0xFF800000> : vector<24xf32>
    %203 = vector.multi_reduction <maximumf>, %202, %cst_71 [1] : vector<24x24xf32> to vector<24xf32>
    %204 = vector.shape_cast %203 : vector<24xf32> to vector<24x1xf32>
    %205 = vector.broadcast %204 : vector<24x1xf32> to vector<24x24xf32>
    %206 = arith.subf %202, %205 : vector<24x24xf32>
    %207 = math.exp %206 : vector<24x24xf32>
    %cst_72 = arith.constant dense<0.000000e+00> : vector<24xf32>
    %208 = vector.multi_reduction <add>, %207, %cst_72 [1] : vector<24x24xf32> to vector<24xf32>
    %209 = vector.shape_cast %208 : vector<24xf32> to vector<24x1xf32>
    %210 = vector.broadcast %209 : vector<24x1xf32> to vector<24x24xf32>
    %211 = arith.divf %207, %210 : vector<24x24xf32>
    %212 = arith.truncf %211 : vector<24x24xf32> to vector<24x24xbf16>
    %cst_73 = arith.constant dense<0.000000e+00> : vector<24x32xf32>
    %213 = tpu.matmul %212, %198, %cst_73 {dimension_numbers = #tpu.dot_dimension_numbers<[1], [0], [0], [1], [0, 0, 1, 1], [], []>} : vector<24x24xbf16>, vector<24x32xbf16>, vector<24x32xf32> -> vector<24x32xf32>
    %214 = arith.truncf %213 : vector<24x32xf32> to vector<24x32xbf16>
    %cst_74 = arith.constant dense<0.000000e+00> : vector<24x128xf32>
    %215 = tpu.matmul %214, %32, %cst_74 {dimension_numbers = #tpu.dot_dimension_numbers<[1], [0], [0], [1], [0, 0, 1, 1], [], []>} : vector<24x32xbf16>, vector<32x128xbf16>, vector<24x128xf32> -> vector<24x128xf32>
    %216 = arith.addf %195, %215 : vector<24x128xf32>
    %217 = vector.extract_strided_slice %150 {offsets = [0, 96], sizes = [24, 32], strides = [1, 1]} : vector<24x128xbf16> to vector<24x32xbf16>
    %218 = vector.extract_strided_slice %151 {offsets = [0, 96], sizes = [24, 32], strides = [1, 1]} : vector<24x128xbf16> to vector<24x32xbf16>
    %219 = vector.extract_strided_slice %152 {offsets = [0, 96], sizes = [24, 32], strides = [1, 1]} : vector<24x128xbf16> to vector<24x32xbf16>
    %cst_75 = arith.constant dense<0.000000e+00> : vector<24x24xf32>
    %220 = tpu.matmul %217, %218, %cst_75 {dimension_numbers = #tpu.dot_dimension_numbers<[1], [1], [0], [0], [0, 0, 1, 0], [], []>} : vector<24x32xbf16>, vector<24x32xbf16>, vector<24x24xf32> -> vector<24x24xf32>
    %cst_76 = arith.constant 0.176776692 : f32
    %221 = vector.broadcast %cst_76 : f32 to vector<24x24xf32>
    %222 = arith.mulf %220, %221 : vector<24x24xf32>
    %223 = arith.addf %222, %17 : vector<24x24xf32>
    %cst_77 = arith.constant dense<0xFF800000> : vector<24xf32>
    %224 = vector.multi_reduction <maximumf>, %223, %cst_77 [1] : vector<24x24xf32> to vector<24xf32>
    %225 = vector.shape_cast %224 : vector<24xf32> to vector<24x1xf32>
    %226 = vector.broadcast %225 : vector<24x1xf32> to vector<24x24xf32>
    %227 = arith.subf %223, %226 : vector<24x24xf32>
    %228 = math.exp %227 : vector<24x24xf32>
    %cst_78 = arith.constant dense<0.000000e+00> : vector<24xf32>
    %229 = vector.multi_reduction <add>, %228, %cst_78 [1] : vector<24x24xf32> to vector<24xf32>
    %230 = vector.shape_cast %229 : vector<24xf32> to vector<24x1xf32>
    %231 = vector.broadcast %230 : vector<24x1xf32> to vector<24x24xf32>
    %232 = arith.divf %228, %231 : vector<24x24xf32>
    %233 = arith.truncf %232 : vector<24x24xf32> to vector<24x24xbf16>
    %cst_79 = arith.constant dense<0.000000e+00> : vector<24x32xf32>
    %234 = tpu.matmul %233, %219, %cst_79 {dimension_numbers = #tpu.dot_dimension_numbers<[1], [0], [0], [1], [0, 0, 1, 1], [], []>} : vector<24x24xbf16>, vector<24x32xbf16>, vector<24x32xf32> -> vector<24x32xf32>
    %235 = arith.truncf %234 : vector<24x32xf32> to vector<24x32xbf16>
    %cst_80 = arith.constant dense<0.000000e+00> : vector<24x128xf32>
    %236 = tpu.matmul %235, %33, %cst_80 {dimension_numbers = #tpu.dot_dimension_numbers<[1], [0], [0], [1], [0, 0, 1, 1], [], []>} : vector<24x32xbf16>, vector<32x128xbf16>, vector<24x128xf32> -> vector<24x128xf32>
    %237 = arith.addf %216, %236 : vector<24x128xf32>
    %238 = tpu.concatenate %149, %237 in 0 : vector<24x128xf32>, vector<24x128xf32> -> vector<48x128xf32>
    %239 = arith.addf %0, %238 : vector<48x128xf32>
    %240 = arith.mulf %239, %239 : vector<48x128xf32>
    %cst_81 = arith.constant dense<0.000000e+00> : vector<48xf32>
    %241 = vector.multi_reduction <add>, %240, %cst_81 [1] : vector<48x128xf32> to vector<48xf32>
    %242 = vector.shape_cast %241 : vector<48xf32> to vector<48x1xf32>
    %cst_82 = arith.constant 1.280000e+02 : f32
    %243 = vector.broadcast %cst_82 : f32 to vector<48x1xf32>
    %244 = arith.divf %242, %243 : vector<48x1xf32>
    %cst_83 = arith.constant 9.99999997E-7 : f32
    %245 = vector.broadcast %cst_83 : f32 to vector<48x1xf32>
    %246 = arith.addf %244, %245 : vector<48x1xf32>
    %247 = math.rsqrt %246 : vector<48x1xf32>
    %248 = vector.broadcast %247 : vector<48x1xf32> to vector<48x128xf32>
    %249 = arith.mulf %239, %248 : vector<48x128xf32>
    %250 = vector.broadcast %21 : vector<1x128xf32> to vector<48x128xf32>
    %251 = arith.mulf %249, %250 : vector<48x128xf32>
    %252 = arith.truncf %251 : vector<48x128xf32> to vector<48x128xbf16>
    %cst_84 = arith.constant dense<0.000000e+00> : vector<48x512xf32>
    %253 = tpu.matmul %252, %27, %cst_84 {dimension_numbers = #tpu.dot_dimension_numbers<[1], [0], [0], [1], [0, 0, 1, 1], [], []>} : vector<48x128xbf16>, vector<128x512xbf16>, vector<48x512xf32> -> vector<48x512xf32>
    %254 = vector.extract_strided_slice %253 {offsets = [0, 0], sizes = [48, 256], strides = [1, 1]} : vector<48x512xf32> to vector<48x256xf32>
    %255 = vector.extract_strided_slice %253 {offsets = [0, 256], sizes = [48, 256], strides = [1, 1]} : vector<48x512xf32> to vector<48x256xf32>
    %cst_85 = arith.constant 0.000000e+00 : f32
    %256 = vector.broadcast %cst_85 : f32 to vector<48x256xf32>
    %257 = arith.subf %256, %254 : vector<48x256xf32>
    %258 = math.exp %257 : vector<48x256xf32>
    %cst_86 = arith.constant 1.000000e+00 : f32
    %259 = vector.broadcast %cst_86 : f32 to vector<48x256xf32>
    %260 = arith.addf %259, %258 : vector<48x256xf32>
    %261 = arith.divf %254, %260 : vector<48x256xf32>
    %262 = arith.mulf %261, %255 : vector<48x256xf32>
    %263 = arith.truncf %262 : vector<48x256xf32> to vector<48x256xbf16>
    %cst_87 = arith.constant dense<0.000000e+00> : vector<48x128xf32>
    %264 = tpu.matmul %263, %29, %cst_87 {dimension_numbers = #tpu.dot_dimension_numbers<[1], [0], [0], [1], [0, 0, 1, 1], [], []>} : vector<48x256xbf16>, vector<256x128xbf16>, vector<48x128xf32> -> vector<48x128xf32>
    %265 = arith.addf %239, %264 : vector<48x128xf32>
    %c1 = arith.constant 1 : index
    %c0_88 = arith.constant 0 : index
    %c0_89 = arith.constant 0 : index
    %266 = vector.load %arg5[%c1, %c0_88, %c0_89] : memref<2x1x128xf32, #tpu.memory_space<vmem>>, vector<1x1x128xf32>
    %267 = vector.shape_cast %266 : vector<1x1x128xf32> to vector<1x128xf32>
    %c1_90 = arith.constant 1 : index
    %c0_91 = arith.constant 0 : index
    %c0_92 = arith.constant 0 : index
    %268 = vector.load %arg6[%c1_90, %c0_91, %c0_92] : memref<2x1x128xf32, #tpu.memory_space<vmem>>, vector<1x1x128xf32>
    %269 = vector.shape_cast %268 : vector<1x1x128xf32> to vector<1x128xf32>
    %c1_93 = arith.constant 1 : index
    %c0_94 = arith.constant 0 : index
    %c0_95 = arith.constant 0 : index
    %270 = vector.load %arg7[%c1_93, %c0_94, %c0_95] : memref<2x128x640xbf16, #tpu.memory_space<vmem>>, vector<1x128x640xbf16>
    %271 = vector.shape_cast %270 : vector<1x128x640xbf16> to vector<128x640xbf16>
    %c1_96 = arith.constant 1 : index
    %c0_97 = arith.constant 0 : index
    %c0_98 = arith.constant 0 : index
    %272 = vector.load %arg8[%c1_96, %c0_97, %c0_98] : memref<2x128x128xbf16, #tpu.memory_space<vmem>>, vector<1x128x128xbf16>
    %273 = vector.shape_cast %272 : vector<1x128x128xbf16> to vector<128x128xbf16>
    %c1_99 = arith.constant 1 : index
    %c0_100 = arith.constant 0 : index
    %c0_101 = arith.constant 0 : index
    %274 = vector.load %arg9[%c1_99, %c0_100, %c0_101] : memref<2x128x512xbf16, #tpu.memory_space<vmem>>, vector<1x128x512xbf16>
    %275 = vector.shape_cast %274 : vector<1x128x512xbf16> to vector<128x512xbf16>
    %c1_102 = arith.constant 1 : index
    %c0_103 = arith.constant 0 : index
    %c0_104 = arith.constant 0 : index
    %276 = vector.load %arg10[%c1_102, %c0_103, %c0_104] : memref<2x256x128xbf16, #tpu.memory_space<vmem>>, vector<1x256x128xbf16>
    %277 = vector.shape_cast %276 : vector<1x256x128xbf16> to vector<256x128xbf16>
    %278 = vector.extract_strided_slice %273 {offsets = [0, 0], sizes = [32, 128], strides = [1, 1]} : vector<128x128xbf16> to vector<32x128xbf16>
    %279 = vector.extract_strided_slice %273 {offsets = [32, 0], sizes = [32, 128], strides = [1, 1]} : vector<128x128xbf16> to vector<32x128xbf16>
    %280 = vector.extract_strided_slice %273 {offsets = [64, 0], sizes = [32, 128], strides = [1, 1]} : vector<128x128xbf16> to vector<32x128xbf16>
    %281 = vector.extract_strided_slice %273 {offsets = [96, 0], sizes = [32, 128], strides = [1, 1]} : vector<128x128xbf16> to vector<32x128xbf16>
    %282 = arith.mulf %265, %265 : vector<48x128xf32>
    %cst_105 = arith.constant dense<0.000000e+00> : vector<48xf32>
    %283 = vector.multi_reduction <add>, %282, %cst_105 [1] : vector<48x128xf32> to vector<48xf32>
    %284 = vector.shape_cast %283 : vector<48xf32> to vector<48x1xf32>
    %cst_106 = arith.constant 1.280000e+02 : f32
    %285 = vector.broadcast %cst_106 : f32 to vector<48x1xf32>
    %286 = arith.divf %284, %285 : vector<48x1xf32>
    %cst_107 = arith.constant 9.99999997E-7 : f32
    %287 = vector.broadcast %cst_107 : f32 to vector<48x1xf32>
    %288 = arith.addf %286, %287 : vector<48x1xf32>
    %289 = math.rsqrt %288 : vector<48x1xf32>
    %290 = vector.broadcast %289 : vector<48x1xf32> to vector<48x128xf32>
    %291 = arith.mulf %265, %290 : vector<48x128xf32>
    %292 = vector.broadcast %267 : vector<1x128xf32> to vector<48x128xf32>
    %293 = arith.mulf %291, %292 : vector<48x128xf32>
    %294 = arith.truncf %293 : vector<48x128xf32> to vector<48x128xbf16>
    %cst_108 = arith.constant dense<0.000000e+00> : vector<48x640xf32>
    %295 = tpu.matmul %294, %271, %cst_108 {dimension_numbers = #tpu.dot_dimension_numbers<[1], [0], [0], [1], [0, 0, 1, 1], [], []>} : vector<48x128xbf16>, vector<128x640xbf16>, vector<48x640xf32> -> vector<48x640xf32>
    %296 = vector.extract_strided_slice %295 {offsets = [0, 0], sizes = [48, 128], strides = [1, 1]} : vector<48x640xf32> to vector<48x128xf32>
    %297 = arith.mulf %296, %2 : vector<48x128xf32>
    %298 = vector.extract_strided_slice %295 {offsets = [0, 128], sizes = [48, 128], strides = [1, 1]} : vector<48x640xf32> to vector<48x128xf32>
    %299 = arith.mulf %298, %3 : vector<48x128xf32>
    %300 = arith.addf %297, %299 : vector<48x128xf32>
    %301 = arith.truncf %300 : vector<48x128xf32> to vector<48x128xbf16>
    %302 = vector.extract_strided_slice %295 {offsets = [0, 256], sizes = [48, 128], strides = [1, 1]} : vector<48x640xf32> to vector<48x128xf32>
    %303 = arith.mulf %302, %2 : vector<48x128xf32>
    %304 = vector.extract_strided_slice %295 {offsets = [0, 384], sizes = [48, 128], strides = [1, 1]} : vector<48x640xf32> to vector<48x128xf32>
    %305 = arith.mulf %304, %3 : vector<48x128xf32>
    %306 = arith.addf %303, %305 : vector<48x128xf32>
    %307 = arith.truncf %306 : vector<48x128xf32> to vector<48x128xbf16>
    %308 = vector.extract_strided_slice %295 {offsets = [0, 512], sizes = [48, 128], strides = [1, 1]} : vector<48x640xf32> to vector<48x128xf32>
    %309 = arith.truncf %308 : vector<48x128xf32> to vector<48x128xbf16>
    %310 = vector.extract_strided_slice %301 {offsets = [0, 0], sizes = [24, 128], strides = [1, 1]} : vector<48x128xbf16> to vector<24x128xbf16>
    %311 = vector.extract_strided_slice %307 {offsets = [0, 0], sizes = [24, 128], strides = [1, 1]} : vector<48x128xbf16> to vector<24x128xbf16>
    %312 = vector.extract_strided_slice %309 {offsets = [0, 0], sizes = [24, 128], strides = [1, 1]} : vector<48x128xbf16> to vector<24x128xbf16>
    %cst_109 = arith.constant 0.000000e+00 : f32
    %313 = vector.broadcast %cst_109 : f32 to vector<24x128xf32>
    %314 = vector.extract_strided_slice %310 {offsets = [0, 0], sizes = [24, 32], strides = [1, 1]} : vector<24x128xbf16> to vector<24x32xbf16>
    %315 = vector.extract_strided_slice %311 {offsets = [0, 0], sizes = [24, 32], strides = [1, 1]} : vector<24x128xbf16> to vector<24x32xbf16>
    %316 = vector.extract_strided_slice %312 {offsets = [0, 0], sizes = [24, 32], strides = [1, 1]} : vector<24x128xbf16> to vector<24x32xbf16>
    %cst_110 = arith.constant dense<0.000000e+00> : vector<24x24xf32>
    %317 = tpu.matmul %314, %315, %cst_110 {dimension_numbers = #tpu.dot_dimension_numbers<[1], [1], [0], [0], [0, 0, 1, 0], [], []>} : vector<24x32xbf16>, vector<24x32xbf16>, vector<24x24xf32> -> vector<24x24xf32>
    %cst_111 = arith.constant 0.176776692 : f32
    %318 = vector.broadcast %cst_111 : f32 to vector<24x24xf32>
    %319 = arith.mulf %317, %318 : vector<24x24xf32>
    %320 = arith.addf %319, %13 : vector<24x24xf32>
    %cst_112 = arith.constant dense<0xFF800000> : vector<24xf32>
    %321 = vector.multi_reduction <maximumf>, %320, %cst_112 [1] : vector<24x24xf32> to vector<24xf32>
    %322 = vector.shape_cast %321 : vector<24xf32> to vector<24x1xf32>
    %323 = vector.broadcast %322 : vector<24x1xf32> to vector<24x24xf32>
    %324 = arith.subf %320, %323 : vector<24x24xf32>
    %325 = math.exp %324 : vector<24x24xf32>
    %cst_113 = arith.constant dense<0.000000e+00> : vector<24xf32>
    %326 = vector.multi_reduction <add>, %325, %cst_113 [1] : vector<24x24xf32> to vector<24xf32>
    %327 = vector.shape_cast %326 : vector<24xf32> to vector<24x1xf32>
    %328 = vector.broadcast %327 : vector<24x1xf32> to vector<24x24xf32>
    %329 = arith.divf %325, %328 : vector<24x24xf32>
    %330 = arith.truncf %329 : vector<24x24xf32> to vector<24x24xbf16>
    %cst_114 = arith.constant dense<0.000000e+00> : vector<24x32xf32>
    %331 = tpu.matmul %330, %316, %cst_114 {dimension_numbers = #tpu.dot_dimension_numbers<[1], [0], [0], [1], [0, 0, 1, 1], [], []>} : vector<24x24xbf16>, vector<24x32xbf16>, vector<24x32xf32> -> vector<24x32xf32>
    %332 = arith.truncf %331 : vector<24x32xf32> to vector<24x32xbf16>
    %cst_115 = arith.constant dense<0.000000e+00> : vector<24x128xf32>
    %333 = tpu.matmul %332, %278, %cst_115 {dimension_numbers = #tpu.dot_dimension_numbers<[1], [0], [0], [1], [0, 0, 1, 1], [], []>} : vector<24x32xbf16>, vector<32x128xbf16>, vector<24x128xf32> -> vector<24x128xf32>
    %334 = arith.addf %313, %333 : vector<24x128xf32>
    %335 = vector.extract_strided_slice %310 {offsets = [0, 32], sizes = [24, 32], strides = [1, 1]} : vector<24x128xbf16> to vector<24x32xbf16>
    %336 = vector.extract_strided_slice %311 {offsets = [0, 32], sizes = [24, 32], strides = [1, 1]} : vector<24x128xbf16> to vector<24x32xbf16>
    %337 = vector.extract_strided_slice %312 {offsets = [0, 32], sizes = [24, 32], strides = [1, 1]} : vector<24x128xbf16> to vector<24x32xbf16>
    %cst_116 = arith.constant dense<0.000000e+00> : vector<24x24xf32>
    %338 = tpu.matmul %335, %336, %cst_116 {dimension_numbers = #tpu.dot_dimension_numbers<[1], [1], [0], [0], [0, 0, 1, 0], [], []>} : vector<24x32xbf16>, vector<24x32xbf16>, vector<24x24xf32> -> vector<24x24xf32>
    %cst_117 = arith.constant 0.176776692 : f32
    %339 = vector.broadcast %cst_117 : f32 to vector<24x24xf32>
    %340 = arith.mulf %338, %339 : vector<24x24xf32>
    %341 = arith.addf %340, %13 : vector<24x24xf32>
    %cst_118 = arith.constant dense<0xFF800000> : vector<24xf32>
    %342 = vector.multi_reduction <maximumf>, %341, %cst_118 [1] : vector<24x24xf32> to vector<24xf32>
    %343 = vector.shape_cast %342 : vector<24xf32> to vector<24x1xf32>
    %344 = vector.broadcast %343 : vector<24x1xf32> to vector<24x24xf32>
    %345 = arith.subf %341, %344 : vector<24x24xf32>
    %346 = math.exp %345 : vector<24x24xf32>
    %cst_119 = arith.constant dense<0.000000e+00> : vector<24xf32>
    %347 = vector.multi_reduction <add>, %346, %cst_119 [1] : vector<24x24xf32> to vector<24xf32>
    %348 = vector.shape_cast %347 : vector<24xf32> to vector<24x1xf32>
    %349 = vector.broadcast %348 : vector<24x1xf32> to vector<24x24xf32>
    %350 = arith.divf %346, %349 : vector<24x24xf32>
    %351 = arith.truncf %350 : vector<24x24xf32> to vector<24x24xbf16>
    %cst_120 = arith.constant dense<0.000000e+00> : vector<24x32xf32>
    %352 = tpu.matmul %351, %337, %cst_120 {dimension_numbers = #tpu.dot_dimension_numbers<[1], [0], [0], [1], [0, 0, 1, 1], [], []>} : vector<24x24xbf16>, vector<24x32xbf16>, vector<24x32xf32> -> vector<24x32xf32>
    %353 = arith.truncf %352 : vector<24x32xf32> to vector<24x32xbf16>
    %cst_121 = arith.constant dense<0.000000e+00> : vector<24x128xf32>
    %354 = tpu.matmul %353, %279, %cst_121 {dimension_numbers = #tpu.dot_dimension_numbers<[1], [0], [0], [1], [0, 0, 1, 1], [], []>} : vector<24x32xbf16>, vector<32x128xbf16>, vector<24x128xf32> -> vector<24x128xf32>
    %355 = arith.addf %334, %354 : vector<24x128xf32>
    %356 = vector.extract_strided_slice %310 {offsets = [0, 64], sizes = [24, 32], strides = [1, 1]} : vector<24x128xbf16> to vector<24x32xbf16>
    %357 = vector.extract_strided_slice %311 {offsets = [0, 64], sizes = [24, 32], strides = [1, 1]} : vector<24x128xbf16> to vector<24x32xbf16>
    %358 = vector.extract_strided_slice %312 {offsets = [0, 64], sizes = [24, 32], strides = [1, 1]} : vector<24x128xbf16> to vector<24x32xbf16>
    %cst_122 = arith.constant dense<0.000000e+00> : vector<24x24xf32>
    %359 = tpu.matmul %356, %357, %cst_122 {dimension_numbers = #tpu.dot_dimension_numbers<[1], [1], [0], [0], [0, 0, 1, 0], [], []>} : vector<24x32xbf16>, vector<24x32xbf16>, vector<24x24xf32> -> vector<24x24xf32>
    %cst_123 = arith.constant 0.176776692 : f32
    %360 = vector.broadcast %cst_123 : f32 to vector<24x24xf32>
    %361 = arith.mulf %359, %360 : vector<24x24xf32>
    %362 = arith.addf %361, %13 : vector<24x24xf32>
    %cst_124 = arith.constant dense<0xFF800000> : vector<24xf32>
    %363 = vector.multi_reduction <maximumf>, %362, %cst_124 [1] : vector<24x24xf32> to vector<24xf32>
    %364 = vector.shape_cast %363 : vector<24xf32> to vector<24x1xf32>
    %365 = vector.broadcast %364 : vector<24x1xf32> to vector<24x24xf32>
    %366 = arith.subf %362, %365 : vector<24x24xf32>
    %367 = math.exp %366 : vector<24x24xf32>
    %cst_125 = arith.constant dense<0.000000e+00> : vector<24xf32>
    %368 = vector.multi_reduction <add>, %367, %cst_125 [1] : vector<24x24xf32> to vector<24xf32>
    %369 = vector.shape_cast %368 : vector<24xf32> to vector<24x1xf32>
    %370 = vector.broadcast %369 : vector<24x1xf32> to vector<24x24xf32>
    %371 = arith.divf %367, %370 : vector<24x24xf32>
    %372 = arith.truncf %371 : vector<24x24xf32> to vector<24x24xbf16>
    %cst_126 = arith.constant dense<0.000000e+00> : vector<24x32xf32>
    %373 = tpu.matmul %372, %358, %cst_126 {dimension_numbers = #tpu.dot_dimension_numbers<[1], [0], [0], [1], [0, 0, 1, 1], [], []>} : vector<24x24xbf16>, vector<24x32xbf16>, vector<24x32xf32> -> vector<24x32xf32>
    %374 = arith.truncf %373 : vector<24x32xf32> to vector<24x32xbf16>
    %cst_127 = arith.constant dense<0.000000e+00> : vector<24x128xf32>
    %375 = tpu.matmul %374, %280, %cst_127 {dimension_numbers = #tpu.dot_dimension_numbers<[1], [0], [0], [1], [0, 0, 1, 1], [], []>} : vector<24x32xbf16>, vector<32x128xbf16>, vector<24x128xf32> -> vector<24x128xf32>
    %376 = arith.addf %355, %375 : vector<24x128xf32>
    %377 = vector.extract_strided_slice %310 {offsets = [0, 96], sizes = [24, 32], strides = [1, 1]} : vector<24x128xbf16> to vector<24x32xbf16>
    %378 = vector.extract_strided_slice %311 {offsets = [0, 96], sizes = [24, 32], strides = [1, 1]} : vector<24x128xbf16> to vector<24x32xbf16>
    %379 = vector.extract_strided_slice %312 {offsets = [0, 96], sizes = [24, 32], strides = [1, 1]} : vector<24x128xbf16> to vector<24x32xbf16>
    %cst_128 = arith.constant dense<0.000000e+00> : vector<24x24xf32>
    %380 = tpu.matmul %377, %378, %cst_128 {dimension_numbers = #tpu.dot_dimension_numbers<[1], [1], [0], [0], [0, 0, 1, 0], [], []>} : vector<24x32xbf16>, vector<24x32xbf16>, vector<24x24xf32> -> vector<24x24xf32>
    %cst_129 = arith.constant 0.176776692 : f32
    %381 = vector.broadcast %cst_129 : f32 to vector<24x24xf32>
    %382 = arith.mulf %380, %381 : vector<24x24xf32>
    %383 = arith.addf %382, %13 : vector<24x24xf32>
    %cst_130 = arith.constant dense<0xFF800000> : vector<24xf32>
    %384 = vector.multi_reduction <maximumf>, %383, %cst_130 [1] : vector<24x24xf32> to vector<24xf32>
    %385 = vector.shape_cast %384 : vector<24xf32> to vector<24x1xf32>
    %386 = vector.broadcast %385 : vector<24x1xf32> to vector<24x24xf32>
    %387 = arith.subf %383, %386 : vector<24x24xf32>
    %388 = math.exp %387 : vector<24x24xf32>
    %cst_131 = arith.constant dense<0.000000e+00> : vector<24xf32>
    %389 = vector.multi_reduction <add>, %388, %cst_131 [1] : vector<24x24xf32> to vector<24xf32>
    %390 = vector.shape_cast %389 : vector<24xf32> to vector<24x1xf32>
    %391 = vector.broadcast %390 : vector<24x1xf32> to vector<24x24xf32>
    %392 = arith.divf %388, %391 : vector<24x24xf32>
    %393 = arith.truncf %392 : vector<24x24xf32> to vector<24x24xbf16>
    %cst_132 = arith.constant dense<0.000000e+00> : vector<24x32xf32>
    %394 = tpu.matmul %393, %379, %cst_132 {dimension_numbers = #tpu.dot_dimension_numbers<[1], [0], [0], [1], [0, 0, 1, 1], [], []>} : vector<24x24xbf16>, vector<24x32xbf16>, vector<24x32xf32> -> vector<24x32xf32>
    %395 = arith.truncf %394 : vector<24x32xf32> to vector<24x32xbf16>
    %cst_133 = arith.constant dense<0.000000e+00> : vector<24x128xf32>
    %396 = tpu.matmul %395, %281, %cst_133 {dimension_numbers = #tpu.dot_dimension_numbers<[1], [0], [0], [1], [0, 0, 1, 1], [], []>} : vector<24x32xbf16>, vector<32x128xbf16>, vector<24x128xf32> -> vector<24x128xf32>
    %397 = arith.addf %376, %396 : vector<24x128xf32>
    %398 = vector.extract_strided_slice %301 {offsets = [24, 0], sizes = [24, 128], strides = [1, 1]} : vector<48x128xbf16> to vector<24x128xbf16>
    %399 = vector.extract_strided_slice %307 {offsets = [24, 0], sizes = [24, 128], strides = [1, 1]} : vector<48x128xbf16> to vector<24x128xbf16>
    %400 = vector.extract_strided_slice %309 {offsets = [24, 0], sizes = [24, 128], strides = [1, 1]} : vector<48x128xbf16> to vector<24x128xbf16>
    %cst_134 = arith.constant 0.000000e+00 : f32
    %401 = vector.broadcast %cst_134 : f32 to vector<24x128xf32>
    %402 = vector.extract_strided_slice %398 {offsets = [0, 0], sizes = [24, 32], strides = [1, 1]} : vector<24x128xbf16> to vector<24x32xbf16>
    %403 = vector.extract_strided_slice %399 {offsets = [0, 0], sizes = [24, 32], strides = [1, 1]} : vector<24x128xbf16> to vector<24x32xbf16>
    %404 = vector.extract_strided_slice %400 {offsets = [0, 0], sizes = [24, 32], strides = [1, 1]} : vector<24x128xbf16> to vector<24x32xbf16>
    %cst_135 = arith.constant dense<0.000000e+00> : vector<24x24xf32>
    %405 = tpu.matmul %402, %403, %cst_135 {dimension_numbers = #tpu.dot_dimension_numbers<[1], [1], [0], [0], [0, 0, 1, 0], [], []>} : vector<24x32xbf16>, vector<24x32xbf16>, vector<24x24xf32> -> vector<24x24xf32>
    %cst_136 = arith.constant 0.176776692 : f32
    %406 = vector.broadcast %cst_136 : f32 to vector<24x24xf32>
    %407 = arith.mulf %405, %406 : vector<24x24xf32>
    %408 = arith.addf %407, %17 : vector<24x24xf32>
    %cst_137 = arith.constant dense<0xFF800000> : vector<24xf32>
    %409 = vector.multi_reduction <maximumf>, %408, %cst_137 [1] : vector<24x24xf32> to vector<24xf32>
    %410 = vector.shape_cast %409 : vector<24xf32> to vector<24x1xf32>
    %411 = vector.broadcast %410 : vector<24x1xf32> to vector<24x24xf32>
    %412 = arith.subf %408, %411 : vector<24x24xf32>
    %413 = math.exp %412 : vector<24x24xf32>
    %cst_138 = arith.constant dense<0.000000e+00> : vector<24xf32>
    %414 = vector.multi_reduction <add>, %413, %cst_138 [1] : vector<24x24xf32> to vector<24xf32>
    %415 = vector.shape_cast %414 : vector<24xf32> to vector<24x1xf32>
    %416 = vector.broadcast %415 : vector<24x1xf32> to vector<24x24xf32>
    %417 = arith.divf %413, %416 : vector<24x24xf32>
    %418 = arith.truncf %417 : vector<24x24xf32> to vector<24x24xbf16>
    %cst_139 = arith.constant dense<0.000000e+00> : vector<24x32xf32>
    %419 = tpu.matmul %418, %404, %cst_139 {dimension_numbers = #tpu.dot_dimension_numbers<[1], [0], [0], [1], [0, 0, 1, 1], [], []>} : vector<24x24xbf16>, vector<24x32xbf16>, vector<24x32xf32> -> vector<24x32xf32>
    %420 = arith.truncf %419 : vector<24x32xf32> to vector<24x32xbf16>
    %cst_140 = arith.constant dense<0.000000e+00> : vector<24x128xf32>
    %421 = tpu.matmul %420, %278, %cst_140 {dimension_numbers = #tpu.dot_dimension_numbers<[1], [0], [0], [1], [0, 0, 1, 1], [], []>} : vector<24x32xbf16>, vector<32x128xbf16>, vector<24x128xf32> -> vector<24x128xf32>
    %422 = arith.addf %401, %421 : vector<24x128xf32>
    %423 = vector.extract_strided_slice %398 {offsets = [0, 32], sizes = [24, 32], strides = [1, 1]} : vector<24x128xbf16> to vector<24x32xbf16>
    %424 = vector.extract_strided_slice %399 {offsets = [0, 32], sizes = [24, 32], strides = [1, 1]} : vector<24x128xbf16> to vector<24x32xbf16>
    %425 = vector.extract_strided_slice %400 {offsets = [0, 32], sizes = [24, 32], strides = [1, 1]} : vector<24x128xbf16> to vector<24x32xbf16>
    %cst_141 = arith.constant dense<0.000000e+00> : vector<24x24xf32>
    %426 = tpu.matmul %423, %424, %cst_141 {dimension_numbers = #tpu.dot_dimension_numbers<[1], [1], [0], [0], [0, 0, 1, 0], [], []>} : vector<24x32xbf16>, vector<24x32xbf16>, vector<24x24xf32> -> vector<24x24xf32>
    %cst_142 = arith.constant 0.176776692 : f32
    %427 = vector.broadcast %cst_142 : f32 to vector<24x24xf32>
    %428 = arith.mulf %426, %427 : vector<24x24xf32>
    %429 = arith.addf %428, %17 : vector<24x24xf32>
    %cst_143 = arith.constant dense<0xFF800000> : vector<24xf32>
    %430 = vector.multi_reduction <maximumf>, %429, %cst_143 [1] : vector<24x24xf32> to vector<24xf32>
    %431 = vector.shape_cast %430 : vector<24xf32> to vector<24x1xf32>
    %432 = vector.broadcast %431 : vector<24x1xf32> to vector<24x24xf32>
    %433 = arith.subf %429, %432 : vector<24x24xf32>
    %434 = math.exp %433 : vector<24x24xf32>
    %cst_144 = arith.constant dense<0.000000e+00> : vector<24xf32>
    %435 = vector.multi_reduction <add>, %434, %cst_144 [1] : vector<24x24xf32> to vector<24xf32>
    %436 = vector.shape_cast %435 : vector<24xf32> to vector<24x1xf32>
    %437 = vector.broadcast %436 : vector<24x1xf32> to vector<24x24xf32>
    %438 = arith.divf %434, %437 : vector<24x24xf32>
    %439 = arith.truncf %438 : vector<24x24xf32> to vector<24x24xbf16>
    %cst_145 = arith.constant dense<0.000000e+00> : vector<24x32xf32>
    %440 = tpu.matmul %439, %425, %cst_145 {dimension_numbers = #tpu.dot_dimension_numbers<[1], [0], [0], [1], [0, 0, 1, 1], [], []>} : vector<24x24xbf16>, vector<24x32xbf16>, vector<24x32xf32> -> vector<24x32xf32>
    %441 = arith.truncf %440 : vector<24x32xf32> to vector<24x32xbf16>
    %cst_146 = arith.constant dense<0.000000e+00> : vector<24x128xf32>
    %442 = tpu.matmul %441, %279, %cst_146 {dimension_numbers = #tpu.dot_dimension_numbers<[1], [0], [0], [1], [0, 0, 1, 1], [], []>} : vector<24x32xbf16>, vector<32x128xbf16>, vector<24x128xf32> -> vector<24x128xf32>
    %443 = arith.addf %422, %442 : vector<24x128xf32>
    %444 = vector.extract_strided_slice %398 {offsets = [0, 64], sizes = [24, 32], strides = [1, 1]} : vector<24x128xbf16> to vector<24x32xbf16>
    %445 = vector.extract_strided_slice %399 {offsets = [0, 64], sizes = [24, 32], strides = [1, 1]} : vector<24x128xbf16> to vector<24x32xbf16>
    %446 = vector.extract_strided_slice %400 {offsets = [0, 64], sizes = [24, 32], strides = [1, 1]} : vector<24x128xbf16> to vector<24x32xbf16>
    %cst_147 = arith.constant dense<0.000000e+00> : vector<24x24xf32>
    %447 = tpu.matmul %444, %445, %cst_147 {dimension_numbers = #tpu.dot_dimension_numbers<[1], [1], [0], [0], [0, 0, 1, 0], [], []>} : vector<24x32xbf16>, vector<24x32xbf16>, vector<24x24xf32> -> vector<24x24xf32>
    %cst_148 = arith.constant 0.176776692 : f32
    %448 = vector.broadcast %cst_148 : f32 to vector<24x24xf32>
    %449 = arith.mulf %447, %448 : vector<24x24xf32>
    %450 = arith.addf %449, %17 : vector<24x24xf32>
    %cst_149 = arith.constant dense<0xFF800000> : vector<24xf32>
    %451 = vector.multi_reduction <maximumf>, %450, %cst_149 [1] : vector<24x24xf32> to vector<24xf32>
    %452 = vector.shape_cast %451 : vector<24xf32> to vector<24x1xf32>
    %453 = vector.broadcast %452 : vector<24x1xf32> to vector<24x24xf32>
    %454 = arith.subf %450, %453 : vector<24x24xf32>
    %455 = math.exp %454 : vector<24x24xf32>
    %cst_150 = arith.constant dense<0.000000e+00> : vector<24xf32>
    %456 = vector.multi_reduction <add>, %455, %cst_150 [1] : vector<24x24xf32> to vector<24xf32>
    %457 = vector.shape_cast %456 : vector<24xf32> to vector<24x1xf32>
    %458 = vector.broadcast %457 : vector<24x1xf32> to vector<24x24xf32>
    %459 = arith.divf %455, %458 : vector<24x24xf32>
    %460 = arith.truncf %459 : vector<24x24xf32> to vector<24x24xbf16>
    %cst_151 = arith.constant dense<0.000000e+00> : vector<24x32xf32>
    %461 = tpu.matmul %460, %446, %cst_151 {dimension_numbers = #tpu.dot_dimension_numbers<[1], [0], [0], [1], [0, 0, 1, 1], [], []>} : vector<24x24xbf16>, vector<24x32xbf16>, vector<24x32xf32> -> vector<24x32xf32>
    %462 = arith.truncf %461 : vector<24x32xf32> to vector<24x32xbf16>
    %cst_152 = arith.constant dense<0.000000e+00> : vector<24x128xf32>
    %463 = tpu.matmul %462, %280, %cst_152 {dimension_numbers = #tpu.dot_dimension_numbers<[1], [0], [0], [1], [0, 0, 1, 1], [], []>} : vector<24x32xbf16>, vector<32x128xbf16>, vector<24x128xf32> -> vector<24x128xf32>
    %464 = arith.addf %443, %463 : vector<24x128xf32>
    %465 = vector.extract_strided_slice %398 {offsets = [0, 96], sizes = [24, 32], strides = [1, 1]} : vector<24x128xbf16> to vector<24x32xbf16>
    %466 = vector.extract_strided_slice %399 {offsets = [0, 96], sizes = [24, 32], strides = [1, 1]} : vector<24x128xbf16> to vector<24x32xbf16>
    %467 = vector.extract_strided_slice %400 {offsets = [0, 96], sizes = [24, 32], strides = [1, 1]} : vector<24x128xbf16> to vector<24x32xbf16>
    %cst_153 = arith.constant dense<0.000000e+00> : vector<24x24xf32>
    %468 = tpu.matmul %465, %466, %cst_153 {dimension_numbers = #tpu.dot_dimension_numbers<[1], [1], [0], [0], [0, 0, 1, 0], [], []>} : vector<24x32xbf16>, vector<24x32xbf16>, vector<24x24xf32> -> vector<24x24xf32>
    %cst_154 = arith.constant 0.176776692 : f32
    %469 = vector.broadcast %cst_154 : f32 to vector<24x24xf32>
    %470 = arith.mulf %468, %469 : vector<24x24xf32>
    %471 = arith.addf %470, %17 : vector<24x24xf32>
    %cst_155 = arith.constant dense<0xFF800000> : vector<24xf32>
    %472 = vector.multi_reduction <maximumf>, %471, %cst_155 [1] : vector<24x24xf32> to vector<24xf32>
    %473 = vector.shape_cast %472 : vector<24xf32> to vector<24x1xf32>
    %474 = vector.broadcast %473 : vector<24x1xf32> to vector<24x24xf32>
    %475 = arith.subf %471, %474 : vector<24x24xf32>
    %476 = math.exp %475 : vector<24x24xf32>
    %cst_156 = arith.constant dense<0.000000e+00> : vector<24xf32>
    %477 = vector.multi_reduction <add>, %476, %cst_156 [1] : vector<24x24xf32> to vector<24xf32>
    %478 = vector.shape_cast %477 : vector<24xf32> to vector<24x1xf32>
    %479 = vector.broadcast %478 : vector<24x1xf32> to vector<24x24xf32>
    %480 = arith.divf %476, %479 : vector<24x24xf32>
    %481 = arith.truncf %480 : vector<24x24xf32> to vector<24x24xbf16>
    %cst_157 = arith.constant dense<0.000000e+00> : vector<24x32xf32>
    %482 = tpu.matmul %481, %467, %cst_157 {dimension_numbers = #tpu.dot_dimension_numbers<[1], [0], [0], [1], [0, 0, 1, 1], [], []>} : vector<24x24xbf16>, vector<24x32xbf16>, vector<24x32xf32> -> vector<24x32xf32>
    %483 = arith.truncf %482 : vector<24x32xf32> to vector<24x32xbf16>
    %cst_158 = arith.constant dense<0.000000e+00> : vector<24x128xf32>
    %484 = tpu.matmul %483, %281, %cst_158 {dimension_numbers = #tpu.dot_dimension_numbers<[1], [0], [0], [1], [0, 0, 1, 1], [], []>} : vector<24x32xbf16>, vector<32x128xbf16>, vector<24x128xf32> -> vector<24x128xf32>
    %485 = arith.addf %464, %484 : vector<24x128xf32>
    %486 = tpu.concatenate %397, %485 in 0 : vector<24x128xf32>, vector<24x128xf32> -> vector<48x128xf32>
    %487 = arith.addf %265, %486 : vector<48x128xf32>
    %488 = arith.mulf %487, %487 : vector<48x128xf32>
    %cst_159 = arith.constant dense<0.000000e+00> : vector<48xf32>
    %489 = vector.multi_reduction <add>, %488, %cst_159 [1] : vector<48x128xf32> to vector<48xf32>
    %490 = vector.shape_cast %489 : vector<48xf32> to vector<48x1xf32>
    %cst_160 = arith.constant 1.280000e+02 : f32
    %491 = vector.broadcast %cst_160 : f32 to vector<48x1xf32>
    %492 = arith.divf %490, %491 : vector<48x1xf32>
    %cst_161 = arith.constant 9.99999997E-7 : f32
    %493 = vector.broadcast %cst_161 : f32 to vector<48x1xf32>
    %494 = arith.addf %492, %493 : vector<48x1xf32>
    %495 = math.rsqrt %494 : vector<48x1xf32>
    %496 = vector.broadcast %495 : vector<48x1xf32> to vector<48x128xf32>
    %497 = arith.mulf %487, %496 : vector<48x128xf32>
    %498 = vector.broadcast %269 : vector<1x128xf32> to vector<48x128xf32>
    %499 = arith.mulf %497, %498 : vector<48x128xf32>
    %500 = arith.truncf %499 : vector<48x128xf32> to vector<48x128xbf16>
    %cst_162 = arith.constant dense<0.000000e+00> : vector<48x512xf32>
    %501 = tpu.matmul %500, %275, %cst_162 {dimension_numbers = #tpu.dot_dimension_numbers<[1], [0], [0], [1], [0, 0, 1, 1], [], []>} : vector<48x128xbf16>, vector<128x512xbf16>, vector<48x512xf32> -> vector<48x512xf32>
    %502 = vector.extract_strided_slice %501 {offsets = [0, 0], sizes = [48, 256], strides = [1, 1]} : vector<48x512xf32> to vector<48x256xf32>
    %503 = vector.extract_strided_slice %501 {offsets = [0, 256], sizes = [48, 256], strides = [1, 1]} : vector<48x512xf32> to vector<48x256xf32>
    %cst_163 = arith.constant 0.000000e+00 : f32
    %504 = vector.broadcast %cst_163 : f32 to vector<48x256xf32>
    %505 = arith.subf %504, %502 : vector<48x256xf32>
    %506 = math.exp %505 : vector<48x256xf32>
    %cst_164 = arith.constant 1.000000e+00 : f32
    %507 = vector.broadcast %cst_164 : f32 to vector<48x256xf32>
    %508 = arith.addf %507, %506 : vector<48x256xf32>
    %509 = arith.divf %502, %508 : vector<48x256xf32>
    %510 = arith.mulf %509, %503 : vector<48x256xf32>
    %511 = arith.truncf %510 : vector<48x256xf32> to vector<48x256xbf16>
    %cst_165 = arith.constant dense<0.000000e+00> : vector<48x128xf32>
    %512 = tpu.matmul %511, %277, %cst_165 {dimension_numbers = #tpu.dot_dimension_numbers<[1], [0], [0], [1], [0, 0, 1, 1], [], []>} : vector<48x256xbf16>, vector<256x128xbf16>, vector<48x128xf32> -> vector<48x128xf32>
    %513 = arith.addf %487, %512 : vector<48x128xf32>
    %c0_166 = arith.constant 0 : index
    %c0_167 = arith.constant 0 : index
    %514 = vector.load %arg11[%c0_166, %c0_167] : memref<1x128xf32, #tpu.memory_space<vmem>>, vector<1x128xf32>
    %515 = arith.mulf %513, %513 : vector<48x128xf32>
    %cst_168 = arith.constant dense<0.000000e+00> : vector<48xf32>
    %516 = vector.multi_reduction <add>, %515, %cst_168 [1] : vector<48x128xf32> to vector<48xf32>
    %517 = vector.shape_cast %516 : vector<48xf32> to vector<48x1xf32>
    %cst_169 = arith.constant 1.280000e+02 : f32
    %518 = vector.broadcast %cst_169 : f32 to vector<48x1xf32>
    %519 = arith.divf %517, %518 : vector<48x1xf32>
    %cst_170 = arith.constant 9.99999997E-7 : f32
    %520 = vector.broadcast %cst_170 : f32 to vector<48x1xf32>
    %521 = arith.addf %519, %520 : vector<48x1xf32>
    %522 = math.rsqrt %521 : vector<48x1xf32>
    %523 = vector.broadcast %522 : vector<48x1xf32> to vector<48x128xf32>
    %524 = arith.mulf %513, %523 : vector<48x128xf32>
    %525 = vector.broadcast %514 : vector<1x128xf32> to vector<48x128xf32>
    %526 = arith.mulf %524, %525 : vector<48x128xf32>
    %c0_171 = arith.constant 0 : index
    %c0_172 = arith.constant 0 : index
    %527 = vector.load %arg13[%c0_171, %c0_172] : memref<48x128xf32, #tpu.memory_space<vmem>>, vector<48x128xf32>
    tpu.vector_store %arg13[%c0_171, %c0_172], %526 {strides = array<i32>} : memref<48x128xf32, #tpu.memory_space<vmem>>, vector<48x128xf32>,
    %528 = arith.truncf %526 : vector<48x128xf32> to vector<48x128xbf16>
    %c0_173 = arith.constant 0 : index
    %c0_174 = arith.constant 0 : index
    %529 = vector.load %arg12[%c0_173, %c0_174] : memref<128x256xbf16, #tpu.memory_space<vmem>>, vector<128x256xbf16>
    %cst_175 = arith.constant dense<0.000000e+00> : vector<48x256xf32>
    %530 = tpu.matmul %528, %529, %cst_175 {dimension_numbers = #tpu.dot_dimension_numbers<[1], [0], [0], [1], [0, 0, 1, 1], [], []>} : vector<48x128xbf16>, vector<128x256xbf16>, vector<48x256xf32> -> vector<48x256xf32>
    %c0_176 = arith.constant 0 : index
    %c0_177 = arith.constant 0 : index
    %531 = vector.load %arg14[%c0_176, %c0_177] : memref<48x256xf32, #tpu.memory_space<vmem>>, vector<48x256xf32>
    tpu.vector_store %arg14[%c0_176, %c0_177], %530 {strides = array<i32>} : memref<48x256xf32, #tpu.memory_space<vmem>>, vector<48x256xf32>,
    return
  }
  func.func @transform_0(%arg0: i32) -> (i32, i32) {
    %c0_i32 = arith.constant 0 : i32
    %c0_i32_0 = arith.constant 0 : i32
    %c0_i32_1 = arith.constant 0 : i32
    return %c0_i32, %c0_i32_0 : i32, i32
  }
  func.func @transform_1(%arg0: i32) -> (i32, i32, i32) {
    %c0_i32 = arith.constant 0 : i32
    %c0_i32_0 = arith.constant 0 : i32
    %c0_i32_1 = arith.constant 0 : i32
    %c0_i32_2 = arith.constant 0 : i32
    return %c0_i32, %c0_i32_0, %c0_i32_1 : i32, i32, i32
  }
  func.func @transform_2(%arg0: i32) -> (i32, i32) {
    %c0_i32 = arith.constant 0 : i32
    %c0_i32_0 = arith.constant 0 : i32
    %c0_i32_1 = arith.constant 0 : i32
    return %c0_i32, %c0_i32_0 : i32, i32
  }
  func.func @transform_3(%arg0: i32) -> (i32, i32) {
    %c0_i32 = arith.constant 0 : i32
    %c0_i32_0 = arith.constant 0 : i32
    %c0_i32_1 = arith.constant 0 : i32
    return %c0_i32, %c0_i32_0 : i32, i32
  }
  func.func @transform_4(%arg0: i32) -> (i32, i32, i32) {
    %c0_i32 = arith.constant 0 : i32
    %c0_i32_0 = arith.constant 0 : i32
    %c0_i32_1 = arith.constant 0 : i32
    %c0_i32_2 = arith.constant 0 : i32
    return %c0_i32, %c0_i32_0, %c0_i32_1 : i32, i32, i32
  }
  func.func @transform_5(%arg0: i32) -> (i32, i32, i32) {
    %c0_i32 = arith.constant 0 : i32
    %c0_i32_0 = arith.constant 0 : i32
    %c0_i32_1 = arith.constant 0 : i32
    %c0_i32_2 = arith.constant 0 : i32
    return %c0_i32, %c0_i32_0, %c0_i32_1 : i32, i32, i32
  }
  func.func @transform_6(%arg0: i32) -> (i32, i32, i32) {
    %c0_i32 = arith.constant 0 : i32
    %c0_i32_0 = arith.constant 0 : i32
    %c0_i32_1 = arith.constant 0 : i32
    %c0_i32_2 = arith.constant 0 : i32
    return %c0_i32, %c0_i32_0, %c0_i32_1 : i32, i32, i32
  }
  func.func @transform_7(%arg0: i32) -> (i32, i32, i32) {
    %c0_i32 = arith.constant 0 : i32
    %c0_i32_0 = arith.constant 0 : i32
    %c0_i32_1 = arith.constant 0 : i32
    %c0_i32_2 = arith.constant 0 : i32
    return %c0_i32, %c0_i32_0, %c0_i32_1 : i32, i32, i32
  }
  func.func @transform_8(%arg0: i32) -> (i32, i32, i32) {
    %c0_i32 = arith.constant 0 : i32
    %c0_i32_0 = arith.constant 0 : i32
    %c0_i32_1 = arith.constant 0 : i32
    %c0_i32_2 = arith.constant 0 : i32
    return %c0_i32, %c0_i32_0, %c0_i32_1 : i32, i32, i32
  }
  func.func @transform_9(%arg0: i32) -> (i32, i32, i32) {
    %c0_i32 = arith.constant 0 : i32
    %c0_i32_0 = arith.constant 0 : i32
    %c0_i32_1 = arith.constant 0 : i32
    %c0_i32_2 = arith.constant 0 : i32
    return %c0_i32, %c0_i32_0, %c0_i32_1 : i32, i32, i32
  }
  func.func @transform_10(%arg0: i32) -> (i32, i32) {
    %c0_i32 = arith.constant 0 : i32
    %c0_i32_0 = arith.constant 0 : i32
    %c0_i32_1 = arith.constant 0 : i32
    return %c0_i32, %c0_i32_0 : i32, i32
  }
  func.func @transform_11(%arg0: i32) -> (i32, i32) {
    %c0_i32 = arith.constant 0 : i32
    %c0_i32_0 = arith.constant 0 : i32
    %c0_i32_1 = arith.constant 0 : i32
    return %c0_i32, %c0_i32_0 : i32, i32
  }
  func.func @transform_12(%arg0: i32) -> (i32, i32) {
    %c0_i32 = arith.constant 0 : i32
    %c0_i32_0 = arith.constant 0 : i32
    %c0_i32_1 = arith.constant 0 : i32
    return %c0_i32, %c0_i32_0 : i32, i32
  }
  func.func @transform_13(%arg0: i32) -> (i32, i32) {
    %c0_i32 = arith.constant 0 : i32
    %c0_i32_0 = arith.constant 0 : i32
    %c0_i32_1 = arith.constant 0 : i32
    return %c0_i32, %c0_i32_0 : i32, i32
  }
}

</mosaic_0001>

<bundles_post_ra>
// kernel: forward.2
= control target key start
LH: loop header
LB: loop body
LE: loop exit
PB: predicated region body
PF: predicated region fallthrough
CT: control target
= control target key end

     0   :  { %s7486_s0 = inlined_call_operand.vmem [shape: f32[16,128], index: 0, kind: input, shape index: {}]   ;;  %s7487_s1 = inlined_call_operand.vmem [shape: f32[2,1,8], index: 1, kind: input, shape index: {}]   ;;  %s7488_s2 = inlined_call_operand.vmem [shape: f32[2,8,1], index: 2, kind: input, shape index: {}]   ;;  %s7489_s3 = inlined_call_operand.vmem [shape: f32[16,128], index: 3, kind: input, shape index: {}]   ;;  %s7490_s4 = inlined_call_operand.vmem [shape: f32[16,128], index: 4, kind: input, shape index: {}]   ;;  %s7491_s5 = inlined_call_operand.vmem [shape: f32[2,1,128], index: 5, kind: input, shape index: {}]   ;;  %s7492_s6 = inlined_call_operand.vmem [shape: f32[2,1,128], index: 6, kind: input, shape index: {}]   ;;  %s7493_s7 = inlined_call_operand.hbm [shape: bf16[2,128,640], index: 7, kind: input, shape index: {}]   ;;  %s7494_s8 = inlined_call_operand.hbm [shape: bf16[2,128,128], index: 8, kind: input, shape index: {}]   ;;  %s7495_s9 = inlined_call_operand.hbm [shape: bf16[2,128,512], index: 9, kind: input, shape index: {}]   ;;  %s7496_s10 = inlined_call_operand.vmem [shape: bf16[2,256,128], index: 10, kind: input, shape index: {}]   ;;  %s7497_s11 = inlined_call_operand.vmem [shape: f32[1,128], index: 11, kind: input, shape index: {}]   ;;  %s7498_s12 = inlined_call_operand.vmem [shape: f32[1,128], index: 12, kind: input, shape index: {}]   ;;  %s7499_s13 = inlined_call_operand.<no memory space> [shape: f32[1,1], index: 13, kind: input, shape index: {}]   ;;  %s7500_s14 = inlined_call_operand.hbm [shape: f32[128,128], index: 14, kind: input, shape index: {}]   ;;  %s7501_s15 = inlined_call_operand.vmem [shape: f32[1,128], index: 15, kind: input, shape index: {}]   ;;  %s7502_s16 = inlined_call_operand.vmem [shape: f32[2,128], index: 16, kind: output, shape index: {}]  }
   0x1   :  { %7504 = sst [smem:[#allocation13_spill]] %s7486_s0  ;;  %v21_v0 = vstv %s7499_s13 }
   0x2   :  { %22 = vst [vmem:[#allocation2] sm:$0x1] %v21_v0 }
   0x3   :  { %23 = vsyncpa [#allocation4], 0 }
   0x4   :  { %24 = vsyncpa [#allocation6], 0 }
   0x5   :  { %25 = vsyncpa [#allocation9], 0  ;;  %s6568_s23 = smov [#allocation5]   ;;  %s6474_s27 = scalar_lea.hbm %s7494_s8, 2048 }
   0x6   :  { %s57_s24 = sshll.u32 %s6568_s23, 4  ;;  %p6475_p0 = scmp.ne.s32.totalorder %s7494_s8, %s6474_s27  ;;  %s58_s24 = int_to_ptr.vmem [resolvable:$true] %s57_s24 }
   0x7   :  { %p6478_p1 = scmp.lt.u32.totalorder %s6474_s27, %s7494_s8 }
   0x9   :  { %p6480_p2 = pnand %p6478_p1, %p6475_p0 }
   0xb   :  { %6483 = shalt.err (!%p6480_p2)
}
   0xc   :  { %s6484_s13 = scalar_lea.vmem %s58_s24, 2048  ;;  %p6489_p4 = scmp.lt.s32.totalorder %s58_s24, %s58_s24 }
   0xd   :  { %p6485_p3 = scmp.ne.s32.totalorder %s58_s24, %s6484_s13  ;;  %p6490_p5 = scmp.lt.s32.totalorder %s6484_s13, %s6484_s13 }
   0xf   :  { %p6491_p6 = por %p6490_p5, %p6489_p4 }
  0x11   :  { %p6492_p7 = pnand %p6491_p6, %p6485_p3 }
  0x13   :  { %6495 = shalt.err (!%p6492_p7)
}
  0x14   :  { %s6569_s17 = smov 64   ;;  %s6570_s18 = smov 4  }
  0x15   :  { %63 = dma.hbm_to_vmem [thread:$0]  %s7494_s8, 2048, %s58_s24, [#allocation6], %s6569_s17, %s6569_s17, %s6570_s18  }
  0x16   :  { %s6571_s21 = smov [#allocation3]   ;;  %s6496_s26 = scalar_lea.hbm %s7493_s7, 10240 }
  0x17   :  { %s45_s22 = sshll.u32 %s6571_s21, 4  ;;  %p6497_p8 = scmp.ne.s32.totalorder %s7493_s7, %s6496_s26  ;;  %s46_s22 = int_to_ptr.vmem [resolvable:$true] %s45_s22 }
  0x18   :  { %p6500_p9 = scmp.lt.u32.totalorder %s6496_s26, %s7493_s7 }
  0x1a   :  { %p6502_p10 = pnand %p6500_p9, %p6497_p8 }
  0x1c   :  { %6505 = shalt.err (!%p6502_p10)
}
  0x1d   :  { %s6506_s0 = scalar_lea.vmem %s46_s22, 10240  ;;  %p6511_p12 = scmp.lt.s32.totalorder %s46_s22, %s46_s22 }
  0x1e   :  { %p6507_p11 = scmp.ne.s32.totalorder %s46_s22, %s6506_s0  ;;  %p6512_p13 = scmp.lt.s32.totalorder %s6506_s0, %s6506_s0 }
  0x20   :  { %p6513_p0 = por %p6512_p13, %p6511_p12 }
  0x22   :  { %p6514_p1 = pnand %p6513_p0, %p6507_p11 }
  0x24   :  { %6517 = shalt.err (!%p6514_p1)
}
  0x25   :  { %s6572_s8 = smov 320   ;;  %s6573_s24 = smov 20  }
  0x26   :  { %51 = dma.hbm_to_vmem [thread:$0]  %s7493_s7, 10240, %s46_s22, [#allocation4], %s6572_s8, %s6572_s8, %s6573_s24  }
  0x27   :  { %s6574_s19 = smov [#allocation7]   ;;  %s6518_s25 = scalar_lea.hbm %s7495_s9, 8192 }
  0x28   :  { %s69_s20 = sshll.u32 %s6574_s19, 4  ;;  %p6519_p2 = scmp.ne.s32.totalorder %s7495_s9, %s6518_s25  ;;  %s70_s20 = int_to_ptr.vmem [resolvable:$true] %s69_s20 }
  0x29   :  { %p6522_p3 = scmp.lt.u32.totalorder %s6518_s25, %s7495_s9 }
  0x2b   :  { %p6524_p4 = pnand %p6522_p3, %p6519_p2 }
  0x2d   :  { %6527 = shalt.err (!%p6524_p4)
}
  0x2e   :  { %s6528_s30 = scalar_lea.vmem %s70_s20, 8192  ;;  %p6533_p6 = scmp.lt.s32.totalorder %s70_s20, %s70_s20 }
  0x2f   :  { %p6529_p5 = scmp.ne.s32.totalorder %s70_s20, %s6528_s30  ;;  %p6534_p7 = scmp.lt.s32.totalorder %s6528_s30, %s6528_s30 }
  0x31   :  { %p6535_p8 = por %p6534_p7, %p6533_p6 }
  0x33   :  { %p6536_p9 = pnand %p6535_p8, %p6529_p5 }
  0x35   :  { %6539 = shalt.err (!%p6536_p9)
}
  0x36   :  { %s6575_s7 = smov 256   ;;  %s6576_s22 = smov 16  }
  0x37   :  { %75 = dma.hbm_to_vmem [thread:$0]  %s7495_s9, 8192, %s70_s20, [#allocation6], %s6575_s7, %s6575_s7, %s6576_s22  }
  0x38   :  { %s6577_s24 = smov [#allocation8]   ;;  %s6540_s21 = scalar_lea.hbm %s7500_s14, 2048 }
  0x39   :  { %s89_s13 = sshll.u32 %s6577_s24, 4  ;;  %p6541_p10 = scmp.ne.s32.totalorder %s7500_s14, %s6540_s21  ;;  %s90_s13 = int_to_ptr.vmem [resolvable:$true] %s89_s13 }
  0x3a   :  { %p6544_p11 = scmp.lt.u32.totalorder %s6540_s21, %s7500_s14 }
  0x3c   :  { %p6546_p12 = pnand %p6544_p11, %p6541_p10 }
  0x3e   :  { %6549 = shalt.err (!%p6546_p12)
}
  0x3f   :  { %s6550_s28 = scalar_lea.vmem %s90_s13, 2048  ;;  %p6555_p0 = scmp.lt.s32.totalorder %s90_s13, %s90_s13 }
  0x40   :  { %p6551_p13 = scmp.ne.s32.totalorder %s90_s13, %s6550_s28  ;;  %p6556_p1 = scmp.lt.s32.totalorder %s6550_s28, %s6550_s28 }
  0x42   :  { %p6557_p2 = por %p6556_p1, %p6555_p0 }
  0x44   :  { %p6558_p3 = pnand %p6557_p2, %p6551_p13 }
  0x46   :  { %6561 = shalt.err (!%p6558_p3)
}
  0x47   :  { %s6578_s9 = smov 128   ;;  %s6579_s20 = smov 8  }
  0x48   :  { %95 = dma.hbm_to_vmem [thread:$0]  %s7500_s14, 2048, %s90_s13, [#allocation9], %s6578_s9, %s6578_s9, %s6579_s20  }
  0x49   :  { %6562 = dma.done.wait [#allocation4], 10240  }
  0x4a   :  { %6563 = vsyncadd [#allocation4], 4294957056 }
  0x4b   :  { %6564 = dma.done.wait [#allocation6], 10240  }
  0x4c   :  { %6565 = vsyncadd [#allocation6], 4294957056 }
  0x4d   :  { %6566 = dma.done.wait [#allocation9], 2048  }
  0x4e   :  { %6567 = vsyncadd [#allocation9], 4294965248  ;;  %s7505_s0 = sld [smem:[#allocation13_spill]]  ;;  %v6086_v4 = vld [vmem:[#allocation3 + $0x4] ss:$20 sps:$4 sm:$0xff]   ;;  %v6580_v35 = vmov 0  }
  0x4f   :  { %v6088_v5 = vld [vmem:[#allocation3] ss:$20 sps:$4 sm:$0xff]   ;;  %481 = vmatprep.subr.bf16.mxu0 %v6086_v4  ;;  %v6091_v8 = vld [vmem:[#allocation3 + $0x8] ss:$20 sps:$4 sm:$0xff]   ;;  %v6097_v12 = vld [vmem:[#allocation3 + $0x30] ss:$20 sps:$4 sm:$0xff]   ;;  %513 = vmatprep.mubr.bf16.mxu0 %v6580_v35 }
  0x50   :  { %v6089_v6 = vld [vmem:[#allocation3 + $0xc] ss:$20 sps:$4 sm:$0xff]   ;;  %482 = vmatpush1.bf16.msra.mxu0 %v6088_v5  ;;  %v6094_v10 = vld [vmem:[#allocation3 + $0x28] ss:$20 sps:$4 sm:$0xff]   ;;  %v6100_v14 = vld [vmem:[#allocation3 + $0x50] ss:$20 sps:$4 sm:$0xff]   ;;  %556 = vmatprep.mubr.bf16.mxu1 %v6580_v35 }
  0x51   :  { %524 = vmatprep.subr.bf16.mxu1 %v6089_v6  ;;  %v6092_v9 = vld [vmem:[#allocation3 + $0x2c] ss:$20 sps:$4 sm:$0xff]   ;;  %v6095_v11 = vld [vmem:[#allocation3 + $0x34] ss:$20 sps:$4 sm:$0xff]   ;;  %v6101_v15 = vld [vmem:[#allocation3 + $0x5c] ss:$20 sps:$4 sm:$0xff]  }
  0x52   :  { %525 = vmatpush1.bf16.msra.mxu1 %v6091_v8  ;;  %483 = vmatprep.subr.bf16.mxu0 %v6092_v9  ;;  %v6098_v13 = vld [vmem:[#allocation3 + $0x54] ss:$20 sps:$4 sm:$0xff]   ;;  %v6103_v16 = vld [vmem:[#allocation3 + $0x58] ss:$20 sps:$4 sm:$0xff]   ;;  %v6104_v17 = vld [vmem:[#allocation3 + $0x7c] ss:$20 sps:$4 sm:$0xff]  }
  0x53   :  { %526 = vmatprep.subr.bf16.mxu1 %v6095_v11  ;;  %v6106_v18 = vld [vmem:[#allocation3 + $0x78] ss:$20 sps:$4 sm:$0xff]   ;;  %v6109_v20 = vld [vmem:[#allocation3 + $0x80] ss:$20 sps:$4 sm:$0xff]   ;;  %v6115_v24 = vld [vmem:[#allocation3 + $0xa8] ss:$20 sps:$4 sm:$0xff]  }
  0x54   :  { %v6727_v1 = vld [vmem:[%s7505_s0] sm:$0xff]  ;;  %v6732_v2 = vld [vmem:[%s7505_s0 + $0x8] sm:$0xff]  ;;  %484 = vmatpush1.bf16.msra.mxu0 %v6094_v10  ;;  %v6581_v38 = vmov 0.0   ;;  %vm6582_vm0 = vmmov 0   ;;  %vm623_vm1 = vcmask 261120   ;;  %s6583_s9 = smov 96  }
  0x55   :  { %v249_v3 = vmul.f32 %v6727_v1, %v6727_v1  ;;  %v250_v7 = vmul.f32 %v6732_v2, %v6732_v2  ;;  %485 = vmatprep.subr.bf16.mxu0 %v6098_v13  ;;  %v6107_v19 = vld [vmem:[#allocation3 + $0x84] ss:$20 sps:$4 sm:$0xff]   ;;  %v6112_v22 = vld [vmem:[#allocation3 + $0xa0] ss:$20 sps:$4 sm:$0xff]   ;;  %v6118_v26 = vld [vmem:[#allocation3 + $0xc8] ss:$20 sps:$4 sm:$0xff]  }
  0x56   :  { %527 = vmatpush1.bf16.msra.mxu1 %v6097_v12  ;;  %v6110_v21 = vld [vmem:[#allocation3 + $0xa4] ss:$20 sps:$4 sm:$0xff]   ;;  %v6113_v23 = vld [vmem:[#allocation3 + $0xac] ss:$20 sps:$4 sm:$0xff]   ;;  %v6119_v27 = vld [vmem:[#allocation3 + $0xd4] ss:$20 sps:$4 sm:$0xff]  }
  0x57   :  { %251 = vadd.xlane.f32.xlu0 %v249_v3  ;;  %528 = vmatprep.subr.bf16.mxu1 %v6101_v15  ;;  %v6116_v25 = vld [vmem:[#allocation3 + $0xcc] ss:$20 sps:$4 sm:$0xff]   ;;  %v6121_v28 = vld [vmem:[#allocation3 + $0xd0] ss:$20 sps:$4 sm:$0xff]   ;;  %v6122_v29 = vld [vmem:[#allocation3 + $0xf4] ss:$20 sps:$4 sm:$0xff]  }
  0x58   :  { %486 = vmatpush1.bf16.msra.mxu0 %v6100_v14  ;;  %v6124_v30 = vld [vmem:[#allocation3 + $0xf0] ss:$20 sps:$4 sm:$0xff]   ;;  %v6127_v32 = vld [vmem:[#allocation3 + $0xf8] ss:$20 sps:$4 sm:$0xff]   ;;  %v6133_v37 = vld [vmem:[#allocation3 + $0x120] ss:$20 sps:$4 sm:$0xff]  }
  0x59   :  { %487 = vmatprep.subr.bf16.mxu0 %v6104_v17  ;;  %v6125_v31 = vld [vmem:[#allocation3 + $0xfc] ss:$20 sps:$4 sm:$0xff]   ;;  %v6131_v34 = vld [vmem:[#allocation3 + $0x124] ss:$20 sps:$4 sm:$0xff]   ;;  %v6136_v55 = vld [vmem:[#allocation3 + $0x60] ss:$20 sps:$4 sm:$0xff]  }
  0x5a   :  { %529 = vmatpush1.bf16.msra.mxu1 %v6103_v16  ;;  %v6128_v33 = vld [vmem:[#allocation3 + $0x11c] ss:$20 sps:$4 sm:$0xff]   ;;  %v6130_v36 = vld [vmem:[#allocation3 + $0x118] ss:$20 sps:$4 sm:$0xff]   ;;  %v6140_v59 = vld [vmem:[#allocation3 + $0x100] ss:$20 sps:$4 sm:$0xff]  }
  0x5b   :  { %253 = vadd.xlane.f32.xlu0 %v250_v7  ;;  %530 = vmatprep.subr.bf16.mxu1 %v6107_v19  ;;  %v5083_v48 = vld [vmem:[%s7491_s5] ss:$0 sm:$0xff]  ;;  %v6134_v52 = vld [vmem:[#allocation3 + $0x10] ss:$20 sps:$4 sm:$0xff]   ;;  %v6135_v54 = vld [vmem:[#allocation3 + $0x38] ss:$20 sps:$4 sm:$0xff]  }
  0x5c   :  { %488 = vmatpush1.bf16.msra.mxu0 %v6106_v18  ;;  %v6137_v56 = vld [vmem:[#allocation3 + $0x88] ss:$20 sps:$4 sm:$0xff]   ;;  %v6138_v57 = vld [vmem:[#allocation3 + $0xb0] ss:$20 sps:$4 sm:$0xff]   ;;  %v6139_v58 = vld [vmem:[#allocation3 + $0xd8] ss:$20 sps:$4 sm:$0xff]  }
  0x5d   :  { %489 = vmatprep.subr.bf16.mxu0 %v6110_v21  ;;  %v6141_v60 = vld [vmem:[#allocation3 + $0x128] ss:$20 sps:$4 sm:$0xff]   ;;  %vm694_vm2 = vcmask 1043456   ;;  %vm678_vm3 = vcmask 64512   ;;  %s6584_s30 = smov 32   ;;  %vm4676_vm4 = vcmask 7168  }
  0x5e   :  { %531 = vmatpush1.bf16.msra.mxu1 %v6109_v20  ;;  %v115_v61 = vld [vmem:[%s7489_s3] sm:$0xff]  ;;  %v118_v6 = vld [vmem:[%s7490_s4 + $0x8] sm:$0xff]  ;;  %vm5073_vm5 = vcmask 1040384  }
  0x5f   :  { %532 = vmatprep.subr.bf16.mxu1 %v6113_v23  ;;  %v117_v62 = vld [vmem:[%s7490_s4] sm:$0xff] }
  0x60   :  { %490 = vmatpush1.bf16.msra.mxu0 %v6112_v22 }
  0x61   :  { %491 = vmatprep.subr.bf16.mxu0 %v6116_v25 }
  0x62   :  { %533 = vmatpush1.bf16.msra.mxu1 %v6115_v24 }
  0x63   :  { %534 = vmatprep.subr.bf16.mxu1 %v6119_v27 }
  0x64   :  { %492 = vmatpush1.bf16.msra.mxu0 %v6118_v26 }
  0x65   :  { %493 = vmatprep.subr.bf16.mxu0 %v6122_v29 }
  0x66   :  { %535 = vmatpush1.bf16.msra.mxu1 %v6121_v28 }
  0x67   :  { %536 = vmatprep.subr.bf16.mxu1 %v6125_v31  ;;  %v6794_v31 = vld [vmem:[%s7487_s1] ss:$0 sm:$0xff] }
  0x68   :  { %494 = vmatpush1.bf16.msra.mxu0 %v6124_v30 }
  0x69   :  { %495 = vmatprep.subr.bf16.mxu0 %v6128_v33 }
  0x6a   :  { %537 = vmatpush1.bf16.msra.mxu1 %v6127_v32 }
  0x6b   :  { %538 = vmatprep.subr.bf16.mxu1 %v6131_v34 }
  0x6c   :  { %496 = vmatpush1.bf16.msra.mxu0 %v6130_v36 }
  0x6d   :  { %5580 = vmatprep.subr.bf16.mxu0 %v6581_v38 }
  0x6e   :  { %539 = vmatpush1.bf16.msra.mxu1 %v6133_v37 }
  0x6f   :  { %5600 = vmatprep.subr.bf16.mxu1 %v6581_v38 }
  0xe4   :  { %v252_v39 = vpop.xlane.xlu0 %251 }
  0xe5   :  { %v256_v40 = vmul.f32 0.0078125, %v252_v39 }
  0xe7   :  { %v258_v41 = vadd.f32 1e-06, %v256_v40 }
  0xe8   :  { %v254_v42 = vpop.xlane.xlu0 %253 }
  0xe9   :  { %6342 = vrsqrt.f32 %v258_v41  ;;  %v257_v43 = vmul.f32 0.0078125, %v254_v42 }
  0xeb   :  { %v259_v44 = vadd.f32 1e-06, %v257_v43 }
  0xed   :  { %6344 = vrsqrt.f32 %v259_v44 }
  0xf3   :  { %v6343_v45 = vpop.eup %6342 }
  0xf4   :  { %v262_v46 = vmul.f32 %v6343_v45, %v6727_v1  ;;  %v116_v1 = vld [vmem:[%s7489_s3 + $0x8] sm:$0xff] }
  0xf6   :  { %v270_v50 = vmul.f32 %v5083_v48, %v262_v46 }
  0xf7   :  { %v6345_v47 = vpop.eup %6344 }
  0xf8   :  { %v263_v49 = vmul.f32 %v6345_v47, %v6732_v2 }
  0xfa   :  { %v271_v51 = vmul.f32 %v5083_v48, %v263_v49 }
  0xfc   :  { %v272_v53 = vpack.c.bf16 %v271_v51, %v270_v50 }
  0xfe   :  { %514 = vmatmul.mubr.bf16.vlgmr.msra.gmra.mrb[0].mxu0 %v272_v53  ;;  %557 = vmatmul.mubr.bf16.vlgmr.msra.gmra.mrb[0].mxu1 %v272_v53 }
  0xff   :  { %5581 = vmatpush3.bf16.msra.mxu0 %v6134_v52  ;;  %5596 = vmatprep.mubr.msk.bf16.mxu0 %vm6582_vm0, %v6581_v38 }
 0x100   :  { %5582 = vmatprep.subr.bf16.mxu0 %v6581_v38  ;;  %5602 = vmatprep.mubr.msk.bf16.mxu1 %vm6582_vm0, %v6581_v38 }
 0x103   :  { %5583 = vmatpush3.bf16.msra.mxu0 %v6135_v54 }
 0x104   :  { %5584 = vmatprep.subr.bf16.mxu0 %v6581_v38 }
 0x107   :  { %5585 = vmatpush3.bf16.msra.mxu0 %v6136_v55 }
 0x108   :  { %5586 = vmatprep.subr.bf16.mxu0 %v6581_v38 }
 0x10b   :  { %5587 = vmatpush3.bf16.msra.mxu0 %v6137_v56 }
 0x10c   :  { %5588 = vmatprep.subr.bf16.mxu0 %v6581_v38 }
 0x10f   :  { %5589 = vmatpush3.bf16.msra.mxu0 %v6138_v57 }
 0x110   :  { %5590 = vmatprep.subr.bf16.mxu0 %v6581_v38 }
 0x113   :  { %5591 = vmatpush3.bf16.msra.mxu0 %v6139_v58 }
 0x114   :  { %5592 = vmatprep.subr.bf16.mxu0 %v6581_v38 }
 0x117   :  { %5593 = vmatpush3.bf16.msra.mxu0 %v6140_v59 }
 0x118   :  { %5594 = vmatprep.subr.bf16.mxu0 %v6581_v38 }
 0x11b   :  { %5595 = vmatpush3.bf16.msra.mxu0 %v6141_v60 }
 0x11c   :  { %5652 = vmatprep.subr.bf16.mxu0 %v6581_v38 }
 0x11e   :  { %5597 = vmatmul.mubr.bf16.vlgmr.msra.gmra.mrb[4].mxu0 %v272_v53 }
 0x11f   :  { %5656 = vmatprep.mubr.msk.bf16.mxu0 %vm6582_vm0, %v6581_v38 }
 0x1d1   :  { %v515_v63 = vpop.f32.mrb[0].mxu0  ;;  %v558_v0 = vpop.f32.mrb[0].mxu1 }
 0x1d2   :  { %v608_v2 = vmul.f32 %v515_v63, %v115_v61  ;;  %v615_v3 = vmul.f32 %v558_v0, %v115_v61  ;;  %v517_v4 = vpop.f32.mrb[1].mxu0  ;;  %v560_v5 = vpop.f32.mrb[1].mxu1 }
 0x1d3   :  { %v610_v7 = vmul.f32 %v517_v4, %v117_v62  ;;  %v617_v8 = vmul.f32 %v560_v5, %v117_v62  ;;  %v519_v9 = vpop.f32.mrb[2].mxu0  ;;  %v562_v10 = vpop.f32.mrb[2].mxu1 }
 0x1d4   :  { %v609_v11 = vmul.f32 %v519_v9, %v116_v1  ;;  %v616_v12 = vmul.f32 %v562_v10, %v116_v1  ;;  %v521_v13 = vpop.f32.mrb[3].mxu0  ;;  %v564_v14 = vpop.f32.mrb[3].mxu1  ;;  %v6820_v9 = vld [vmem:[#allocation5 + $0x10] sm:$0xff]  }
 0x1d5   :  { %v612_v15 = vadd.f32 %v610_v7, %v608_v2  ;;  %v619_v16 = vadd.f32 %v617_v8, %v615_v3  ;;  %v611_v17 = vmul.f32 %v521_v13, %v118_v6  ;;  %v618_v18 = vmul.f32 %v564_v14, %v118_v6  ;;  %v6831_v13 = vld [vmem:[#allocation5] sm:$0xff]  }
 0x1d7   :  { %v613_v19 = vadd.f32 %v611_v17, %v609_v11  ;;  %v620_v20 = vadd.f32 %v618_v18, %v616_v12  ;;  %v6824_v11 = vld [vmem:[#allocation5 + $0x18] sm:$0xff]   ;;  %v6835_v18 = vld [vmem:[#allocation5 + $0x8] sm:$0xff]  }
 0x1d9   :  { %v6773_v21 = vpack.c.bf16 %v613_v19, %v612_v15  ;;  %v6775_v22 = vpack.c.bf16 %v620_v20, %v619_v16 }
 0x1db   :  { %743 = vrot.lane.b32.xlu0 %v6775_v22, %s6583_s9  ;;  %v628_v23 = vsel %vm623_vm1, %v6775_v22, 0 }
 0x1dc   :  { %5601 = vmatpush3.bf16.xpose.msra.mxu1 %v628_v23 }
 0x1dd   :  { %5606 = vmatprep.subr.bf16.mxu1 %v6581_v38 }
 0x1e3   :  { %5603 = vmatmul.mubr.msk.bf16.vlgmr.msra.gmra.mrb[4].mxu1 %vm623_vm1, %v6773_v21 }
 0x1e4   :  { %5608 = vmatprep.mubr.msk.bf16.mxu1 %vm6582_vm0, %v6581_v38 }
 0x1f1   :  { %v601_v24 = vpop.f32.mrb[4].mxu0 }
 0x1f2   :  { %v5598_v25 = vpop.f32.mrb[5].mxu0 }
 0x1f3   :  { %v604_v26 = vpop.f32.mrb[6].mxu0 }
 0x1f4   :  { %v6786_v27 = vpack.c.bf16 %v604_v26, %v601_v24  ;;  %v5599_v28 = vpop.f32.mrb[7].mxu0 }
 0x1f6   :  { %v696_v29 = vsel %vm694_vm2, %v6786_v27, 0 }
 0x1f7   :  { %5607 = vmatpush3.bf16.msra.mxu1 %v696_v29 }
 0x1f8   :  { %5612 = vmatprep.subr.bf16.mxu1 %v6581_v38 }
 0x24d   :  { %v744_v48 = vpop.permute.xlu0 %743 }
 0x24e   :  { %v749_v50 = vsel %vm623_vm1, %v744_v48, 0 }
 0x2b6   :  { %v664_v30 = vpop.f32.mrb[4].mxu1 }
 0x2b7   :  { %v670_v32 = vmul.f32 0.17677669, %v664_v30  ;;  %v5604_v33 = vpop.f32.mrb[5].mxu1 }
 0x2b8   :  { %v667_v34 = vpop.f32.mrb[6].mxu1 }
 0x2b9   :  { %v5605_v36 = vpop.f32.mrb[7].mxu1  ;;  %v677_v37 = vadd.f32 %v6794_v31, %v670_v32 }
 0x2bb   :  { %v679_v39 = vsel %vm678_vm3, %v677_v37, -inf }
 0x2bc   :  { %680 = vmax.xlane.f32.xlu1 %v679_v39 }
 0x349   :  { %v681_v40 = vpop.xlane.xlu1 %680 }
 0x34a   :  { %v682_v41 = vsub.f32 %v677_v37, %v681_v40 }
 0x34c   :  { %v683_v42 = vmul.f32 1.442695, %v682_v41 }
 0x34e   :  { %6346 = vpow2.f32 %v683_v42 }
 0x358   :  { %v6347_v43 = vpop.eup %6346 }
 0x359   :  { %v685_v44 = vsel %vm678_vm3, %v6347_v43, 0.0 }
 0x35a   :  { %686 = vadd.xlane.f32.xlu1 %v685_v44 }
 0x36b   :  { %740 = vrot.lane.b32.xlu1 %v6773_v21, %s6583_s9 }
 0x3e7   :  { %v687_v45 = vpop.xlane.xlu1 %686 }
 0x3e8   :  { %6348 = vrcp.f32 %v687_v45 }
 0x3eb   :  { %v741_v51 = vpop.permute.xlu1 %740 }
 0x3f2   :  { %v6349_v46 = vpop.eup %6348 }
 0x3f3   :  { %v689_v47 = vmul.f32 %v6349_v46, %v6347_v43 }
 0x3f5   :  { %v690_v49 = vpack.c.bf16 %v689_v47, %v689_v47 }
 0x3f7   :  { %5609 = vmatmul.mubr.msk.bf16.vlgmr.msra.gmra.mrb[8].mxu1 %vm678_vm3, %v690_v49 }
 0x3f8   :  { %5613 = vmatpush3.bf16.xpose.msra.mxu1 %v749_v50  ;;  %5614 = vmatprep.mubr.msk.bf16.mxu1 %vm6582_vm0, %v6581_v38  ;;  %v6861_v50 = vld [vmem:[#allocation5 + $0x20] sm:$0xff]  }
 0x3f9   :  { %5618 = vmatprep.subr.bf16.mxu1 %v6581_v38  ;;  %5653 = vmatpush3.bf16.msra.mxu0 %v6861_v50 }
 0x3fa   :  { %5654 = vmatprep.subr.bf16.mxu0 %v6581_v38 }
 0x3ff   :  { %5615 = vmatmul.mubr.msk.bf16.vlgmr.msra.gmra.mrb[12].mxu1 %vm623_vm1, %v741_v51 }
 0x400   :  { %5620 = vmatprep.mubr.msk.bf16.mxu1 %vm6582_vm0, %v6581_v38 }
 0x4ca   :  { %v732_v52 = vpop.f32.mrb[8].mxu1 }
 0x4cb   :  { %v5610_v53 = vpop.f32.mrb[9].mxu1  ;;  %v738_v19 = vpack.c.bf16 %v732_v52, %v732_v52 }
 0x4cc   :  { %v735_v54 = vpop.f32.mrb[10].mxu1 }
 0x4cd   :  { %v5611_v55 = vpop.f32.mrb[11].mxu1 }
 0x4d2   :  { %v785_v56 = vpop.f32.mrb[12].mxu1 }
 0x4d3   :  { %v791_v57 = vmul.f32 0.17677669, %v785_v56  ;;  %v5616_v58 = vpop.f32.mrb[13].mxu1 }
 0x4d4   :  { %v788_v59 = vpop.f32.mrb[14].mxu1 }
 0x4d5   :  { %v5617_v60 = vpop.f32.mrb[15].mxu1  ;;  %v792_v61 = vadd.f32 %v6794_v31, %v791_v57 }
 0x4d6   :  { %v6875_v60 = vld [vmem:[#allocation5 + $0x28] sm:$0xff]  }
 0x4d7   :  { %v793_v62 = vsel %vm678_vm3, %v792_v61, -inf  ;;  %5655 = vmatpush3.bf16.msra.mxu0 %v6875_v60 }
 0x4d8   :  { %794 = vmax.xlane.f32.xlu1 %v793_v62  ;;  %5666 = vmatprep.subr.bf16.mxu0 %v6581_v38 }
 0x4e9   :  { %967 = vrot.lane.b32.xlu1 %v6775_v22, %s6569_s17 }
 0x4ed   :  { %965 = vrot.lane.b32.xlu1 %v6773_v21, %s6569_s17 }
 0x565   :  { %v795_v63 = vpop.xlane.xlu1 %794 }
 0x566   :  { %v796_v0 = vsub.f32 %v792_v61, %v795_v63 }
 0x568   :  { %v797_v1 = vmul.f32 1.442695, %v796_v0 }
 0x569   :  { %v968_v20 = vpop.permute.xlu1 %967 }
 0x56a   :  { %6350 = vpow2.f32 %v797_v1  ;;  %v973_v23 = vsel %vm623_vm1, %v968_v20, 0 }
 0x56d   :  { %v966_v24 = vpop.permute.xlu1 %965 }
 0x574   :  { %v6351_v2 = vpop.eup %6350 }
 0x575   :  { %v799_v3 = vsel %vm678_vm3, %v6351_v2, 0.0 }
 0x576   :  { %800 = vadd.xlane.f32.xlu0 %v799_v3 }
 0x58c   :  { %806 = vrot.lane.b32.xlu0 %v6786_v27, %s6583_s9 }
 0x603   :  { %v801_v4 = vpop.xlane.xlu0 %800 }
 0x604   :  { %6352 = vrcp.f32 %v801_v4 }
 0x607   :  { %v807_v5 = vpop.permute.xlu0 %806 }
 0x608   :  { %v812_v6 = vsel %vm694_vm2, %v807_v5, 0 }
 0x609   :  { %5619 = vmatpush3.bf16.msra.mxu1 %v812_v6 }
 0x60a   :  { %5624 = vmatprep.subr.bf16.mxu1 %v6581_v38 }
 0x60e   :  { %v6353_v7 = vpop.eup %6352 }
 0x60f   :  { %v803_v8 = vmul.f32 %v6353_v7, %v6351_v2 }
 0x611   :  { %v804_v10 = vpack.c.bf16 %v803_v8, %v803_v8 }
 0x613   :  { %5621 = vmatmul.mubr.msk.bf16.vlgmr.msra.gmra.mrb[16].mxu1 %vm678_vm3, %v804_v10  ;;  %v6887_v10 = vrot.slane %v6773_v21, 4 }
 0x614   :  { %5625 = vmatpush3.bf16.msra.mxu1 %v6820_v9  ;;  %5628 = vmatprep.mubr.msk.bf16.mxu1 %vm6582_vm0, %v6581_v38 }
 0x615   :  { %5626 = vmatprep.subr.bf16.mxu1 %v6581_v38 }
 0x618   :  { %5627 = vmatpush3.bf16.msra.mxu1 %v6824_v11 }
 0x619   :  { %5632 = vmatprep.subr.bf16.mxu1 %v6581_v38 }
 0x6e6   :  { %v848_v12 = vpop.f32.mrb[16].mxu1 }
 0x6e7   :  { %v854_v14 = vpack.c.bf16 %v848_v12, %v848_v12  ;;  %v5622_v15 = vpop.f32.mrb[17].mxu1 }
 0x6e8   :  { %v851_v16 = vpop.f32.mrb[18].mxu1 }
 0x6e9   :  { %v5623_v17 = vpop.f32.mrb[19].mxu1  ;;  %5629 = vmatmul.mubr.msk.bf16.vlgmr.msra.gmra.mrb[20].mxu1 %vm623_vm1, %v854_v14 }
 0x6ea   :  { %5633 = vmatpush3.bf16.msra.mxu1 %v6831_v13  ;;  %5636 = vmatprep.mubr.msk.bf16.mxu1 %vm6582_vm0, %v6581_v38 }
 0x6eb   :  { %5634 = vmatprep.subr.bf16.mxu1 %v6581_v38 }
 0x6ee   :  { %5635 = vmatpush3.bf16.msra.mxu1 %v6835_v18 }
 0x6ef   :  { %5640 = vmatprep.subr.bf16.mxu1 %v6581_v38 }
 0x6f1   :  { %5637 = vmatmul.mubr.msk.bf16.vlgmr.msra.gmra.mrb[24].mxu1 %vm623_vm1, %v738_v19 }
 0x6f2   :  { %5642 = vmatprep.mubr.msk.bf16.mxu1 %vm6582_vm0, %v6581_v38 }
 0x6f7   :  { %5641 = vmatpush3.bf16.xpose.msra.mxu1 %v973_v23 }
 0x6f8   :  { %5646 = vmatprep.subr.bf16.mxu1 %v6581_v38 }
 0x6fe   :  { %5643 = vmatmul.mubr.msk.bf16.vlgmr.msra.gmra.mrb[28].mxu1 %vm623_vm1, %v966_v24 }
 0x6ff   :  { %5648 = vmatprep.mubr.msk.bf16.mxu1 %vm6582_vm0, %v6581_v38 }
 0x7bc   :  { %v904_v25 = vpop.f32.mrb[20].mxu1 }
 0x7bd   :  { %v5630_v26 = vpop.f32.mrb[21].mxu1 }
 0x7be   :  { %v907_v28 = vpop.f32.mrb[22].mxu1 }
 0x7bf   :  { %v5631_v29 = vpop.f32.mrb[23].mxu1  ;;  %v6902_v28 = vld [vmem:[#allocation5 + $0x30] sm:$0xff]  }
 0x7c0   :  { %v6905_v29 = vld [vmem:[#allocation5 + $0x38] sm:$0xff]  }
 0x7c4   :  { %v959_v30 = vpop.f32.mrb[24].mxu1 }
 0x7c5   :  { %v6850_v32 = vadd.f32 %v959_v30, %v904_v25  ;;  %v5638_v33 = vpop.f32.mrb[25].mxu1 }
 0x7c6   :  { %v962_v34 = vpop.f32.mrb[26].mxu1 }
 0x7c7   :  { %v5639_v36 = vpop.f32.mrb[27].mxu1 }
 0x7d1   :  { %v1009_v37 = vpop.f32.mrb[28].mxu1 }
 0x7d2   :  { %v1015_v39 = vmul.f32 0.17677669, %v1009_v37  ;;  %v5644_v40 = vpop.f32.mrb[29].mxu1 }
 0x7d3   :  { %v1012_v41 = vpop.f32.mrb[30].mxu1  ;;  %v6930_v40 = vrot.slane %v6786_v27, 4 }
 0x7d4   :  { %v5645_v42 = vpop.f32.mrb[31].mxu1  ;;  %v1016_v43 = vadd.f32 %v6794_v31, %v1015_v39 }
 0x7d6   :  { %v1017_v44 = vsel %vm678_vm3, %v1016_v43, -inf }
 0x7d7   :  { %1018 = vmax.xlane.f32.xlu1 %v1017_v44 }
 0x7e8   :  { %1136 = vrot.lane.b32.xlu1 %v6775_v22, %s6584_s30 }
 0x7ec   :  { %1134 = vrot.lane.b32.xlu1 %v6773_v21, %s6584_s30  ;;  %v6895_v21 = vrot.slane %v6775_v22, 4 }
 0x7ee   :  { %v1309_v34 = vsel %vm623_vm1, %v6895_v21, 0 }
 0x864   :  { %v1019_v45 = vpop.xlane.xlu1 %1018 }
 0x865   :  { %v1020_v46 = vsub.f32 %v1016_v43, %v1019_v45 }
 0x867   :  { %v1021_v47 = vmul.f32 1.442695, %v1020_v46 }
 0x868   :  { %v1137_v56 = vpop.permute.xlu1 %1136 }
 0x869   :  { %6354 = vpow2.f32 %v1021_v47  ;;  %v1142_v58 = vsel %vm623_vm1, %v1137_v56, 0 }
 0x86c   :  { %v1135_v59 = vpop.permute.xlu1 %1134 }
 0x873   :  { %v6355_v48 = vpop.eup %6354 }
 0x874   :  { %v1023_v49 = vsel %vm678_vm3, %v6355_v48, 0.0 }
 0x875   :  { %1024 = vadd.xlane.f32.xlu0 %v1023_v49 }
 0x88b   :  { %1029 = vrot.lane.b32.xlu0 %v6786_v27, %s6569_s17 }
 0x902   :  { %v1025_v51 = vpop.xlane.xlu0 %1024 }
 0x903   :  { %6356 = vrcp.f32 %v1025_v51 }
 0x906   :  { %v1030_v52 = vpop.permute.xlu0 %1029 }
 0x907   :  { %v1035_v53 = vsel %vm694_vm2, %v1030_v52, 0 }
 0x908   :  { %5647 = vmatpush3.bf16.msra.mxu1 %v1035_v53 }
 0x909   :  { %5660 = vmatprep.subr.bf16.mxu1 %v6581_v38 }
 0x90d   :  { %v6357_v54 = vpop.eup %6356 }
 0x90e   :  { %v1027_v55 = vmul.f32 %v6357_v54, %v6355_v48 }
 0x910   :  { %v1028_v57 = vpack.c.bf16 %v1027_v55, %v1027_v55 }
 0x912   :  { %5649 = vmatmul.mubr.msk.bf16.vlgmr.msra.gmra.mrb[32].mxu1 %vm678_vm3, %v1028_v57 }
 0x913   :  { %5661 = vmatpush3.bf16.xpose.msra.mxu1 %v1142_v58  ;;  %5662 = vmatprep.mubr.msk.bf16.mxu1 %vm6582_vm0, %v6581_v38 }
 0x914   :  { %5672 = vmatprep.subr.bf16.mxu1 %v6581_v38 }
 0x91a   :  { %5663 = vmatmul.mubr.msk.bf16.vlgmr.msra.gmra.mrb[36].mxu1 %vm623_vm1, %v1135_v59 }
 0x91b   :  { %5676 = vmatprep.mubr.msk.bf16.mxu1 %vm6582_vm0, %v6581_v38  ;;  %5673 = vmatpush3.bf16.msra.mxu1 %v6902_v28 }
 0x91c   :  { %5674 = vmatprep.subr.bf16.mxu1 %v6581_v38 }
 0x91f   :  { %5675 = vmatpush3.bf16.msra.mxu1 %v6905_v29 }
 0x920   :  { %5686 = vmatprep.subr.bf16.mxu1 %v6581_v38 }
 0x9e5   :  { %v1071_v61 = vpop.f32.mrb[32].mxu1 }
 0x9e6   :  { %v1077_v62 = vpack.c.bf16 %v1071_v61, %v1071_v61  ;;  %v5650_v63 = vpop.f32.mrb[33].mxu1 }
 0x9e7   :  { %v1074_v0 = vpop.f32.mrb[34].mxu1 }
 0x9e8   :  { %v5651_v1 = vpop.f32.mrb[35].mxu1  ;;  %5657 = vmatmul.mubr.msk.bf16.vlgmr.msra.gmra.mrb[8].mxu0 %vm623_vm1, %v1077_v62 }
 0x9e9   :  { %5668 = vmatprep.mubr.msk.bf16.mxu0 %vm6582_vm0, %v6581_v38 }
 0x9ed   :  { %v1178_v2 = vpop.f32.mrb[36].mxu1 }
 0x9ee   :  { %v1184_v3 = vmul.f32 0.17677669, %v1178_v2  ;;  %v5664_v4 = vpop.f32.mrb[37].mxu1 }
 0x9ef   :  { %v1181_v5 = vpop.f32.mrb[38].mxu1 }
 0x9f0   :  { %v5665_v6 = vpop.f32.mrb[39].mxu1  ;;  %v1185_v7 = vadd.f32 %v6794_v31, %v1184_v3 }
 0x9f2   :  { %v1186_v8 = vsel %vm678_vm3, %v1185_v7, -inf }
 0x9f3   :  { %1187 = vmax.xlane.f32.xlu0 %v1186_v8 }
 0xa09   :  { %1198 = vrot.lane.b32.xlu0 %v6786_v27, %s6584_s30  ;;  %v6941_v27 = vld [vmem:[%s7487_s1 + $0x1] ss:$0 sm:$0xff] }
 0xa0d   :  { %1419 = vrot.lane.b32.xlu0 %v6887_v10, %s6583_s9 }
 0xa80   :  { %v1188_v12 = vpop.xlane.xlu0 %1187 }
 0xa81   :  { %v1189_v14 = vsub.f32 %v1185_v7, %v1188_v12 }
 0xa83   :  { %v1190_v15 = vmul.f32 1.442695, %v1189_v14 }
 0xa84   :  { %v1199_v16 = vpop.permute.xlu0 %1198 }
 0xa85   :  { %6358 = vpow2.f32 %v1190_v15  ;;  %v1204_v17 = vsel %vm694_vm2, %v1199_v16, 0 }
 0xa86   :  { %5667 = vmatpush3.bf16.msra.mxu0 %v1204_v17 }
 0xa87   :  { %5680 = vmatprep.subr.bf16.mxu0 %v6581_v38 }
 0xa88   :  { %v1420_v39 = vpop.permute.xlu0 %1419 }
 0xa8f   :  { %v6359_v31 = vpop.eup %6358 }
 0xa90   :  { %v1192_v19 = vsel %vm678_vm3, %v6359_v31, 0.0 }
 0xa91   :  { %1193 = vadd.xlane.f32.xlu1 %v1192_v19 }
 0xaa2   :  { %1421 = vrot.lane.b32.xlu1 %v6895_v21, %s6583_s9 }
 0xabb   :  { %v1127_v20 = vpop.f32.mrb[8].mxu0 }
 0xabc   :  { %v6900_v23 = vadd.f32 %v1127_v20, %v6850_v32  ;;  %v5658_v24 = vpop.f32.mrb[9].mxu0 }
 0xabd   :  { %v1130_v25 = vpop.f32.mrb[10].mxu0 }
 0xabe   :  { %v5659_v26 = vpop.f32.mrb[11].mxu0 }
 0xb1e   :  { %v1194_v22 = vpop.xlane.xlu1 %1193 }
 0xb1f   :  { %6360 = vrcp.f32 %v1194_v22 }
 0xb22   :  { %v1422_v36 = vpop.permute.xlu1 %1421 }
 0xb23   :  { %v1427_v37 = vsel %vm623_vm1, %v1422_v36, 0 }
 0xb29   :  { %v6361_v30 = vpop.eup %6360 }
 0xb2a   :  { %v1196_v32 = vmul.f32 %v6361_v30, %v6359_v31 }
 0xb2c   :  { %v1197_v33 = vpack.c.bf16 %v1196_v32, %v1196_v32 }
 0xb2e   :  { %5669 = vmatmul.mubr.msk.bf16.vlgmr.msra.gmra.mrb[12].mxu0 %vm678_vm3, %v1197_v33 }
 0xb2f   :  { %5681 = vmatpush3.bf16.xpose.msra.mxu0 %v1309_v34  ;;  %5682 = vmatprep.mubr.msk.bf16.mxu0 %vm6582_vm0, %v6581_v38 }
 0xb30   :  { %5692 = vmatprep.subr.bf16.mxu0 %v6581_v38 }
 0xb36   :  { %5683 = vmatmul.mubr.msk.bf16.vlgmr.msra.gmra.mrb[16].mxu0 %vm623_vm1, %v6887_v10 }
 0xb37   :  { %5693 = vmatpush3.bf16.xpose.msra.mxu0 %v1427_v37  ;;  %5694 = vmatprep.mubr.msk.bf16.mxu0 %vm6582_vm0, %v6581_v38 }
 0xb38   :  { %5704 = vmatprep.subr.bf16.mxu0 %v6581_v38 }
 0xb3e   :  { %5695 = vmatmul.mubr.msk.bf16.vlgmr.msra.gmra.mrb[20].mxu0 %vm623_vm1, %v1420_v39 }
 0xb3f   :  { %5705 = vmatpush3.bf16.msra.mxu0 %v6820_v9  ;;  %5708 = vmatprep.mubr.msk.bf16.mxu0 %vm6582_vm0, %v6581_v38  ;;  %v1376_v9 = vsel %vm694_vm2, %v6930_v40, 0 }
 0xb40   :  { %5706 = vmatprep.subr.bf16.mxu0 %v6581_v38 }
 0xb43   :  { %5707 = vmatpush3.bf16.msra.mxu0 %v6824_v11 }
 0xb44   :  { %5720 = vmatprep.subr.bf16.mxu0 %v6581_v38 }
 0xc01   :  { %v1240_v41 = vpop.f32.mrb[12].mxu0 }
 0xc02   :  { %v1246_v42 = vpack.c.bf16 %v1240_v41, %v1240_v41  ;;  %v5670_v43 = vpop.f32.mrb[13].mxu0 }
 0xc03   :  { %v1243_v44 = vpop.f32.mrb[14].mxu0 }
 0xc04   :  { %v5671_v45 = vpop.f32.mrb[15].mxu0  ;;  %5677 = vmatmul.mubr.msk.bf16.vlgmr.msra.gmra.mrb[40].mxu1 %vm623_vm1, %v1246_v42 }
 0xc05   :  { %5687 = vmatpush3.bf16.msra.mxu1 %v1376_v9  ;;  %5688 = vmatprep.mubr.msk.bf16.mxu1 %vm6582_vm0, %v6581_v38 }
 0xc06   :  { %5698 = vmatprep.subr.bf16.mxu1 %v6581_v38 }
 0xc09   :  { %v1345_v11 = vpop.f32.mrb[16].mxu0 }
 0xc0a   :  { %v1351_v46 = vmul.f32 0.17677669, %v1345_v11  ;;  %v5684_v47 = vpop.f32.mrb[17].mxu0 }
 0xc0b   :  { %v1348_v48 = vpop.f32.mrb[18].mxu0 }
 0xc0c   :  { %v5685_v49 = vpop.f32.mrb[19].mxu0  ;;  %v1358_v51 = vadd.f32 %v6941_v27, %v1351_v46 }
 0xc0e   :  { %v1359_v52 = vsel %vm678_vm3, %v1358_v51, -inf }
 0xc0f   :  { %1360 = vmax.xlane.f32.xlu1 %v1359_v52 }
 0xc11   :  { %v1463_v53 = vpop.f32.mrb[20].mxu0 }
 0xc12   :  { %v1469_v54 = vmul.f32 0.17677669, %v1463_v53  ;;  %v5696_v55 = vpop.f32.mrb[21].mxu0 }
 0xc13   :  { %v1466_v56 = vpop.f32.mrb[22].mxu0 }
 0xc14   :  { %v5697_v57 = vpop.f32.mrb[23].mxu0  ;;  %v1470_v58 = vadd.f32 %v6941_v27, %v1469_v54 }
 0xc16   :  { %v1471_v59 = vsel %vm678_vm3, %v1470_v58, -inf }
 0xc17   :  { %1472 = vmax.xlane.f32.xlu0 %v1471_v59 }
 0xc20   :  { %1483 = vrot.lane.b32.xlu1 %v6930_v40, %s6583_s9 }
 0xc24   :  { %1618 = vrot.lane.b32.xlu1 %v6887_v10, %s6569_s17 }
 0xc9c   :  { %v1361_v61 = vpop.xlane.xlu1 %1360 }
 0xc9d   :  { %v1362_v62 = vsub.f32 %v1358_v51, %v1361_v61 }
 0xc9f   :  { %v1363_v63 = vmul.f32 1.442695, %v1362_v62 }
 0xca0   :  { %v1484_v20 = vpop.permute.xlu1 %1483 }
 0xca1   :  { %6362 = vpow2.f32 %v1363_v63  ;;  %v1489_v25 = vsel %vm694_vm2, %v1484_v20, 0 }
 0xca4   :  { %v1473_v0 = vpop.xlane.xlu0 %1472  ;;  %v1619_v44 = vpop.permute.xlu1 %1618 }
 0xca5   :  { %v1474_v1 = vsub.f32 %v1470_v58, %v1473_v0 }
 0xca7   :  { %v1475_v2 = vmul.f32 1.442695, %v1474_v1 }
 0xca9   :  { %6364 = vpow2.f32 %v1475_v2 }
 0xcab   :  { %v6363_v3 = vpop.eup %6362 }
 0xcac   :  { %v1365_v4 = vsel %vm678_vm3, %v6363_v3, 0.0 }
 0xcad   :  { %1366 = vadd.xlane.f32.xlu0 %v1365_v4 }
 0xcb3   :  { %v6365_v5 = vpop.eup %6364 }
 0xcb4   :  { %v1477_v6 = vsel %vm678_vm3, %v6365_v5, 0.0 }
 0xcb5   :  { %1478 = vadd.xlane.f32.xlu0 %v1477_v6 }
 0xccb   :  { %1620 = vrot.lane.b32.xlu0 %v6895_v21, %s6569_s17 }
 0xcd7   :  { %v1296_v7 = vpop.f32.mrb[40].mxu1 }
 0xcd8   :  { %v6956_v8 = vadd.f32 %v1296_v7, %v6900_v23  ;;  %v5678_v12 = vpop.f32.mrb[41].mxu1 }
 0xcd9   :  { %v1299_v14 = vpop.f32.mrb[42].mxu1 }
 0xcda   :  { %v5679_v15 = vpop.f32.mrb[43].mxu1 }
 0xd3a   :  { %v1367_v16 = vpop.xlane.xlu0 %1366 }
 0xd3b   :  { %6366 = vrcp.f32 %v1367_v16 }
 0xd42   :  { %v1479_v17 = vpop.xlane.xlu0 %1478 }
 0xd43   :  { %6368 = vrcp.f32 %v1479_v17 }
 0xd45   :  { %v6367_v31 = vpop.eup %6366 }
 0xd46   :  { %v1369_v19 = vmul.f32 %v6367_v31, %v6363_v3 }
 0xd48   :  { %v1370_v24 = vpack.c.bf16 %v1369_v19, %v1369_v19 }
 0xd4a   :  { %5689 = vmatmul.mubr.msk.bf16.vlgmr.msra.gmra.mrb[44].mxu1 %vm678_vm3, %v1370_v24 }
 0xd4b   :  { %5699 = vmatpush3.bf16.msra.mxu1 %v1489_v25  ;;  %5700 = vmatprep.mubr.msk.bf16.mxu1 %vm6582_vm0, %v6581_v38 }
 0xd4c   :  { %5712 = vmatprep.subr.bf16.mxu1 %v6581_v38 }
 0xd4d   :  { %v6369_v23 = vpop.eup %6368 }
 0xd4e   :  { %v1481_v26 = vmul.f32 %v6369_v23, %v6365_v5 }
 0xd50   :  { %v1482_v22 = vpack.c.bf16 %v1481_v26, %v1481_v26 }
 0xd52   :  { %5701 = vmatmul.mubr.msk.bf16.vlgmr.msra.gmra.mrb[48].mxu1 %vm678_vm3, %v1482_v22 }
 0xd53   :  { %5713 = vmatpush3.bf16.msra.mxu1 %v6831_v13  ;;  %5716 = vmatprep.mubr.msk.bf16.mxu1 %vm6582_vm0, %v6581_v38  ;;  %v1621_v13 = vpop.permute.xlu0 %1620 }
 0xd54   :  { %5714 = vmatprep.subr.bf16.mxu1 %v6581_v38  ;;  %v1626_v43 = vsel %vm623_vm1, %v1621_v13, 0 }
 0xd57   :  { %5715 = vmatpush3.bf16.msra.mxu1 %v6835_v18 }
 0xd58   :  { %5726 = vmatprep.subr.bf16.mxu1 %v6581_v38 }
 0xe1d   :  { %v1412_v30 = vpop.f32.mrb[44].mxu1 }
 0xe1e   :  { %v1418_v32 = vpack.c.bf16 %v1412_v30, %v1412_v30  ;;  %v5690_v33 = vpop.f32.mrb[45].mxu1 }
 0xe1f   :  { %v1415_v34 = vpop.f32.mrb[46].mxu1 }
 0xe20   :  { %v5691_v36 = vpop.f32.mrb[47].mxu1  ;;  %5717 = vmatmul.mubr.msk.bf16.vlgmr.msra.gmra.mrb[52].mxu1 %vm623_vm1, %v1418_v32 }
 0xe21   :  { %5728 = vmatprep.mubr.msk.bf16.mxu1 %vm6582_vm0, %v6581_v38 }
 0xe25   :  { %v1525_v37 = vpop.f32.mrb[48].mxu1 }
 0xe26   :  { %v1531_v39 = vpack.c.bf16 %v1525_v37, %v1525_v37  ;;  %v5702_v41 = vpop.f32.mrb[49].mxu1 }
 0xe27   :  { %v1528_v42 = vpop.f32.mrb[50].mxu1 }
 0xe28   :  { %v5703_v18 = vpop.f32.mrb[51].mxu1  ;;  %5709 = vmatmul.mubr.msk.bf16.vlgmr.msra.gmra.mrb[24].mxu0 %vm623_vm1, %v1531_v39 }
 0xe29   :  { %5721 = vmatpush3.bf16.xpose.msra.mxu0 %v1626_v43  ;;  %5722 = vmatprep.mubr.msk.bf16.mxu0 %vm6582_vm0, %v6581_v38 }
 0xe2a   :  { %5732 = vmatprep.subr.bf16.mxu0 %v6581_v38 }
 0xe30   :  { %5723 = vmatmul.mubr.msk.bf16.vlgmr.msra.gmra.mrb[28].mxu0 %vm623_vm1, %v1619_v44 }
 0xe31   :  { %5733 = vmatpush3.bf16.msra.mxu0 %v6861_v50  ;;  %5736 = vmatprep.mubr.msk.bf16.mxu0 %vm6582_vm0, %v6581_v38 }
 0xe32   :  { %5734 = vmatprep.subr.bf16.mxu0 %v6581_v38 }
 0xe35   :  { %5735 = vmatpush3.bf16.msra.mxu0 %v6875_v60 }
 0xe36   :  { %5746 = vmatprep.subr.bf16.mxu0 %v6581_v38 }
 0xef3   :  { %v1612_v45 = vpop.f32.mrb[52].mxu1 }
 0xef4   :  { %v5718_v9 = vpop.f32.mrb[53].mxu1 }
 0xef5   :  { %v1615_v11 = vpop.f32.mrb[54].mxu1 }
 0xef6   :  { %v5719_v46 = vpop.f32.mrb[55].mxu1 }
 0xefb   :  { %v1569_v47 = vpop.f32.mrb[24].mxu0 }
 0xefc   :  { %v6985_v48 = vadd.f32 %v1612_v45, %v1569_v47  ;;  %v5710_v49 = vpop.f32.mrb[25].mxu0  ;;  %v6150_v47 = vld [vmem:[#allocation7] ss:$16 sps:$4 sm:$0xff]  }
 0xefd   :  { %v1572_v51 = vpop.f32.mrb[26].mxu0  ;;  %v6153_v49 = vld [vmem:[#allocation7 + $0x8] ss:$16 sps:$4 sm:$0xff]  }
 0xefe   :  { %v5711_v52 = vpop.f32.mrb[27].mxu0  ;;  %v6155_v51 = vld [vmem:[#allocation7 + $0xc] ss:$16 sps:$4 sm:$0xff]  }
 0xeff   :  { %v6158_v52 = vld [vmem:[#allocation7 + $0x24] ss:$16 sps:$4 sm:$0xff]  }
 0xf03   :  { %v1662_v50 = vpop.f32.mrb[28].mxu0 }
 0xf04   :  { %v1668_v53 = vmul.f32 0.17677669, %v1662_v50  ;;  %v5724_v54 = vpop.f32.mrb[29].mxu0  ;;  %v6161_v50 = vld [vmem:[#allocation7 + $0x2c] ss:$16 sps:$4 sm:$0xff]  }
 0xf05   :  { %v1665_v55 = vpop.f32.mrb[30].mxu0  ;;  %v6159_v54 = vld [vmem:[#allocation7 + $0x28] ss:$16 sps:$4 sm:$0xff]  }
 0xf06   :  { %v5725_v56 = vpop.f32.mrb[31].mxu0  ;;  %v1669_v57 = vadd.f32 %v6941_v27, %v1668_v53  ;;  %v6156_v53 = vld [vmem:[#allocation7 + $0x20] ss:$16 sps:$4 sm:$0xff]   ;;  %v6164_v55 = vld [vmem:[#allocation7 + $0x44] ss:$16 sps:$4 sm:$0xff]  }
 0xf07   :  { %v6167_v56 = vld [vmem:[#allocation7 + $0x4c] ss:$16 sps:$4 sm:$0xff]  }
 0xf08   :  { %v1670_v60 = vsel %vm678_vm3, %v1669_v57, -inf }
 0xf09   :  { %1671 = vmax.xlane.f32.xlu1 %v1670_v60  ;;  %v6165_v60 = vld [vmem:[#allocation7 + $0x48] ss:$16 sps:$4 sm:$0xff]  }
 0xf1a   :  { %1777 = vrot.lane.b32.xlu1 %v6895_v21, %s6584_s30 }
 0xf1e   :  { %1775 = vrot.lane.b32.xlu1 %v6887_v10, %s6584_s30 }
 0xf96   :  { %v1672_v58 = vpop.xlane.xlu1 %1671 }
 0xf97   :  { %v1673_v59 = vsub.f32 %v1669_v57, %v1672_v58  ;;  %v6162_v57 = vld [vmem:[#allocation7 + $0x40] ss:$16 sps:$4 sm:$0xff]  }
 0xf99   :  { %v1674_v61 = vmul.f32 1.442695, %v1673_v59 }
 0xf9a   :  { %v1778_v3 = vpop.permute.xlu1 %1777 }
 0xf9b   :  { %6370 = vpow2.f32 %v1674_v61  ;;  %v1783_v5 = vsel %vm623_vm1, %v1778_v3, 0  ;;  %v6168_v3 = vld [vmem:[#allocation7 + $0x60] ss:$16 sps:$4 sm:$0xff]  }
 0xf9e   :  { %v1776_v6 = vpop.permute.xlu1 %1775 }
 0xfa5   :  { %v6371_v62 = vpop.eup %6370 }
 0xfa6   :  { %v1676_v63 = vsel %vm678_vm3, %v6371_v62, 0.0 }
 0xfa7   :  { %1677 = vadd.xlane.f32.xlu0 %v1676_v63  ;;  %v6467_v63 = vld [vmem:[%s7505_s0 + $0x8] sm:$0xff] }
 0xfbd   :  { %1682 = vrot.lane.b32.xlu0 %v6930_v40, %s6569_s17 }
0x1034   :  { %v1678_v0 = vpop.xlane.xlu0 %1677 }
0x1035   :  { %6372 = vrcp.f32 %v1678_v0 }
0x1038   :  { %v1683_v1 = vpop.permute.xlu0 %1682 }
0x1039   :  { %v1688_v2 = vsel %vm694_vm2, %v1683_v1, 0 }
0x103a   :  { %5727 = vmatpush3.bf16.msra.mxu1 %v1688_v2 }
0x103b   :  { %5740 = vmatprep.subr.bf16.mxu1 %v6581_v38 }
0x103f   :  { %v6373_v10 = vpop.eup %6372 }
0x1040   :  { %v1680_v21 = vmul.f32 %v6373_v10, %v6371_v62  ;;  %v6170_v10 = vld [vmem:[#allocation7 + $0x64] ss:$16 sps:$4 sm:$0xff]  }
0x1042   :  { %v1681_v4 = vpack.c.bf16 %v1680_v21, %v1680_v21  ;;  %v6173_v21 = vld [vmem:[#allocation7 + $0x6c] ss:$16 sps:$4 sm:$0xff]  }
0x1044   :  { %5729 = vmatmul.mubr.msk.bf16.vlgmr.msra.gmra.mrb[56].mxu1 %vm678_vm3, %v1681_v4  ;;  %v6171_v4 = vld [vmem:[#allocation7 + $0x68] ss:$16 sps:$4 sm:$0xff]  }
0x1045   :  { %5741 = vmatpush3.bf16.xpose.msra.mxu1 %v1783_v5  ;;  %5742 = vmatprep.mubr.msk.bf16.mxu1 %vm6582_vm0, %v6581_v38  ;;  %v6174_v5 = vld [vmem:[#allocation7 + $0x80] ss:$16 sps:$4 sm:$0xff]  }
0x1046   :  { %5752 = vmatprep.subr.bf16.mxu1 %v6581_v38 }
0x104c   :  { %5743 = vmatmul.mubr.msk.bf16.vlgmr.msra.gmra.mrb[60].mxu1 %vm623_vm1, %v1776_v6  ;;  %v6176_v6 = vld [vmem:[#allocation7 + $0x84] ss:$16 sps:$4 sm:$0xff]  }
0x104d   :  { %5753 = vmatpush3.bf16.msra.mxu1 %v6902_v28  ;;  %5756 = vmatprep.mubr.msk.bf16.mxu1 %vm6582_vm0, %v6581_v38 }
0x104e   :  { %5754 = vmatprep.subr.bf16.mxu1 %v6581_v38 }
0x1051   :  { %5755 = vmatpush3.bf16.msra.mxu1 %v6905_v29  ;;  %v6466_v29 = vld [vmem:[%s7505_s0] sm:$0xff] }
0x1052   :  { %v7017_v25 = vadd.f32 %v6466_v29, %v6956_v8  ;;  %2160 = vmatprep.subr.bf16.mxu1 %v6155_v51  ;;  %v6197_v29 = vld [vmem:[#allocation7 + $0xec] ss:$16 sps:$4 sm:$0xff]  }
0x1053   :  { %v6208_v51 = vld [vmem:[%s7496_s10 + $0x68] sm:$0xff]  }
0x1054   :  { %v1934_v26 = vmul.f32 %v7017_v25, %v7017_v25 }
0x1117   :  { %v1724_v7 = vpop.f32.mrb[56].mxu1 }
0x1118   :  { %v1730_v12 = vpack.c.bf16 %v1724_v7, %v1724_v7  ;;  %v5730_v14 = vpop.f32.mrb[57].mxu1  ;;  %v6177_v7 = vld [vmem:[#allocation7 + $0x88] ss:$16 sps:$4 sm:$0xff]  }
0x1119   :  { %v1727_v15 = vpop.f32.mrb[58].mxu1  ;;  %v6182_v14 = vld [vmem:[#allocation7 + $0xa4] ss:$16 sps:$4 sm:$0xff]  }
0x111a   :  { %v5731_v16 = vpop.f32.mrb[59].mxu1  ;;  %5737 = vmatmul.mubr.msk.bf16.vlgmr.msra.gmra.mrb[32].mxu0 %vm623_vm1, %v1730_v12  ;;  %v6179_v12 = vld [vmem:[#allocation7 + $0x8c] ss:$16 sps:$4 sm:$0xff]  }
0x111b   :  { %5748 = vmatprep.mubr.msk.bf16.mxu0 %vm6582_vm0, %v6581_v38  ;;  %v6185_v15 = vld [vmem:[#allocation7 + $0xac] ss:$16 sps:$4 sm:$0xff]   ;;  %v6180_v16 = vld [vmem:[#allocation7 + $0xa0] ss:$16 sps:$4 sm:$0xff]  }
0x111f   :  { %v1819_v17 = vpop.f32.mrb[60].mxu1 }
0x1120   :  { %v1825_v31 = vmul.f32 0.17677669, %v1819_v17  ;;  %v5744_v28 = vpop.f32.mrb[61].mxu1  ;;  %v6183_v17 = vld [vmem:[#allocation7 + $0xa8] ss:$16 sps:$4 sm:$0xff]  }
0x1121   :  { %v1822_v19 = vpop.f32.mrb[62].mxu1  ;;  %v6191_v28 = vld [vmem:[#allocation7 + $0xcc] ss:$16 sps:$4 sm:$0xff]  }
0x1122   :  { %v5745_v20 = vpop.f32.mrb[63].mxu1  ;;  %v1826_v24 = vadd.f32 %v6941_v27, %v1825_v31  ;;  %v6188_v31 = vld [vmem:[#allocation7 + $0xc4] ss:$16 sps:$4 sm:$0xff]   ;;  %v6186_v19 = vld [vmem:[#allocation7 + $0xc0] ss:$16 sps:$4 sm:$0xff]  }
0x1123   :  { %v6189_v20 = vld [vmem:[#allocation7 + $0xc8] ss:$16 sps:$4 sm:$0xff]  }
0x1124   :  { %v1827_v23 = vsel %vm678_vm3, %v1826_v24, -inf }
0x1125   :  { %1828 = vmax.xlane.f32.xlu1 %v1827_v23  ;;  %v6192_v23 = vld [vmem:[#allocation7 + $0xe0] ss:$16 sps:$4 sm:$0xff]  }
0x1129   :  { %1936 = vadd.xlane.f32.xlu1 %v1934_v26  ;;  %v6195_v26 = vld [vmem:[#allocation7 + $0xe8] ss:$16 sps:$4 sm:$0xff]  }
0x11b2   :  { %v1829_v22 = vpop.xlane.xlu1 %1828 }
0x11b3   :  { %v1830_v30 = vsub.f32 %v1826_v24, %v1829_v22  ;;  %v6194_v24 = vld [vmem:[#allocation7 + $0xe4] ss:$16 sps:$4 sm:$0xff]  }
0x11b5   :  { %v1831_v32 = vmul.f32 1.442695, %v1830_v30 }
0x11b6   :  { %v1937_v22 = vpop.xlane.xlu1 %1936 }
0x11b7   :  { %6374 = vpow2.f32 %v1831_v32  ;;  %v1940_v30 = vmul.f32 0.0078125, %v1937_v22 }
0x11b9   :  { %v1942_v32 = vadd.f32 1e-06, %v1940_v30 }
0x11c1   :  { %v6375_v33 = vpop.eup %6374 }
0x11c2   :  { %v1833_v27 = vsel %vm678_vm3, %v6375_v33, 0.0 }
0x11c3   :  { %1834 = vadd.xlane.f32.xlu0 %v1833_v27 }
0x11d9   :  { %1839 = vrot.lane.b32.xlu0 %v6930_v40, %s6584_s30 }
0x11ed   :  { %v1768_v8 = vpop.f32.mrb[32].mxu0 }
0x11ee   :  { %v1774_v34 = vadd.f32 %v1768_v8, %v6985_v48  ;;  %v5738_v36 = vpop.f32.mrb[33].mxu0  ;;  %v6152_v48 = vld [vmem:[#allocation7 + $0x4] ss:$16 sps:$4 sm:$0xff]  }
0x11ef   :  { %v1771_v13 = vpop.f32.mrb[34].mxu0 }
0x11f0   :  { %v5739_v37 = vpop.f32.mrb[35].mxu0 }
0x11f1   :  { %v5158_v37 = vld [vmem:[%s7492_s6] ss:$0 sm:$0xff] }
0x1250   :  { %v1835_v39 = vpop.xlane.xlu0 %1834 }
0x1251   :  { %6376 = vrcp.f32 %v1835_v39 }
0x1252   :  { %6378 = vrsqrt.f32 %v1942_v32 }
0x1254   :  { %v1840_v41 = vpop.permute.xlu0 %1839 }
0x1255   :  { %v1845_v42 = vsel %vm694_vm2, %v1840_v41, 0 }
0x1256   :  { %5747 = vmatpush3.bf16.msra.mxu0 %v1845_v42 }
0x1257   :  { %2117 = vmatprep.subr.bf16.mxu0 %v6152_v48  ;;  %v6206_v48 = vld [vmem:[%s7496_s10 + $0x60] sm:$0xff]  }
0x125b   :  { %v6377_v43 = vpop.eup %6376 }
0x125c   :  { %v1837_v18 = vmul.f32 %v6377_v43, %v6375_v33 }
0x125e   :  { %v1838_v44 = vpack.c.bf16 %v1837_v18, %v1837_v18  ;;  %v6198_v18 = vld [vmem:[%s7496_s10 + $0x40] sm:$0xff]  }
0x1260   :  { %5749 = vmatmul.mubr.msk.bf16.vlgmr.msra.gmra.mrb[36].mxu0 %vm678_vm3, %v1838_v44  ;;  %v6199_v44 = vld [vmem:[%s7496_s10] sm:$0xff]  }
0x1261   :  { %2149 = vmatprep.mubr.bf16.mxu0 %v6580_v35  ;;  %2118 = vmatpush1.bf16.msra.mxu0 %v6150_v47  ;;  %v6205_v47 = vld [vmem:[%s7496_s10 + $0x18] sm:$0xff]  }
0x1262   :  { %2119 = vmatprep.subr.bf16.mxu0 %v6158_v52  ;;  %v6209_v52 = vld [vmem:[%s7496_s10 + $0x28] sm:$0xff]  }
0x1265   :  { %2120 = vmatpush1.bf16.msra.mxu0 %v6156_v53  ;;  %v6211_v53 = vld [vmem:[%s7496_s10 + $0x30] sm:$0xff]  }
0x1266   :  { %2121 = vmatprep.subr.bf16.mxu0 %v6164_v55  ;;  %v6213_v55 = vld [vmem:[%s7496_s10 + $0x38] sm:$0xff]  }
0x1269   :  { %2122 = vmatpush1.bf16.msra.mxu0 %v6162_v57 }
0x126a   :  { %2123 = vmatprep.subr.bf16.mxu0 %v6170_v10 }
0x126d   :  { %2124 = vmatpush1.bf16.msra.mxu0 %v6168_v3 }
0x126e   :  { %2125 = vmatprep.subr.bf16.mxu0 %v6176_v6 }
0x1271   :  { %2126 = vmatpush1.bf16.msra.mxu0 %v6174_v5 }
0x1272   :  { %2127 = vmatprep.subr.bf16.mxu0 %v6182_v14 }
0x1275   :  { %2128 = vmatpush1.bf16.msra.mxu0 %v6180_v16 }
0x1276   :  { %2129 = vmatprep.subr.bf16.mxu0 %v6188_v31 }
0x1279   :  { %2130 = vmatpush1.bf16.msra.mxu0 %v6186_v19 }
0x127a   :  { %2131 = vmatprep.subr.bf16.mxu0 %v6194_v24 }
0x127d   :  { %2132 = vmatpush1.bf16.msra.mxu0 %v6192_v23 }
0x127e   :  { %5433 = vmatprep.subr.bf16.mxu0 %v6198_v18  ;;  %v6220_v18 = vld [vmem:[#allocation3 + $0x168] ss:$20 sps:$4 sm:$0xff]  }
0x1333   :  { %v1881_v40 = vpop.f32.mrb[36].mxu0 }
0x1334   :  { %v1887_v45 = vpack.c.bf16 %v1881_v40, %v1881_v40  ;;  %v5750_v9 = vpop.f32.mrb[37].mxu0  ;;  %v6200_v40 = vld [vmem:[%s7496_s10 + $0x48] sm:$0xff]  }
0x1335   :  { %v1884_v11 = vpop.f32.mrb[38].mxu0  ;;  %v6202_v9 = vld [vmem:[%s7496_s10 + $0x50] sm:$0xff]  }
0x1336   :  { %v5751_v46 = vpop.f32.mrb[39].mxu0  ;;  %5757 = vmatmul.mubr.msk.bf16.vlgmr.msra.gmra.mrb[64].mxu1 %vm623_vm1, %v1887_v45  ;;  %v6201_v45 = vld [vmem:[%s7496_s10 + $0x8] sm:$0xff]   ;;  %v6203_v11 = vld [vmem:[%s7496_s10 + $0x10] sm:$0xff]  }
0x1337   :  { %2192 = vmatprep.mubr.bf16.mxu1 %v6580_v35  ;;  %2161 = vmatpush1.bf16.msra.mxu1 %v6153_v49  ;;  %v6204_v46 = vld [vmem:[%s7496_s10 + $0x58] sm:$0xff]   ;;  %v6207_v49 = vld [vmem:[%s7496_s10 + $0x20] sm:$0xff]  }
0x1338   :  { %2162 = vmatprep.subr.bf16.mxu1 %v6161_v50  ;;  %v6210_v50 = vld [vmem:[%s7496_s10 + $0x70] sm:$0xff]  }
0x133b   :  { %2163 = vmatpush1.bf16.msra.mxu1 %v6159_v54  ;;  %v6212_v54 = vld [vmem:[%s7496_s10 + $0x78] sm:$0xff]  }
0x133c   :  { %2164 = vmatprep.subr.bf16.mxu1 %v6167_v56 }
0x133f   :  { %2165 = vmatpush1.bf16.msra.mxu1 %v6165_v60 }
0x1340   :  { %2166 = vmatprep.subr.bf16.mxu1 %v6173_v21 }
0x1343   :  { %2167 = vmatpush1.bf16.msra.mxu1 %v6171_v4 }
0x1344   :  { %2168 = vmatprep.subr.bf16.mxu1 %v6179_v12 }
0x1347   :  { %2169 = vmatpush1.bf16.msra.mxu1 %v6177_v7 }
0x1348   :  { %2170 = vmatprep.subr.bf16.mxu1 %v6185_v15 }
0x134b   :  { %2171 = vmatpush1.bf16.msra.mxu1 %v6183_v17 }
0x134c   :  { %2172 = vmatprep.subr.bf16.mxu1 %v6191_v28 }
0x134f   :  { %2173 = vmatpush1.bf16.msra.mxu1 %v6189_v20 }
0x1350   :  { %2174 = vmatprep.subr.bf16.mxu1 %v6197_v29 }
0x1353   :  { %2175 = vmatpush1.bf16.msra.mxu1 %v6195_v26 }
0x1409   :  { %v1925_v58 = vpop.f32.mrb[64].mxu1 }
0x140a   :  { %v1931_v59 = vadd.f32 %v1925_v58, %v1774_v34  ;;  %v5758_v61 = vpop.f32.mrb[65].mxu1  ;;  %v6379_v34 = vpop.eup %6378 }
0x140b   :  { %v1928_v62 = vpop.f32.mrb[66].mxu1  ;;  %v1946_v36 = vmul.f32 %v6379_v34, %v7017_v25 }
0x140c   :  { %v7034_v0 = vadd.f32 %v6467_v63, %v1931_v59  ;;  %v5759_v1 = vpop.f32.mrb[67].mxu1 }
0x140d   :  { %v1954_v41 = vmul.f32 %v5158_v37, %v1946_v36 }
0x140e   :  { %v1935_v2 = vmul.f32 %v7034_v0, %v7034_v0 }
0x1410   :  { %1938 = vadd.xlane.f32.xlu1 %v1935_v2 }
0x149d   :  { %v1939_v33 = vpop.xlane.xlu1 %1938 }
0x149e   :  { %v1941_v27 = vmul.f32 0.0078125, %v1939_v33 }
0x14a0   :  { %v1943_v8 = vadd.f32 1e-06, %v1941_v27 }
0x14a2   :  { %6380 = vrsqrt.f32 %v1943_v8 }
0x14ac   :  { %v6381_v13 = vpop.eup %6380 }
0x14ad   :  { %v1947_v39 = vmul.f32 %v6381_v13, %v7034_v0  ;;  %v6214_v13 = vld [vmem:[#allocation3 + $0x140] ss:$20 sps:$4 sm:$0xff]  }
0x14af   :  { %v1955_v42 = vmul.f32 %v5158_v37, %v1947_v39  ;;  %v6216_v37 = vld [vmem:[#allocation3 + $0x144] ss:$20 sps:$4 sm:$0xff]   ;;  %v6217_v39 = vld [vmem:[#allocation3 + $0x148] ss:$20 sps:$4 sm:$0xff]  }
0x14b0   :  { %2739 = vmatprep.subr.bf16.mxu1 %v6216_v37  ;;  %v6269_v37 = vld [vmem:[#allocation3 + $0x268] ss:$20 sps:$4 sm:$0xff]  }
0x14b1   :  { %v1956_v43 = vpack.c.bf16 %v1955_v42, %v1954_v41  ;;  %v6219_v41 = vld [vmem:[#allocation3 + $0x14c] ss:$20 sps:$4 sm:$0xff]  }
0x14b2   :  { %v6222_v42 = vld [vmem:[#allocation3 + $0x16c] ss:$20 sps:$4 sm:$0xff]  }
0x14b3   :  { %2150 = vmatmul.mubr.bf16.vlgmr.msra.gmra.mrb[40].mxu0 %v1956_v43  ;;  %2193 = vmatmul.mubr.bf16.vlgmr.msra.gmra.mrb[68].mxu1 %v1956_v43  ;;  %v6225_v43 = vld [vmem:[#allocation3 + $0x174] ss:$20 sps:$4 sm:$0xff]  }
0x14b4   :  { %2771 = vmatprep.mubr.bf16.mxu1 %v6580_v35  ;;  %5434 = vmatpush3.bf16.msra.mxu0 %v6199_v44  ;;  %v6223_v44 = vld [vmem:[#allocation3 + $0x170] ss:$20 sps:$4 sm:$0xff]  }
0x14b5   :  { %5435 = vmatprep.subr.bf16.mxu0 %v6200_v40  ;;  %2740 = vmatpush1.bf16.msra.mxu1 %v6214_v13  ;;  %v6268_v13 = vld [vmem:[#allocation3 + $0x240] ss:$20 sps:$4 sm:$0xff]  }
0x14b6   :  { %2741 = vmatprep.subr.bf16.mxu1 %v6222_v42  ;;  %v6468_v42 = vld [vmem:[%s7489_s3] sm:$0xff] }
0x14b8   :  { %5436 = vmatpush3.bf16.msra.mxu0 %v6201_v45 }
0x14b9   :  { %5437 = vmatprep.subr.bf16.mxu0 %v6202_v9  ;;  %2742 = vmatpush1.bf16.msra.mxu1 %v6220_v18 }
0x14bc   :  { %5438 = vmatpush3.bf16.msra.mxu0 %v6203_v11 }
0x14bd   :  { %5439 = vmatprep.subr.bf16.mxu0 %v6204_v46 }
0x14c0   :  { %5440 = vmatpush3.bf16.msra.mxu0 %v6205_v47 }
0x14c1   :  { %5441 = vmatprep.subr.bf16.mxu0 %v6206_v48 }
0x14c4   :  { %5442 = vmatpush3.bf16.msra.mxu0 %v6207_v49 }
0x14c5   :  { %5443 = vmatprep.subr.bf16.mxu0 %v6208_v51 }
0x14c8   :  { %5444 = vmatpush3.bf16.msra.mxu0 %v6209_v52 }
0x14c9   :  { %5445 = vmatprep.subr.bf16.mxu0 %v6210_v50  ;;  %v6228_v50 = vld [vmem:[#allocation3 + $0x194] ss:$20 sps:$4 sm:$0xff]  }
0x14ca   :  { %2743 = vmatprep.subr.bf16.mxu1 %v6228_v50 }
0x14cc   :  { %5446 = vmatpush3.bf16.msra.mxu0 %v6211_v53  ;;  %v6226_v53 = vld [vmem:[#allocation3 + $0x190] ss:$20 sps:$4 sm:$0xff]  }
0x14cd   :  { %5447 = vmatprep.subr.bf16.mxu0 %v6212_v54  ;;  %v6231_v54 = vld [vmem:[#allocation3 + $0x19c] ss:$20 sps:$4 sm:$0xff]   ;;  %2744 = vmatpush1.bf16.msra.mxu1 %v6226_v53 }
0x14d0   :  { %5448 = vmatpush3.bf16.msra.mxu0 %v6213_v55  ;;  %v6229_v55 = vld [vmem:[#allocation3 + $0x198] ss:$20 sps:$4 sm:$0xff]  }
0x14d1   :  { %2782 = vmatprep.subr.bf16.mxu0 %v6219_v41 }
0x1586   :  { %v2151_v56 = vpop.f32.mrb[40].mxu0  ;;  %v2194_v57 = vpop.f32.mrb[68].mxu1 }
0x1587   :  { %v2203_v60 = vsub.f32 0.0, %v2151_v56  ;;  %v2153_v58 = vpop.f32.mrb[41].mxu0  ;;  %v2196_v59 = vpop.f32.mrb[69].mxu1 }
0x1588   :  { %v2204_v61 = vsub.f32 0.0, %v2153_v58  ;;  %v2155_v62 = vpop.f32.mrb[42].mxu0  ;;  %v2198_v63 = vpop.f32.mrb[70].mxu1 }
0x1589   :  { %v2207_v1 = vmul.f32 1.442695, %v2203_v60  ;;  %v2205_v2 = vsub.f32 0.0, %v2155_v62  ;;  %v2157_v10 = vpop.f32.mrb[43].mxu0  ;;  %v2200_v21 = vpop.f32.mrb[71].mxu1 }
0x158a   :  { %v2209_v3 = vmul.f32 1.442695, %v2204_v61  ;;  %v2206_v4 = vsub.f32 0.0, %v2157_v10  ;;  %v6240_v60 = vld [vmem:[#allocation3 + $0x1e4] ss:$20 sps:$4 sm:$0xff]  }
0x158b   :  { %6382 = vpow2.f32 %v2207_v1  ;;  %v2211_v5 = vmul.f32 1.442695, %v2205_v2  ;;  %v6243_v61 = vld [vmem:[#allocation3 + $0x1ec] ss:$20 sps:$4 sm:$0xff]   ;;  %v6249_v1 = vld [vmem:[#allocation3 + $0x214] ss:$20 sps:$4 sm:$0xff]  }
0x158c   :  { %6384 = vpow2.f32 %v2209_v3  ;;  %v2213_v6 = vmul.f32 1.442695, %v2206_v4  ;;  %v6247_v2 = vld [vmem:[#allocation3 + $0x210] ss:$20 sps:$4 sm:$0xff]   ;;  %v6253_v4 = vld [vmem:[#allocation3 + $0x238] ss:$20 sps:$4 sm:$0xff]  }
0x158d   :  { %6386 = vpow2.f32 %v2211_v5  ;;  %v6250_v3 = vld [vmem:[#allocation3 + $0x230] ss:$20 sps:$4 sm:$0xff]  }
0x158e   :  { %6388 = vpow2.f32 %v2213_v6  ;;  %v6258_v5 = vld [vmem:[#allocation3 + $0x25c] ss:$20 sps:$4 sm:$0xff]   ;;  %v6261_v6 = vld [vmem:[#allocation3 + $0x264] ss:$20 sps:$4 sm:$0xff]  }
0x1595   :  { %v6383_v7 = vpop.eup %6382 }
0x1596   :  { %v6385_v12 = vpop.eup %6384  ;;  %v2215_v14 = vadd.f32 1.0, %v6383_v7  ;;  %v6256_v7 = vld [vmem:[#allocation3 + $0x258] ss:$20 sps:$4 sm:$0xff]  }
0x1597   :  { %v6387_v15 = vpop.eup %6386  ;;  %v2216_v16 = vadd.f32 1.0, %v6385_v12  ;;  %v6259_v12 = vld [vmem:[#allocation3 + $0x260] ss:$20 sps:$4 sm:$0xff]  }
0x1598   :  { %v6389_v17 = vpop.eup %6388  ;;  %6390 = vrcp.f32 %v2215_v14  ;;  %v2217_v31 = vadd.f32 1.0, %v6387_v15 }
0x1599   :  { %6392 = vrcp.f32 %v2216_v16  ;;  %v2218_v28 = vadd.f32 1.0, %v6389_v17 }
0x159a   :  { %6394 = vrcp.f32 %v2217_v31 }
0x159b   :  { %6396 = vrcp.f32 %v2218_v28 }
0x15a2   :  { %v6391_v19 = vpop.eup %6390 }
0x15a3   :  { %v6393_v20 = vpop.eup %6392  ;;  %v2220_v24 = vmul.f32 %v6391_v19, %v2151_v56  ;;  %v6232_v56 = vld [vmem:[#allocation3 + $0x1b8] ss:$20 sps:$4 sm:$0xff]  }
0x15a4   :  { %v6395_v29 = vpop.eup %6394  ;;  %v2222_v23 = vmul.f32 %v6393_v20, %v2153_v58  ;;  %v6238_v58 = vld [vmem:[#allocation3 + $0x1e0] ss:$20 sps:$4 sm:$0xff]  }
0x15a5   :  { %v6397_v26 = vpop.eup %6396  ;;  %v2227_v22 = vmul.f32 %v2220_v24, %v2194_v57  ;;  %v2224_v30 = vmul.f32 %v6395_v29, %v2155_v62  ;;  %v6235_v57 = vld [vmem:[#allocation3 + $0x1c0] ss:$20 sps:$4 sm:$0xff]  }
0x15a6   :  { %v2228_v32 = vmul.f32 %v2222_v23, %v2196_v59  ;;  %v2226_v33 = vmul.f32 %v6397_v26, %v2157_v10  ;;  %v6241_v59 = vld [vmem:[#allocation3 + $0x1e8] ss:$20 sps:$4 sm:$0xff]   ;;  %v6246_v62 = vld [vmem:[#allocation3 + $0x20c] ss:$20 sps:$4 sm:$0xff]  }
0x15a7   :  { %v2229_v27 = vmul.f32 %v2224_v30, %v2198_v63  ;;  %v6244_v63 = vld [vmem:[#allocation3 + $0x208] ss:$20 sps:$4 sm:$0xff]   ;;  %v5241_v29 = vld [vmem:[%s7491_s5 + $0x1] ss:$0 sm:$0xff]  ;;  %v6262_v30 = vld [vmem:[#allocation3 + $0x150] ss:$20 sps:$4 sm:$0xff]  }
0x15a8   :  { %v2230_v8 = vmul.f32 %v2226_v33, %v2200_v21  ;;  %v6252_v10 = vld [vmem:[#allocation3 + $0x234] ss:$20 sps:$4 sm:$0xff]   ;;  %v6255_v21 = vld [vmem:[#allocation3 + $0x23c] ss:$20 sps:$4 sm:$0xff]   ;;  %v6263_v33 = vld [vmem:[#allocation3 + $0x178] ss:$20 sps:$4 sm:$0xff]  }
0x15a9   :  { %v2231_v34 = vpack.c.bf16 %v2229_v27, %v2227_v22  ;;  %v6264_v27 = vld [vmem:[#allocation3 + $0x1a0] ss:$20 sps:$4 sm:$0xff]  }
0x15aa   :  { %v2232_v36 = vpack.c.bf16 %v2230_v8, %v2228_v32  ;;  %v6265_v8 = vld [vmem:[#allocation3 + $0x1c8] ss:$20 sps:$4 sm:$0xff]  }
0x15ac   :  { %2361 = vmatprep.mubr.bf16.mxu0 %v2232_v36  ;;  %v6267_v36 = vld [vmem:[#allocation3 + $0x218] ss:$20 sps:$4 sm:$0xff]  }
0x15ad   :  { %2362 = vmatmul.mubr.bf16.vlgmr.msra.gmra.mrb[44].mxu0 %v2231_v34  ;;  %v6266_v34 = vld [vmem:[#allocation3 + $0x1f0] ss:$20 sps:$4 sm:$0xff]  }
0x15ae   :  { %2814 = vmatprep.mubr.bf16.mxu0 %v6580_v35  ;;  %2783 = vmatpush1.bf16.msra.mxu0 %v6217_v39 }
0x15af   :  { %2784 = vmatprep.subr.bf16.mxu0 %v6225_v43 }
0x15b2   :  { %2785 = vmatpush1.bf16.msra.mxu0 %v6223_v44 }
0x15b3   :  { %2786 = vmatprep.subr.bf16.mxu0 %v6231_v54 }
0x15b6   :  { %2787 = vmatpush1.bf16.msra.mxu0 %v6229_v55 }
0x1680   :  { %v5449_v40 = vpop.f32.mrb[44].mxu0 }
0x1681   :  { %v5450_v45 = vpop.f32.mrb[45].mxu0 }
0x1682   :  { %v5451_v9 = vadd.f32 %v5450_v45, %v5449_v40  ;;  %v5452_v11 = vpop.f32.mrb[46].mxu0  ;;  %v6469_v45 = vld [vmem:[%s7490_s4] sm:$0xff] }
0x1683   :  { %v5453_v46 = vpop.f32.mrb[47].mxu0 }
0x1684   :  { %v7094_v47 = vadd.f32 %v5451_v9, %v7017_v25  ;;  %v5454_v48 = vadd.f32 %v5453_v46, %v5452_v11  ;;  %v6234_v25 = vld [vmem:[#allocation3 + $0x1bc] ss:$20 sps:$4 sm:$0xff]  }
0x1685   :  { %2745 = vmatprep.subr.bf16.mxu1 %v6234_v25 }
0x1686   :  { %v7097_v49 = vadd.f32 %v5454_v48, %v7034_v0  ;;  %v2508_v51 = vmul.f32 %v7094_v47, %v7094_v47  ;;  %v6237_v0 = vld [vmem:[#allocation3 + $0x1c4] ss:$20 sps:$4 sm:$0xff]   ;;  %2746 = vmatpush1.bf16.msra.mxu1 %v6232_v56 }
0x1687   :  { %2788 = vmatprep.subr.bf16.mxu0 %v6237_v0  ;;  %2747 = vmatprep.subr.bf16.mxu1 %v6240_v60  ;;  %v6471_v56 = vld [vmem:[%s7490_s4 + $0x8] sm:$0xff] }
0x1688   :  { %2510 = vadd.xlane.f32.xlu1 %v2508_v51  ;;  %v2509_v52 = vmul.f32 %v7097_v49, %v7097_v49  ;;  %2789 = vmatpush1.bf16.msra.mxu0 %v6235_v57  ;;  %v6470_v51 = vld [vmem:[%s7489_s3 + $0x8] sm:$0xff] }
0x1689   :  { %2790 = vmatprep.subr.bf16.mxu0 %v6243_v61 }
0x168a   :  { %2748 = vmatpush1.bf16.msra.mxu1 %v6238_v58 }
0x168b   :  { %2749 = vmatprep.subr.bf16.mxu1 %v6246_v62 }
0x168c   :  { %2512 = vadd.xlane.f32.xlu1 %v2509_v52  ;;  %2791 = vmatpush1.bf16.msra.mxu0 %v6241_v59 }
0x168d   :  { %2792 = vmatprep.subr.bf16.mxu0 %v6249_v1 }
0x168e   :  { %2750 = vmatpush1.bf16.msra.mxu1 %v6244_v63 }
0x168f   :  { %2751 = vmatprep.subr.bf16.mxu1 %v6252_v10 }
0x1690   :  { %2793 = vmatpush1.bf16.msra.mxu0 %v6247_v2 }
0x1691   :  { %2794 = vmatprep.subr.bf16.mxu0 %v6255_v21 }
0x1692   :  { %2752 = vmatpush1.bf16.msra.mxu1 %v6250_v3 }
0x1693   :  { %2753 = vmatprep.subr.bf16.mxu1 %v6258_v5 }
0x1694   :  { %2795 = vmatpush1.bf16.msra.mxu0 %v6253_v4 }
0x1695   :  { %2796 = vmatprep.subr.bf16.mxu0 %v6261_v6 }
0x1696   :  { %2754 = vmatpush1.bf16.msra.mxu1 %v6256_v7 }
0x1697   :  { %5760 = vmatprep.subr.bf16.mxu1 %v6581_v38 }
0x1698   :  { %2797 = vmatpush1.bf16.msra.mxu0 %v6259_v12 }
0x1699   :  { %5780 = vmatprep.subr.bf16.mxu0 %v6581_v38 }
0x1715   :  { %v2511_v14 = vpop.xlane.xlu1 %2510 }
0x1716   :  { %v2514_v15 = vmul.f32 0.0078125, %v2511_v14 }
0x1718   :  { %v2516_v16 = vadd.f32 1e-06, %v2514_v15 }
0x1719   :  { %v2513_v17 = vpop.xlane.xlu1 %2512 }
0x171a   :  { %6398 = vrsqrt.f32 %v2516_v16  ;;  %v2515_v31 = vmul.f32 0.0078125, %v2513_v17  ;;  %v7164_v17 = vld [vmem:[%s7487_s1] ss:$0 sm:$0xff] }
0x171c   :  { %v2517_v28 = vadd.f32 1e-06, %v2515_v31 }
0x171e   :  { %6400 = vrsqrt.f32 %v2517_v28 }
0x1724   :  { %v6399_v19 = vpop.eup %6398 }
0x1725   :  { %v2520_v20 = vmul.f32 %v6399_v19, %v7094_v47 }
0x1727   :  { %v2528_v26 = vmul.f32 %v5241_v29, %v2520_v20 }
0x1728   :  { %v6401_v24 = vpop.eup %6400 }
0x1729   :  { %v2521_v23 = vmul.f32 %v6401_v24, %v7097_v49 }
0x172b   :  { %v2529_v22 = vmul.f32 %v5241_v29, %v2521_v23 }
0x172d   :  { %v2530_v32 = vpack.c.bf16 %v2529_v22, %v2528_v26 }
0x172f   :  { %2772 = vmatmul.mubr.bf16.vlgmr.msra.gmra.mrb[72].mxu1 %v2530_v32  ;;  %2815 = vmatmul.mubr.bf16.vlgmr.msra.gmra.mrb[48].mxu0 %v2530_v32 }
0x1730   :  { %5761 = vmatpush3.bf16.msra.mxu1 %v6262_v30  ;;  %5776 = vmatprep.mubr.msk.bf16.mxu1 %vm6582_vm0, %v6581_v38 }
0x1731   :  { %5762 = vmatprep.subr.bf16.mxu1 %v6581_v38  ;;  %5782 = vmatprep.mubr.msk.bf16.mxu0 %vm6582_vm0, %v6581_v38 }
0x1734   :  { %5763 = vmatpush3.bf16.msra.mxu1 %v6263_v33 }
0x1735   :  { %5764 = vmatprep.subr.bf16.mxu1 %v6581_v38 }
0x1738   :  { %5765 = vmatpush3.bf16.msra.mxu1 %v6264_v27 }
0x1739   :  { %5766 = vmatprep.subr.bf16.mxu1 %v6581_v38 }
0x173c   :  { %5767 = vmatpush3.bf16.msra.mxu1 %v6265_v8 }
0x173d   :  { %5768 = vmatprep.subr.bf16.mxu1 %v6581_v38 }
0x1740   :  { %5769 = vmatpush3.bf16.msra.mxu1 %v6266_v34 }
0x1741   :  { %5770 = vmatprep.subr.bf16.mxu1 %v6581_v38 }
0x1744   :  { %5771 = vmatpush3.bf16.msra.mxu1 %v6267_v36 }
0x1745   :  { %5772 = vmatprep.subr.bf16.mxu1 %v6581_v38 }
0x1748   :  { %5773 = vmatpush3.bf16.msra.mxu1 %v6268_v13 }
0x1749   :  { %5774 = vmatprep.subr.bf16.mxu1 %v6581_v38 }
0x174c   :  { %5775 = vmatpush3.bf16.msra.mxu1 %v6269_v37 }
0x174d   :  { %5786 = vmatprep.subr.bf16.mxu1 %v6581_v38 }
0x174f   :  { %5777 = vmatmul.mubr.bf16.vlgmr.msra.gmra.mrb[76].mxu1 %v2530_v32 }
0x1750   :  { %5788 = vmatprep.mubr.msk.bf16.mxu1 %vm6582_vm0, %v6581_v38 }
0x1802   :  { %v2773_v39 = vpop.f32.mrb[72].mxu1  ;;  %v2816_v41 = vpop.f32.mrb[48].mxu0 }
0x1803   :  { %v2866_v43 = vmul.f32 %v6468_v42, %v2773_v39  ;;  %v2873_v18 = vmul.f32 %v6468_v42, %v2816_v41  ;;  %v2775_v44 = vpop.f32.mrb[73].mxu1  ;;  %v2818_v40 = vpop.f32.mrb[49].mxu0 }
0x1804   :  { %v2868_v9 = vmul.f32 %v6469_v45, %v2775_v44  ;;  %v2875_v11 = vmul.f32 %v6469_v45, %v2818_v40  ;;  %v2777_v46 = vpop.f32.mrb[74].mxu1  ;;  %v2820_v48 = vpop.f32.mrb[50].mxu0  ;;  %v7181_v44 = vld [vmem:[#allocation5 + $0x50] sm:$0xff]   ;;  %v7184_v40 = vld [vmem:[#allocation5 + $0x58] sm:$0xff]  }
0x1805   :  { %v2867_v52 = vmul.f32 %v6470_v51, %v2777_v46  ;;  %v2874_v50 = vmul.f32 %v6470_v51, %v2820_v48  ;;  %v2779_v53 = vpop.f32.mrb[75].mxu1  ;;  %v2822_v54 = vpop.f32.mrb[51].mxu0  ;;  %v7191_v51 = vld [vmem:[#allocation5 + $0x40] sm:$0xff]  }
0x1806   :  { %v2870_v55 = vadd.f32 %v2868_v9, %v2866_v43  ;;  %v2877_v25 = vadd.f32 %v2875_v11, %v2873_v18  ;;  %v2869_v0 = vmul.f32 %v6471_v56, %v2779_v53  ;;  %v2876_v57 = vmul.f32 %v6471_v56, %v2822_v54 }
0x1808   :  { %v2871_v60 = vadd.f32 %v2869_v0, %v2867_v52  ;;  %v2878_v58 = vadd.f32 %v2876_v57, %v2874_v50  ;;  %v7195_v50 = vld [vmem:[#allocation5 + $0x48] sm:$0xff]  }
0x180a   :  { %v7136_v59 = vpack.c.bf16 %v2871_v60, %v2870_v55  ;;  %v7138_v61 = vpack.c.bf16 %v2878_v58, %v2877_v25 }
0x180c   :  { %2992 = vrot.lane.b32.xlu1 %v7138_v61, %s6583_s9  ;;  %2989 = vrot.lane.b32.xlu0 %v7136_v59, %s6583_s9  ;;  %v2885_v62 = vsel %vm623_vm1, %v7138_v61, 0 }
0x180d   :  { %5781 = vmatpush3.bf16.xpose.msra.mxu0 %v2885_v62 }
0x180e   :  { %5792 = vmatprep.subr.bf16.mxu0 %v6581_v38 }
0x1814   :  { %5783 = vmatmul.mubr.msk.bf16.vlgmr.msra.gmra.mrb[52].mxu0 %vm623_vm1, %v7136_v59 }
0x1815   :  { %5794 = vmatprep.mubr.msk.bf16.mxu0 %vm6582_vm0, %v6581_v38 }
0x1822   :  { %v2859_v63 = vpop.f32.mrb[76].mxu1 }
0x1823   :  { %v5778_v1 = vpop.f32.mrb[77].mxu1 }
0x1824   :  { %v2862_v2 = vpop.f32.mrb[78].mxu1 }
0x1825   :  { %v7151_v10 = vpack.c.bf16 %v2862_v2, %v2859_v63  ;;  %v5779_v21 = vpop.f32.mrb[79].mxu1 }
0x1827   :  { %v2945_v3 = vsel %vm694_vm2, %v7151_v10, 0 }
0x1828   :  { %5787 = vmatpush3.bf16.msra.mxu1 %v2945_v3 }
0x1829   :  { %5798 = vmatprep.subr.bf16.mxu1 %v6581_v38 }
0x187e   :  { %v2993_v4 = vpop.permute.xlu1 %2992  ;;  %v2990_v6 = vpop.permute.xlu0 %2989 }
0x187f   :  { %v2998_v5 = vsel %vm623_vm1, %v2993_v4, 0 }
0x1880   :  { %5793 = vmatpush3.bf16.xpose.msra.mxu0 %v2998_v5 }
0x1881   :  { %5804 = vmatprep.subr.bf16.mxu0 %v6581_v38 }
0x1887   :  { %5795 = vmatmul.mubr.msk.bf16.vlgmr.msra.gmra.mrb[56].mxu0 %vm623_vm1, %v2990_v6 }
0x1888   :  { %5808 = vmatprep.mubr.msk.bf16.mxu0 %vm6582_vm0, %v6581_v38  ;;  %5805 = vmatpush3.bf16.msra.mxu0 %v7181_v44 }
0x1889   :  { %5806 = vmatprep.subr.bf16.mxu0 %v6581_v38 }
0x188c   :  { %5807 = vmatpush3.bf16.msra.mxu0 %v7184_v40 }
0x188d   :  { %5820 = vmatprep.subr.bf16.mxu0 %v6581_v38 }
0x18e7   :  { %v2921_v7 = vpop.f32.mrb[52].mxu0 }
0x18e8   :  { %v2927_v12 = vmul.f32 0.17677669, %v2921_v7  ;;  %v5784_v14 = vpop.f32.mrb[53].mxu0 }
0x18e9   :  { %v2924_v15 = vpop.f32.mrb[54].mxu0 }
0x18ea   :  { %v5785_v16 = vpop.f32.mrb[55].mxu0  ;;  %v2928_v31 = vadd.f32 %v7164_v17, %v2927_v12 }
0x18ec   :  { %v2929_v28 = vsel %vm678_vm3, %v2928_v31, -inf }
0x18ed   :  { %2930 = vmax.xlane.f32.xlu0 %v2929_v28 }
0x195a   :  { %v3034_v19 = vpop.f32.mrb[56].mxu0 }
0x195b   :  { %v3040_v20 = vmul.f32 0.17677669, %v3034_v19  ;;  %v5796_v24 = vpop.f32.mrb[57].mxu0 }
0x195c   :  { %v3037_v29 = vpop.f32.mrb[58].mxu0 }
0x195d   :  { %v5797_v23 = vpop.f32.mrb[59].mxu0  ;;  %v3041_v26 = vadd.f32 %v7164_v17, %v3040_v20 }
0x195f   :  { %v3042_v22 = vsel %vm678_vm3, %v3041_v26, -inf }
0x1960   :  { %3043 = vmax.xlane.f32.xlu1 %v3042_v22 }
0x1971   :  { %3216 = vrot.lane.b32.xlu1 %v7138_v61, %s6569_s17 }
0x197a   :  { %v2931_v30 = vpop.xlane.xlu0 %2930 }
0x197b   :  { %v2932_v32 = vsub.f32 %v2928_v31, %v2931_v30 }
0x197d   :  { %v2933_v33 = vmul.f32 1.442695, %v2932_v32 }
0x197f   :  { %6402 = vpow2.f32 %v2933_v33  ;;  %v7224_v33 = vld [vmem:[#allocation5 + $0x60] sm:$0xff]  }
0x1989   :  { %v6403_v27 = vpop.eup %6402 }
0x198a   :  { %v2935_v8 = vsel %vm678_vm3, %v6403_v27, 0.0 }
0x198b   :  { %2936 = vadd.xlane.f32.xlu0 %v2935_v8 }
0x19ed   :  { %v3044_v34 = vpop.xlane.xlu1 %3043 }
0x19ee   :  { %v3045_v36 = vsub.f32 %v3041_v26, %v3044_v34 }
0x19f0   :  { %v3046_v13 = vmul.f32 1.442695, %v3045_v36 }
0x19f1   :  { %v3217_v0 = vpop.permute.xlu1 %3216 }
0x19f2   :  { %6404 = vpow2.f32 %v3046_v13  ;;  %v3222_v63 = vsel %vm623_vm1, %v3217_v0, 0  ;;  %v7250_v0 = vrot.slane %v7136_v59, 4 }
0x19fc   :  { %v6405_v37 = vpop.eup %6404 }
0x19fd   :  { %v3048_v39 = vsel %vm678_vm3, %v6405_v37, 0.0 }
0x19fe   :  { %3049 = vadd.xlane.f32.xlu0 %v3048_v39 }
0x1a14   :  { %3055 = vrot.lane.b32.xlu0 %v7151_v10, %s6583_s9 }
0x1a18   :  { %v2937_v41 = vpop.xlane.xlu0 %2936  ;;  %3214 = vrot.lane.b32.xlu0 %v7136_v59, %s6569_s17 }
0x1a19   :  { %6406 = vrcp.f32 %v2937_v41 }
0x1a23   :  { %v6407_v42 = vpop.eup %6406 }
0x1a24   :  { %v2939_v43 = vmul.f32 %v6407_v42, %v6403_v27 }
0x1a26   :  { %v2940_v18 = vpack.c.bf16 %v2939_v43, %v2939_v43  ;;  %v7238_v43 = vld [vmem:[#allocation5 + $0x68] sm:$0xff]  }
0x1a28   :  { %5789 = vmatmul.mubr.msk.bf16.vlgmr.msra.gmra.mrb[80].mxu1 %vm678_vm3, %v2940_v18 }
0x1a29   :  { %5800 = vmatprep.mubr.msk.bf16.mxu1 %vm6582_vm0, %v6581_v38 }
0x1a8b   :  { %v3050_v45 = vpop.xlane.xlu0 %3049 }
0x1a8c   :  { %6408 = vrcp.f32 %v3050_v45 }
0x1a8f   :  { %v3056_v9 = vpop.permute.xlu0 %3055 }
0x1a90   :  { %v3061_v11 = vsel %vm694_vm2, %v3056_v9, 0 }
0x1a91   :  { %5799 = vmatpush3.bf16.msra.mxu1 %v3061_v11 }
0x1a92   :  { %5812 = vmatprep.subr.bf16.mxu1 %v6581_v38 }
0x1a93   :  { %v3215_v2 = vpop.permute.xlu0 %3214 }
0x1a96   :  { %v6409_v46 = vpop.eup %6408 }
0x1a97   :  { %v3052_v48 = vmul.f32 %v6409_v46, %v6405_v37 }
0x1a99   :  { %v3053_v52 = vpack.c.bf16 %v3052_v48, %v3052_v48 }
0x1a9b   :  { %5801 = vmatmul.mubr.msk.bf16.vlgmr.msra.gmra.mrb[84].mxu1 %vm678_vm3, %v3053_v52 }
0x1a9c   :  { %5813 = vmatpush3.bf16.msra.mxu1 %v7191_v51  ;;  %5816 = vmatprep.mubr.msk.bf16.mxu1 %vm6582_vm0, %v6581_v38 }
0x1a9d   :  { %5814 = vmatprep.subr.bf16.mxu1 %v6581_v38 }
0x1aa0   :  { %5815 = vmatpush3.bf16.msra.mxu1 %v7195_v50 }
0x1aa1   :  { %5826 = vmatprep.subr.bf16.mxu1 %v6581_v38 }
0x1afb   :  { %v2981_v53 = vpop.f32.mrb[80].mxu1 }
0x1afc   :  { %v2987_v54 = vpack.c.bf16 %v2981_v53, %v2981_v53  ;;  %v5790_v55 = vpop.f32.mrb[81].mxu1 }
0x1afd   :  { %v2984_v25 = vpop.f32.mrb[82].mxu1 }
0x1afe   :  { %v5791_v56 = vpop.f32.mrb[83].mxu1  ;;  %5817 = vmatmul.mubr.msk.bf16.vlgmr.msra.gmra.mrb[88].mxu1 %vm623_vm1, %v2987_v54 }
0x1aff   :  { %5828 = vmatprep.mubr.msk.bf16.mxu1 %vm6582_vm0, %v6581_v38 }
0x1b6e   :  { %v3097_v57 = vpop.f32.mrb[84].mxu1 }
0x1b6f   :  { %v3103_v60 = vpack.c.bf16 %v3097_v57, %v3097_v57  ;;  %v5802_v58 = vpop.f32.mrb[85].mxu1 }
0x1b70   :  { %v3100_v62 = vpop.f32.mrb[86].mxu1 }
0x1b71   :  { %v5803_v1 = vpop.f32.mrb[87].mxu1  ;;  %5809 = vmatmul.mubr.msk.bf16.vlgmr.msra.gmra.mrb[60].mxu0 %vm623_vm1, %v3103_v60 }
0x1b72   :  { %5821 = vmatpush3.bf16.xpose.msra.mxu0 %v3222_v63  ;;  %5822 = vmatprep.mubr.msk.bf16.mxu0 %vm6582_vm0, %v6581_v38 }
0x1b73   :  { %5832 = vmatprep.subr.bf16.mxu0 %v6581_v38 }
0x1b79   :  { %5823 = vmatmul.mubr.msk.bf16.vlgmr.msra.gmra.mrb[64].mxu0 %vm623_vm1, %v3215_v2 }
0x1b7a   :  { %5836 = vmatprep.mubr.msk.bf16.mxu0 %vm6582_vm0, %v6581_v38  ;;  %5833 = vmatpush3.bf16.msra.mxu0 %v7224_v33 }
0x1b7b   :  { %5834 = vmatprep.subr.bf16.mxu0 %v6581_v38 }
0x1b7e   :  { %5835 = vmatpush3.bf16.msra.mxu0 %v7238_v43 }
0x1b7f   :  { %5846 = vmatprep.subr.bf16.mxu0 %v6581_v38 }
0x1bd1   :  { %v3208_v21 = vpop.f32.mrb[88].mxu1 }
0x1bd2   :  { %v5818_v3 = vpop.f32.mrb[89].mxu1 }
0x1bd3   :  { %v3211_v4 = vpop.f32.mrb[90].mxu1 }
0x1bd4   :  { %v5819_v5 = vpop.f32.mrb[91].mxu1 }
0x1c44   :  { %v3153_v6 = vpop.f32.mrb[60].mxu0 }
0x1c45   :  { %v7213_v7 = vadd.f32 %v3208_v21, %v3153_v6  ;;  %v5810_v12 = vpop.f32.mrb[61].mxu0  ;;  %v7265_v6 = vld [vmem:[#allocation5 + $0x70] sm:$0xff]  }
0x1c46   :  { %v3156_v14 = vpop.f32.mrb[62].mxu0  ;;  %v7268_v12 = vld [vmem:[#allocation5 + $0x78] sm:$0xff]  }
0x1c47   :  { %v5811_v15 = vpop.f32.mrb[63].mxu0 }
0x1c4c   :  { %v3258_v16 = vpop.f32.mrb[64].mxu0 }
0x1c4d   :  { %v3264_v31 = vmul.f32 0.17677669, %v3258_v16  ;;  %v5824_v28 = vpop.f32.mrb[65].mxu0 }
0x1c4e   :  { %v3261_v19 = vpop.f32.mrb[66].mxu0 }
0x1c4f   :  { %v5825_v20 = vpop.f32.mrb[67].mxu0  ;;  %v3265_v24 = vadd.f32 %v7164_v17, %v3264_v31 }
0x1c50   :  { %v7293_v20 = vrot.slane %v7151_v10, 4 }
0x1c51   :  { %v3266_v29 = vsel %vm678_vm3, %v3265_v24, -inf }
0x1c52   :  { %3267 = vmax.xlane.f32.xlu1 %v3266_v29 }
0x1c63   :  { %3385 = vrot.lane.b32.xlu1 %v7138_v61, %s6584_s30 }
0x1c67   :  { %3383 = vrot.lane.b32.xlu1 %v7136_v59, %s6584_s30  ;;  %v7258_v59 = vrot.slane %v7138_v61, 4 }
0x1c69   :  { %v3558_v16 = vsel %vm623_vm1, %v7258_v59, 0 }
0x1cdf   :  { %v3268_v23 = vpop.xlane.xlu1 %3267 }
0x1ce0   :  { %v3269_v26 = vsub.f32 %v3265_v24, %v3268_v23 }
0x1ce2   :  { %v3270_v22 = vmul.f32 1.442695, %v3269_v26 }
0x1ce3   :  { %v3386_v37 = vpop.permute.xlu1 %3385 }
0x1ce4   :  { %6410 = vpow2.f32 %v3270_v22  ;;  %v3391_v41 = vsel %vm623_vm1, %v3386_v37, 0 }
0x1ce7   :  { %v3384_v42 = vpop.permute.xlu1 %3383 }
0x1cee   :  { %v6411_v30 = vpop.eup %6410 }
0x1cef   :  { %v3272_v32 = vsel %vm678_vm3, %v6411_v30, 0.0 }
0x1cf0   :  { %3273 = vadd.xlane.f32.xlu0 %v3272_v32 }
0x1d06   :  { %3278 = vrot.lane.b32.xlu0 %v7151_v10, %s6569_s17 }
0x1d7d   :  { %v3274_v27 = vpop.xlane.xlu0 %3273 }
0x1d7e   :  { %6412 = vrcp.f32 %v3274_v27 }
0x1d81   :  { %v3279_v8 = vpop.permute.xlu0 %3278 }
0x1d82   :  { %v3284_v34 = vsel %vm694_vm2, %v3279_v8, 0  ;;  %v7304_v8 = vld [vmem:[%s7487_s1 + $0x1] ss:$0 sm:$0xff] }
0x1d83   :  { %5827 = vmatpush3.bf16.msra.mxu1 %v3284_v34 }
0x1d84   :  { %5840 = vmatprep.subr.bf16.mxu1 %v6581_v38 }
0x1d88   :  { %v6413_v36 = vpop.eup %6412 }
0x1d89   :  { %v3276_v13 = vmul.f32 %v6413_v36, %v6411_v30 }
0x1d8b   :  { %v3277_v39 = vpack.c.bf16 %v3276_v13, %v3276_v13 }
0x1d8d   :  { %5829 = vmatmul.mubr.msk.bf16.vlgmr.msra.gmra.mrb[92].mxu1 %vm678_vm3, %v3277_v39 }
0x1d8e   :  { %5841 = vmatpush3.bf16.xpose.msra.mxu1 %v3391_v41  ;;  %5842 = vmatprep.mubr.msk.bf16.mxu1 %vm6582_vm0, %v6581_v38 }
0x1d8f   :  { %5852 = vmatprep.subr.bf16.mxu1 %v6581_v38 }
0x1d95   :  { %5843 = vmatmul.mubr.msk.bf16.vlgmr.msra.gmra.mrb[96].mxu1 %vm623_vm1, %v3384_v42 }
0x1d96   :  { %5856 = vmatprep.mubr.msk.bf16.mxu1 %vm6582_vm0, %v6581_v38  ;;  %5853 = vmatpush3.bf16.msra.mxu1 %v7265_v6 }
0x1d97   :  { %5854 = vmatprep.subr.bf16.mxu1 %v6581_v38 }
0x1d9a   :  { %5855 = vmatpush3.bf16.msra.mxu1 %v7268_v12 }
0x1d9b   :  { %5866 = vmatprep.subr.bf16.mxu1 %v6581_v38 }
0x1e60   :  { %v3320_v18 = vpop.f32.mrb[92].mxu1 }
0x1e61   :  { %v3326_v45 = vpack.c.bf16 %v3320_v18, %v3320_v18  ;;  %v5830_v9 = vpop.f32.mrb[93].mxu1 }
0x1e62   :  { %v3323_v11 = vpop.f32.mrb[94].mxu1 }
0x1e63   :  { %v5831_v46 = vpop.f32.mrb[95].mxu1  ;;  %5837 = vmatmul.mubr.msk.bf16.vlgmr.msra.gmra.mrb[68].mxu0 %vm623_vm1, %v3326_v45 }
0x1e64   :  { %5848 = vmatprep.mubr.msk.bf16.mxu0 %vm6582_vm0, %v6581_v38 }
0x1e68   :  { %v3427_v48 = vpop.f32.mrb[96].mxu1 }
0x1e69   :  { %v3433_v52 = vmul.f32 0.17677669, %v3427_v48  ;;  %v5844_v53 = vpop.f32.mrb[97].mxu1 }
0x1e6a   :  { %v3430_v54 = vpop.f32.mrb[98].mxu1 }
0x1e6b   :  { %v5845_v55 = vpop.f32.mrb[99].mxu1  ;;  %v3434_v25 = vadd.f32 %v7164_v17, %v3433_v52 }
0x1e6d   :  { %v3435_v56 = vsel %vm678_vm3, %v3434_v25, -inf }
0x1e6e   :  { %3436 = vmax.xlane.f32.xlu0 %v3435_v56 }
0x1e84   :  { %3447 = vrot.lane.b32.xlu0 %v7151_v10, %s6584_s30 }
0x1e88   :  { %3662 = vrot.lane.b32.xlu0 %v7250_v0, %s6583_s9 }
0x1efb   :  { %v3437_v57 = vpop.xlane.xlu0 %3436 }
0x1efc   :  { %v3438_v60 = vsub.f32 %v3434_v25, %v3437_v57 }
0x1efe   :  { %v3439_v58 = vmul.f32 1.442695, %v3438_v60 }
0x1eff   :  { %v3448_v62 = vpop.permute.xlu0 %3447 }
0x1f00   :  { %6414 = vpow2.f32 %v3439_v58  ;;  %v3453_v63 = vsel %vm694_vm2, %v3448_v62, 0 }
0x1f01   :  { %5847 = vmatpush3.bf16.msra.mxu0 %v3453_v63 }
0x1f02   :  { %5860 = vmatprep.subr.bf16.mxu0 %v6581_v38 }
0x1f03   :  { %v3663_v19 = vpop.permute.xlu0 %3662 }
0x1f0a   :  { %v6415_v17 = vpop.eup %6414 }
0x1f0b   :  { %v3441_v1 = vsel %vm678_vm3, %v6415_v17, 0.0 }
0x1f0c   :  { %3442 = vadd.xlane.f32.xlu1 %v3441_v1 }
0x1f1d   :  { %3664 = vrot.lane.b32.xlu1 %v7258_v59, %s6583_s9 }
0x1f36   :  { %v3376_v2 = vpop.f32.mrb[68].mxu0 }
0x1f37   :  { %v7263_v21 = vadd.f32 %v3376_v2, %v7213_v7  ;;  %v5838_v3 = vpop.f32.mrb[69].mxu0 }
0x1f38   :  { %v3379_v4 = vpop.f32.mrb[70].mxu0 }
0x1f39   :  { %v5839_v5 = vpop.f32.mrb[71].mxu0 }
0x1f99   :  { %v3443_v61 = vpop.xlane.xlu1 %3442 }
0x1f9a   :  { %6416 = vrcp.f32 %v3443_v61 }
0x1f9d   :  { %v3665_v31 = vpop.permute.xlu1 %3664 }
0x1f9e   :  { %v3670_v28 = vsel %vm623_vm1, %v3665_v31, 0 }
0x1fa4   :  { %v6417_v14 = vpop.eup %6416 }
0x1fa5   :  { %v3445_v7 = vmul.f32 %v6417_v14, %v6415_v17 }
0x1fa7   :  { %v3446_v15 = vpack.c.bf16 %v3445_v7, %v3445_v7 }
0x1fa9   :  { %5849 = vmatmul.mubr.msk.bf16.vlgmr.msra.gmra.mrb[72].mxu0 %vm678_vm3, %v3446_v15 }
0x1faa   :  { %5861 = vmatpush3.bf16.xpose.msra.mxu0 %v3558_v16  ;;  %5862 = vmatprep.mubr.msk.bf16.mxu0 %vm6582_vm0, %v6581_v38 }
0x1fab   :  { %5872 = vmatprep.subr.bf16.mxu0 %v6581_v38 }
0x1fb1   :  { %5863 = vmatmul.mubr.msk.bf16.vlgmr.msra.gmra.mrb[76].mxu0 %vm623_vm1, %v7250_v0 }
0x1fb2   :  { %5873 = vmatpush3.bf16.xpose.msra.mxu0 %v3670_v28  ;;  %5874 = vmatprep.mubr.msk.bf16.mxu0 %vm6582_vm0, %v6581_v38 }
0x1fb3   :  { %5884 = vmatprep.subr.bf16.mxu0 %v6581_v38 }
0x1fb9   :  { %5875 = vmatmul.mubr.msk.bf16.vlgmr.msra.gmra.mrb[80].mxu0 %vm623_vm1, %v3663_v19 }
0x1fba   :  { %5885 = vmatpush3.bf16.msra.mxu0 %v7181_v44  ;;  %5888 = vmatprep.mubr.msk.bf16.mxu0 %vm6582_vm0, %v6581_v38  ;;  %v3619_v44 = vsel %vm694_vm2, %v7293_v20, 0 }
0x1fbb   :  { %5886 = vmatprep.subr.bf16.mxu0 %v6581_v38 }
0x1fbe   :  { %5887 = vmatpush3.bf16.msra.mxu0 %v7184_v40 }
0x1fbf   :  { %5900 = vmatprep.subr.bf16.mxu0 %v6581_v38 }
0x207c   :  { %v3489_v24 = vpop.f32.mrb[72].mxu0 }
0x207d   :  { %v3495_v29 = vpack.c.bf16 %v3489_v24, %v3489_v24  ;;  %v5850_v23 = vpop.f32.mrb[73].mxu0 }
0x207e   :  { %v3492_v26 = vpop.f32.mrb[74].mxu0 }
0x207f   :  { %v5851_v22 = vpop.f32.mrb[75].mxu0  ;;  %5857 = vmatmul.mubr.msk.bf16.vlgmr.msra.gmra.mrb[100].mxu1 %vm623_vm1, %v3495_v29 }
0x2080   :  { %5867 = vmatpush3.bf16.msra.mxu1 %v3619_v44  ;;  %5868 = vmatprep.mubr.msk.bf16.mxu1 %vm6582_vm0, %v6581_v38 }
0x2081   :  { %5878 = vmatprep.subr.bf16.mxu1 %v6581_v38 }
0x2084   :  { %v3594_v40 = vpop.f32.mrb[76].mxu0 }
0x2085   :  { %v3600_v30 = vmul.f32 0.17677669, %v3594_v40  ;;  %v5864_v10 = vpop.f32.mrb[77].mxu0 }
0x2086   :  { %v3597_v32 = vpop.f32.mrb[78].mxu0 }
0x2087   :  { %v5865_v27 = vpop.f32.mrb[79].mxu0  ;;  %v3601_v34 = vadd.f32 %v7304_v8, %v3600_v30 }
0x2089   :  { %v3602_v36 = vsel %vm678_vm3, %v3601_v34, -inf }
0x208a   :  { %3603 = vmax.xlane.f32.xlu1 %v3602_v36 }
0x208c   :  { %v3706_v13 = vpop.f32.mrb[80].mxu0 }
0x208d   :  { %v3712_v37 = vmul.f32 0.17677669, %v3706_v13  ;;  %v5876_v39 = vpop.f32.mrb[81].mxu0 }
0x208e   :  { %v3709_v41 = vpop.f32.mrb[82].mxu0 }
0x208f   :  { %v5877_v42 = vpop.f32.mrb[83].mxu0  ;;  %v3713_v18 = vadd.f32 %v7304_v8, %v3712_v37 }
0x2091   :  { %v3714_v45 = vsel %vm678_vm3, %v3713_v18, -inf }
0x2092   :  { %3715 = vmax.xlane.f32.xlu0 %v3714_v45 }
0x209b   :  { %3726 = vrot.lane.b32.xlu1 %v7293_v20, %s6583_s9 }
0x209f   :  { %3861 = vrot.lane.b32.xlu1 %v7250_v0, %s6569_s17 }
0x2117   :  { %v3604_v9 = vpop.xlane.xlu1 %3603 }
0x2118   :  { %v3605_v11 = vsub.f32 %v3601_v34, %v3604_v9 }
0x211a   :  { %v3606_v46 = vmul.f32 1.442695, %v3605_v11 }
0x211b   :  { %v3727_v4 = vpop.permute.xlu1 %3726 }
0x211c   :  { %6418 = vpow2.f32 %v3606_v46  ;;  %v3732_v61 = vsel %vm694_vm2, %v3727_v4, 0 }
0x211f   :  { %v3716_v48 = vpop.xlane.xlu0 %3715  ;;  %v3862_v44 = vpop.permute.xlu1 %3861 }
0x2120   :  { %v3717_v52 = vsub.f32 %v3713_v18, %v3716_v48 }
0x2122   :  { %v3718_v53 = vmul.f32 1.442695, %v3717_v52 }
0x2124   :  { %6420 = vpow2.f32 %v3718_v53 }
0x2126   :  { %v6419_v54 = vpop.eup %6418 }
0x2127   :  { %v3608_v55 = vsel %vm678_vm3, %v6419_v54, 0.0 }
0x2128   :  { %3609 = vadd.xlane.f32.xlu0 %v3608_v55 }
0x212e   :  { %v6421_v25 = vpop.eup %6420 }
0x212f   :  { %v3720_v56 = vsel %vm678_vm3, %v6421_v25, 0.0 }
0x2130   :  { %3721 = vadd.xlane.f32.xlu0 %v3720_v56 }
0x2146   :  { %3863 = vrot.lane.b32.xlu0 %v7258_v59, %s6569_s17 }
0x2152   :  { %v3545_v57 = vpop.f32.mrb[100].mxu1 }
0x2153   :  { %v7319_v60 = vadd.f32 %v3545_v57, %v7263_v21  ;;  %v5858_v58 = vpop.f32.mrb[101].mxu1 }
0x2154   :  { %v3548_v62 = vpop.f32.mrb[102].mxu1 }
0x2155   :  { %v5859_v63 = vpop.f32.mrb[103].mxu1 }
0x21b5   :  { %v3610_v17 = vpop.xlane.xlu0 %3609 }
0x21b6   :  { %6422 = vrcp.f32 %v3610_v17 }
0x21bd   :  { %v3722_v1 = vpop.xlane.xlu0 %3721 }
0x21be   :  { %6424 = vrcp.f32 %v3722_v1 }
0x21c0   :  { %v6423_v2 = vpop.eup %6422 }
0x21c1   :  { %v3612_v3 = vmul.f32 %v6423_v2, %v6419_v54 }
0x21c3   :  { %v3613_v5 = vpack.c.bf16 %v3612_v3, %v3612_v3 }
0x21c5   :  { %5869 = vmatmul.mubr.msk.bf16.vlgmr.msra.gmra.mrb[104].mxu1 %vm678_vm3, %v3613_v5 }
0x21c6   :  { %5879 = vmatpush3.bf16.msra.mxu1 %v3732_v61  ;;  %5880 = vmatprep.mubr.msk.bf16.mxu1 %vm6582_vm0, %v6581_v38 }
0x21c7   :  { %5892 = vmatprep.subr.bf16.mxu1 %v6581_v38 }
0x21c8   :  { %v6425_v21 = vpop.eup %6424 }
0x21c9   :  { %v3724_v14 = vmul.f32 %v6425_v21, %v6421_v25 }
0x21cb   :  { %v3725_v7 = vpack.c.bf16 %v3724_v14, %v3724_v14 }
0x21cd   :  { %5881 = vmatmul.mubr.msk.bf16.vlgmr.msra.gmra.mrb[108].mxu1 %vm678_vm3, %v3725_v7 }
0x21ce   :  { %5893 = vmatpush3.bf16.msra.mxu1 %v7191_v51  ;;  %5896 = vmatprep.mubr.msk.bf16.mxu1 %vm6582_vm0, %v6581_v38  ;;  %v3864_v51 = vpop.permute.xlu0 %3863 }
0x21cf   :  { %5894 = vmatprep.subr.bf16.mxu1 %v6581_v38  ;;  %v3869_v22 = vsel %vm623_vm1, %v3864_v51, 0 }
0x21d2   :  { %5895 = vmatpush3.bf16.msra.mxu1 %v7195_v50 }
0x21d3   :  { %5906 = vmatprep.subr.bf16.mxu1 %v6581_v38 }
0x2298   :  { %v3655_v15 = vpop.f32.mrb[104].mxu1 }
0x2299   :  { %v3661_v16 = vpack.c.bf16 %v3655_v15, %v3655_v15  ;;  %v5870_v31 = vpop.f32.mrb[105].mxu1 }
0x229a   :  { %v3658_v28 = vpop.f32.mrb[106].mxu1 }
0x229b   :  { %v5871_v19 = vpop.f32.mrb[107].mxu1  ;;  %5897 = vmatmul.mubr.msk.bf16.vlgmr.msra.gmra.mrb[112].mxu1 %vm623_vm1, %v3661_v16 }
0x229c   :  { %5908 = vmatprep.mubr.msk.bf16.mxu1 %vm6582_vm0, %v6581_v38 }
0x22a0   :  { %v3768_v24 = vpop.f32.mrb[108].mxu1 }
0x22a1   :  { %v3774_v29 = vpack.c.bf16 %v3768_v24, %v3768_v24  ;;  %v5882_v23 = vpop.f32.mrb[109].mxu1 }
0x22a2   :  { %v3771_v26 = vpop.f32.mrb[110].mxu1 }
0x22a3   :  { %v5883_v50 = vpop.f32.mrb[111].mxu1  ;;  %5889 = vmatmul.mubr.msk.bf16.vlgmr.msra.gmra.mrb[84].mxu0 %vm623_vm1, %v3774_v29 }
0x22a4   :  { %5901 = vmatpush3.bf16.xpose.msra.mxu0 %v3869_v22  ;;  %5902 = vmatprep.mubr.msk.bf16.mxu0 %vm6582_vm0, %v6581_v38 }
0x22a5   :  { %5912 = vmatprep.subr.bf16.mxu0 %v6581_v38 }
0x22ab   :  { %5903 = vmatmul.mubr.msk.bf16.vlgmr.msra.gmra.mrb[88].mxu0 %vm623_vm1, %v3862_v44 }
0x22ac   :  { %5913 = vmatpush3.bf16.msra.mxu0 %v7224_v33  ;;  %5916 = vmatprep.mubr.msk.bf16.mxu0 %vm6582_vm0, %v6581_v38 }
0x22ad   :  { %5914 = vmatprep.subr.bf16.mxu0 %v6581_v38 }
0x22b0   :  { %5915 = vmatpush3.bf16.msra.mxu0 %v7238_v43 }
0x22b1   :  { %5926 = vmatprep.subr.bf16.mxu0 %v6581_v38 }
0x236e   :  { %v3855_v40 = vpop.f32.mrb[112].mxu1 }
0x236f   :  { %v5898_v30 = vpop.f32.mrb[113].mxu1 }
0x2370   :  { %v3858_v10 = vpop.f32.mrb[114].mxu1 }
0x2371   :  { %v5899_v32 = vpop.f32.mrb[115].mxu1 }
0x2376   :  { %v3812_v27 = vpop.f32.mrb[84].mxu0 }
0x2377   :  { %v7348_v34 = vadd.f32 %v3855_v40, %v3812_v27  ;;  %v5890_v36 = vpop.f32.mrb[85].mxu0  ;;  %v6278_v27 = vld [vmem:[#allocation7 + $0x100] ss:$16 sps:$4 sm:$0xff]  }
0x2378   :  { %v3815_v13 = vpop.f32.mrb[86].mxu0  ;;  %v6281_v36 = vld [vmem:[#allocation7 + $0x108] ss:$16 sps:$4 sm:$0xff]  }
0x2379   :  { %v5891_v37 = vpop.f32.mrb[87].mxu0  ;;  %v6283_v13 = vld [vmem:[#allocation7 + $0x10c] ss:$16 sps:$4 sm:$0xff]  }
0x237a   :  { %v6286_v37 = vld [vmem:[#allocation7 + $0x124] ss:$16 sps:$4 sm:$0xff]  }
0x237e   :  { %v3905_v33 = vpop.f32.mrb[88].mxu0 }
0x237f   :  { %v3911_v39 = vmul.f32 0.17677669, %v3905_v33  ;;  %v5904_v41 = vpop.f32.mrb[89].mxu0  ;;  %v6289_v33 = vld [vmem:[#allocation7 + $0x12c] ss:$16 sps:$4 sm:$0xff]  }
0x2380   :  { %v3908_v42 = vpop.f32.mrb[90].mxu0  ;;  %v6287_v41 = vld [vmem:[#allocation7 + $0x128] ss:$16 sps:$4 sm:$0xff]  }
0x2381   :  { %v5905_v18 = vpop.f32.mrb[91].mxu0  ;;  %v3912_v45 = vadd.f32 %v7304_v8, %v3911_v39  ;;  %v6284_v39 = vld [vmem:[#allocation7 + $0x120] ss:$16 sps:$4 sm:$0xff]   ;;  %v6292_v42 = vld [vmem:[#allocation7 + $0x144] ss:$16 sps:$4 sm:$0xff]  }
0x2382   :  { %v6295_v18 = vld [vmem:[#allocation7 + $0x14c] ss:$16 sps:$4 sm:$0xff]  }
0x2383   :  { %v3913_v43 = vsel %vm678_vm3, %v3912_v45, -inf }
0x2384   :  { %3914 = vmax.xlane.f32.xlu1 %v3913_v43 }
0x2395   :  { %4020 = vrot.lane.b32.xlu1 %v7258_v59, %s6584_s30 }
0x2399   :  { %4018 = vrot.lane.b32.xlu1 %v7250_v0, %s6584_s30 }
0x2411   :  { %v3915_v9 = vpop.xlane.xlu1 %3914 }
0x2412   :  { %v3916_v11 = vsub.f32 %v3912_v45, %v3915_v9  ;;  %v6290_v45 = vld [vmem:[#allocation7 + $0x140] ss:$16 sps:$4 sm:$0xff]  }
0x2414   :  { %v3917_v46 = vmul.f32 1.442695, %v3916_v11 }
0x2415   :  { %v4021_v25 = vpop.permute.xlu1 %4020 }
0x2416   :  { %6426 = vpow2.f32 %v3917_v46  ;;  %v4026_v57 = vsel %vm623_vm1, %v4021_v25, 0  ;;  %v6302_v25 = vld [vmem:[#allocation7 + $0x180] ss:$16 sps:$4 sm:$0xff]  }
0x2419   :  { %v4019_v58 = vpop.permute.xlu1 %4018 }
0x2420   :  { %v6427_v48 = vpop.eup %6426 }
0x2421   :  { %v3919_v52 = vsel %vm678_vm3, %v6427_v48, 0.0 }
0x2422   :  { %3920 = vadd.xlane.f32.xlu0 %v3919_v52 }
0x2438   :  { %3925 = vrot.lane.b32.xlu0 %v7293_v20, %s6569_s17 }
0x24af   :  { %v3921_v53 = vpop.xlane.xlu0 %3920 }
0x24b0   :  { %6428 = vrcp.f32 %v3921_v53 }
0x24b3   :  { %v3926_v54 = vpop.permute.xlu0 %3925 }
0x24b4   :  { %v3931_v55 = vsel %vm694_vm2, %v3926_v54, 0  ;;  %v6298_v54 = vld [vmem:[#allocation7 + $0x164] ss:$16 sps:$4 sm:$0xff]  }
0x24b5   :  { %5907 = vmatpush3.bf16.msra.mxu1 %v3931_v55  ;;  %v6301_v55 = vld [vmem:[#allocation7 + $0x16c] ss:$16 sps:$4 sm:$0xff]  }
0x24b6   :  { %5920 = vmatprep.subr.bf16.mxu1 %v6581_v38 }
0x24ba   :  { %v6429_v0 = vpop.eup %6428 }
0x24bb   :  { %v3923_v59 = vmul.f32 %v6429_v0, %v6427_v48  ;;  %v6296_v0 = vld [vmem:[#allocation7 + $0x160] ss:$16 sps:$4 sm:$0xff]  }
0x24bd   :  { %v3924_v56 = vpack.c.bf16 %v3923_v59, %v3923_v59  ;;  %v6299_v59 = vld [vmem:[#allocation7 + $0x168] ss:$16 sps:$4 sm:$0xff]  }
0x24bf   :  { %5909 = vmatmul.mubr.msk.bf16.vlgmr.msra.gmra.mrb[116].mxu1 %vm678_vm3, %v3924_v56  ;;  %v6304_v56 = vld [vmem:[#allocation7 + $0x184] ss:$16 sps:$4 sm:$0xff]  }
0x24c0   :  { %5921 = vmatpush3.bf16.xpose.msra.mxu1 %v4026_v57  ;;  %5922 = vmatprep.mubr.msk.bf16.mxu1 %vm6582_vm0, %v6581_v38  ;;  %v6305_v57 = vld [vmem:[#allocation7 + $0x188] ss:$16 sps:$4 sm:$0xff]  }
0x24c1   :  { %5932 = vmatprep.subr.bf16.mxu1 %v6581_v38 }
0x24c7   :  { %5923 = vmatmul.mubr.msk.bf16.vlgmr.msra.gmra.mrb[120].mxu1 %vm623_vm1, %v4019_v58  ;;  %v6307_v58 = vld [vmem:[#allocation7 + $0x18c] ss:$16 sps:$4 sm:$0xff]  }
0x24c8   :  { %5933 = vmatpush3.bf16.msra.mxu1 %v7265_v6  ;;  %5936 = vmatprep.mubr.msk.bf16.mxu1 %vm6582_vm0, %v6581_v38 }
0x24c9   :  { %5934 = vmatprep.subr.bf16.mxu1 %v6581_v38 }
0x24cc   :  { %5935 = vmatpush3.bf16.msra.mxu1 %v7268_v12  ;;  %v7378_v12 = vadd.f32 %v7319_v60, %v7094_v47 }
0x24cd   :  { %4403 = vmatprep.subr.bf16.mxu1 %v6283_v13  ;;  %v6338_v13 = vld [vmem:[%s7496_s10 + $0xf0] sm:$0xff]  }
0x24ce   :  { %v4177_v7 = vmul.f32 %v7378_v12, %v7378_v12 }
0x2592   :  { %v3967_v62 = vpop.f32.mrb[116].mxu1 }
0x2593   :  { %v3973_v63 = vpack.c.bf16 %v3967_v62, %v3967_v62  ;;  %v5910_v17 = vpop.f32.mrb[117].mxu1  ;;  %v6310_v62 = vld [vmem:[#allocation7 + $0x1a4] ss:$16 sps:$4 sm:$0xff]  }
0x2594   :  { %v3970_v1 = vpop.f32.mrb[118].mxu1  ;;  %v6311_v17 = vld [vmem:[#allocation7 + $0x1a8] ss:$16 sps:$4 sm:$0xff]  }
0x2595   :  { %v5911_v2 = vpop.f32.mrb[119].mxu1  ;;  %5917 = vmatmul.mubr.msk.bf16.vlgmr.msra.gmra.mrb[92].mxu0 %vm623_vm1, %v3973_v63  ;;  %v6308_v63 = vld [vmem:[#allocation7 + $0x1a0] ss:$16 sps:$4 sm:$0xff]   ;;  %v6316_v1 = vld [vmem:[#allocation7 + $0x1c4] ss:$16 sps:$4 sm:$0xff]  }
0x2596   :  { %5928 = vmatprep.mubr.msk.bf16.mxu0 %vm6582_vm0, %v6581_v38  ;;  %v6319_v2 = vld [vmem:[#allocation7 + $0x1cc] ss:$16 sps:$4 sm:$0xff]  }
0x259a   :  { %v4062_v3 = vpop.f32.mrb[120].mxu1 }
0x259b   :  { %v4068_v4 = vmul.f32 0.17677669, %v4062_v3  ;;  %v5924_v6 = vpop.f32.mrb[121].mxu1  ;;  %v6314_v3 = vld [vmem:[#allocation7 + $0x1c0] ss:$16 sps:$4 sm:$0xff]  }
0x259c   :  { %v4065_v5 = vpop.f32.mrb[122].mxu1  ;;  %v6322_v6 = vld [vmem:[#allocation7 + $0x1e4] ss:$16 sps:$4 sm:$0xff]  }
0x259d   :  { %v5925_v61 = vpop.f32.mrb[123].mxu1  ;;  %v4069_v21 = vadd.f32 %v7304_v8, %v4068_v4  ;;  %v6317_v4 = vld [vmem:[#allocation7 + $0x1c8] ss:$16 sps:$4 sm:$0xff]   ;;  %v6325_v5 = vld [vmem:[#allocation7 + $0x1ec] ss:$16 sps:$4 sm:$0xff]  }
0x259e   :  { %v6320_v61 = vld [vmem:[#allocation7 + $0x1e0] ss:$16 sps:$4 sm:$0xff]  }
0x259f   :  { %v4070_v14 = vsel %vm678_vm3, %v4069_v21, -inf }
0x25a0   :  { %4071 = vmax.xlane.f32.xlu1 %v4070_v14 }
0x25a4   :  { %4179 = vadd.xlane.f32.xlu1 %v4177_v7 }
0x262d   :  { %v4072_v15 = vpop.xlane.xlu1 %4071 }
0x262e   :  { %v4073_v16 = vsub.f32 %v4069_v21, %v4072_v15  ;;  %v6323_v21 = vld [vmem:[#allocation7 + $0x1e8] ss:$16 sps:$4 sm:$0xff]  }
0x2630   :  { %v4074_v31 = vmul.f32 1.442695, %v4073_v16 }
0x2631   :  { %v4180_v14 = vpop.xlane.xlu1 %4179 }
0x2632   :  { %6430 = vpow2.f32 %v4074_v31  ;;  %v4183_v7 = vmul.f32 0.0078125, %v4180_v14 }
0x2634   :  { %v4185_v15 = vadd.f32 1e-06, %v4183_v7 }
0x263c   :  { %v6431_v28 = vpop.eup %6430 }
0x263d   :  { %v4076_v19 = vsel %vm678_vm3, %v6431_v28, 0.0 }
0x263e   :  { %4077 = vadd.xlane.f32.xlu0 %v4076_v19 }
0x2654   :  { %4082 = vrot.lane.b32.xlu0 %v7293_v20, %s6584_s30 }
0x2668   :  { %v4011_v47 = vpop.f32.mrb[92].mxu0 }
0x2669   :  { %v4017_v8 = vadd.f32 %v4011_v47, %v7348_v34  ;;  %v5918_v60 = vpop.f32.mrb[93].mxu0  ;;  %v6280_v34 = vld [vmem:[#allocation7 + $0x104] ss:$16 sps:$4 sm:$0xff]  }
0x266a   :  { %v4014_v51 = vpop.f32.mrb[94].mxu0  ;;  %v5314_v60 = vld [vmem:[%s7492_s6 + $0x1] ss:$0 sm:$0xff] }
0x266b   :  { %v5919_v24 = vpop.f32.mrb[95].mxu0 }
0x26cb   :  { %v4078_v29 = vpop.xlane.xlu0 %4077 }
0x26cc   :  { %6432 = vrcp.f32 %v4078_v29 }
0x26cd   :  { %6434 = vrsqrt.f32 %v4185_v15 }
0x26cf   :  { %v4083_v23 = vpop.permute.xlu0 %4082 }
0x26d0   :  { %v4088_v26 = vsel %vm694_vm2, %v4083_v23, 0 }
0x26d1   :  { %5927 = vmatpush3.bf16.msra.mxu0 %v4088_v26  ;;  %v6326_v26 = vld [vmem:[%s7496_s10 + $0xc0] sm:$0xff]  }
0x26d2   :  { %4360 = vmatprep.subr.bf16.mxu0 %v6280_v34  ;;  %v6336_v34 = vld [vmem:[%s7496_s10 + $0xe8] sm:$0xff]  }
0x26d6   :  { %v6433_v22 = vpop.eup %6432 }
0x26d7   :  { %v4080_v50 = vmul.f32 %v6433_v22, %v6431_v28  ;;  %v6435_v19 = vpop.eup %6434  ;;  %v6327_v22 = vld [vmem:[%s7496_s10 + $0x80] sm:$0xff]  }
0x26d8   :  { %v4189_v47 = vmul.f32 %v6435_v19, %v7378_v12 }
0x26d9   :  { %v4081_v44 = vpack.c.bf16 %v4080_v50, %v4080_v50  ;;  %v6328_v50 = vld [vmem:[%s7496_s10 + $0xc8] sm:$0xff]  }
0x26da   :  { %v4197_v24 = vmul.f32 %v5314_v60, %v4189_v47 }
0x26db   :  { %5929 = vmatmul.mubr.msk.bf16.vlgmr.msra.gmra.mrb[96].mxu0 %vm678_vm3, %v4081_v44  ;;  %v6329_v44 = vld [vmem:[%s7496_s10 + $0x88] sm:$0xff]  }
0x26dc   :  { %4392 = vmatprep.mubr.bf16.mxu0 %v6580_v35  ;;  %4361 = vmatpush1.bf16.msra.mxu0 %v6278_v27  ;;  %v6335_v27 = vld [vmem:[%s7496_s10 + $0xa0] sm:$0xff]  }
0x26dd   :  { %4362 = vmatprep.subr.bf16.mxu0 %v6286_v37  ;;  %v6339_v37 = vld [vmem:[%s7496_s10 + $0xb0] sm:$0xff]  }
0x26e0   :  { %4363 = vmatpush1.bf16.msra.mxu0 %v6284_v39  ;;  %v6341_v39 = vld [vmem:[%s7496_s10 + $0xb8] sm:$0xff]  }
0x26e1   :  { %4364 = vmatprep.subr.bf16.mxu0 %v6292_v42 }
0x26e4   :  { %4365 = vmatpush1.bf16.msra.mxu0 %v6290_v45 }
0x26e5   :  { %4366 = vmatprep.subr.bf16.mxu0 %v6298_v54 }
0x26e8   :  { %4367 = vmatpush1.bf16.msra.mxu0 %v6296_v0 }
0x26e9   :  { %4368 = vmatprep.subr.bf16.mxu0 %v6304_v56 }
0x26ec   :  { %4369 = vmatpush1.bf16.msra.mxu0 %v6302_v25 }
0x26ed   :  { %4370 = vmatprep.subr.bf16.mxu0 %v6310_v62 }
0x26f0   :  { %4371 = vmatpush1.bf16.msra.mxu0 %v6308_v63 }
0x26f1   :  { %4372 = vmatprep.subr.bf16.mxu0 %v6316_v1 }
0x26f4   :  { %4373 = vmatpush1.bf16.msra.mxu0 %v6314_v3 }
0x26f5   :  { %4374 = vmatprep.subr.bf16.mxu0 %v6322_v6 }
0x26f8   :  { %4375 = vmatpush1.bf16.msra.mxu0 %v6320_v61 }
0x26f9   :  { %5520 = vmatprep.subr.bf16.mxu0 %v6326_v26 }
0x27ae   :  { %v4124_v20 = vpop.f32.mrb[96].mxu0 }
0x27af   :  { %v4130_v40 = vpack.c.bf16 %v4124_v20, %v4124_v20  ;;  %v5930_v30 = vpop.f32.mrb[97].mxu0  ;;  %v6330_v20 = vld [vmem:[%s7496_s10 + $0xd0] sm:$0xff]  }
0x27b0   :  { %v4127_v10 = vpop.f32.mrb[98].mxu0  ;;  %v6332_v30 = vld [vmem:[%s7496_s10 + $0xd8] sm:$0xff]  }
0x27b1   :  { %v5931_v32 = vpop.f32.mrb[99].mxu0  ;;  %5937 = vmatmul.mubr.msk.bf16.vlgmr.msra.gmra.mrb[124].mxu1 %vm623_vm1, %v4130_v40  ;;  %v6331_v40 = vld [vmem:[%s7496_s10 + $0x90] sm:$0xff]   ;;  %v6333_v10 = vld [vmem:[%s7496_s10 + $0x98] sm:$0xff]  }
0x27b2   :  { %4435 = vmatprep.mubr.bf16.mxu1 %v6580_v35  ;;  %4404 = vmatpush1.bf16.msra.mxu1 %v6281_v36  ;;  %v6293_v35 = vld [vmem:[#allocation7 + $0x148] ss:$16 sps:$4 sm:$0xff]   ;;  %v6334_v32 = vld [vmem:[%s7496_s10 + $0xe0] sm:$0xff]  }
0x27b3   :  { %4405 = vmatprep.subr.bf16.mxu1 %v6289_v33  ;;  %v6337_v36 = vld [vmem:[%s7496_s10 + $0xa8] sm:$0xff]   ;;  %v6340_v33 = vld [vmem:[%s7496_s10 + $0xf8] sm:$0xff]  }
0x27b6   :  { %4406 = vmatpush1.bf16.msra.mxu1 %v6287_v41 }
0x27b7   :  { %4407 = vmatprep.subr.bf16.mxu1 %v6295_v18 }
0x27ba   :  { %4408 = vmatpush1.bf16.msra.mxu1 %v6293_v35 }
0x27bb   :  { %4409 = vmatprep.subr.bf16.mxu1 %v6301_v55 }
0x27be   :  { %4410 = vmatpush1.bf16.msra.mxu1 %v6299_v59 }
0x27bf   :  { %4411 = vmatprep.subr.bf16.mxu1 %v6307_v58 }
0x27c2   :  { %4412 = vmatpush1.bf16.msra.mxu1 %v6305_v57 }
0x2884   :  { %v4168_v43 = vpop.f32.mrb[124].mxu1 }
0x2885   :  { %v4174_v9 = vadd.f32 %v4168_v43, %v4017_v8  ;;  %v5938_v11 = vpop.f32.mrb[125].mxu1 }
0x2886   :  { %v4171_v46 = vpop.f32.mrb[126].mxu1 }
0x2887   :  { %v7393_v48 = vadd.f32 %v4174_v9, %v7097_v49  ;;  %v5939_v52 = vpop.f32.mrb[127].mxu1  ;;  %v6313_v49 = vld [vmem:[#allocation7 + $0x1ac] ss:$16 sps:$4 sm:$0xff]  }
0x2888   :  { %4413 = vmatprep.subr.bf16.mxu1 %v6313_v49 }
0x2889   :  { %v4178_v53 = vmul.f32 %v7393_v48, %v7393_v48  ;;  %4414 = vmatpush1.bf16.msra.mxu1 %v6311_v17 }
0x288a   :  { %4415 = vmatprep.subr.bf16.mxu1 %v6319_v2 }
0x288b   :  { %4181 = vadd.xlane.f32.xlu1 %v4178_v53 }
0x288d   :  { %4416 = vmatpush1.bf16.msra.mxu1 %v6317_v4 }
0x288e   :  { %4417 = vmatprep.subr.bf16.mxu1 %v6325_v5 }
0x2891   :  { %4418 = vmatpush1.bf16.msra.mxu1 %v6323_v21 }
0x2892   :  { %5940 = vmatprep.subr.mxu1 %v6581_v38 }
0x2918   :  { %v4182_v16 = vpop.xlane.xlu1 %4181 }
0x2919   :  { %v4184_v31 = vmul.f32 0.0078125, %v4182_v16 }
0x291b   :  { %v4186_v28 = vadd.f32 1e-06, %v4184_v31 }
0x291d   :  { %6436 = vrsqrt.f32 %v4186_v28 }
0x2927   :  { %v6437_v8 = vpop.eup %6436 }
0x2928   :  { %v4190_v51 = vmul.f32 %v6437_v8, %v7393_v48 }
0x292a   :  { %v4198_v29 = vmul.f32 %v5314_v60, %v4190_v51 }
0x292c   :  { %v4199_v23 = vpack.c.bf16 %v4198_v29, %v4197_v24 }
0x292e   :  { %4393 = vmatmul.mubr.bf16.vlgmr.msra.gmra.mrb[100].mxu0 %v4199_v23  ;;  %4436 = vmatmul.mubr.bf16.vlgmr.msra.gmra.mrb[128].mxu1 %v4199_v23 }
0x292f   :  { %5942 = vmatprep.mubr.msk.f32.mxu1 %vm6582_vm0, %v6581_v38  ;;  %5521 = vmatpush3.bf16.msra.mxu0 %v6327_v22 }
0x2930   :  { %5522 = vmatprep.subr.bf16.mxu0 %v6328_v50 }
0x2933   :  { %5523 = vmatpush3.bf16.msra.mxu0 %v6329_v44 }
0x2934   :  { %5524 = vmatprep.subr.bf16.mxu0 %v6330_v20 }
0x2937   :  { %5525 = vmatpush3.bf16.msra.mxu0 %v6331_v40 }
0x2938   :  { %5526 = vmatprep.subr.bf16.mxu0 %v6332_v30 }
0x293b   :  { %5527 = vmatpush3.bf16.msra.mxu0 %v6333_v10 }
0x293c   :  { %5528 = vmatprep.subr.bf16.mxu0 %v6334_v32 }
0x293f   :  { %5529 = vmatpush3.bf16.msra.mxu0 %v6335_v27 }
0x2940   :  { %5530 = vmatprep.subr.bf16.mxu0 %v6336_v34  ;;  %v5363_v34 = vld [vmem:[%s7497_s11] ss:$0 sm:$0xff] }
0x2943   :  { %5531 = vmatpush3.bf16.msra.mxu0 %v6337_v36 }
0x2944   :  { %5532 = vmatprep.subr.bf16.mxu0 %v6338_v13 }
0x2947   :  { %5533 = vmatpush3.bf16.msra.mxu0 %v6339_v37 }
0x2948   :  { %5534 = vmatprep.subr.bf16.mxu0 %v6340_v33 }
0x294b   :  { %5535 = vmatpush3.bf16.msra.mxu0 %v6341_v39 }
0x294c   :  { %5980 = vmatprep.subr.mxu0 %v6581_v38 }
0x2a01   :  { %v4394_v41 = vpop.f32.mrb[100].mxu0  ;;  %v4437_v42 = vpop.f32.mrb[128].mxu1 }
0x2a02   :  { %v4446_v18 = vsub.f32 0.0, %v4394_v41  ;;  %v4396_v45 = vpop.f32.mrb[101].mxu0  ;;  %v4439_v35 = vpop.f32.mrb[129].mxu1 }
0x2a03   :  { %v4447_v43 = vsub.f32 0.0, %v4396_v45  ;;  %v4398_v9 = vpop.f32.mrb[102].mxu0  ;;  %v4441_v11 = vpop.f32.mrb[130].mxu1 }
0x2a04   :  { %v4450_v46 = vmul.f32 1.442695, %v4446_v18  ;;  %v4448_v52 = vsub.f32 0.0, %v4398_v9  ;;  %v4400_v53 = vpop.f32.mrb[103].mxu0  ;;  %v4443_v54 = vpop.f32.mrb[131].mxu1  ;;  %v4641_v18 = vld [vmem:[%s7488_s2 + $0x8] sm:$0xff] }
0x2a05   :  { %v4452_v55 = vmul.f32 1.442695, %v4447_v43  ;;  %v4449_v0 = vsub.f32 0.0, %v4400_v53 }
0x2a06   :  { %6438 = vpow2.f32 %v4450_v46  ;;  %v4454_v59 = vmul.f32 1.442695, %v4448_v52 }
0x2a07   :  { %6440 = vpow2.f32 %v4452_v55  ;;  %v4456_v25 = vmul.f32 1.442695, %v4449_v0 }
0x2a08   :  { %6442 = vpow2.f32 %v4454_v59 }
0x2a09   :  { %6444 = vpow2.f32 %v4456_v25 }
0x2a10   :  { %v6439_v56 = vpop.eup %6438 }
0x2a11   :  { %v6441_v57 = vpop.eup %6440  ;;  %v4458_v58 = vadd.f32 1.0, %v6439_v56 }
0x2a12   :  { %v6443_v62 = vpop.eup %6442  ;;  %v4459_v49 = vadd.f32 1.0, %v6441_v57 }
0x2a13   :  { %v6445_v63 = vpop.eup %6444  ;;  %6446 = vrcp.f32 %v4458_v58  ;;  %v4460_v17 = vadd.f32 1.0, %v6443_v62 }
0x2a14   :  { %6448 = vrcp.f32 %v4459_v49  ;;  %v4461_v1 = vadd.f32 1.0, %v6445_v63 }
0x2a15   :  { %6450 = vrcp.f32 %v4460_v17 }
0x2a16   :  { %6452 = vrcp.f32 %v4461_v1 }
0x2a1d   :  { %v6447_v2 = vpop.eup %6446 }
0x2a1e   :  { %v6449_v3 = vpop.eup %6448  ;;  %v4463_v4 = vmul.f32 %v6447_v2, %v4394_v41 }
0x2a1f   :  { %v6451_v6 = vpop.eup %6450  ;;  %v4465_v5 = vmul.f32 %v6449_v3, %v4396_v45 }
0x2a20   :  { %v6453_v61 = vpop.eup %6452  ;;  %v4470_v21 = vmul.f32 %v4463_v4, %v4437_v42  ;;  %v4467_v14 = vmul.f32 %v6451_v6, %v4398_v9  ;;  %v5365_v42 = vld [vmem:[#allocation2] ss:$0 sm:$0xff] }
0x2a21   :  { %v4471_v7 = vmul.f32 %v4465_v5, %v4439_v35  ;;  %v4469_v15 = vmul.f32 %v6453_v61, %v4400_v53  ;;  %v4640_v9 = vld [vmem:[%s7488_s2] sm:$0xff] }
0x2a22   :  { %v4472_v16 = vmul.f32 %v4467_v14, %v4441_v11 }
0x2a23   :  { %v4473_v31 = vmul.f32 %v4469_v15, %v4443_v54 }
0x2a24   :  { %v4474_v28 = vpack.c.bf16 %v4472_v16, %v4470_v21 }
0x2a25   :  { %v4475_v19 = vpack.c.bf16 %v4473_v31, %v4471_v7 }
0x2a27   :  { %4604 = vmatprep.mubr.bf16.mxu0 %v4475_v19 }
0x2a28   :  { %4605 = vmatmul.mubr.bf16.vlgmr.msra.gmra.mrb[104].mxu0 %v4474_v28 }
0x2a29   :  { %5982 = vmatprep.mubr.msk.f32.mxu0 %vm6582_vm0, %v6581_v38 }
0x2afb   :  { %v5536_v47 = vpop.f32.mrb[104].mxu0 }
0x2afc   :  { %v5537_v8 = vpop.f32.mrb[105].mxu0 }
0x2afd   :  { %v5538_v60 = vadd.f32 %v5537_v8, %v5536_v47  ;;  %v5539_v51 = vpop.f32.mrb[106].mxu0 }
0x2afe   :  { %v5540_v24 = vpop.f32.mrb[107].mxu0 }
0x2aff   :  { %v5541_v29 = vadd.f32 %v5540_v24, %v5539_v51  ;;  %v4613_v26 = vadd.f32 %v5538_v60, %v7378_v12  ;;  %v5364_v12 = vld [vmem:[%s7498_s12] ss:$0 sm:$0xff] }
0x2b01   :  { %v4614_v23 = vadd.f32 %v5541_v29, %v7393_v48  ;;  %v4616_v50 = vmul.f32 %v4613_v26, %v4613_v26 }
0x2b03   :  { %v4617_v22 = vmul.f32 %v4614_v23, %v4614_v23 }
0x2b05   :  { %4620 = vadd.xlane.f32.xlu1 %v4617_v22 }
0x2b09   :  { %4618 = vadd.xlane.f32.xlu1 %v4616_v50 }
0x2b92   :  { %v4621_v44 = vpop.xlane.xlu1 %4620 }
0x2b93   :  { %v4623_v20 = vmul.f32 0.0078125, %v4621_v44  ;;  %v6585_v44 = vmov 0.0|0.0  }
0x2b95   :  { %v4625_v40 = vadd.f32 1e-06, %v4623_v20  ;;  %v4642_v20 = vld [vmem:[#allocation8] sm:$0xff] }
0x2b96   :  { %v4619_v30 = vpop.xlane.xlu1 %4618 }
0x2b97   :  { %6454 = vrsqrt.f32 %v4625_v40  ;;  %v4622_v10 = vmul.f32 0.0078125, %v4619_v30  ;;  %v4643_v40 = vld [vmem:[#allocation8 + $0x8] sm:$0xff] }
0x2b98   :  { %v6021_v30 = vpack.c.bf16 %v4643_v40, %v4642_v20 }
0x2b99   :  { %v4624_v32 = vadd.f32 1e-06, %v4622_v10  ;;  %v4644_v10 = vld [vmem:[#allocation8 + $0x10] sm:$0xff] }
0x2b9b   :  { %6456 = vrsqrt.f32 %v4624_v32  ;;  %v4645_v32 = vld [vmem:[#allocation8 + $0x18] sm:$0xff] }
0x2ba1   :  { %v6455_v27 = vpop.eup %6454 }
0x2ba2   :  { %v4629_v48 = vmul.f32 %v6455_v27, %v4614_v23 }
0x2ba4   :  { %v4637_v36 = vmul.f32 %v5363_v34, %v4629_v48  ;;  %v4646_v48 = vld [vmem:[#allocation8 + $0x20] sm:$0xff] }
0x2ba5   :  { %v6457_v13 = vpop.eup %6456 }
0x2ba6   :  { %5981 = vmatpush3.msra.mxu0 %v4637_v36  ;;  %v4871_v37 = vmul.f32 %v5364_v12, %v4637_v36  ;;  %v4628_v33 = vmul.f32 %v6457_v13, %v4613_v26 }
0x2ba7   :  { %6044 = vmatprep.subr.bf16.mxu0 %v6585_v44 }
0x2ba8   :  { %4872 = vadd.xlane.f32.xlu1 %v4871_v37  ;;  %v4636_v39 = vmul.f32 %v5363_v34, %v4628_v33  ;;  %v6024_v34 = vpack.c.bf16 %v4645_v32, %v4644_v10  ;;  %v4648_v37 = vld [vmem:[#allocation8 + $0x30] sm:$0xff]  ;;  %v4649_v33 = vld [vmem:[#allocation8 + $0x38] sm:$0xff] }
0x2baa   :  { %5941 = vmatpush3.msra.mxu1 %v4636_v39  ;;  %v4665_v41 = vmul.f32 %v5364_v12, %v4636_v39  ;;  %v4647_v12 = vld [vmem:[#allocation8 + $0x28] sm:$0xff]  ;;  %v6030_v39 = vpack.c.bf16 %v4649_v33, %v4648_v37 }
0x2bab   :  { %6020 = vmatprep.subr.bf16.mxu1 %v6585_v44  ;;  %v6027_v13 = vpack.c.bf16 %v4647_v12, %v4646_v48 }
0x2bac   :  { %4666 = vadd.xlane.f32.xlu0 %v4665_v41  ;;  %v4650_v41 = vld [vmem:[#allocation8 + $0x40] sm:$0xff] }
0x2c35   :  { %v4873_v45 = vpop.xlane.xlu1 %4872 }
0x2c36   :  { %v4874_v35 = vadd.f32 %v5365_v42, %v4873_v45  ;;  %v4652_v45 = vld [vmem:[#allocation8 + $0x50] sm:$0xff] }
0x2c38   :  { %v4875_v43 = vadd.f32 %v4874_v35, %v4641_v18  ;;  %v4653_v35 = vld [vmem:[#allocation8 + $0x58] sm:$0xff] }
0x2c39   :  { %v4667_v11 = vpop.xlane.xlu0 %4666 }
0x2c3a   :  { %v4876_v46 = vsel %vm4676_vm4, %v4875_v43, -inf  ;;  %v4674_v52 = vadd.f32 %v5365_v42, %v4667_v11  ;;  %v4651_v42 = vld [vmem:[#allocation8 + $0x48] sm:$0xff] }
0x2c3b   :  { %v4877_v53 = vrot.slane %v4876_v46, 4  ;;  %v6033_v18 = vpack.c.bf16 %v4651_v42, %v4650_v41 }
0x2c3c   :  { %v4675_v54 = vadd.f32 %v4674_v52, %v4640_v9  ;;  %v4655_v9 = vld [vmem:[#allocation8 + $0x68] sm:$0xff]  ;;  %v4657_v52 = vld [vmem:[#allocation8 + $0x78] sm:$0xff] }
0x2c3d   :  { %v4878_v55 = vmax.f32 %v4876_v46, %v4877_v53  ;;  %v4656_v46 = vld [vmem:[#allocation8 + $0x70] sm:$0xff] }
0x2c3e   :  { %v4677_v0 = vsel %vm4676_vm4, %v4675_v54, -inf  ;;  %v6042_v53 = vpack.c.bf16 %v4657_v52, %v4656_v46 }
0x2c3f   :  { %v4879_v59 = vrot.slane %v4878_v55, 2  ;;  %v4678_v25 = vrot.slane %v4677_v0, 4 }
0x2c41   :  { %v4880_v56 = vmax.f32 %v4878_v55, %v4879_v59  ;;  %v4679_v57 = vmax.f32 %v4677_v0, %v4678_v25  ;;  %v4658_v25 = vld [vmem:[%s7501_s15] sm:$0x1] }
0x2c43   :  { %v4881_v58 = vrot.slane %v4880_v56, 1  ;;  %v4680_v62 = vrot.slane %v4679_v57, 2 }
0x2c45   :  { %v4882_v49 = vmax.f32 %v4880_v56, %v4881_v58  ;;  %v4681_v63 = vmax.f32 %v4679_v57, %v4680_v62 }
0x2c47   :  { %v4883_v17 = vsub.f32 %v4875_v43, %v4882_v49  ;;  %v4682_v1 = vrot.slane %v4681_v63, 1  ;;  %v6036_v43 = vpack.c.bf16 %v4653_v35, %v4652_v45 }
0x2c49   :  { %v4884_v2 = vmul.f32 1.442695, %v4883_v17  ;;  %v4683_v3 = vmax.f32 %v4681_v63, %v4682_v1 }
0x2c4b   :  { %6458 = vpow2.f32 %v4884_v2  ;;  %v4684_v4 = vsub.f32 %v4675_v54, %v4683_v3 }
0x2c4d   :  { %v4685_v6 = vmul.f32 1.442695, %v4684_v4 }
0x2c4f   :  { %6460 = vpow2.f32 %v4685_v6 }
0x2c55   :  { %v6459_v5 = vpop.eup %6458 }
0x2c56   :  { %v4886_v61 = vsel %vm4676_vm4, %v6459_v5, 0.0 }
0x2c57   :  { %v4887_v21 = vrot.slane %v4886_v61, 4 }
0x2c59   :  { %v6461_v14 = vpop.eup %6460  ;;  %v4888_v7 = vadd.f32 %v4887_v21, %v4886_v61 }
0x2c5a   :  { %v4687_v15 = vsel %vm4676_vm4, %v6461_v14, 0.0 }
0x2c5b   :  { %v4889_v16 = vrot.slane %v4888_v7, 2  ;;  %v4688_v31 = vrot.slane %v4687_v15, 4 }
0x2c5d   :  { %v4890_v28 = vadd.f32 %v4889_v16, %v4888_v7  ;;  %v4689_v19 = vadd.f32 %v4688_v31, %v4687_v15 }
0x2c5f   :  { %v4891_v47 = vrot.slane %v4890_v28, 1  ;;  %v4690_v8 = vrot.slane %v4689_v19, 2 }
0x2c61   :  { %v4892_v60 = vadd.f32 %v4891_v47, %v4890_v28  ;;  %v4691_v51 = vadd.f32 %v4690_v8, %v4689_v19 }
0x2c63   :  { %6462 = vrcp.f32 %v4892_v60  ;;  %v4692_v24 = vrot.slane %v4691_v51, 1 }
0x2c65   :  { %v4693_v29 = vadd.f32 %v4692_v24, %v4691_v51 }
0x2c67   :  { %6464 = vrcp.f32 %v4693_v29 }
0x2c6d   :  { %v6463_v23 = vpop.eup %6462 }
0x2c6e   :  { %v4894_v26 = vmul.f32 %v6463_v23, %v6459_v5 }
0x2c70   :  { %4895 = vxpose.xlu1.b32.start.end [1/1] (short) (narrow) %v4894_v26, 8 }
0x2c71   :  { %v6465_v22 = vpop.eup %6464 }
0x2c72   :  { %v4695_v50 = vmul.f32 %v6465_v22, %v6461_v14 }
0x2c74   :  { %4696 = vxpose.xlu0.b32.start.end [1/1] (short) (narrow) %v4695_v50, 8 }
0x2cf0   :  { %v4911_v27 = vpop.trf.xlu1 }
0x2cf1   :  { %5983 = vmatmul.mubr.msk.f32.vlgmr.msra.gmra.mrb[108].mxu0 %vm678_vm3, %v4911_v27 }
0x2cf2   :  { %6046 = vmatpush3.bf16.msra.mxu0 %v6021_v30  ;;  %6017 = vmatprep.mubr.msk.f32.mxu0 %vm6582_vm0, %v6581_v38 }
0x2cf3   :  { %6047 = vmatprep.subr.bf16.mxu0 %v6585_v44 }
0x2cf4   :  { %v4712_v36 = vpop.trf.xlu0 }
0x2cf5   :  { %5943 = vmatmul.mubr.msk.f32.vlgmr.msra.gmra.mrb[132].mxu1 %vm678_vm3, %v4712_v36 }
0x2cf6   :  { %6022 = vmatpush3.bf16.msra.mxu1 %v6021_v30  ;;  %6049 = vmatpush3.bf16.msra.mxu0 %v6024_v34 }
0x2cf7   :  { %6023 = vmatprep.subr.bf16.mxu1 %v6585_v44  ;;  %6050 = vmatprep.subr.bf16.mxu0 %v6585_v44 }
0x2cf8   :  { %5977 = vmatprep.mubr.msk.f32.mxu1 %vm6582_vm0, %v6581_v38  ;;  %v4654_v38 = vld [vmem:[#allocation8 + $0x60] sm:$0xff] }
0x2cf9   :  { %v6039_v11 = vpack.c.bf16 %v4655_v9, %v4654_v38 }
0x2cfa   :  { %6025 = vmatpush3.bf16.msra.mxu1 %v6024_v34  ;;  %6052 = vmatpush3.bf16.msra.mxu0 %v6027_v13 }
0x2cfb   :  { %6026 = vmatprep.subr.bf16.mxu1 %v6585_v44  ;;  %6053 = vmatprep.subr.bf16.mxu0 %v6585_v44 }
0x2cfe   :  { %6028 = vmatpush3.bf16.msra.mxu1 %v6027_v13  ;;  %6055 = vmatpush3.bf16.msra.mxu0 %v6030_v39 }
0x2cff   :  { %6029 = vmatprep.subr.bf16.mxu1 %v6585_v44  ;;  %6056 = vmatprep.subr.bf16.mxu0 %v6585_v44 }
0x2d02   :  { %6031 = vmatpush3.bf16.msra.mxu1 %v6030_v39  ;;  %6058 = vmatpush3.bf16.msra.mxu0 %v6033_v18 }
0x2d03   :  { %6032 = vmatprep.subr.bf16.mxu1 %v6585_v44  ;;  %6059 = vmatprep.subr.bf16.mxu0 %v6585_v44 }
0x2d06   :  { %6034 = vmatpush3.bf16.msra.mxu1 %v6033_v18  ;;  %6061 = vmatpush3.bf16.msra.mxu0 %v6036_v43 }
0x2d07   :  { %6035 = vmatprep.subr.bf16.mxu1 %v6585_v44  ;;  %6062 = vmatprep.subr.bf16.mxu0 %v6585_v44 }
0x2d0a   :  { %6037 = vmatpush3.bf16.msra.mxu1 %v6036_v43  ;;  %6064 = vmatpush3.bf16.msra.mxu0 %v6039_v11 }
0x2d0b   :  { %6038 = vmatprep.subr.bf16.mxu1 %v6585_v44  ;;  %6065 = vmatprep.subr.bf16.mxu0 %v6585_v44 }
0x2d0e   :  { %6040 = vmatpush3.bf16.msra.mxu1 %v6039_v11  ;;  %6067 = vmatpush3.bf16.msra.mxu0 %v6042_v53 }
0x2d0f   :  { %6041 = vmatprep.subr.bf16.mxu1 %v6585_v44 }
0x2d12   :  { %6043 = vmatpush3.bf16.msra.mxu1 %v6042_v53 }
0x2dc4   :  { %v4996_v54 = vpop.f32.mrb[108].mxu0 }
0x2dc5   :  { %v5984_v55 = vpop.f32.mrb[109].mxu0  ;;  %6018 = vmatmul.mubr.f32.vlgmr.msra.gmra.mrb[110].mxu0 %v4996_v54 }
0x2dc8   :  { %v4797_v0 = vpop.f32.mrb[132].mxu1 }
0x2dc9   :  { %v5944_v59 = vpop.f32.mrb[133].mxu1  ;;  %5978 = vmatmul.mubr.f32.vlgmr.msra.gmra.mrb[134].mxu1 %v4797_v0 }
0x2e98   :  { %v5066_v56 = vpop.f32.mrb[110].mxu0 }
0x2e99   :  { %v5067_v57 = vadd.f32 %v5066_v56, %v4658_v25  ;;  %v6019_v58 = vpop.f32.mrb[111].mxu0 }
0x2e9b   :  { %v5071_v62 = vrot.slane %v5067_v57, 7 }
0x2e9c   :  { %v4867_v49 = vpop.f32.mrb[134].mxu1 }
0x2e9d   :  { %v4868_v63 = vadd.f32 %v4867_v49, %v4658_v25  ;;  %v5979_v17 = vpop.f32.mrb[135].mxu1 }
0x2e9f   :  { %v5074_v1 = vsel %vm5073_vm5, %v4868_v63, %v5071_v62 }
0x2ea0   :  { %5075 = vst [vmem:[%s7502_s16] sm:$0x3] %v5074_v1 }
0x2ea1   :  { %5080 = vsyncpa [#allocation4], 1 }
0x2ea2   :  { %5081 = vsyncpa [#allocation6], 1 }
0x2ea3   :  { %5082 = vsyncpa [#allocation9], 1 }

// kernel: forward.3
= control target key start
LH: loop header
LB: loop body
LE: loop exit
PB: predicated region body
PF: predicated region fallthrough
CT: control target
= control target key end

     0   :  { %v8392_v43 = vmov 0   ;;  %v8393_v45 = vmov 0.0   ;;  %vm8394_vm0 = vmmov 0   ;;  %vm718_vm1 = vcmask 261120   ;;  %s8396_s26 = smov 96   ;;  %s8397_s14 = smov 64   ;;  %s10539_s0 = inlined_call_operand.vmem [shape: f32[48,128], index: 0, kind: input, shape index: {}]   ;;  %s10540_s6 = inlined_call_operand.vmem [shape: bf16[2,128,640], index: 6, kind: input, shape index: {}]   ;;  %s10541_s4 = inlined_call_operand.vmem [shape: f32[2,1,128], index: 4, kind: input, shape index: {}]   ;;  %s10542_s2 = inlined_call_operand.vmem [shape: f32[48,128], index: 2, kind: input, shape index: {}]   ;;  %s10543_s3 = inlined_call_operand.vmem [shape: f32[48,128], index: 3, kind: input, shape index: {}]   ;;  %s10544_s1 = inlined_call_operand.vmem [shape: f32[2,1,24], index: 1, kind: input, shape index: {}]   ;;  %s10545_s7 = inlined_call_operand.vmem [shape: bf16[2,128,128], index: 7, kind: input, shape index: {}]   ;;  %s10546_s8 = inlined_call_operand.vmem [shape: bf16[2,128,512], index: 8, kind: input, shape index: {}]   ;;  %s10547_s5 = inlined_call_operand.vmem [shape: f32[2,1,128], index: 5, kind: input, shape index: {}]   ;;  %s10548_s9 = inlined_call_operand.vmem [shape: bf16[2,256,128], index: 9, kind: input, shape index: {}]   ;;  %s10549_s11 = inlined_call_operand.vmem [shape: bf16[128,256], index: 11, kind: input, shape index: {}]   ;;  %s10550_s10 = inlined_call_operand.vmem [shape: f32[1,128], index: 10, kind: input, shape index: {}]   ;;  %s10551_s12 = inlined_call_operand.vmem [shape: f32[48,128], index: 12, kind: output, shape index: {0}]   ;;  %s10552_s13 = inlined_call_operand.vmem [shape: f32[48,256], index: 13, kind: output, shape index: {1}]  }
   0x1   :  { %v8472_v0 = vld [vmem:[%s10539_s0] sm:$0xff]  ;;  %v8477_v1 = vld [vmem:[%s10539_s0 + $0x10] sm:$0xff]  ;;  %v8482_v2 = vld [vmem:[%s10539_s0 + $0x8] sm:$0xff]  ;;  %522 = vmatprep.mubr.bf16.mxu0 %v8392_v43  ;;  %585 = vmatprep.mubr.bf16.mxu1 %v8392_v43  ;;  %vm827_vm2 = vcmask 1043456   ;;  %vm785_vm6 = vcmask 195584   ;;  %s8398_s15 = smov 32  }
   0x2   :  { %v224_v3 = vmul.f32 %v8472_v0, %v8472_v0  ;;  %v226_v4 = vmul.f32 %v8477_v1, %v8477_v1  ;;  %v8491_v5 = vld [vmem:[%s10539_s0 + $0x18] sm:$0xff]  ;;  %v8496_v6 = vld [vmem:[%s10539_s0 + $0x28] sm:$0xff]  ;;  %v8501_v7 = vld [vmem:[%s10539_s0 + $0x20] sm:$0xff]  ;;  %v225_v9 = vmul.f32 %v8482_v2, %v8482_v2 }
   0x3   :  { %v7746_v8 = vld [vmem:[%s10540_s6 + $0x4] ss:$20 sps:$4 sm:$0xff]   ;;  %v227_v10 = vmul.f32 %v8491_v5, %v8491_v5  ;;  %v7748_v11 = vld [vmem:[%s10540_s6] ss:$20 sps:$4 sm:$0xff]   ;;  %v7751_v13 = vld [vmem:[%s10540_s6 + $0x8] ss:$20 sps:$4 sm:$0xff]   ;;  %v229_v17 = vmul.f32 %v8496_v6, %v8496_v6  ;;  %v228_v18 = vmul.f32 %v8501_v7, %v8501_v7 }
   0x4   :  { %230 = vadd.xlane.f32.xlu0 %v224_v3  ;;  %234 = vadd.xlane.f32.xlu1 %v226_v4  ;;  %v7749_v12 = vld [vmem:[%s10540_s6 + $0xc] ss:$20 sps:$4 sm:$0xff]   ;;  %v7754_v15 = vld [vmem:[%s10540_s6 + $0x28] ss:$20 sps:$4 sm:$0xff]   ;;  %v7757_v19 = vld [vmem:[%s10540_s6 + $0x30] ss:$20 sps:$4 sm:$0xff]  }
   0x5   :  { %490 = vmatprep.subr.bf16.mxu0 %v7746_v8  ;;  %v7752_v14 = vld [vmem:[%s10540_s6 + $0x2c] ss:$20 sps:$4 sm:$0xff]   ;;  %553 = vmatprep.subr.bf16.mxu1 %v7749_v12  ;;  %v7755_v16 = vld [vmem:[%s10540_s6 + $0x34] ss:$20 sps:$4 sm:$0xff]   ;;  %v7760_v21 = vld [vmem:[%s10540_s6 + $0x50] ss:$20 sps:$4 sm:$0xff]  }
   0x6   :  { %491 = vmatpush1.bf16.msra.mxu0 %v7748_v11  ;;  %554 = vmatpush1.bf16.msra.mxu1 %v7751_v13  ;;  %v7758_v20 = vld [vmem:[%s10540_s6 + $0x54] ss:$20 sps:$4 sm:$0xff]   ;;  %v7761_v22 = vld [vmem:[%s10540_s6 + $0x5c] ss:$20 sps:$4 sm:$0xff]   ;;  %v7763_v23 = vld [vmem:[%s10540_s6 + $0x58] ss:$20 sps:$4 sm:$0xff]  }
   0x7   :  { %492 = vmatprep.subr.bf16.mxu0 %v7752_v14  ;;  %555 = vmatprep.subr.bf16.mxu1 %v7755_v16  ;;  %v7764_v24 = vld [vmem:[%s10540_s6 + $0x7c] ss:$20 sps:$4 sm:$0xff]   ;;  %v7766_v25 = vld [vmem:[%s10540_s6 + $0x78] ss:$20 sps:$4 sm:$0xff]   ;;  %v7769_v27 = vld [vmem:[%s10540_s6 + $0x80] ss:$20 sps:$4 sm:$0xff]  }
   0x8   :  { %232 = vadd.xlane.f32.xlu0 %v225_v9  ;;  %236 = vadd.xlane.f32.xlu1 %v227_v10  ;;  %v7767_v26 = vld [vmem:[%s10540_s6 + $0x84] ss:$20 sps:$4 sm:$0xff]   ;;  %v7772_v29 = vld [vmem:[%s10540_s6 + $0xa0] ss:$20 sps:$4 sm:$0xff]   ;;  %v7775_v31 = vld [vmem:[%s10540_s6 + $0xa8] ss:$20 sps:$4 sm:$0xff]  }
   0x9   :  { %v7770_v28 = vld [vmem:[%s10540_s6 + $0xa4] ss:$20 sps:$4 sm:$0xff]   ;;  %v7773_v30 = vld [vmem:[%s10540_s6 + $0xac] ss:$20 sps:$4 sm:$0xff]   ;;  %v7778_v33 = vld [vmem:[%s10540_s6 + $0xc8] ss:$20 sps:$4 sm:$0xff]  }
   0xa   :  { %493 = vmatpush1.bf16.msra.mxu0 %v7754_v15  ;;  %556 = vmatpush1.bf16.msra.mxu1 %v7757_v19  ;;  %v7776_v32 = vld [vmem:[%s10540_s6 + $0xcc] ss:$20 sps:$4 sm:$0xff]   ;;  %v7779_v34 = vld [vmem:[%s10540_s6 + $0xd4] ss:$20 sps:$4 sm:$0xff]   ;;  %v7781_v35 = vld [vmem:[%s10540_s6 + $0xd0] ss:$20 sps:$4 sm:$0xff]  }
   0xb   :  { %494 = vmatprep.subr.bf16.mxu0 %v7758_v20  ;;  %557 = vmatprep.subr.bf16.mxu1 %v7761_v22  ;;  %v7782_v36 = vld [vmem:[%s10540_s6 + $0xf4] ss:$20 sps:$4 sm:$0xff]   ;;  %v7785_v37 = vld [vmem:[%s10540_s6 + $0xfc] ss:$20 sps:$4 sm:$0xff]   ;;  %v7787_v39 = vld [vmem:[%s10540_s6 + $0xf8] ss:$20 sps:$4 sm:$0xff]  }
   0xc   :  { %240 = vadd.xlane.f32.xlu1 %v229_v17  ;;  %238 = vadd.xlane.f32.xlu0 %v228_v18  ;;  %v7784_v38 = vld [vmem:[%s10540_s6 + $0xf0] ss:$20 sps:$4 sm:$0xff]   ;;  %v7790_v42 = vld [vmem:[%s10540_s6 + $0x118] ss:$20 sps:$4 sm:$0xff]   ;;  %v7793_v44 = vld [vmem:[%s10540_s6 + $0x120] ss:$20 sps:$4 sm:$0xff]  }
   0xd   :  { %v7788_v40 = vld [vmem:[%s10540_s6 + $0x11c] ss:$20 sps:$4 sm:$0xff]   ;;  %v7791_v41 = vld [vmem:[%s10540_s6 + $0x124] ss:$20 sps:$4 sm:$0xff]   ;;  %v6530_v9 = vld [vmem:[%s10541_s4] ss:$0 sm:$0xff] }
   0xe   :  { %495 = vmatpush1.bf16.msra.mxu0 %v7760_v21  ;;  %558 = vmatpush1.bf16.msra.mxu1 %v7763_v23  ;;  %v7794_v15 = vld [vmem:[%s10540_s6 + $0x10] ss:$20 sps:$4 sm:$0xff]   ;;  %v7796_v22 = vld [vmem:[%s10540_s6 + $0x60] ss:$20 sps:$4 sm:$0xff]  }
   0xf   :  { %496 = vmatprep.subr.bf16.mxu0 %v7764_v24  ;;  %559 = vmatprep.subr.bf16.mxu1 %v7767_v26  ;;  %v7797_v26 = vld [vmem:[%s10540_s6 + $0x88] ss:$20 sps:$4 sm:$0xff]  }
  0x12   :  { %497 = vmatpush1.bf16.msra.mxu0 %v7766_v25  ;;  %560 = vmatpush1.bf16.msra.mxu1 %v7769_v27  ;;  %v7799_v27 = vld [vmem:[%s10540_s6 + $0xd8] ss:$20 sps:$4 sm:$0xff]  }
  0x13   :  { %498 = vmatprep.subr.bf16.mxu0 %v7770_v28  ;;  %561 = vmatprep.subr.bf16.mxu1 %v7773_v30  ;;  %v7800_v28 = vld [vmem:[%s10540_s6 + $0x100] ss:$20 sps:$4 sm:$0xff]  }
  0x14   :  { %v52_v30 = vld [vmem:[%s10542_s2] sm:$0xff] }
  0x16   :  { %499 = vmatpush1.bf16.msra.mxu0 %v7772_v29  ;;  %562 = vmatpush1.bf16.msra.mxu1 %v7775_v31  ;;  %v7801_v29 = vld [vmem:[%s10540_s6 + $0x128] ss:$20 sps:$4 sm:$0xff]   ;;  %v58_v31 = vld [vmem:[%s10543_s3] sm:$0xff] }
  0x17   :  { %500 = vmatprep.subr.bf16.mxu0 %v7776_v32  ;;  %563 = vmatprep.subr.bf16.mxu1 %v7779_v34  ;;  %v53_v34 = vld [vmem:[%s10542_s2 + $0x8] sm:$0xff] }
  0x1a   :  { %501 = vmatpush1.bf16.msra.mxu0 %v7778_v33  ;;  %564 = vmatpush1.bf16.msra.mxu1 %v7781_v35 }
  0x1b   :  { %502 = vmatprep.subr.bf16.mxu0 %v7782_v36  ;;  %565 = vmatprep.subr.bf16.mxu1 %v7785_v37 }
  0x1e   :  { %503 = vmatpush1.bf16.msra.mxu0 %v7784_v38  ;;  %566 = vmatpush1.bf16.msra.mxu1 %v7787_v39  ;;  %v59_v39 = vld [vmem:[%s10543_s3 + $0x8] sm:$0xff] }
  0x1f   :  { %504 = vmatprep.subr.bf16.mxu0 %v7788_v40  ;;  %567 = vmatprep.subr.bf16.mxu1 %v7791_v41 }
  0x22   :  { %505 = vmatpush1.bf16.msra.mxu0 %v7790_v42  ;;  %568 = vmatpush1.bf16.msra.mxu1 %v7793_v44 }
  0x23   :  { %7251 = vmatprep.subr.bf16.mxu0 %v8393_v45 }
  0x91   :  { %v231_v46 = vpop.xlane.xlu0 %230  ;;  %v235_v47 = vpop.xlane.xlu1 %234 }
  0x92   :  { %v243_v48 = vmul.f32 0.0078125, %v231_v46  ;;  %v245_v49 = vmul.f32 0.0078125, %v235_v47 }
  0x94   :  { %v249_v50 = vadd.f32 1e-06, %v243_v48  ;;  %v251_v55 = vadd.f32 1e-06, %v245_v49 }
  0x95   :  { %v233_v51 = vpop.xlane.xlu0 %232  ;;  %v237_v52 = vpop.xlane.xlu1 %236 }
  0x96   :  { %8026 = vrsqrt.f32 %v249_v50  ;;  %v244_v53 = vmul.f32 0.0078125, %v233_v51  ;;  %v246_v54 = vmul.f32 0.0078125, %v237_v52 }
  0x98   :  { %v250_v56 = vadd.f32 1e-06, %v244_v53  ;;  %v252_v57 = vadd.f32 1e-06, %v246_v54 }
  0x99   :  { %v241_v58 = vpop.xlane.xlu1 %240  ;;  %v239_v59 = vpop.xlane.xlu0 %238 }
  0x9a   :  { %8028 = vrsqrt.f32 %v250_v56  ;;  %v248_v60 = vmul.f32 0.0078125, %v241_v58  ;;  %v247_v61 = vmul.f32 0.0078125, %v239_v59  ;;  %v54_v56 = vld [vmem:[%s10542_s2 + $0x10] sm:$0xff] }
  0x9b   :  { %8030 = vrsqrt.f32 %v251_v55 }
  0x9c   :  { %8032 = vrsqrt.f32 %v252_v57  ;;  %v254_v62 = vadd.f32 1e-06, %v248_v60  ;;  %v253_v63 = vadd.f32 1e-06, %v247_v61  ;;  %v60_v57 = vld [vmem:[%s10543_s3 + $0x10] sm:$0xff] }
  0x9e   :  { %8034 = vrsqrt.f32 %v254_v62  ;;  %v55_v62 = vld [vmem:[%s10542_s2 + $0x18] sm:$0xff] }
  0x9f   :  { %8036 = vrsqrt.f32 %v253_v63 }
  0xa0   :  { %v8027_v3 = vpop.eup %8026 }
  0xa1   :  { %v261_v4 = vmul.f32 %v8027_v3, %v8472_v0 }
  0xa3   :  { %v273_v13 = vmul.f32 %v6530_v9, %v261_v4 }
  0xa4   :  { %v8029_v8 = vpop.eup %8028 }
  0xa5   :  { %v8031_v10 = vpop.eup %8030  ;;  %v262_v11 = vmul.f32 %v8029_v8, %v8482_v2  ;;  %v7795_v2 = vld [vmem:[%s10540_s6 + $0x38] ss:$20 sps:$4 sm:$0xff]  }
  0xa6   :  { %v8033_v12 = vpop.eup %8032  ;;  %v263_v17 = vmul.f32 %v8031_v10, %v8477_v1 }
  0xa7   :  { %v274_v14 = vmul.f32 %v6530_v9, %v262_v11  ;;  %v264_v0 = vmul.f32 %v8033_v12, %v8491_v5 }
  0xa8   :  { %v8035_v18 = vpop.eup %8034  ;;  %v275_v20 = vmul.f32 %v6530_v9, %v263_v17 }
  0xa9   :  { %v279_v16 = vpack.c.bf16 %v274_v14, %v273_v13  ;;  %v8037_v19 = vpop.eup %8036  ;;  %v276_v21 = vmul.f32 %v6530_v9, %v264_v0  ;;  %v266_v5 = vmul.f32 %v8035_v18, %v8496_v6 }
  0xaa   :  { %v265_v1 = vmul.f32 %v8037_v19, %v8501_v7  ;;  %v7798_v7 = vld [vmem:[%s10540_s6 + $0xb0] ss:$20 sps:$4 sm:$0xff]  }
  0xab   :  { %523 = vmatmul.mubr.bf16.vlgmr.msra.gmra.mrb[0].mxu0 %v279_v16  ;;  %586 = vmatmul.mubr.bf16.vlgmr.msra.gmra.mrb[0].mxu1 %v279_v16  ;;  %v280_v23 = vpack.c.bf16 %v276_v21, %v275_v20  ;;  %v278_v25 = vmul.f32 %v6530_v9, %v266_v5  ;;  %v56_v5 = vld [vmem:[%s10542_s2 + $0x20] sm:$0xff] }
  0xac   :  { %7252 = vmatpush3.bf16.msra.mxu0 %v7794_v15  ;;  %532 = vmatprep.mubr.bf16.mxu0 %v8392_v43  ;;  %v277_v24 = vmul.f32 %v6530_v9, %v265_v1  ;;  %v61_v9 = vld [vmem:[%s10543_s3 + $0x18] sm:$0xff] }
  0xad   :  { %7253 = vmatprep.subr.bf16.mxu0 %v8393_v45  ;;  %595 = vmatprep.mubr.bf16.mxu1 %v8392_v43 }
  0xae   :  { %v281_v6 = vpack.c.bf16 %v278_v25, %v277_v24 }
  0xb0   :  { %7254 = vmatpush3.bf16.msra.mxu0 %v7795_v2 }
  0xb1   :  { %7255 = vmatprep.subr.bf16.mxu0 %v8393_v45 }
  0xb3   :  { %533 = vmatmul.mubr.bf16.gmra.mrb[4].mxu0 %v280_v23  ;;  %596 = vmatmul.mubr.bf16.gmra.mrb[4].mxu1 %v280_v23 }
  0xb4   :  { %7256 = vmatpush3.bf16.msra.mxu0 %v7796_v22  ;;  %542 = vmatprep.mubr.bf16.mxu0 %v8392_v43  ;;  %v62_v22 = vld [vmem:[%s10543_s3 + $0x20] sm:$0xff] }
  0xb5   :  { %7257 = vmatprep.subr.bf16.mxu0 %v8393_v45  ;;  %605 = vmatprep.mubr.bf16.mxu1 %v8392_v43 }
  0xb8   :  { %7258 = vmatpush3.bf16.msra.mxu0 %v7797_v26 }
  0xb9   :  { %7259 = vmatprep.subr.bf16.mxu0 %v8393_v45 }
  0xbb   :  { %543 = vmatmul.mubr.bf16.gmra.mrb[8].mxu0 %v281_v6  ;;  %606 = vmatmul.mubr.bf16.gmra.mrb[8].mxu1 %v281_v6 }
  0xbc   :  { %7260 = vmatpush3.bf16.msra.mxu0 %v7798_v7  ;;  %7267 = vmatprep.mubr.msk.bf16.mxu0 %vm8394_vm0, %v8393_v45 }
  0xbd   :  { %7261 = vmatprep.subr.bf16.mxu0 %v8393_v45 }
  0xc0   :  { %7262 = vmatpush3.bf16.msra.mxu0 %v7799_v27 }
  0xc1   :  { %7263 = vmatprep.subr.bf16.mxu0 %v8393_v45 }
  0xc4   :  { %7264 = vmatpush3.bf16.msra.mxu0 %v7800_v28 }
  0xc5   :  { %7265 = vmatprep.subr.bf16.mxu0 %v8393_v45 }
  0xc8   :  { %7266 = vmatpush3.bf16.msra.mxu0 %v7801_v29 }
  0xcb   :  { %7268 = vmatmul.mubr.bf16.vlgmr.msra.gmra.mrb[12].mxu0 %v279_v16 }
  0xcc   :  { %7271 = vmatprep.mubr.msk.bf16.mxu0 %vm8394_vm0, %v8393_v45 }
  0xd3   :  { %7272 = vmatmul.mubr.bf16.gmra.mrb[16].mxu0 %v280_v23 }
  0xd4   :  { %7275 = vmatprep.mubr.msk.bf16.mxu0 %vm8394_vm0, %v8393_v45 }
  0xdb   :  { %7276 = vmatmul.mubr.bf16.gmra.mrb[20].mxu0 %v281_v6  ;;  %v57_v6 = vld [vmem:[%s10542_s2 + $0x28] sm:$0xff] }
 0x17e   :  { %v524_v32 = vpop.f32.mrb[0].mxu0  ;;  %v587_v33 = vpop.f32.mrb[0].mxu1 }
 0x17f   :  { %v673_v35 = vmul.f32 %v524_v32, %v52_v30  ;;  %v694_v36 = vmul.f32 %v587_v33, %v52_v30  ;;  %v526_v37 = vpop.f32.mrb[1].mxu0  ;;  %v589_v38 = vpop.f32.mrb[1].mxu1  ;;  %v63_v30 = vld [vmem:[%s10543_s3 + $0x28] sm:$0xff] }
 0x180   :  { %v679_v40 = vmul.f32 %v526_v37, %v58_v31  ;;  %v700_v41 = vmul.f32 %v589_v38, %v58_v31  ;;  %v528_v42 = vpop.f32.mrb[2].mxu0  ;;  %v591_v44 = vpop.f32.mrb[2].mxu1 }
 0x181   :  { %v674_v46 = vmul.f32 %v528_v42, %v53_v34  ;;  %v695_v47 = vmul.f32 %v591_v44, %v53_v34  ;;  %v530_v48 = vpop.f32.mrb[3].mxu0  ;;  %v593_v49 = vpop.f32.mrb[3].mxu1 }
 0x182   :  { %v685_v50 = vadd.f32 %v679_v40, %v673_v35  ;;  %v706_v51 = vadd.f32 %v700_v41, %v694_v36  ;;  %v680_v52 = vmul.f32 %v530_v48, %v59_v39  ;;  %v701_v53 = vmul.f32 %v593_v49, %v59_v39 }
 0x184   :  { %v686_v54 = vadd.f32 %v680_v52, %v674_v46  ;;  %v707_v55 = vadd.f32 %v701_v53, %v695_v47 }
 0x186   :  { %v8678_v58 = vpack.c.bf16 %v686_v54, %v685_v50  ;;  %v8680_v59 = vpack.c.bf16 %v707_v55, %v706_v51  ;;  %v534_v60 = vpop.f32.mrb[4].mxu0  ;;  %v597_v61 = vpop.f32.mrb[4].mxu1 }
 0x187   :  { %v675_v63 = vmul.f32 %v534_v60, %v54_v56  ;;  %v696_v3 = vmul.f32 %v597_v61, %v54_v56  ;;  %v536_v4 = vpop.f32.mrb[5].mxu0  ;;  %v599_v8 = vpop.f32.mrb[5].mxu1 }
 0x188   :  { %v681_v10 = vmul.f32 %v536_v4, %v60_v57  ;;  %v702_v11 = vmul.f32 %v599_v8, %v60_v57  ;;  %v538_v12 = vpop.f32.mrb[6].mxu0  ;;  %v601_v13 = vpop.f32.mrb[6].mxu1  ;;  %7691 = vmatprep.subr.msk.bf16.mxu1 %vm718_vm1, %v8680_v59  ;;  %7283 = vmatprep.mubr.msk.bf16.mxu1 %vm718_vm1, %v8678_v58  ;;  %v726_v14 = vsel %vm718_vm1, %v8680_v59, 0 }
 0x189   :  { %v676_v15 = vmul.f32 %v538_v12, %v55_v62  ;;  %v697_v16 = vmul.f32 %v601_v13, %v55_v62  ;;  %v540_v17 = vpop.f32.mrb[7].mxu0  ;;  %v603_v0 = vpop.f32.mrb[7].mxu1  ;;  %7280 = vmatpush3.bf16.xpose.msra.mxu1 %v726_v14 }
 0x18a   :  { %v687_v18 = vadd.f32 %v681_v10, %v675_v63  ;;  %v708_v19 = vadd.f32 %v702_v11, %v696_v3  ;;  %v682_v2 = vmul.f32 %v540_v17, %v61_v9  ;;  %v703_v20 = vmul.f32 %v603_v0, %v61_v9 }
 0x18b   :  { %v64_v10 = vlaneseq }
 0x18c   :  { %v688_v21 = vadd.f32 %v682_v2, %v676_v15  ;;  %v709_v1 = vadd.f32 %v703_v20, %v697_v16  ;;  %v6528_v15 = vld [vmem:[%s10544_s1] ss:$0 sm:$0xff]  ;;  %v8395_v16 = vmov -1e+09  }
 0x18d   :  { %v65_v11 = vshrl.u32 %v64_v10, 7  ;;  %v69_v12 = vand.u32 127, %v64_v10 }
 0x18e   :  { %v8700_v23 = vpack.c.bf16 %v688_v21, %v687_v18  ;;  %v8702_v24 = vpack.c.bf16 %v709_v1, %v708_v19  ;;  %v544_v25 = vpop.f32.mrb[8].mxu0  ;;  %v607_v26 = vpop.f32.mrb[8].mxu1 }
 0x18f   :  { %v677_v7 = vmul.f32 %v544_v25, %v56_v5  ;;  %v698_v27 = vmul.f32 %v607_v26, %v56_v5  ;;  %v546_v28 = vpop.f32.mrb[9].mxu0  ;;  %v609_v29 = vpop.f32.mrb[9].mxu1  ;;  %v66_v13 = vadd.s32 8, %v65_v11  ;;  %v67_v14 = vadd.s32 16, %v65_v11 }
 0x190   :  { %v683_v31 = vmul.f32 %v546_v28, %v62_v22  ;;  %v704_v32 = vmul.f32 %v609_v29, %v62_v22  ;;  %v548_v33 = vpop.f32.mrb[10].mxu0  ;;  %v611_v34 = vpop.f32.mrb[10].mxu1  ;;  %7692 = vmatprep.subr.msk.bf16.mxu1 %vm718_vm1, %v8702_v24  ;;  %v729_v35 = vsel %vm718_vm1, %v8702_v24, 0  ;;  %vm70_vm3 = vcmp.ge.s32.totalorder %v65_v11, %v69_v12 }
 0x191   :  { %v678_v36 = vmul.f32 %v548_v33, %v57_v6  ;;  %v699_v37 = vmul.f32 %v611_v34, %v57_v6  ;;  %v550_v38 = vpop.f32.mrb[11].mxu0  ;;  %v613_v39 = vpop.f32.mrb[11].mxu1  ;;  %7282 = vmatpush3.bf16.xpose.msra.mxu1 %v729_v35  ;;  %vm71_vm4 = vcmp.ge.s32.totalorder %v66_v13, %v69_v12  ;;  %vm72_vm5 = vcmp.ge.s32.totalorder %v67_v14, %v69_v12 }
 0x192   :  { %v8714_v40 = vadd.f32 %v683_v31, %v677_v7  ;;  %v8716_v41 = vadd.f32 %v704_v32, %v698_v27  ;;  %v684_v42 = vmul.f32 %v550_v38, %v63_v30  ;;  %v705_v44 = vmul.f32 %v613_v39, %v63_v30 }
 0x193   :  { %v8747_v17 = vsel %vm70_vm3, 0.0, %v8395_v16  ;;  %v8749_v0 = vsel %vm71_vm4, 0.0, %v8395_v16  ;;  %v8751_v18 = vsel %vm72_vm5, 0.0, %v8395_v16 }
 0x194   :  { %v8718_v46 = vadd.f32 %v684_v42, %v678_v36  ;;  %v8720_v47 = vadd.f32 %v705_v44, %v699_v37  ;;  %v8754_v2 = vadd.f32 %v6528_v15, %v8747_v17  ;;  %v8757_v22 = vadd.f32 %v6528_v15, %v8749_v0 }
 0x195   :  { %v8760_v25 = vadd.f32 %v6528_v15, %v8751_v18 }
 0x196   :  { %v693_v48 = vpack.c.bf16 %v8718_v46, %v8714_v40  ;;  %v714_v49 = vpack.c.bf16 %v8720_v47, %v8716_v41  ;;  %v1678_v41 = vrot.slane %v8700_v23, 4 }
 0x198   :  { %7284 = vmatmul.mubr.msk.bf16.vlgmr.msra.gmra.mrb[12].mxu1 %vm718_vm1, %v8700_v23 }
 0x19e   :  { %v650_v50 = vpop.f32.mrb[12].mxu0 }
 0x19f   :  { %v7269_v51 = vpop.f32.mrb[13].mxu0 }
 0x1a0   :  { %v653_v52 = vpop.f32.mrb[14].mxu0 }
 0x1a1   :  { %v8728_v53 = vpack.c.bf16 %v653_v52, %v650_v50  ;;  %v7270_v54 = vpop.f32.mrb[15].mxu0 }
 0x1a3   :  { %7287 = vmatprep.subr.bf16.mxu1 %v8728_v53 }
 0x1a4   :  { %7288 = vmatpush3.bf16.msra.mxu1 %v8728_v53 }
 0x1a6   :  { %v658_v55 = vpop.f32.mrb[16].mxu0 }
 0x1a7   :  { %v7273_v56 = vpop.f32.mrb[17].mxu0 }
 0x1a8   :  { %v661_v57 = vpop.f32.mrb[18].mxu0 }
 0x1a9   :  { %v8732_v60 = vpack.c.bf16 %v661_v57, %v658_v55  ;;  %v7274_v61 = vpop.f32.mrb[19].mxu0 }
 0x1ab   :  { %7693 = vmatprep.subr.msk.bf16.mxu1 %vm827_vm2, %v8732_v60  ;;  %v829_v62 = vsel %vm827_vm2, %v8732_v60, 0 }
 0x1ac   :  { %7290 = vmatpush3.bf16.msra.mxu1 %v829_v62 }
 0x1ae   :  { %v8738_v63 = vpop.f32.mrb[20].mxu0 }
 0x1af   :  { %v7277_v3 = vpop.f32.mrb[21].mxu0 }
 0x1b0   :  { %v8740_v4 = vpop.f32.mrb[22].mxu0 }
 0x1b1   :  { %v717_v8 = vpack.c.bf16 %v8740_v4, %v8738_v63  ;;  %v7278_v9 = vpop.f32.mrb[23].mxu0 }
 0x26b   :  { %v7285_v19 = vpop.f32.mrb[12].mxu1 }
 0x26c   :  { %v765_v20 = vpop.f32.mrb[13].mxu1  ;;  %v781_v21 = vmul.f32 0.17677669, %v7285_v19 }
 0x26d   :  { %v779_v1 = vmul.f32 0.17677669, %v765_v20  ;;  %v7286_v5 = vpop.f32.mrb[14].mxu1 }
 0x26e   :  { %v768_v26 = vpop.f32.mrb[15].mxu1  ;;  %v784_v29 = vadd.f32 %v781_v21, %v8760_v25 }
 0x26f   :  { %v780_v6 = vmul.f32 0.17677669, %v768_v26  ;;  %v782_v7 = vadd.f32 %v779_v1, %v8754_v2 }
 0x270   :  { %v792_v31 = vsel %vm785_vm6, %v784_v29, -inf }
 0x271   :  { %v786_v27 = vsel %vm785_vm6, %v782_v7, -inf  ;;  %v783_v28 = vadd.f32 %v780_v6, %v8757_v22 }
 0x272   :  { %787 = vmax.xlane.f32.xlu0 %v786_v27 }
 0x273   :  { %v789_v30 = vsel %vm785_vm6, %v783_v28, -inf }
 0x274   :  { %790 = vmax.xlane.f32.xlu1 %v789_v30 }
 0x276   :  { %793 = vmax.xlane.f32.xlu0 %v792_v31 }
 0x2ff   :  { %v788_v32 = vpop.xlane.xlu0 %787 }
 0x300   :  { %v795_v33 = vsub.f32 %v782_v7, %v788_v32 }
 0x301   :  { %v791_v34 = vpop.xlane.xlu1 %790 }
 0x302   :  { %v798_v35 = vmul.f32 1.442695, %v795_v33  ;;  %v796_v36 = vsub.f32 %v783_v28, %v791_v34 }
 0x303   :  { %v794_v37 = vpop.xlane.xlu0 %793 }
 0x304   :  { %8038 = vpow2.f32 %v798_v35  ;;  %v800_v38 = vmul.f32 1.442695, %v796_v36  ;;  %v797_v39 = vsub.f32 %v784_v29, %v794_v37 }
 0x306   :  { %8040 = vpow2.f32 %v800_v38  ;;  %v802_v42 = vmul.f32 1.442695, %v797_v39 }
 0x308   :  { %8042 = vpow2.f32 %v802_v42 }
 0x30e   :  { %v8039_v44 = vpop.eup %8038 }
 0x30f   :  { %v804_v50 = vsel %vm785_vm6, %v8039_v44, 0.0 }
 0x310   :  { %v8041_v51 = vpop.eup %8040  ;;  %805 = vadd.xlane.f32.xlu1 %v804_v50 }
 0x311   :  { %v807_v52 = vsel %vm785_vm6, %v8041_v51, 0.0 }
 0x312   :  { %v8043_v54 = vpop.eup %8042  ;;  %808 = vadd.xlane.f32.xlu0 %v807_v52 }
 0x313   :  { %v810_v55 = vsel %vm785_vm6, %v8043_v54, 0.0 }
 0x314   :  { %811 = vadd.xlane.f32.xlu1 %v810_v55 }
 0x325   :  { %891 = vrot.lane.b32.xlu1 %v8702_v24, %s8396_s26 }
 0x328   :  { %889 = vrot.lane.b32.xlu0 %v8680_v59, %s8396_s26 }
 0x329   :  { %883 = vrot.lane.b32.xlu1 %v8678_v58, %s8396_s26 }
 0x32d   :  { %885 = vrot.lane.b32.xlu1 %v8700_v23, %s8396_s26 }
 0x39d   :  { %v806_v56 = vpop.xlane.xlu1 %805 }
 0x39e   :  { %8044 = vrcp.f32 %v806_v56 }
 0x39f   :  { %v809_v57 = vpop.xlane.xlu0 %808 }
 0x3a0   :  { %8046 = vrcp.f32 %v809_v57 }
 0x3a1   :  { %v812_v61 = vpop.xlane.xlu1 %811 }
 0x3a2   :  { %8048 = vrcp.f32 %v812_v61 }
 0x3a3   :  { %v890_v62 = vpop.permute.xlu0 %889 }
 0x3a4   :  { %7694 = vmatprep.subr.msk.bf16.mxu1 %vm718_vm1, %v890_v62  ;;  %v900_v20 = vsel %vm718_vm1, %v890_v62, 0 }
 0x3a5   :  { %v892_v10 = vpop.permute.xlu1 %891 }
 0x3a6   :  { %v903_v21 = vsel %vm718_vm1, %v892_v10, 0 }
 0x3a8   :  { %v8045_v3 = vpop.eup %8044 }
 0x3a9   :  { %v814_v11 = vmul.f32 %v8045_v3, %v8039_v44  ;;  %v884_v19 = vpop.permute.xlu1 %883 }
 0x3aa   :  { %v8047_v9 = vpop.eup %8046 }
 0x3ab   :  { %v816_v12 = vmul.f32 %v8047_v9, %v8041_v51 }
 0x3ac   :  { %v8049_v13 = vpop.eup %8048 }
 0x3ad   :  { %v819_v14 = vpack.c.bf16 %v816_v12, %v814_v11  ;;  %v818_v15 = vmul.f32 %v8049_v13, %v8043_v54  ;;  %v886_v1 = vpop.permute.xlu1 %885  ;;  %v8807_v13 = vld [vmem:[%s10545_s7 + $0x10] sm:$0xff]  }
 0x3af   :  { %7291 = vmatprep.mubr.msk.bf16.mxu1 %vm785_vm6, %v819_v14  ;;  %v820_v16 = vpack.c.bf16 %v818_v15, %v818_v15  ;;  %v8816_v14 = vld [vmem:[%s10545_s7 + $0x18] sm:$0xff]  }
 0x3b1   :  { %7292 = vmatmul.mubr.msk.bf16.vlgmr.msra.gmra.mrb[16].mxu1 %vm785_vm6, %v820_v16 }
 0x3b2   :  { %7296 = vmatpush3.bf16.xpose.msra.mxu1 %v900_v20  ;;  %7299 = vmatprep.mubr.msk.bf16.mxu1 %vm718_vm1, %v884_v19 }
 0x3b3   :  { %7695 = vmatprep.subr.msk.bf16.mxu1 %vm718_vm1, %v892_v10 }
 0x3ba   :  { %7298 = vmatpush3.bf16.xpose.msra.mxu1 %v903_v21 }
 0x3bb   :  { %7311 = vmatprep.subr.bf16.mxu1 %v8807_v13 }
 0x3c1   :  { %7300 = vmatmul.mubr.msk.bf16.vlgmr.msra.gmra.mrb[20].mxu1 %vm718_vm1, %v886_v1 }
 0x3c2   :  { %7312 = vmatpush3.bf16.msra.mxu1 %v8807_v13 }
 0x3c3   :  { %7313 = vmatprep.subr.bf16.mxu1 %v8816_v14 }
 0x3c6   :  { %7314 = vmatpush3.bf16.msra.mxu1 %v8816_v14 }
 0x484   :  { %v8787_v5 = vpop.f32.mrb[16].mxu1 }
 0x485   :  { %v8789_v26 = vpop.f32.mrb[17].mxu1 }
 0x486   :  { %v7294_v6 = vpop.f32.mrb[18].mxu1 }
 0x487   :  { %v8791_v7 = vpop.f32.mrb[19].mxu1 }
 0x488   :  { %v879_v27 = vpack.c.bf16 %v8791_v7, %v8789_v26 }
 0x494   :  { %v7301_v28 = vpop.f32.mrb[20].mxu1 }
 0x495   :  { %v939_v29 = vpop.f32.mrb[21].mxu1  ;;  %v955_v30 = vmul.f32 0.17677669, %v7301_v28 }
 0x496   :  { %v953_v31 = vmul.f32 0.17677669, %v939_v29  ;;  %v7302_v32 = vpop.f32.mrb[22].mxu1 }
 0x497   :  { %v942_v33 = vpop.f32.mrb[23].mxu1  ;;  %v958_v38 = vadd.f32 %v955_v30, %v8760_v25 }
 0x498   :  { %v954_v34 = vmul.f32 0.17677669, %v942_v33  ;;  %v956_v35 = vadd.f32 %v953_v31, %v8754_v2 }
 0x499   :  { %v965_v42 = vsel %vm785_vm6, %v958_v38, -inf }
 0x49a   :  { %v959_v36 = vsel %vm785_vm6, %v956_v35, -inf  ;;  %v957_v37 = vadd.f32 %v954_v34, %v8757_v22 }
 0x49b   :  { %960 = vmax.xlane.f32.xlu0 %v959_v36  ;;  %v880_v36 = vpack.c.bf16 %v8787_v5, %v8787_v5 }
 0x49c   :  { %v962_v39 = vsel %vm785_vm6, %v957_v37, -inf }
 0x49d   :  { %963 = vmax.xlane.f32.xlu1 %v962_v39 }
 0x49f   :  { %966 = vmax.xlane.f32.xlu0 %v965_v42 }
 0x528   :  { %v961_v44 = vpop.xlane.xlu0 %960 }
 0x529   :  { %v968_v50 = vsub.f32 %v956_v35, %v961_v44  ;;  %v8850_v35 = vld [vmem:[%s10545_s7 + $0x8] sm:$0xff]  }
 0x52a   :  { %v964_v51 = vpop.xlane.xlu1 %963 }
 0x52b   :  { %v971_v52 = vmul.f32 1.442695, %v968_v50  ;;  %v969_v54 = vsub.f32 %v957_v37, %v964_v51 }
 0x52c   :  { %v967_v55 = vpop.xlane.xlu0 %966 }
 0x52d   :  { %8050 = vpow2.f32 %v971_v52  ;;  %v973_v56 = vmul.f32 1.442695, %v969_v54  ;;  %v970_v57 = vsub.f32 %v958_v38, %v967_v55 }
 0x52f   :  { %8052 = vpow2.f32 %v973_v56  ;;  %v975_v61 = vmul.f32 1.442695, %v970_v57 }
 0x531   :  { %8054 = vpow2.f32 %v975_v61 }
 0x537   :  { %v8051_v62 = vpop.eup %8050 }
 0x538   :  { %v977_v3 = vsel %vm785_vm6, %v8051_v62, 0.0 }
 0x539   :  { %v8053_v9 = vpop.eup %8052  ;;  %978 = vadd.xlane.f32.xlu0 %v977_v3 }
 0x53a   :  { %v980_v12 = vsel %vm785_vm6, %v8053_v9, 0.0 }
 0x53b   :  { %v8055_v10 = vpop.eup %8054 }
 0x53c   :  { %v983_v11 = vsel %vm785_vm6, %v8055_v10, 0.0 }
 0x53d   :  { %984 = vadd.xlane.f32.xlu1 %v983_v11  ;;  %981 = vadd.xlane.f32.xlu0 %v980_v12 }
 0x54e   :  { %998 = vrot.lane.b32.xlu1 %v8732_v60, %s8396_s26 }
 0x552   :  { %1196 = vrot.lane.b32.xlu1 %v8680_v59, %s8397_s14 }
 0x553   :  { %996 = vrot.lane.b32.xlu0 %v8728_v53, %s8396_s26 }
 0x556   :  { %1198 = vrot.lane.b32.xlu1 %v8702_v24, %s8397_s14 }
 0x557   :  { %1192 = vrot.lane.b32.xlu0 %v8678_v58, %s8397_s14 }
 0x55a   :  { %1194 = vrot.lane.b32.xlu1 %v8700_v23, %s8397_s14 }
 0x55b   :  { %1438 = vrot.lane.b32.xlu0 %v8680_v59, %s8398_s15  ;;  %v8842_v59 = vld [vmem:[%s10545_s7] sm:$0xff]  }
 0x55e   :  { %1440 = vrot.lane.b32.xlu1 %v8702_v24, %s8398_s15 }
 0x55f   :  { %1434 = vrot.lane.b32.xlu0 %v8678_v58, %s8398_s15 }
 0x562   :  { %1436 = vrot.lane.b32.xlu1 %v8700_v23, %s8398_s15 }
 0x5c6   :  { %v979_v15 = vpop.xlane.xlu0 %978 }
 0x5c7   :  { %8056 = vrcp.f32 %v979_v15  ;;  %v8891_v15 = vrot.slane %v693_v48, 4 }
 0x5ca   :  { %v982_v16 = vpop.xlane.xlu0 %981  ;;  %v985_v19 = vpop.xlane.xlu1 %984 }
 0x5cb   :  { %8058 = vrcp.f32 %v982_v16 }
 0x5cc   :  { %8060 = vrcp.f32 %v985_v19 }
 0x5ce   :  { %v997_v20 = vpop.permute.xlu0 %996  ;;  %v999_v21 = vpop.permute.xlu1 %998 }
 0x5cf   :  { %7303 = vmatprep.subr.bf16.mxu0 %v997_v20  ;;  %v1008_v6 = vsel %vm827_vm2, %v999_v21, 0 }
 0x5d0   :  { %7304 = vmatpush3.bf16.msra.mxu0 %v997_v20 }
 0x5d1   :  { %7696 = vmatprep.subr.msk.bf16.mxu0 %vm827_vm2, %v999_v21  ;;  %v8057_v1 = vpop.eup %8056 }
 0x5d2   :  { %v1197_v58 = vpop.permute.xlu1 %1196  ;;  %v987_v30 = vmul.f32 %v8057_v1, %v8051_v62  ;;  %v1193_v26 = vpop.permute.xlu0 %1192 }
 0x5d3   :  { %7697 = vmatprep.subr.msk.bf16.mxu1 %vm718_vm1, %v1197_v58  ;;  %v1207_v7 = vsel %vm718_vm1, %v1197_v58, 0 }
 0x5d4   :  { %7306 = vmatpush3.bf16.msra.mxu0 %v1008_v6 }
 0x5d5   :  { %v8059_v28 = vpop.eup %8058  ;;  %7319 = vmatprep.subr.bf16.mxu0 %v8842_v59 }
 0x5d6   :  { %v8061_v29 = vpop.eup %8060  ;;  %v989_v31 = vmul.f32 %v8059_v28, %v8053_v9  ;;  %v1439_v56 = vpop.permute.xlu0 %1438  ;;  %v8878_v9 = vrot.slane %v714_v49, 4  ;;  %v8899_v49 = vsel %vm827_vm2, %v1678_v41, %v8891_v15 }
 0x5d7   :  { %v991_v32 = vmul.f32 %v8061_v29, %v8055_v10  ;;  %v1449_v62 = vsel %vm718_vm1, %v1439_v56, 0  ;;  %v1682_v10 = vrot.slane %v8702_v24, 4 }
 0x5d8   :  { %v992_v33 = vpack.c.bf16 %v989_v31, %v987_v30  ;;  %v1695_v23 = vsel %vm718_vm1, %v8878_v9, 0 }
 0x5d9   :  { %v993_v34 = vpack.c.bf16 %v991_v32, %v991_v32  ;;  %v8884_v12 = vsel %vm827_vm2, %v1682_v10, %v8878_v9 }
 0x5da   :  { %7307 = vmatprep.mubr.msk.bf16.mxu0 %vm785_vm6, %v992_v33  ;;  %v1435_v61 = vpop.permute.xlu0 %1434  ;;  %v1692_v24 = vsel %vm718_vm1, %v8884_v12, 0 }
 0x5db   :  { %7308 = vmatmul.mubr.msk.bf16.vlgmr.msra.gmra.mrb[24].mxu0 %vm785_vm6, %v993_v34 }
 0x5dc   :  { %7320 = vmatpush3.bf16.msra.mxu0 %v8842_v59  ;;  %7323 = vmatprep.mubr.msk.bf16.mxu0 %vm718_vm1, %v879_v27  ;;  %v1199_v27 = vpop.permute.xlu1 %1198 }
 0x5dd   :  { %7321 = vmatprep.subr.bf16.mxu0 %v8850_v35  ;;  %v1210_v55 = vsel %vm718_vm1, %v1199_v27, 0 }
 0x5e0   :  { %7322 = vmatpush3.bf16.msra.mxu0 %v8850_v35  ;;  %v1195_v57 = vpop.permute.xlu1 %1194 }
 0x5e3   :  { %7324 = vmatmul.mubr.msk.bf16.vlgmr.msra.gmra.mrb[28].mxu0 %vm718_vm1, %v880_v36 }
 0x5e4   :  { %v1441_v3 = vpop.permute.xlu1 %1440 }
 0x5e5   :  { %v1452_v11 = vsel %vm718_vm1, %v1441_v3, 0 }
 0x5e8   :  { %v1437_v47 = vpop.permute.xlu1 %1436 }
 0x6ae   :  { %v7309_v37 = vpop.f32.mrb[24].mxu0 }
 0x6af   :  { %v1044_v38 = vpop.f32.mrb[25].mxu0  ;;  %v1059_v50 = vpack.c.bf16 %v7309_v37, %v7309_v37 }
 0x6b0   :  { %v7310_v39 = vpop.f32.mrb[26].mxu0 }
 0x6b1   :  { %v1047_v42 = vpop.f32.mrb[27].mxu0 }
 0x6b2   :  { %v1058_v44 = vpack.c.bf16 %v1047_v42, %v1044_v38 }
 0x6b4   :  { %7315 = vmatprep.mubr.msk.bf16.mxu1 %vm718_vm1, %v1058_v44 }
 0x6b5   :  { %7316 = vmatmul.mubr.msk.bf16.vlgmr.msra.gmra.mrb[24].mxu1 %vm718_vm1, %v1059_v50 }
 0x6b6   :  { %7328 = vmatpush3.bf16.xpose.msra.mxu1 %v1207_v7  ;;  %v7325_v51 = vpop.f32.mrb[28].mxu0  ;;  %7331 = vmatprep.mubr.msk.bf16.mxu1 %vm718_vm1, %v1193_v26 }
 0x6b7   :  { %7698 = vmatprep.subr.msk.bf16.mxu1 %vm718_vm1, %v1199_v27  ;;  %v1178_v5 = vpop.f32.mrb[29].mxu0 }
 0x6b8   :  { %v7326_v52 = vpop.f32.mrb[30].mxu0 }
 0x6b9   :  { %v1181_v54 = vpop.f32.mrb[31].mxu0 }
 0x6be   :  { %7330 = vmatpush3.bf16.xpose.msra.mxu1 %v1210_v55 }
 0x6bf   :  { %7700 = vmatprep.subr.msk.bf16.mxu1 %vm718_vm1, %v1439_v56 }
 0x6c5   :  { %7332 = vmatmul.mubr.msk.bf16.vlgmr.msra.gmra.mrb[28].mxu1 %vm718_vm1, %v1195_v57 }
 0x6c6   :  { %7352 = vmatpush3.bf16.xpose.msra.mxu1 %v1449_v62  ;;  %7355 = vmatprep.mubr.msk.bf16.mxu1 %vm718_vm1, %v1435_v61 }
 0x6c7   :  { %7701 = vmatprep.subr.msk.bf16.mxu1 %vm718_vm1, %v1441_v3 }
 0x6ce   :  { %7354 = vmatpush3.bf16.xpose.msra.mxu1 %v1452_v11 }
 0x6cf   :  { %7703 = vmatprep.subr.msk.bf16.mxu1 %vm718_vm1, %v8884_v12 }
 0x6d5   :  { %7356 = vmatmul.mubr.msk.bf16.vlgmr.msra.gmra.mrb[32].mxu1 %vm718_vm1, %v1437_v47 }
 0x6d6   :  { %7376 = vmatpush3.bf16.xpose.msra.mxu1 %v1692_v24  ;;  %7379 = vmatprep.mubr.msk.bf16.mxu1 %vm718_vm1, %v8899_v49 }
 0x6d7   :  { %7704 = vmatprep.subr.msk.bf16.mxu1 %vm718_vm1, %v8878_v9 }
 0x6de   :  { %7378 = vmatpush3.bf16.xpose.msra.mxu1 %v1695_v23 }
 0x6e5   :  { %7380 = vmatmul.mubr.msk.bf16.vlgmr.msra.gmra.mrb[36].mxu1 %vm718_vm1, %v8891_v15 }
 0x788   :  { %v7317_v40 = vpop.f32.mrb[24].mxu1 }
 0x789   :  { %v8909_v46 = vadd.f32 %v7325_v51, %v7317_v40  ;;  %v1112_v48 = vpop.f32.mrb[25].mxu1 }
 0x78a   :  { %v8911_v16 = vadd.f32 %v1178_v5, %v1112_v48  ;;  %v7318_v19 = vpop.f32.mrb[26].mxu1 }
 0x78b   :  { %v1115_v20 = vpop.f32.mrb[27].mxu1 }
 0x78c   :  { %v8913_v21 = vadd.f32 %v1181_v54, %v1115_v20 }
 0x798   :  { %v7333_v58 = vpop.f32.mrb[28].mxu1 }
 0x799   :  { %v1246_v1 = vpop.f32.mrb[29].mxu1  ;;  %v1262_v6 = vmul.f32 0.17677669, %v7333_v58 }
 0x79a   :  { %v1260_v28 = vmul.f32 0.17677669, %v1246_v1  ;;  %v7334_v29 = vpop.f32.mrb[30].mxu1 }
 0x79b   :  { %v1249_v30 = vpop.f32.mrb[31].mxu1  ;;  %v1265_v36 = vadd.f32 %v1262_v6, %v8760_v25 }
 0x79c   :  { %v1261_v31 = vmul.f32 0.17677669, %v1249_v30  ;;  %v1263_v32 = vadd.f32 %v1260_v28, %v8754_v2 }
 0x79d   :  { %v1272_v38 = vsel %vm785_vm6, %v1265_v36, -inf }
 0x79e   :  { %v1266_v33 = vsel %vm785_vm6, %v1263_v32, -inf  ;;  %v1264_v34 = vadd.f32 %v1261_v31, %v8757_v22 }
 0x79f   :  { %1267 = vmax.xlane.f32.xlu0 %v1266_v33 }
 0x7a0   :  { %v1269_v37 = vsel %vm785_vm6, %v1264_v34, -inf }
 0x7a1   :  { %1270 = vmax.xlane.f32.xlu1 %v1269_v37 }
 0x7a3   :  { %1273 = vmax.xlane.f32.xlu0 %v1272_v38 }
 0x7a8   :  { %v7357_v39 = vpop.f32.mrb[32].mxu1 }
 0x7a9   :  { %v1488_v42 = vpop.f32.mrb[33].mxu1  ;;  %v1504_v19 = vmul.f32 0.17677669, %v7357_v39 }
 0x7aa   :  { %v7358_v44 = vpop.f32.mrb[34].mxu1  ;;  %v1502_v40 = vmul.f32 0.17677669, %v1488_v42 }
 0x7ab   :  { %v1491_v50 = vpop.f32.mrb[35].mxu1  ;;  %v1507_v28 = vadd.f32 %v1504_v19, %v8760_v25  ;;  %v8957_v19 = vld [vmem:[%s10545_s7 + $0x28] sm:$0xff]  }
 0x7ac   :  { %v1503_v48 = vmul.f32 0.17677669, %v1491_v50  ;;  %v1505_v20 = vadd.f32 %v1502_v40, %v8754_v2 }
 0x7ad   :  { %v1514_v29 = vsel %vm785_vm6, %v1507_v28, -inf }
 0x7ae   :  { %v1506_v58 = vadd.f32 %v1503_v48, %v8757_v22  ;;  %v1508_v1 = vsel %vm785_vm6, %v1505_v20, -inf }
 0x7b0   :  { %v1511_v6 = vsel %vm785_vm6, %v1506_v58, -inf }
 0x7b8   :  { %v8921_v26 = vpop.f32.mrb[36].mxu1 }
 0x7b9   :  { %v8923_v7 = vpop.f32.mrb[37].mxu1 }
 0x7ba   :  { %v7382_v27 = vpop.f32.mrb[38].mxu1 }
 0x7bb   :  { %v8925_v51 = vpop.f32.mrb[39].mxu1 }
 0x82c   :  { %v1268_v5 = vpop.xlane.xlu0 %1267 }
 0x82d   :  { %v1275_v52 = vsub.f32 %v1263_v32, %v1268_v5 }
 0x82e   :  { %v1271_v54 = vpop.xlane.xlu1 %1270 }
 0x82f   :  { %v1278_v55 = vmul.f32 1.442695, %v1275_v52  ;;  %v1276_v56 = vsub.f32 %v1264_v34, %v1271_v54 }
 0x830   :  { %v1274_v57 = vpop.xlane.xlu0 %1273 }
 0x831   :  { %8062 = vpow2.f32 %v1278_v55  ;;  %v1280_v61 = vmul.f32 1.442695, %v1276_v56  ;;  %v1277_v62 = vsub.f32 %v1265_v36, %v1274_v57  ;;  %v8944_v36 = vld [vmem:[%s10545_s7 + $0x20] sm:$0xff]  }
 0x833   :  { %8064 = vpow2.f32 %v1280_v61  ;;  %v1282_v3 = vmul.f32 1.442695, %v1277_v62 }
 0x835   :  { %8066 = vpow2.f32 %v1282_v3 }
 0x83b   :  { %v8063_v10 = vpop.eup %8062 }
 0x83c   :  { %v1284_v11 = vsel %vm785_vm6, %v8063_v10, 0.0 }
 0x83d   :  { %v8065_v41 = vpop.eup %8064  ;;  %1285 = vadd.xlane.f32.xlu0 %v1284_v11 }
 0x83e   :  { %v1287_v23 = vsel %vm785_vm6, %v8065_v41, 0.0 }
 0x83f   :  { %v8067_v47 = vpop.eup %8066 }
 0x840   :  { %v1290_v24 = vsel %vm785_vm6, %v8067_v47, 0.0 }
 0x841   :  { %1291 = vadd.xlane.f32.xlu1 %v1290_v24  ;;  %1288 = vadd.xlane.f32.xlu0 %v1287_v23 }
 0x852   :  { %1303 = vrot.lane.b32.xlu1 %v8732_v60, %s8397_s14 }
 0x857   :  { %1301 = vrot.lane.b32.xlu0 %v8728_v53, %s8397_s14 }
 0x876   :  { %1509 = vmax.xlane.f32.xlu1 %v1508_v1  ;;  %1512 = vmax.xlane.f32.xlu0 %v1511_v6  ;;  %v1747_v6 = vmul.f32 0.17677669, %v8921_v26 }
 0x87a   :  { %1515 = vmax.xlane.f32.xlu0 %v1514_v29 }
 0x8ca   :  { %v1286_v30 = vpop.xlane.xlu0 %1285 }
 0x8cb   :  { %8068 = vrcp.f32 %v1286_v30 }
 0x8ce   :  { %v1289_v31 = vpop.xlane.xlu0 %1288  ;;  %v1292_v32 = vpop.xlane.xlu1 %1291 }
 0x8cf   :  { %8070 = vrcp.f32 %v1289_v31 }
 0x8d0   :  { %8072 = vrcp.f32 %v1292_v32 }
 0x8d2   :  { %v1302_v33 = vpop.permute.xlu0 %1301  ;;  %v1304_v34 = vpop.permute.xlu1 %1303 }
 0x8d3   :  { %7335 = vmatprep.subr.bf16.mxu0 %v1302_v33  ;;  %v1313_v38 = vsel %vm827_vm2, %v1304_v34, 0 }
 0x8d4   :  { %7336 = vmatpush3.bf16.msra.mxu0 %v1302_v33 }
 0x8d5   :  { %7699 = vmatprep.subr.msk.bf16.mxu0 %vm827_vm2, %v1304_v34  ;;  %v8069_v37 = vpop.eup %8068 }
 0x8d6   :  { %v1294_v44 = vmul.f32 %v8069_v37, %v8063_v10 }
 0x8d8   :  { %7338 = vmatpush3.bf16.msra.mxu0 %v1313_v38 }
 0x8d9   :  { %v8071_v39 = vpop.eup %8070  ;;  %7343 = vmatprep.subr.bf16.mxu0 %v8944_v36 }
 0x8da   :  { %v8073_v42 = vpop.eup %8072  ;;  %v1296_v50 = vmul.f32 %v8071_v39, %v8065_v41 }
 0x8db   :  { %v1298_v27 = vmul.f32 %v8073_v42, %v8067_v47 }
 0x8dc   :  { %v1299_v5 = vpack.c.bf16 %v1296_v50, %v1294_v44 }
 0x8dd   :  { %v1300_v52 = vpack.c.bf16 %v1298_v27, %v1298_v27 }
 0x8de   :  { %7339 = vmatprep.mubr.msk.bf16.mxu0 %vm785_vm6, %v1299_v5 }
 0x8df   :  { %7340 = vmatmul.mubr.msk.bf16.vlgmr.msra.gmra.mrb[32].mxu0 %vm785_vm6, %v1300_v52 }
 0x8e0   :  { %7344 = vmatpush3.bf16.msra.mxu0 %v8944_v36 }
 0x8e1   :  { %7345 = vmatprep.subr.bf16.mxu0 %v8957_v19 }
 0x8e4   :  { %7346 = vmatpush3.bf16.msra.mxu0 %v8957_v19 }
 0x903   :  { %v1513_v54 = vpop.xlane.xlu0 %1512  ;;  %v1510_v55 = vpop.xlane.xlu1 %1509 }
 0x904   :  { %v1518_v56 = vsub.f32 %v1506_v58, %v1513_v54  ;;  %v1517_v61 = vsub.f32 %v1505_v20, %v1510_v55  ;;  %v6529_v20 = vld [vmem:[%s10544_s1 + $0x1] ss:$0 sm:$0xff]  ;;  %v1746_v58 = vmul.f32 0.17677669, %v8925_v51 }
 0x905   :  { %v8970_v1 = vadd.f32 %v6529_v20, %v8749_v0  ;;  %v8975_v29 = vadd.f32 %v6529_v20, %v8751_v18  ;;  %v8981_v32 = vadd.f32 %v6529_v20, %v8747_v17 }
 0x906   :  { %v1522_v57 = vmul.f32 1.442695, %v1518_v56  ;;  %v1520_v11 = vmul.f32 1.442695, %v1517_v61 }
 0x907   :  { %v1516_v62 = vpop.xlane.xlu0 %1515  ;;  %v1750_v31 = vadd.f32 %v1747_v6, %v8975_v29 }
 0x908   :  { %8074 = vpow2.f32 %v1522_v57  ;;  %v1519_v3 = vsub.f32 %v1507_v28, %v1516_v62  ;;  %v1749_v28 = vadd.f32 %v1746_v58, %v8970_v1  ;;  %v8993_v57 = vld [vmem:[%s10545_s7 + $0x30] sm:$0xff]  }
 0x909   :  { %v1757_v0 = vsel %vm785_vm6, %v1750_v31, -inf }
 0x90a   :  { %v1524_v10 = vmul.f32 1.442695, %v1519_v3  ;;  %v1754_v30 = vsel %vm785_vm6, %v1749_v28, -inf }
 0x90c   :  { %8076 = vpow2.f32 %v1524_v10  ;;  %v9006_v10 = vrot.slane %v717_v8, 4 }
 0x90d   :  { %8078 = vpow2.f32 %v1520_v11  ;;  %v9000_v11 = vld [vmem:[%s10545_s7 + $0x38] sm:$0xff]  }
 0x912   :  { %v8075_v41 = vpop.eup %8074 }
 0x913   :  { %v1529_v47 = vsel %vm785_vm6, %v8075_v41, 0.0 }
 0x914   :  { %1530 = vadd.xlane.f32.xlu0 %v1529_v47 }
 0x916   :  { %v8077_v24 = vpop.eup %8076 }
 0x917   :  { %v1532_v23 = vsel %vm785_vm6, %v8077_v24, 0.0  ;;  %v8079_v40 = vpop.eup %8078 }
 0x918   :  { %1533 = vadd.xlane.f32.xlu1 %v1532_v23  ;;  %v1526_v48 = vsel %vm785_vm6, %v8079_v40, 0.0 }
 0x91c   :  { %1527 = vadd.xlane.f32.xlu1 %v1526_v48 }
 0x92a   :  { %1543 = vrot.lane.b32.xlu0 %v8728_v53, %s8398_s15  ;;  %v1745_v53 = vmul.f32 0.17677669, %v8923_v7 }
 0x92c   :  { %v1748_v51 = vadd.f32 %v1745_v53, %v8981_v32 }
 0x92d   :  { %1545 = vrot.lane.b32.xlu1 %v8732_v60, %s8398_s15 }
 0x92e   :  { %v1751_v26 = vsel %vm785_vm6, %v1748_v51, -inf }
 0x949   :  { %1755 = vmax.xlane.f32.xlu0 %v1754_v30 }
 0x94d   :  { %1758 = vmax.xlane.f32.xlu0 %v1757_v0 }
 0x951   :  { %1752 = vmax.xlane.f32.xlu1 %v1751_v26 }
 0x9a1   :  { %v1531_v18 = vpop.xlane.xlu0 %1530 }
 0x9a2   :  { %8080 = vrcp.f32 %v1531_v18 }
 0x9a5   :  { %v1544_v33 = vpop.permute.xlu0 %1543  ;;  %v1534_v34 = vpop.xlane.xlu1 %1533 }
 0x9a6   :  { %7359 = vmatprep.subr.bf16.mxu0 %v1544_v33 }
 0x9a9   :  { %v1528_v7 = vpop.xlane.xlu1 %1527 }
 0x9aa   :  { %8082 = vrcp.f32 %v1528_v7 }
 0x9ab   :  { %8084 = vrcp.f32 %v1534_v34 }
 0x9ac   :  { %v8081_v37 = vpop.eup %8080 }
 0x9ad   :  { %v1538_v27 = vmul.f32 %v8081_v37, %v8075_v41  ;;  %v1546_v56 = vpop.permute.xlu1 %1545  ;;  %v1787_v41 = vrot.slane %v8732_v60, 4 }
 0x9ae   :  { %v1555_v62 = vsel %vm827_vm2, %v1546_v56, 0 }
 0x9af   :  { %v9014_v47 = vsel %vm827_vm2, %v1787_v41, %v9006_v10 }
 0x9b2   :  { %v7341_v17 = vpop.f32.mrb[32].mxu0 }
 0x9b3   :  { %v1349_v38 = vpop.f32.mrb[33].mxu0  ;;  %v1364_v52 = vpack.c.bf16 %v7341_v17, %v7341_v17 }
 0x9b4   :  { %v8083_v39 = vpop.eup %8082  ;;  %v7342_v42 = vpop.f32.mrb[34].mxu0 }
 0x9b5   :  { %v1352_v44 = vpop.f32.mrb[35].mxu0  ;;  %v1536_v50 = vmul.f32 %v8083_v39, %v8079_v40  ;;  %v8085_v55 = vpop.eup %8084 }
 0x9b6   :  { %v1363_v5 = vpack.c.bf16 %v1352_v44, %v1349_v38  ;;  %v1540_v61 = vmul.f32 %v8085_v55, %v8077_v24 }
 0x9b7   :  { %v1541_v54 = vpack.c.bf16 %v1538_v27, %v1536_v50 }
 0x9b8   :  { %7347 = vmatprep.mubr.msk.bf16.mxu0 %vm718_vm1, %v1363_v5  ;;  %v1542_v3 = vpack.c.bf16 %v1540_v61, %v1540_v61 }
 0x9b9   :  { %7348 = vmatmul.mubr.msk.bf16.vlgmr.msra.gmra.mrb[36].mxu0 %vm718_vm1, %v1364_v52 }
 0x9ba   :  { %7360 = vmatpush3.bf16.msra.mxu0 %v1544_v33  ;;  %7363 = vmatprep.mubr.msk.bf16.mxu0 %vm785_vm6, %v1541_v54 }
 0x9bb   :  { %7702 = vmatprep.subr.msk.bf16.mxu0 %vm827_vm2, %v1546_v56 }
 0x9be   :  { %7362 = vmatpush3.bf16.msra.mxu0 %v1555_v62  ;;  %v1798_v62 = vsel %vm827_vm2, %v9006_v10, 0 }
 0x9bf   :  { %7367 = vmatprep.subr.bf16.mxu0 %v8993_v57 }
 0x9c1   :  { %7364 = vmatmul.mubr.msk.bf16.vlgmr.msra.gmra.mrb[40].mxu0 %vm785_vm6, %v1542_v3 }
 0x9c2   :  { %7368 = vmatpush3.bf16.msra.mxu0 %v8993_v57 }
 0x9c3   :  { %7369 = vmatprep.subr.bf16.mxu0 %v9000_v11 }
 0x9c6   :  { %7370 = vmatpush3.bf16.msra.mxu0 %v9000_v11 }
 0x9c7   :  { %7383 = vmatprep.subr.bf16.mxu0 %v9014_v47 }
 0x9d6   :  { %v1756_v24 = vpop.xlane.xlu0 %1755 }
 0x9d7   :  { %v1761_v23 = vsub.f32 %v1749_v28, %v1756_v24 }
 0x9d9   :  { %v1765_v40 = vmul.f32 1.442695, %v1761_v23 }
 0x9da   :  { %v1759_v63 = vpop.xlane.xlu0 %1758 }
 0x9db   :  { %8086 = vpow2.f32 %v1765_v40  ;;  %v1762_v4 = vsub.f32 %v1750_v31, %v1759_v63 }
 0x9dd   :  { %v1767_v20 = vmul.f32 1.442695, %v1762_v4 }
 0x9de   :  { %v1753_v8 = vpop.xlane.xlu1 %1752 }
 0x9df   :  { %v1760_v48 = vsub.f32 %v1748_v51, %v1753_v8 }
 0x9e1   :  { %v1763_v58 = vmul.f32 1.442695, %v1760_v48 }
 0x9e3   :  { %8088 = vpow2.f32 %v1763_v58 }
 0x9e4   :  { %8090 = vpow2.f32 %v1767_v20 }
 0x9e5   :  { %v8087_v60 = vpop.eup %8086 }
 0x9e6   :  { %v1772_v6 = vsel %vm785_vm6, %v8087_v60, 0.0 }
 0x9e7   :  { %1773 = vadd.xlane.f32.xlu0 %v1772_v6 }
 0x9ed   :  { %v8089_v53 = vpop.eup %8088 }
 0x9ee   :  { %v1769_v30 = vsel %vm785_vm6, %v8089_v53, 0.0  ;;  %v8091_v0 = vpop.eup %8090 }
 0x9ef   :  { %1770 = vadd.xlane.f32.xlu1 %v1769_v30  ;;  %v1775_v28 = vsel %vm785_vm6, %v8091_v0, 0.0 }
 0x9f3   :  { %1776 = vadd.xlane.f32.xlu1 %v1775_v28 }
 0x9fd   :  { %1854 = vrot.lane.b32.xlu0 %v8884_v12, %s8396_s26 }
 0xa04   :  { %1856 = vrot.lane.b32.xlu1 %v8878_v9, %s8396_s26 }
 0xa08   :  { %1850 = vrot.lane.b32.xlu1 %v8899_v49, %s8396_s26 }
 0xa0c   :  { %1852 = vrot.lane.b32.xlu1 %v8891_v15, %s8396_s26 }
 0xa74   :  { %v1774_v51 = vpop.xlane.xlu0 %1773 }
 0xa78   :  { %v1855_v3 = vpop.permute.xlu0 %1854 }
 0xa79   :  { %v1865_v23 = vsel %vm718_vm1, %v1855_v3, 0 }
 0xa7c   :  { %v1771_v31 = vpop.xlane.xlu1 %1770 }
 0xa7d   :  { %8092 = vrcp.f32 %v1771_v31 }
 0xa7e   :  { %8094 = vrcp.f32 %v1774_v51 }
 0xa80   :  { %v1777_v18 = vpop.xlane.xlu1 %1776 }
 0xa81   :  { %8096 = vrcp.f32 %v1777_v18 }
 0xa87   :  { %v8093_v39 = vpop.eup %8092 }
 0xa88   :  { %v8095_v44 = vpop.eup %8094  ;;  %v1779_v5 = vmul.f32 %v8093_v39, %v8089_v53 }
 0xa89   :  { %v1781_v55 = vmul.f32 %v8095_v44, %v8087_v60 }
 0xa8b   :  { %v8097_v61 = vpop.eup %8096 }
 0xa8c   :  { %v7349_v26 = vpop.f32.mrb[36].mxu0 }
 0xa8d   :  { %v1433_v33 = vadd.f32 %v7349_v26, %v8909_v46  ;;  %v1417_v34 = vpop.f32.mrb[37].mxu0  ;;  %v1784_v46 = vpack.c.bf16 %v1781_v55, %v1779_v5 }
 0xa8e   :  { %v1431_v7 = vadd.f32 %v1417_v34, %v8911_v16  ;;  %v7350_v37 = vpop.f32.mrb[38].mxu0  ;;  %v1857_v16 = vpop.permute.xlu1 %1856 }
 0xa8f   :  { %v1420_v17 = vpop.f32.mrb[39].mxu0  ;;  %v1868_v40 = vsel %vm718_vm1, %v1857_v16, 0 }
 0xa90   :  { %v1432_v38 = vadd.f32 %v1420_v17, %v8913_v21  ;;  %v1783_v21 = vmul.f32 %v8097_v61, %v8091_v0 }
 0xa92   :  { %v1785_v41 = vpack.c.bf16 %v1783_v21, %v1783_v21  ;;  %v1851_v24 = vpop.permute.xlu1 %1850 }
 0xa94   :  { %v7365_v42 = vpop.f32.mrb[40].mxu0 }
 0xa95   :  { %v1591_v50 = vpop.f32.mrb[41].mxu0  ;;  %v1606_v56 = vpack.c.bf16 %v7365_v42, %v7365_v42 }
 0xa96   :  { %v7366_v27 = vpop.f32.mrb[42].mxu0  ;;  %v1853_v63 = vpop.permute.xlu1 %1852 }
 0xa97   :  { %v1594_v52 = vpop.f32.mrb[43].mxu0 }
 0xa98   :  { %v1605_v54 = vpack.c.bf16 %v1594_v52, %v1591_v50 }
 0xa9a   :  { %7371 = vmatprep.mubr.msk.bf16.mxu0 %vm718_vm1, %v1605_v54 }
 0xa9b   :  { %7372 = vmatmul.mubr.msk.bf16.vlgmr.msra.gmra.mrb[44].mxu0 %vm718_vm1, %v1606_v56 }
 0xa9c   :  { %7384 = vmatpush3.bf16.msra.mxu0 %v9014_v47  ;;  %7387 = vmatprep.mubr.msk.bf16.mxu0 %vm785_vm6, %v1784_v46 }
 0xa9d   :  { %7705 = vmatprep.subr.msk.bf16.mxu0 %vm827_vm2, %v9006_v10 }
 0xaa0   :  { %7386 = vmatpush3.bf16.msra.mxu0 %v1798_v62 }
 0xaa1   :  { %7706 = vmatprep.subr.msk.bf16.mxu0 %vm718_vm1, %v1855_v3 }
 0xaa3   :  { %7388 = vmatmul.mubr.msk.bf16.vlgmr.msra.gmra.mrb[48].mxu0 %vm785_vm6, %v1785_v41 }
 0xaa4   :  { %7395 = vmatprep.mubr.msk.bf16.mxu0 %vm718_vm1, %v1851_v24 }
 0xaa9   :  { %7392 = vmatpush3.bf16.xpose.msra.mxu0 %v1865_v23 }
 0xaaa   :  { %7707 = vmatprep.subr.msk.bf16.mxu0 %vm718_vm1, %v1857_v16 }
 0xab1   :  { %7394 = vmatpush3.bf16.xpose.msra.mxu0 %v1868_v40 }
 0xab2   :  { %7415 = vmatprep.subr.bf16.mxu0 %v8842_v59 }
 0xab8   :  { %7396 = vmatmul.mubr.msk.bf16.vlgmr.msra.gmra.mrb[52].mxu0 %vm718_vm1, %v1853_v63 }
 0xab9   :  { %7416 = vmatpush3.bf16.msra.mxu0 %v8842_v59 }
 0xaba   :  { %7417 = vmatprep.subr.bf16.mxu0 %v8850_v35 }
 0xabd   :  { %7418 = vmatpush3.bf16.msra.mxu0 %v8850_v35 }
 0xb6e   :  { %v7373_v4 = vpop.f32.mrb[44].mxu0 }
 0xb6f   :  { %v9050_v8 = vadd.f32 %v7373_v4, %v1433_v33  ;;  %v1659_v48 = vpop.f32.mrb[45].mxu0 }
 0xb70   :  { %v9052_v20 = vadd.f32 %v1659_v48, %v1431_v7  ;;  %v7374_v58 = vpop.f32.mrb[46].mxu0 }
 0xb71   :  { %v1662_v60 = vpop.f32.mrb[47].mxu0 }
 0xb72   :  { %v9054_v6 = vadd.f32 %v1662_v60, %v1432_v38 }
 0xb76   :  { %v7389_v53 = vpop.f32.mrb[48].mxu0 }
 0xb77   :  { %v1834_v30 = vpop.f32.mrb[49].mxu0  ;;  %v1849_v59 = vpack.c.bf16 %v7389_v53, %v7389_v53 }
 0xb78   :  { %v7390_v0 = vpop.f32.mrb[50].mxu0 }
 0xb79   :  { %v1837_v28 = vpop.f32.mrb[51].mxu0 }
 0xb7a   :  { %v1848_v31 = vpack.c.bf16 %v1837_v28, %v1834_v30 }
 0xb7c   :  { %7419 = vmatprep.mubr.msk.bf16.mxu0 %vm718_vm1, %v1848_v31 }
 0xb7d   :  { %7420 = vmatmul.mubr.msk.bf16.vlgmr.msra.gmra.mrb[56].mxu0 %vm718_vm1, %v1849_v59 }
 0xb8b   :  { %v7397_v35 = vpop.f32.mrb[52].mxu0 }
 0xb8c   :  { %v1904_v51 = vpop.f32.mrb[53].mxu0  ;;  %v1920_v26 = vmul.f32 0.17677669, %v7397_v35 }
 0xb8d   :  { %v1918_v18 = vmul.f32 0.17677669, %v1904_v51  ;;  %v7398_v33 = vpop.f32.mrb[54].mxu0 }
 0xb8e   :  { %v1907_v34 = vpop.f32.mrb[55].mxu0  ;;  %v1923_v39 = vadd.f32 %v1920_v26, %v8975_v29 }
 0xb8f   :  { %v1919_v7 = vmul.f32 0.17677669, %v1907_v34  ;;  %v1921_v37 = vadd.f32 %v1918_v18, %v8981_v32 }
 0xb90   :  { %v1930_v44 = vsel %vm785_vm6, %v1923_v39, -inf }
 0xb91   :  { %v1924_v17 = vsel %vm785_vm6, %v1921_v37, -inf  ;;  %v1922_v38 = vadd.f32 %v1919_v7, %v8970_v1 }
 0xb92   :  { %1925 = vmax.xlane.f32.xlu0 %v1924_v17 }
 0xb93   :  { %v1927_v42 = vsel %vm785_vm6, %v1922_v38, -inf }
 0xb94   :  { %1928 = vmax.xlane.f32.xlu1 %v1927_v42 }
 0xb96   :  { %1931 = vmax.xlane.f32.xlu0 %v1930_v44 }
 0xc1f   :  { %v1926_v50 = vpop.xlane.xlu0 %1925 }
 0xc20   :  { %v1933_v27 = vsub.f32 %v1921_v37, %v1926_v50 }
 0xc21   :  { %v1929_v5 = vpop.xlane.xlu1 %1928 }
 0xc22   :  { %v1936_v52 = vmul.f32 1.442695, %v1933_v27  ;;  %v1934_v54 = vsub.f32 %v1922_v38, %v1929_v5 }
 0xc23   :  { %v1932_v55 = vpop.xlane.xlu0 %1931 }
 0xc24   :  { %8098 = vpow2.f32 %v1936_v52  ;;  %v1938_v56 = vmul.f32 1.442695, %v1934_v54  ;;  %v1935_v61 = vsub.f32 %v1923_v39, %v1932_v55 }
 0xc26   :  { %8100 = vpow2.f32 %v1938_v56  ;;  %v1940_v46 = vmul.f32 1.442695, %v1935_v61 }
 0xc28   :  { %8102 = vpow2.f32 %v1940_v46 }
 0xc2e   :  { %v8099_v16 = vpop.eup %8098 }
 0xc2f   :  { %v1942_v21 = vsel %vm785_vm6, %v8099_v16, 0.0 }
 0xc30   :  { %v8101_v62 = vpop.eup %8100  ;;  %1943 = vadd.xlane.f32.xlu0 %v1942_v21 }
 0xc31   :  { %v1945_v24 = vsel %vm785_vm6, %v8101_v62, 0.0 }
 0xc32   :  { %v8103_v3 = vpop.eup %8102 }
 0xc33   :  { %v1948_v41 = vsel %vm785_vm6, %v8103_v3, 0.0 }
 0xc34   :  { %1949 = vadd.xlane.f32.xlu1 %v1948_v41  ;;  %1946 = vadd.xlane.f32.xlu0 %v1945_v24 }
 0xc45   :  { %1961 = vrot.lane.b32.xlu1 %v9006_v10, %s8396_s26 }
 0xc49   :  { %2135 = vrot.lane.b32.xlu1 %v8884_v12, %s8397_s14 }
 0xc4a   :  { %1959 = vrot.lane.b32.xlu0 %v9014_v47, %s8396_s26 }
 0xc4d   :  { %2137 = vrot.lane.b32.xlu1 %v8878_v9, %s8397_s14 }
 0xc4e   :  { %2131 = vrot.lane.b32.xlu0 %v8899_v49, %s8397_s14 }
 0xc50   :  { %v9077_v23 = vpop.f32.mrb[56].mxu0 }
 0xc51   :  { %2133 = vrot.lane.b32.xlu1 %v8891_v15, %s8397_s14  ;;  %v9081_v40 = vpop.f32.mrb[57].mxu0 }
 0xc52   :  { %2365 = vrot.lane.b32.xlu0 %v8884_v12, %s8398_s15  ;;  %v7422_v63 = vpop.f32.mrb[58].mxu0 }
 0xc53   :  { %v9085_v4 = vpop.f32.mrb[59].mxu0 }
 0xc55   :  { %2367 = vrot.lane.b32.xlu1 %v8878_v9, %s8398_s15 }
 0xc56   :  { %2361 = vrot.lane.b32.xlu0 %v8899_v49, %s8398_s15 }
 0xc59   :  { %2363 = vrot.lane.b32.xlu1 %v8891_v15, %s8398_s15 }
 0xcbd   :  { %v1944_v48 = vpop.xlane.xlu0 %1943 }
 0xcbe   :  { %8104 = vrcp.f32 %v1944_v48 }
 0xcc1   :  { %v1947_v58 = vpop.xlane.xlu0 %1946  ;;  %v1950_v60 = vpop.xlane.xlu1 %1949 }
 0xcc2   :  { %8106 = vrcp.f32 %v1947_v58 }
 0xcc3   :  { %8108 = vrcp.f32 %v1950_v60 }
 0xcc5   :  { %v1960_v53 = vpop.permute.xlu0 %1959  ;;  %v1962_v12 = vpop.permute.xlu1 %1961 }
 0xcc6   :  { %7399 = vmatprep.subr.bf16.mxu1 %v1960_v53  ;;  %v1971_v9 = vsel %vm827_vm2, %v1962_v12, 0 }
 0xcc7   :  { %7400 = vmatpush3.bf16.msra.mxu1 %v1960_v53 }
 0xcc8   :  { %7708 = vmatprep.subr.msk.bf16.mxu1 %vm827_vm2, %v1962_v12  ;;  %v8105_v30 = vpop.eup %8104 }
 0xcc9   :  { %v1952_v0 = vmul.f32 %v8105_v30, %v8099_v16  ;;  %v2136_v51 = vpop.permute.xlu1 %2135  ;;  %v2132_v17 = vpop.permute.xlu0 %2131 }
 0xccb   :  { %7402 = vmatpush3.bf16.msra.mxu1 %v1971_v9 }
 0xccc   :  { %v8107_v49 = vpop.eup %8106  ;;  %7407 = vmatprep.subr.bf16.mxu1 %v8807_v13 }
 0xccd   :  { %v8109_v15 = vpop.eup %8108  ;;  %v1954_v28 = vmul.f32 %v8107_v49, %v8101_v62  ;;  %v2138_v38 = vpop.permute.xlu1 %2137 }
 0xcce   :  { %v1956_v31 = vmul.f32 %v8109_v15, %v8103_v3  ;;  %v2366_v39 = vpop.permute.xlu0 %2365 }
 0xccf   :  { %v1957_v59 = vpack.c.bf16 %v1954_v28, %v1952_v0  ;;  %v2376_v50 = vsel %vm718_vm1, %v2366_v39, 0 }
 0xcd0   :  { %v1958_v35 = vpack.c.bf16 %v1956_v31, %v1956_v31 }
 0xcd1   :  { %7403 = vmatprep.mubr.msk.bf16.mxu1 %vm785_vm6, %v1957_v59  ;;  %v2134_v42 = vpop.permute.xlu1 %2133 }
 0xcd2   :  { %7404 = vmatmul.mubr.msk.bf16.vlgmr.msra.gmra.mrb[40].mxu1 %vm785_vm6, %v1958_v35  ;;  %v2362_v44 = vpop.permute.xlu0 %2361 }
 0xcd3   :  { %7408 = vmatpush3.bf16.msra.mxu1 %v8807_v13  ;;  %v2146_v13 = vsel %vm718_vm1, %v2136_v51, 0 }
 0xcd4   :  { %7409 = vmatprep.subr.bf16.mxu1 %v8816_v14 }
 0xcd5   :  { %v2368_v27 = vpop.permute.xlu1 %2367 }
 0xcd6   :  { %v2379_v5 = vsel %vm718_vm1, %v2368_v27, 0 }
 0xcd7   :  { %7410 = vmatpush3.bf16.msra.mxu1 %v8816_v14  ;;  %v2149_v14 = vsel %vm718_vm1, %v2138_v38, 0 }
 0xcd8   :  { %7709 = vmatprep.subr.msk.bf16.mxu1 %vm718_vm1, %v2136_v51 }
 0xcd9   :  { %v2364_v52 = vpop.permute.xlu1 %2363 }
 0xda5   :  { %v7405_v26 = vpop.f32.mrb[40].mxu1 }
 0xda6   :  { %v2007_v18 = vpop.f32.mrb[41].mxu1  ;;  %v2022_v37 = vpack.c.bf16 %v7405_v26, %v7405_v26 }
 0xda7   :  { %v7406_v33 = vpop.f32.mrb[42].mxu1 }
 0xda8   :  { %v2010_v34 = vpop.f32.mrb[43].mxu1 }
 0xda9   :  { %v2021_v7 = vpack.c.bf16 %v2010_v34, %v2007_v18 }
 0xdab   :  { %7411 = vmatprep.mubr.msk.bf16.mxu1 %vm718_vm1, %v2021_v7 }
 0xdac   :  { %7412 = vmatmul.mubr.msk.bf16.vlgmr.msra.gmra.mrb[44].mxu1 %vm718_vm1, %v2022_v37 }
 0xdad   :  { %7424 = vmatpush3.bf16.xpose.msra.mxu1 %v2146_v13  ;;  %7427 = vmatprep.mubr.msk.bf16.mxu1 %vm718_vm1, %v2132_v17 }
 0xdae   :  { %7710 = vmatprep.subr.msk.bf16.mxu1 %vm718_vm1, %v2138_v38 }
 0xdb5   :  { %7426 = vmatpush3.bf16.xpose.msra.mxu1 %v2149_v14 }
 0xdb6   :  { %7712 = vmatprep.subr.msk.bf16.mxu1 %vm718_vm1, %v2366_v39 }
 0xdbc   :  { %7428 = vmatmul.mubr.msk.bf16.vlgmr.msra.gmra.mrb[48].mxu1 %vm718_vm1, %v2134_v42 }
 0xdbd   :  { %7448 = vmatpush3.bf16.xpose.msra.mxu1 %v2376_v50  ;;  %7451 = vmatprep.mubr.msk.bf16.mxu1 %vm718_vm1, %v2362_v44 }
 0xdbe   :  { %7713 = vmatprep.subr.msk.bf16.mxu1 %vm718_vm1, %v2368_v27 }
 0xdc5   :  { %7450 = vmatpush3.bf16.xpose.msra.mxu1 %v2379_v5 }
 0xdcc   :  { %7452 = vmatmul.mubr.msk.bf16.vlgmr.msra.gmra.mrb[52].mxu1 %vm718_vm1, %v2364_v52 }
 0xdcd   :  { %2846 = vmatprep.mubr.bf16.mxu1 %v8392_v43 }
 0xe7f   :  { %v7413_v54 = vpop.f32.mrb[44].mxu1 }
 0xe80   :  { %v9117_v55 = vadd.f32 %v9077_v23, %v7413_v54  ;;  %v2063_v56 = vpop.f32.mrb[45].mxu1 }
 0xe81   :  { %v9120_v61 = vadd.f32 %v9081_v40, %v2063_v56  ;;  %v7414_v46 = vpop.f32.mrb[46].mxu1 }
 0xe82   :  { %v2066_v16 = vpop.f32.mrb[47].mxu1 }
 0xe83   :  { %v9123_v21 = vadd.f32 %v9085_v4, %v2066_v16 }
 0xe8f   :  { %v7429_v62 = vpop.f32.mrb[48].mxu1 }
 0xe90   :  { %v2185_v3 = vpop.f32.mrb[49].mxu1  ;;  %v2201_v41 = vmul.f32 0.17677669, %v7429_v62 }
 0xe91   :  { %v2199_v24 = vmul.f32 0.17677669, %v2185_v3  ;;  %v7430_v63 = vpop.f32.mrb[50].mxu1 }
 0xe92   :  { %v2188_v48 = vpop.f32.mrb[51].mxu1  ;;  %v2204_v40 = vadd.f32 %v2201_v41, %v8975_v29 }
 0xe93   :  { %v2200_v58 = vmul.f32 0.17677669, %v2188_v48  ;;  %v2202_v60 = vadd.f32 %v2199_v24, %v8981_v32 }
 0xe94   :  { %v2211_v4 = vsel %vm785_vm6, %v2204_v40, -inf }
 0xe95   :  { %v2205_v23 = vsel %vm785_vm6, %v2202_v60, -inf  ;;  %v2203_v53 = vadd.f32 %v2200_v58, %v8970_v1 }
 0xe96   :  { %2206 = vmax.xlane.f32.xlu0 %v2205_v23 }
 0xe97   :  { %v2208_v12 = vsel %vm785_vm6, %v2203_v53, -inf }
 0xe98   :  { %2209 = vmax.xlane.f32.xlu1 %v2208_v12 }
 0xe9a   :  { %2212 = vmax.xlane.f32.xlu0 %v2211_v4 }
 0xe9f   :  { %v7453_v30 = vpop.f32.mrb[52].mxu1 }
 0xea0   :  { %v2415_v9 = vpop.f32.mrb[53].mxu1  ;;  %v2431_v42 = vmul.f32 0.17677669, %v7453_v30 }
 0xea1   :  { %v7454_v49 = vpop.f32.mrb[54].mxu1  ;;  %v2429_v14 = vmul.f32 0.17677669, %v2415_v9 }
 0xea2   :  { %v2418_v15 = vpop.f32.mrb[55].mxu1  ;;  %v2434_v52 = vadd.f32 %v2431_v42, %v8975_v29  ;;  %v7821_v42 = vld [vmem:[%s10546_s8 + $0x64] ss:$16 sps:$4 sm:$0xff]  }
 0xea3   :  { %v2430_v39 = vmul.f32 0.17677669, %v2418_v15  ;;  %v2432_v44 = vadd.f32 %v2429_v14, %v8981_v32  ;;  %v7813_v14 = vld [vmem:[%s10546_s8 + $0x20] ss:$16 sps:$4 sm:$0xff]  }
 0xea4   :  { %v2441_v54 = vsel %vm785_vm6, %v2434_v52, -inf }
 0xea5   :  { %v2433_v50 = vadd.f32 %v2430_v39, %v8970_v1  ;;  %v2435_v27 = vsel %vm785_vm6, %v2432_v44, -inf  ;;  %v7816_v39 = vld [vmem:[%s10546_s8 + $0x40] ss:$16 sps:$4 sm:$0xff]  }
 0xea7   :  { %v2438_v5 = vsel %vm785_vm6, %v2433_v50, -inf }
 0xf23   :  { %v2207_v0 = vpop.xlane.xlu0 %2206 }
 0xf24   :  { %v2214_v28 = vsub.f32 %v2202_v60, %v2207_v0 }
 0xf25   :  { %v2210_v31 = vpop.xlane.xlu1 %2209 }
 0xf26   :  { %v2217_v59 = vmul.f32 1.442695, %v2214_v28  ;;  %v2215_v35 = vsub.f32 %v2203_v53, %v2210_v31 }
 0xf27   :  { %v2213_v51 = vpop.xlane.xlu0 %2212 }
 0xf28   :  { %8110 = vpow2.f32 %v2217_v59  ;;  %v2219_v26 = vmul.f32 1.442695, %v2215_v35  ;;  %v2216_v18 = vsub.f32 %v2204_v40, %v2213_v51 }
 0xf2a   :  { %8112 = vpow2.f32 %v2219_v26  ;;  %v2221_v33 = vmul.f32 1.442695, %v2216_v18  ;;  %v7810_v18 = vld [vmem:[%s10546_s8] ss:$16 sps:$4 sm:$0xff]  }
 0xf2c   :  { %8114 = vpow2.f32 %v2221_v33  ;;  %v8374_v33 = vld [vmem:[%s10539_s0 + $0x8] sm:$0xff] }
 0xf32   :  { %v8111_v34 = vpop.eup %8110 }
 0xf33   :  { %v2223_v7 = vsel %vm785_vm6, %v8111_v34, 0.0 }
 0xf34   :  { %v8113_v37 = vpop.eup %8112  ;;  %2224 = vadd.xlane.f32.xlu0 %v2223_v7  ;;  %v7812_v7 = vld [vmem:[%s10546_s8 + $0x4] ss:$16 sps:$4 sm:$0xff]  }
 0xf35   :  { %v2226_v38 = vsel %vm785_vm6, %v8113_v37, 0.0  ;;  %2814 = vmatprep.subr.bf16.mxu1 %v7812_v7 }
 0xf36   :  { %v8115_v17 = vpop.eup %8114  ;;  %2815 = vmatpush1.bf16.msra.mxu1 %v7810_v18 }
 0xf37   :  { %v2229_v13 = vsel %vm785_vm6, %v8115_v17, 0.0 }
 0xf38   :  { %2230 = vadd.xlane.f32.xlu1 %v2229_v13  ;;  %2227 = vadd.xlane.f32.xlu0 %v2226_v38 }
 0xf49   :  { %2242 = vrot.lane.b32.xlu1 %v9006_v10, %s8397_s14 }
 0xf4e   :  { %2240 = vrot.lane.b32.xlu0 %v9014_v47, %s8397_s14 }
 0xf6d   :  { %2436 = vmax.xlane.f32.xlu1 %v2435_v27  ;;  %2439 = vmax.xlane.f32.xlu0 %v2438_v5  ;;  %v7824_v27 = vld [vmem:[%s10546_s8 + $0x84] ss:$16 sps:$4 sm:$0xff]  }
 0xf6e   :  { %v7827_v5 = vld [vmem:[%s10546_s8 + $0xa4] ss:$16 sps:$4 sm:$0xff]  }
 0xf71   :  { %2442 = vmax.xlane.f32.xlu0 %v2441_v54  ;;  %v7830_v54 = vld [vmem:[%s10546_s8 + $0xc4] ss:$16 sps:$4 sm:$0xff]  }
 0xfc1   :  { %v2225_v56 = vpop.xlane.xlu0 %2224 }
 0xfc2   :  { %8116 = vrcp.f32 %v2225_v56  ;;  %v7828_v56 = vld [vmem:[%s10546_s8 + $0xc0] ss:$16 sps:$4 sm:$0xff]  }
 0xfc5   :  { %v2228_v46 = vpop.xlane.xlu0 %2227  ;;  %v2231_v16 = vpop.xlane.xlu1 %2230 }
 0xfc6   :  { %8118 = vrcp.f32 %v2228_v46  ;;  %v7833_v46 = vld [vmem:[%s10546_s8 + $0xe4] ss:$16 sps:$4 sm:$0xff]  }
 0xfc7   :  { %8120 = vrcp.f32 %v2231_v16  ;;  %v7831_v16 = vld [vmem:[%s10546_s8 + $0xe0] ss:$16 sps:$4 sm:$0xff]  }
 0xfc9   :  { %v2241_v62 = vpop.permute.xlu0 %2240  ;;  %v2243_v3 = vpop.permute.xlu1 %2242 }
 0xfca   :  { %7431 = vmatprep.subr.bf16.mxu0 %v2241_v62  ;;  %v2252_v24 = vsel %vm827_vm2, %v2243_v3, 0 }
 0xfcb   :  { %7432 = vmatpush3.bf16.msra.mxu0 %v2241_v62 }
 0xfcc   :  { %7711 = vmatprep.subr.msk.bf16.mxu0 %vm827_vm2, %v2243_v3  ;;  %v8117_v41 = vpop.eup %8116 }
 0xfcd   :  { %v2233_v58 = vmul.f32 %v8117_v41, %v8111_v34  ;;  %v9175_v34 = vadd.f32 %v8374_v33, %v9054_v6  ;;  %v8376_v6 = vld [vmem:[%s10539_s0] sm:$0xff] }
 0xfcf   :  { %7434 = vmatpush3.bf16.msra.mxu0 %v2252_v24 }
 0xfd0   :  { %v8119_v63 = vpop.eup %8118  ;;  %7439 = vmatprep.subr.bf16.mxu0 %v8944_v36 }
 0xfd1   :  { %v8121_v48 = vpop.eup %8120  ;;  %v2235_v60 = vmul.f32 %v8119_v63, %v8113_v37  ;;  %v2598_v37 = vmul.f32 %v9175_v34, %v9175_v34 }
 0xfd2   :  { %v2237_v23 = vmul.f32 %v8121_v48, %v8115_v17  ;;  %v9192_v17 = vadd.f32 %v8376_v6, %v9052_v20  ;;  %v7818_v20 = vld [vmem:[%s10546_s8 + $0x44] ss:$16 sps:$4 sm:$0xff]  }
 0xfd3   :  { %v2238_v53 = vpack.c.bf16 %v2235_v60, %v2233_v58 }
 0xfd4   :  { %v2239_v40 = vpack.c.bf16 %v2237_v23, %v2237_v23  ;;  %v2597_v38 = vmul.f32 %v9192_v17, %v9192_v17 }
 0xfd5   :  { %7435 = vmatprep.mubr.msk.bf16.mxu0 %vm785_vm6, %v2238_v53 }
 0xfd6   :  { %7436 = vmatmul.mubr.msk.bf16.vlgmr.msra.gmra.mrb[60].mxu0 %vm785_vm6, %v2239_v40 }
 0xfd7   :  { %7440 = vmatpush3.bf16.msra.mxu0 %v8944_v36 }
 0xfd8   :  { %7441 = vmatprep.subr.bf16.mxu0 %v8957_v19 }
 0xfdb   :  { %7442 = vmatpush3.bf16.msra.mxu0 %v8957_v19 }
 0xffa   :  { %v2440_v12 = vpop.xlane.xlu0 %2439  ;;  %v2437_v4 = vpop.xlane.xlu1 %2436 }
 0xffb   :  { %v2445_v30 = vsub.f32 %v2433_v50, %v2440_v12  ;;  %v2444_v49 = vsub.f32 %v2432_v44, %v2437_v4  ;;  %v7819_v44 = vld [vmem:[%s10546_s8 + $0x60] ss:$16 sps:$4 sm:$0xff]  }
 0xffc   :  { %v7822_v50 = vld [vmem:[%s10546_s8 + $0x80] ss:$16 sps:$4 sm:$0xff]  }
 0xffd   :  { %v2449_v9 = vmul.f32 1.442695, %v2445_v30  ;;  %v2447_v28 = vmul.f32 1.442695, %v2444_v49 }
 0xffe   :  { %v2443_v15 = vpop.xlane.xlu0 %2442 }
 0xfff   :  { %8122 = vpow2.f32 %v2449_v9  ;;  %v2446_v0 = vsub.f32 %v2434_v52, %v2443_v15  ;;  %v7825_v52 = vld [vmem:[%s10546_s8 + $0xa0] ss:$16 sps:$4 sm:$0xff]  }
0x1001   :  { %v2451_v31 = vmul.f32 1.442695, %v2446_v0 }
0x1003   :  { %8124 = vpow2.f32 %v2451_v31 }
0x1004   :  { %8126 = vpow2.f32 %v2447_v28 }
0x1009   :  { %v9152_v59 = vpop.eup %8122 }
0x100a   :  { %v2456_v36 = vsel %vm785_vm6, %v9152_v59, 0.0 }
0x100b   :  { %2457 = vadd.xlane.f32.xlu0 %v2456_v36 }
0x100d   :  { %v9156_v35 = vpop.eup %8124 }
0x100e   :  { %v2459_v19 = vsel %vm785_vm6, %v9156_v35, 0.0  ;;  %v9160_v51 = vpop.eup %8126 }
0x100f   :  { %2460 = vadd.xlane.f32.xlu1 %v2459_v19  ;;  %v2453_v26 = vsel %vm785_vm6, %v9160_v51, 0.0 }
0x1013   :  { %2454 = vadd.xlane.f32.xlu1 %v2453_v26 }
0x1021   :  { %2470 = vrot.lane.b32.xlu0 %v9014_v47, %s8398_s15 }
0x1024   :  { %2472 = vrot.lane.b32.xlu1 %v9006_v10, %s8398_s15  ;;  %v8375_v10 = vld [vmem:[%s10539_s0 + $0x10] sm:$0xff] }
0x1025   :  { %v9184_v47 = vadd.f32 %v8375_v10, %v9050_v8  ;;  %v7815_v8 = vld [vmem:[%s10546_s8 + $0x24] ss:$16 sps:$4 sm:$0xff]  }
0x1026   :  { %2816 = vmatprep.subr.bf16.mxu1 %v7815_v8 }
0x1027   :  { %v2599_v13 = vmul.f32 %v9184_v47, %v9184_v47  ;;  %2817 = vmatpush1.bf16.msra.mxu1 %v7813_v14 }
0x1028   :  { %2818 = vmatprep.subr.bf16.mxu1 %v7818_v20 }
0x102b   :  { %2819 = vmatpush1.bf16.msra.mxu1 %v7816_v39 }
0x102c   :  { %2820 = vmatprep.subr.bf16.mxu1 %v7821_v42 }
0x102f   :  { %2821 = vmatpush1.bf16.msra.mxu1 %v7819_v44 }
0x1030   :  { %2822 = vmatprep.subr.bf16.mxu1 %v7824_v27 }
0x1033   :  { %2823 = vmatpush1.bf16.msra.mxu1 %v7822_v50 }
0x1034   :  { %2824 = vmatprep.subr.bf16.mxu1 %v7827_v5 }
0x1037   :  { %2825 = vmatpush1.bf16.msra.mxu1 %v7825_v52 }
0x1038   :  { %2826 = vmatprep.subr.bf16.mxu1 %v7830_v54 }
0x103b   :  { %2827 = vmatpush1.bf16.msra.mxu1 %v7828_v56  ;;  %v7834_v56 = vld [vmem:[%s10546_s8 + $0x8] ss:$16 sps:$4 sm:$0xff]  }
0x103c   :  { %2828 = vmatprep.subr.bf16.mxu1 %v7833_v46 }
0x103f   :  { %2829 = vmatpush1.bf16.msra.mxu1 %v7831_v16  ;;  %v7840_v16 = vld [vmem:[%s10546_s8 + $0x48] ss:$16 sps:$4 sm:$0xff]  }
0x1040   :  { %2605 = vadd.xlane.f32.xlu0 %v2598_v37 }
0x1044   :  { %2607 = vadd.xlane.f32.xlu0 %v2599_v13  ;;  %v7836_v13 = vld [vmem:[%s10546_s8 + $0xc] ss:$16 sps:$4 sm:$0xff]  }
0x1048   :  { %2603 = vadd.xlane.f32.xlu1 %v2597_v38 }
0x1098   :  { %v2458_v62 = vpop.xlane.xlu0 %2457 }
0x1099   :  { %8128 = vrcp.f32 %v2458_v62  ;;  %v7845_v62 = vld [vmem:[%s10546_s8 + $0x6c] ss:$16 sps:$4 sm:$0xff]  }
0x109c   :  { %v2471_v3 = vpop.permute.xlu0 %2470  ;;  %v2461_v41 = vpop.xlane.xlu1 %2460 }
0x109d   :  { %7455 = vmatprep.subr.bf16.mxu0 %v2471_v3 }
0x10a0   :  { %v2455_v24 = vpop.xlane.xlu1 %2454 }
0x10a1   :  { %8130 = vrcp.f32 %v2455_v24  ;;  %v7846_v24 = vld [vmem:[%s10546_s8 + $0x88] ss:$16 sps:$4 sm:$0xff]  }
0x10a2   :  { %8132 = vrcp.f32 %v2461_v41  ;;  %v7848_v41 = vld [vmem:[%s10546_s8 + $0x8c] ss:$16 sps:$4 sm:$0xff]  }
0x10a3   :  { %v8129_v63 = vpop.eup %8128 }
0x10a4   :  { %v2465_v12 = vmul.f32 %v8129_v63, %v9152_v59  ;;  %v2473_v15 = vpop.permute.xlu1 %2472  ;;  %v7851_v63 = vld [vmem:[%s10546_s8 + $0xac] ss:$16 sps:$4 sm:$0xff]  }
0x10a5   :  { %v2482_v28 = vsel %vm827_vm2, %v2473_v15, 0 }
0x10a9   :  { %v7437_v48 = vpop.f32.mrb[60].mxu0 }
0x10aa   :  { %v2288_v58 = vpop.f32.mrb[61].mxu0  ;;  %v2303_v30 = vpack.c.bf16 %v7437_v48, %v7437_v48  ;;  %v7849_v48 = vld [vmem:[%s10546_s8 + $0xa8] ss:$16 sps:$4 sm:$0xff]  }
0x10ab   :  { %v8131_v60 = vpop.eup %8130  ;;  %v7438_v23 = vpop.f32.mrb[62].mxu0 }
0x10ac   :  { %v2291_v53 = vpop.f32.mrb[63].mxu0  ;;  %v2463_v40 = vmul.f32 %v8131_v60, %v9160_v51  ;;  %v8133_v49 = vpop.eup %8132  ;;  %v7852_v60 = vld [vmem:[%s10546_s8 + $0xc8] ss:$16 sps:$4 sm:$0xff]   ;;  %v7857_v23 = vld [vmem:[%s10546_s8 + $0xec] ss:$16 sps:$4 sm:$0xff]  }
0x10ad   :  { %v2302_v4 = vpack.c.bf16 %v2291_v53, %v2288_v58  ;;  %v2467_v0 = vmul.f32 %v8133_v49, %v9156_v35  ;;  %v7854_v58 = vld [vmem:[%s10546_s8 + $0xcc] ss:$16 sps:$4 sm:$0xff]   ;;  %v7855_v53 = vld [vmem:[%s10546_s8 + $0xe8] ss:$16 sps:$4 sm:$0xff]  }
0x10ae   :  { %v2468_v9 = vpack.c.bf16 %v2465_v12, %v2463_v40 }
0x10af   :  { %7443 = vmatprep.mubr.msk.bf16.mxu0 %vm718_vm1, %v2302_v4  ;;  %v2469_v31 = vpack.c.bf16 %v2467_v0, %v2467_v0 }
0x10b0   :  { %7444 = vmatmul.mubr.msk.bf16.vlgmr.msra.gmra.mrb[64].mxu0 %vm718_vm1, %v2303_v30 }
0x10b1   :  { %7456 = vmatpush3.bf16.msra.mxu0 %v2471_v3  ;;  %7459 = vmatprep.mubr.msk.bf16.mxu0 %vm785_vm6, %v2468_v9  ;;  %v7843_v3 = vld [vmem:[%s10546_s8 + $0x68] ss:$16 sps:$4 sm:$0xff]  }
0x10b2   :  { %7714 = vmatprep.subr.msk.bf16.mxu0 %vm827_vm2, %v2473_v15 }
0x10b5   :  { %7458 = vmatpush3.bf16.msra.mxu0 %v2482_v28 }
0x10b6   :  { %7463 = vmatprep.subr.bf16.mxu0 %v8993_v57 }
0x10b8   :  { %7460 = vmatmul.mubr.msk.bf16.vlgmr.msra.gmra.mrb[68].mxu0 %vm785_vm6, %v2469_v31 }
0x10b9   :  { %7464 = vmatpush3.bf16.msra.mxu0 %v8993_v57  ;;  %v9257_v57 = vld [vmem:[%s10547_s5] ss:$0 sm:$0xff] }
0x10ba   :  { %7465 = vmatprep.subr.bf16.mxu0 %v9000_v11 }
0x10bd   :  { %7466 = vmatpush3.bf16.msra.mxu0 %v9000_v11 }
0x10be   :  { %2877 = vmatprep.subr.bf16.mxu0 %v7836_v13  ;;  %v8379_v13 = vld [vmem:[%s10539_s0 + $0x20] sm:$0xff] }
0x10cd   :  { %v2606_v59 = vpop.xlane.xlu0 %2605 }
0x10ce   :  { %v2616_v36 = vmul.f32 0.0078125, %v2606_v59 }
0x10d0   :  { %v2622_v19 = vadd.f32 1e-06, %v2616_v36 }
0x10d2   :  { %8134 = vrsqrt.f32 %v2622_v19 }
0x10d5   :  { %v2604_v51 = vpop.xlane.xlu1 %2603 }
0x10d6   :  { %v2615_v35 = vmul.f32 0.0078125, %v2604_v51 }
0x10d8   :  { %v2621_v26 = vadd.f32 1e-06, %v2615_v35 }
0x10da   :  { %8136 = vrsqrt.f32 %v2621_v26 }
0x10dc   :  { %v8135_v18 = vpop.eup %8134 }
0x10dd   :  { %v2634_v33 = vmul.f32 %v8135_v18, %v9175_v34 }
0x10df   :  { %v2646_v37 = vmul.f32 %v9257_v57, %v2634_v33 }
0x10e4   :  { %v8137_v7 = vpop.eup %8136 }
0x10e5   :  { %v2633_v10 = vmul.f32 %v8137_v7, %v9192_v17  ;;  %v8377_v7 = vld [vmem:[%s10539_s0 + $0x18] sm:$0xff] }
0x10e7   :  { %v2645_v11 = vmul.f32 %v9257_v57, %v2633_v10 }
0x10e9   :  { %v2651_v6 = vpack.c.bf16 %v2646_v37, %v2645_v11  ;;  %v8378_v37 = vld [vmem:[%s10539_s0 + $0x28] sm:$0xff] }
0x10eb   :  { %2847 = vmatmul.mubr.bf16.vlgmr.msra.gmra.mrb[56].mxu1 %v2651_v6 }
0x10ec   :  { %2856 = vmatprep.mubr.bf16.mxu1 %v8392_v43 }
0x1183   :  { %v7445_v38 = vpop.f32.mrb[64].mxu0 }
0x1184   :  { %v2360_v8 = vadd.f32 %v7445_v38, %v9117_v55  ;;  %v2344_v14 = vpop.f32.mrb[65].mxu0  ;;  %v7839_v55 = vld [vmem:[%s10546_s8 + $0x2c] ss:$16 sps:$4 sm:$0xff]  }
0x1185   :  { %v2358_v20 = vadd.f32 %v2344_v14, %v9120_v61  ;;  %v7446_v39 = vpop.f32.mrb[66].mxu0  ;;  %v7837_v61 = vld [vmem:[%s10546_s8 + $0x28] ss:$16 sps:$4 sm:$0xff]  }
0x1186   :  { %v2347_v42 = vpop.f32.mrb[67].mxu0 }
0x1187   :  { %v9269_v44 = vadd.f32 %v2347_v42, %v9123_v21  ;;  %v7842_v21 = vld [vmem:[%s10546_s8 + $0x4c] ss:$16 sps:$4 sm:$0xff]  }
0x118b   :  { %v7461_v50 = vpop.f32.mrb[68].mxu0 }
0x118c   :  { %v2518_v27 = vpop.f32.mrb[69].mxu0  ;;  %v2533_v46 = vpack.c.bf16 %v7461_v50, %v7461_v50 }
0x118d   :  { %v7462_v5 = vpop.f32.mrb[70].mxu0 }
0x118e   :  { %v2521_v52 = vpop.f32.mrb[71].mxu0 }
0x118f   :  { %v2532_v54 = vpack.c.bf16 %v2521_v52, %v2518_v27 }
0x1191   :  { %7467 = vmatprep.mubr.msk.bf16.mxu0 %vm718_vm1, %v2532_v54 }
0x1192   :  { %7468 = vmatmul.mubr.msk.bf16.vlgmr.msra.gmra.mrb[72].mxu0 %vm718_vm1, %v2533_v46  ;;  %v7859_v46 = vld [vmem:[%s10548_s9] sm:$0xff]  }
0x1193   :  { %2878 = vmatpush1.bf16.msra.mxu0 %v7834_v56  ;;  %2909 = vmatprep.mubr.bf16.mxu0 %v8392_v43  ;;  %v7858_v56 = vld [vmem:[%s10548_s9 + $0x40] sm:$0xff]  }
0x1194   :  { %2879 = vmatprep.subr.bf16.mxu0 %v7839_v55  ;;  %7076 = vmatprep.subr.bf16.mxu1 %v7858_v56 }
0x1195   :  { %7077 = vmatpush3.bf16.msra.mxu1 %v7859_v46 }
0x1197   :  { %2880 = vmatpush1.bf16.msra.mxu0 %v7837_v61 }
0x1198   :  { %2881 = vmatprep.subr.bf16.mxu0 %v7842_v21 }
0x119b   :  { %2882 = vmatpush1.bf16.msra.mxu0 %v7840_v16  ;;  %v7860_v16 = vld [vmem:[%s10548_s9 + $0x48] sm:$0xff]  }
0x119c   :  { %2883 = vmatprep.subr.bf16.mxu0 %v7845_v62  ;;  %v7861_v62 = vld [vmem:[%s10548_s9 + $0x8] sm:$0xff]   ;;  %7078 = vmatprep.subr.bf16.mxu1 %v7860_v16 }
0x119d   :  { %7079 = vmatpush3.bf16.msra.mxu1 %v7861_v62 }
0x119f   :  { %2884 = vmatpush1.bf16.msra.mxu0 %v7843_v3  ;;  %v7862_v3 = vld [vmem:[%s10548_s9 + $0x50] sm:$0xff]  }
0x11a0   :  { %2885 = vmatprep.subr.bf16.mxu0 %v7848_v41  ;;  %7080 = vmatprep.subr.bf16.mxu1 %v7862_v3 }
0x11a3   :  { %2886 = vmatpush1.bf16.msra.mxu0 %v7846_v24 }
0x11a4   :  { %2887 = vmatprep.subr.bf16.mxu0 %v7851_v63 }
0x11a7   :  { %2888 = vmatpush1.bf16.msra.mxu0 %v7849_v48 }
0x11a8   :  { %2889 = vmatprep.subr.bf16.mxu0 %v7854_v58 }
0x11ab   :  { %2890 = vmatpush1.bf16.msra.mxu0 %v7852_v60 }
0x11ac   :  { %2891 = vmatprep.subr.bf16.mxu0 %v7857_v23 }
0x11af   :  { %2892 = vmatpush1.bf16.msra.mxu0 %v7855_v53  ;;  %v7863_v53 = vld [vmem:[%s10548_s9 + $0x10] sm:$0xff]  }
0x11b0   :  { %7081 = vmatpush3.bf16.msra.mxu1 %v7863_v53  ;;  %v7885_v53 = vld [vmem:[%s10540_s6 + $0x174] ss:$20 sps:$4 sm:$0xff]  }
0x11b2   :  { %2910 = vmatmul.mubr.bf16.vlgmr.msra.gmra.mrb[76].mxu0 %v2651_v6 }
0x11b3   :  { %2919 = vmatprep.mubr.bf16.mxu0 %v8392_v43 }
0x11be   :  { %v2848_v40 = vpop.f32.mrb[56].mxu1 }
0x11bf   :  { %v2850_v12 = vpop.f32.mrb[57].mxu1  ;;  %v2940_v9 = vsub.f32 0.0, %v2848_v40 }
0x11c0   :  { %v2852_v4 = vpop.f32.mrb[58].mxu1  ;;  %v2941_v49 = vsub.f32 0.0, %v2850_v12 }
0x11c1   :  { %v9320_v30 = vpop.f32.mrb[59].mxu1  ;;  %v2942_v15 = vsub.f32 0.0, %v2852_v4  ;;  %v2952_v28 = vmul.f32 1.442695, %v2940_v9 }
0x11c2   :  { %v2943_v0 = vsub.f32 0.0, %v9320_v30  ;;  %v2954_v31 = vmul.f32 1.442695, %v2941_v49 }
0x11c3   :  { %v2956_v59 = vmul.f32 1.442695, %v2942_v15  ;;  %8138 = vpow2.f32 %v2952_v28 }
0x11c4   :  { %v2958_v36 = vmul.f32 1.442695, %v2943_v0  ;;  %8140 = vpow2.f32 %v2954_v31  ;;  %v7865_v0 = vld [vmem:[%s10548_s9 + $0x18] sm:$0xff]  }
0x11c5   :  { %8142 = vpow2.f32 %v2956_v59  ;;  %v7866_v59 = vld [vmem:[%s10548_s9 + $0x60] sm:$0xff]  }
0x11c6   :  { %8144 = vpow2.f32 %v2958_v36  ;;  %v7867_v36 = vld [vmem:[%s10548_s9 + $0x20] sm:$0xff]  }
0x11cd   :  { %v8139_v39 = vpop.eup %8138 }
0x11ce   :  { %v8141_v42 = vpop.eup %8140  ;;  %v2976_v27 = vadd.f32 1.0, %v8139_v39 }
0x11cf   :  { %v2977_v5 = vadd.f32 1.0, %v8141_v42 }
0x11d0   :  { %8146 = vrcp.f32 %v2976_v27 }
0x11d1   :  { %8148 = vrcp.f32 %v2977_v5 }
0x1265   :  { %v7469_v19 = vpop.f32.mrb[72].mxu0 }
0x1266   :  { %v2590_v51 = vadd.f32 %v7469_v19, %v2360_v8  ;;  %v2574_v35 = vpop.f32.mrb[73].mxu0  ;;  %v7868_v19 = vld [vmem:[%s10548_s9 + $0x68] sm:$0xff]  }
0x1267   :  { %v2588_v26 = vadd.f32 %v2574_v35, %v2358_v20  ;;  %v7470_v18 = vpop.f32.mrb[74].mxu0  ;;  %v7870_v35 = vld [vmem:[%s10548_s9 + $0x70] sm:$0xff]  }
0x1268   :  { %v2577_v33 = vpop.f32.mrb[75].mxu0  ;;  %v9332_v6 = vadd.f32 %v8378_v37, %v2590_v51  ;;  %v7869_v51 = vld [vmem:[%s10548_s9 + $0x28] sm:$0xff]   ;;  %v7872_v18 = vld [vmem:[%s10548_s9 + $0x78] sm:$0xff]  }
0x1269   :  { %v9326_v10 = vadd.f32 %v8377_v7, %v2588_v26  ;;  %v2589_v11 = vadd.f32 %v2577_v33, %v9269_v44  ;;  %v8143_v44 = vpop.eup %8142  ;;  %v7871_v26 = vld [vmem:[%s10548_s9 + $0x30] sm:$0xff]   ;;  %v7873_v33 = vld [vmem:[%s10548_s9 + $0x38] sm:$0xff]   ;;  %v2608_v7 = vpop.xlane.xlu0 %2607 }
0x126a   :  { %v2602_v20 = vmul.f32 %v9332_v6, %v9332_v6  ;;  %v8145_v50 = vpop.eup %8144  ;;  %v2978_v52 = vadd.f32 1.0, %v8143_v44 }
0x126b   :  { %v9337_v38 = vadd.f32 %v8379_v13, %v2589_v11  ;;  %v2600_v8 = vmul.f32 %v9326_v10, %v9326_v10  ;;  %v2979_v54 = vadd.f32 1.0, %v8145_v50  ;;  %v8147_v55 = vpop.eup %8146  ;;  %v2617_v11 = vmul.f32 0.0078125, %v2608_v7 }
0x126c   :  { %8150 = vrcp.f32 %v2978_v52  ;;  %v8149_v61 = vpop.eup %8148  ;;  %v2989_v24 = vmul.f32 %v8147_v55, %v2848_v40  ;;  %v7864_v40 = vld [vmem:[%s10548_s9 + $0x58] sm:$0xff]  }
0x126d   :  { %2609 = vadd.xlane.f32.xlu1 %v2600_v8  ;;  %v2601_v14 = vmul.f32 %v9337_v38, %v9337_v38  ;;  %8152 = vrcp.f32 %v2979_v54  ;;  %v2991_v63 = vmul.f32 %v8149_v61, %v2850_v12  ;;  %7082 = vmatprep.subr.bf16.mxu1 %v7864_v40  ;;  %v2623_v37 = vadd.f32 1e-06, %v2617_v11  ;;  %v7891_v40 = vld [vmem:[%s10540_s6 + $0x19c] ss:$20 sps:$4 sm:$0xff]  }
0x126e   :  { %7083 = vmatpush3.bf16.msra.mxu1 %v7865_v0 }
0x126f   :  { %2611 = vadd.xlane.f32.xlu0 %v2601_v14  ;;  %7084 = vmatprep.subr.bf16.mxu1 %v7866_v59  ;;  %8154 = vrsqrt.f32 %v2623_v37 }
0x1271   :  { %2613 = vadd.xlane.f32.xlu1 %v2602_v20 }
0x1272   :  { %7085 = vmatpush3.bf16.msra.mxu1 %v7867_v36 }
0x1273   :  { %7086 = vmatprep.subr.bf16.mxu1 %v7868_v19 }
0x1276   :  { %v8151_v21 = vpop.eup %8150  ;;  %7087 = vmatpush3.bf16.msra.mxu1 %v7869_v51 }
0x1277   :  { %v8153_v41 = vpop.eup %8152  ;;  %v2993_v58 = vmul.f32 %v8151_v21, %v2852_v4  ;;  %7088 = vmatprep.subr.bf16.mxu1 %v7870_v35 }
0x1278   :  { %v2995_v9 = vmul.f32 %v8153_v41, %v9320_v30 }
0x1279   :  { %v8155_v5 = vpop.eup %8154 }
0x127a   :  { %7089 = vmatpush3.bf16.msra.mxu1 %v7871_v26  ;;  %v2635_v52 = vmul.f32 %v8155_v5, %v9184_v47 }
0x127b   :  { %7090 = vmatprep.subr.bf16.mxu1 %v7872_v18 }
0x127c   :  { %v2647_v55 = vmul.f32 %v9257_v57, %v2635_v52 }
0x127e   :  { %7091 = vmatpush3.bf16.msra.mxu1 %v7873_v33 }
0x1285   :  { %v2911_v48 = vpop.f32.mrb[76].mxu0 }
0x1286   :  { %v9360_v60 = vmul.f32 %v2989_v24, %v2911_v48  ;;  %v2913_v23 = vpop.f32.mrb[77].mxu0  ;;  %v7874_v48 = vld [vmem:[%s10540_s6 + $0x140] ss:$20 sps:$4 sm:$0xff]  }
0x1287   :  { %v9366_v49 = vmul.f32 %v2991_v63, %v2913_v23  ;;  %v2915_v15 = vpop.f32.mrb[78].mxu0  ;;  %v7882_v23 = vld [vmem:[%s10540_s6 + $0x16c] ss:$20 sps:$4 sm:$0xff]  }
0x1288   :  { %v9371_v12 = vmul.f32 %v2993_v58, %v2915_v15  ;;  %v2917_v4 = vpop.f32.mrb[79].mxu0  ;;  %v7876_v58 = vld [vmem:[%s10540_s6 + $0x144] ss:$20 sps:$4 sm:$0xff]   ;;  %v7888_v15 = vld [vmem:[%s10540_s6 + $0x194] ss:$20 sps:$4 sm:$0xff]  }
0x1289   :  { %v3015_v28 = vmul.f32 %v2995_v9, %v2917_v4  ;;  %3590 = vmatprep.subr.bf16.mxu0 %v7876_v58  ;;  %v7880_v9 = vld [vmem:[%s10540_s6 + $0x168] ss:$20 sps:$4 sm:$0xff]   ;;  %v7889_v4 = vld [vmem:[%s10540_s6 + $0x198] ss:$20 sps:$4 sm:$0xff]  }
0x128a   :  { %v3024_v31 = vpack.c.bf16 %v9371_v12, %v9360_v60  ;;  %v7877_v60 = vld [vmem:[%s10540_s6 + $0x148] ss:$20 sps:$4 sm:$0xff]   ;;  %3591 = vmatpush1.bf16.msra.mxu0 %v7874_v48  ;;  %v7886_v12 = vld [vmem:[%s10540_s6 + $0x190] ss:$20 sps:$4 sm:$0xff]  }
0x128b   :  { %v3025_v30 = vpack.c.bf16 %v3015_v28, %v9366_v49  ;;  %3592 = vmatprep.subr.bf16.mxu0 %v7882_v23  ;;  %v7883_v49 = vld [vmem:[%s10540_s6 + $0x170] ss:$20 sps:$4 sm:$0xff]  }
0x128e   :  { %3593 = vmatpush1.bf16.msra.mxu0 %v7880_v9 }
0x128f   :  { %3594 = vmatprep.subr.bf16.mxu0 %v7888_v15 }
0x1292   :  { %3595 = vmatpush1.bf16.msra.mxu0 %v7886_v12 }
0x12fa   :  { %v2610_v13 = vpop.xlane.xlu1 %2609 }
0x12fb   :  { %v2618_v8 = vmul.f32 0.0078125, %v2610_v13 }
0x12fc   :  { %v2612_v14 = vpop.xlane.xlu0 %2611 }
0x12fd   :  { %v2624_v20 = vadd.f32 1e-06, %v2618_v8  ;;  %v2619_v39 = vmul.f32 0.0078125, %v2612_v14 }
0x12fe   :  { %v2614_v42 = vpop.xlane.xlu1 %2613 }
0x12ff   :  { %8156 = vrsqrt.f32 %v2624_v20  ;;  %v2625_v44 = vadd.f32 1e-06, %v2619_v39  ;;  %v2620_v50 = vmul.f32 0.0078125, %v2614_v42 }
0x1301   :  { %v2626_v27 = vadd.f32 1e-06, %v2620_v50  ;;  %8158 = vrsqrt.f32 %v2625_v44 }
0x1303   :  { %8160 = vrsqrt.f32 %v2626_v27 }
0x1309   :  { %v8157_v54 = vpop.eup %8156 }
0x130a   :  { %v2636_v56 = vmul.f32 %v8157_v54, %v9326_v10 }
0x130b   :  { %v8159_v46 = vpop.eup %8158 }
0x130c   :  { %v2648_v61 = vmul.f32 %v9257_v57, %v2636_v56  ;;  %v2637_v3 = vmul.f32 %v8159_v46, %v9337_v38 }
0x130d   :  { %v8161_v21 = vpop.eup %8160 }
0x130e   :  { %v2652_v16 = vpack.c.bf16 %v2648_v61, %v2647_v55  ;;  %v2638_v62 = vmul.f32 %v8161_v21, %v9332_v6  ;;  %v2649_v24 = vmul.f32 %v9257_v57, %v2637_v3 }
0x1310   :  { %2857 = vmatmul.mubr.bf16.gmra.mrb[60].mxu1 %v2652_v16  ;;  %2920 = vmatmul.mubr.bf16.gmra.mrb[80].mxu0 %v2652_v16  ;;  %v2650_v41 = vmul.f32 %v9257_v57, %v2638_v62  ;;  %v7879_v57 = vld [vmem:[%s10540_s6 + $0x14c] ss:$20 sps:$4 sm:$0xff]  }
0x1311   :  { %2866 = vmatprep.mubr.bf16.mxu1 %v8392_v43  ;;  %2929 = vmatprep.mubr.bf16.mxu0 %v8392_v43 }
0x1312   :  { %v2653_v63 = vpack.c.bf16 %v2650_v41, %v2649_v24  ;;  %3653 = vmatprep.subr.bf16.mxu1 %v7879_v57 }
0x1318   :  { %2867 = vmatmul.mubr.bf16.gmra.mrb[64].mxu1 %v2653_v63  ;;  %2930 = vmatmul.mubr.bf16.gmra.mrb[84].mxu0 %v2653_v63 }
0x1319   :  { %3158 = vmatprep.mubr.bf16.mxu1 %v3025_v30  ;;  %3622 = vmatprep.mubr.bf16.mxu0 %v8392_v43 }
0x1320   :  { %3159 = vmatmul.mubr.bf16.vlgmr.msra.gmra.mrb[68].mxu1 %v3024_v31 }
0x1321   :  { %3654 = vmatpush1.bf16.msra.mxu1 %v7877_v60 }
0x1322   :  { %3655 = vmatprep.subr.bf16.mxu1 %v7885_v53 }
0x1325   :  { %3656 = vmatpush1.bf16.msra.mxu1 %v7883_v49 }
0x1326   :  { %3657 = vmatprep.subr.bf16.mxu1 %v7891_v40 }
0x1329   :  { %3658 = vmatpush1.bf16.msra.mxu1 %v7889_v4 }
0x13e3   :  { %v9450_v0 = vpop.f32.mrb[60].mxu1  ;;  %v9452_v28 = vpop.f32.mrb[80].mxu0 }
0x13e4   :  { %v2944_v31 = vsub.f32 0.0, %v9450_v0  ;;  %v9455_v30 = vpop.f32.mrb[61].mxu1  ;;  %v9457_v59 = vpop.f32.mrb[81].mxu0 }
0x13e5   :  { %v2945_v36 = vsub.f32 0.0, %v9455_v30  ;;  %v9460_v19 = vpop.f32.mrb[62].mxu1  ;;  %v9462_v51 = vpop.f32.mrb[82].mxu0 }
0x13e6   :  { %v2960_v35 = vmul.f32 1.442695, %v2944_v31  ;;  %v2946_v26 = vsub.f32 0.0, %v9460_v19  ;;  %v9465_v18 = vpop.f32.mrb[63].mxu1  ;;  %v9467_v33 = vpop.f32.mrb[83].mxu0 }
0x13e7   :  { %v2962_v7 = vmul.f32 1.442695, %v2945_v36  ;;  %v2947_v11 = vsub.f32 0.0, %v9465_v18 }
0x13e8   :  { %8162 = vpow2.f32 %v2960_v35  ;;  %v2964_v37 = vmul.f32 1.442695, %v2946_v26 }
0x13e9   :  { %8164 = vpow2.f32 %v2962_v7  ;;  %v2966_v13 = vmul.f32 1.442695, %v2947_v11 }
0x13ea   :  { %8166 = vpow2.f32 %v2964_v37 }
0x13eb   :  { %8168 = vpow2.f32 %v2966_v13  ;;  %v9470_v8 = vpop.f32.mrb[64].mxu1  ;;  %v9472_v14 = vpop.f32.mrb[84].mxu0 }
0x13ec   :  { %v2948_v20 = vsub.f32 0.0, %v9470_v8  ;;  %v9475_v39 = vpop.f32.mrb[65].mxu1  ;;  %v9477_v42 = vpop.f32.mrb[85].mxu0 }
0x13ed   :  { %v2949_v44 = vsub.f32 0.0, %v9475_v39  ;;  %v9480_v50 = vpop.f32.mrb[66].mxu1  ;;  %v9482_v27 = vpop.f32.mrb[86].mxu0 }
0x13ee   :  { %v2968_v5 = vmul.f32 1.442695, %v2948_v20  ;;  %v2950_v52 = vsub.f32 0.0, %v9480_v50  ;;  %v9485_v54 = vpop.f32.mrb[67].mxu1  ;;  %v9487_v56 = vpop.f32.mrb[87].mxu0 }
0x13ef   :  { %v2970_v46 = vmul.f32 1.442695, %v2949_v44  ;;  %v2951_v55 = vsub.f32 0.0, %v9485_v54 }
0x13f0   :  { %8170 = vpow2.f32 %v2968_v5  ;;  %v2972_v61 = vmul.f32 1.442695, %v2950_v52 }
0x13f1   :  { %8172 = vpow2.f32 %v2970_v46  ;;  %v2974_v21 = vmul.f32 1.442695, %v2951_v55 }
0x13f2   :  { %v8163_v16 = vpop.eup %8162  ;;  %8174 = vpow2.f32 %v2972_v61 }
0x13f3   :  { %v8165_v62 = vpop.eup %8164  ;;  %v2980_v3 = vadd.f32 1.0, %v8163_v16  ;;  %8176 = vpow2.f32 %v2974_v21  ;;  %v7092_v41 = vpop.f32.mrb[68].mxu1 }
0x13f4   :  { %v8167_v24 = vpop.eup %8166  ;;  %v2981_v63 = vadd.f32 1.0, %v8165_v62  ;;  %v7093_v48 = vpop.f32.mrb[69].mxu1 }
0x13f5   :  { %v8169_v58 = vpop.eup %8168  ;;  %8178 = vrcp.f32 %v2980_v3  ;;  %v2982_v60 = vadd.f32 1.0, %v8167_v24  ;;  %v7094_v57 = vadd.f32 %v7093_v48, %v7092_v41  ;;  %v7095_v23 = vpop.f32.mrb[70].mxu1 }
0x13f6   :  { %8180 = vrcp.f32 %v2981_v63  ;;  %v2983_v53 = vadd.f32 1.0, %v8169_v58  ;;  %v7096_v9 = vpop.f32.mrb[71].mxu1 }
0x13f7   :  { %8182 = vrcp.f32 %v2982_v60  ;;  %v9491_v49 = vadd.f32 %v7094_v57, %v9192_v17  ;;  %v7097_v15 = vadd.f32 %v7096_v9, %v7095_v23  ;;  %v7903_v60 = vld [vmem:[%s10540_s6 + $0x1ec] ss:$20 sps:$4 sm:$0xff]   ;;  %v7904_v9 = vld [vmem:[%s10540_s6 + $0x208] ss:$20 sps:$4 sm:$0xff]  }
0x13f8   :  { %8184 = vrcp.f32 %v2983_v53  ;;  %v7898_v57 = vld [vmem:[%s10540_s6 + $0x1e0] ss:$20 sps:$4 sm:$0xff]  }
0x13f9   :  { %v9494_v40 = vadd.f32 %v7097_v15, %v9175_v34  ;;  %v3325_v12 = vmul.f32 %v9491_v49, %v9491_v49  ;;  %v7906_v23 = vld [vmem:[%s10540_s6 + $0x20c] ss:$20 sps:$4 sm:$0xff]   ;;  %v7909_v53 = vld [vmem:[%s10540_s6 + $0x214] ss:$20 sps:$4 sm:$0xff]   ;;  %v7907_v15 = vld [vmem:[%s10540_s6 + $0x210] ss:$20 sps:$4 sm:$0xff]  }
0x13fa   :  { %v8171_v4 = vpop.eup %8170 }
0x13fb   :  { %v8173_v31 = vpop.eup %8172  ;;  %v2984_v36 = vadd.f32 1.0, %v8171_v4  ;;  %3331 = vadd.xlane.f32.xlu0 %v3325_v12  ;;  %v3326_v35 = vmul.f32 %v9494_v40, %v9494_v40  ;;  %v7912_v12 = vld [vmem:[%s10540_s6 + $0x234] ss:$20 sps:$4 sm:$0xff]   ;;  %v7915_v4 = vld [vmem:[%s10540_s6 + $0x23c] ss:$20 sps:$4 sm:$0xff]  }
0x13fc   :  { %v8175_v26 = vpop.eup %8174  ;;  %v2985_v7 = vadd.f32 1.0, %v8173_v31  ;;  %v7910_v31 = vld [vmem:[%s10540_s6 + $0x230] ss:$20 sps:$4 sm:$0xff]  }
0x13fd   :  { %v8177_v11 = vpop.eup %8176  ;;  %8186 = vrcp.f32 %v2984_v36  ;;  %v2986_v17 = vadd.f32 1.0, %v8175_v26  ;;  %3333 = vadd.xlane.f32.xlu1 %v3326_v35  ;;  %v7913_v36 = vld [vmem:[%s10540_s6 + $0x238] ss:$20 sps:$4 sm:$0xff]   ;;  %v7918_v35 = vld [vmem:[%s10540_s6 + $0x25c] ss:$20 sps:$4 sm:$0xff]  }
0x13fe   :  { %8188 = vrcp.f32 %v2985_v7  ;;  %v2987_v37 = vadd.f32 1.0, %v8177_v11  ;;  %v7916_v26 = vld [vmem:[%s10540_s6 + $0x258] ss:$20 sps:$4 sm:$0xff]   ;;  %v7919_v7 = vld [vmem:[%s10540_s6 + $0x260] ss:$20 sps:$4 sm:$0xff]  }
0x13ff   :  { %v8179_v34 = vpop.eup %8178  ;;  %8190 = vrcp.f32 %v2986_v17  ;;  %v7921_v11 = vld [vmem:[%s10540_s6 + $0x264] ss:$20 sps:$4 sm:$0xff]  }
0x1400   :  { %v8181_v13 = vpop.eup %8180  ;;  %v2997_v20 = vmul.f32 %v8179_v34, %v9450_v0  ;;  %8192 = vrcp.f32 %v2987_v37 }
0x1401   :  { %v8183_v44 = vpop.eup %8182  ;;  %v2999_v5 = vmul.f32 %v8181_v13, %v9455_v30 }
0x1402   :  { %v8185_v52 = vpop.eup %8184  ;;  %v3016_v46 = vmul.f32 %v2997_v20, %v9452_v28  ;;  %v3001_v55 = vmul.f32 %v8183_v44, %v9460_v19 }
0x1403   :  { %v3017_v61 = vmul.f32 %v2999_v5, %v9457_v59  ;;  %v3003_v21 = vmul.f32 %v8185_v52, %v9465_v18 }
0x1404   :  { %v3018_v16 = vmul.f32 %v3001_v55, %v9462_v51  ;;  %v9582_v55 = vld [vmem:[%s10541_s4 + $0x1] ss:$0 sm:$0xff] }
0x1405   :  { %v3019_v62 = vmul.f32 %v3003_v21, %v9467_v33  ;;  %v7894_v33 = vld [vmem:[%s10540_s6 + $0x1bc] ss:$20 sps:$4 sm:$0xff]  }
0x1406   :  { %v3026_v3 = vpack.c.bf16 %v3018_v16, %v3016_v46  ;;  %3596 = vmatprep.subr.bf16.mxu0 %v7894_v33 }
0x1407   :  { %v8187_v41 = vpop.eup %8186  ;;  %v3027_v0 = vpack.c.bf16 %v3019_v62, %v3017_v61 }
0x1408   :  { %v8189_v24 = vpop.eup %8188  ;;  %v3005_v63 = vmul.f32 %v8187_v41, %v9470_v8  ;;  %v7897_v8 = vld [vmem:[%s10540_s6 + $0x1c4] ss:$20 sps:$4 sm:$0xff]  }
0x1409   :  { %v8191_v30 = vpop.eup %8190  ;;  %v3007_v48 = vmul.f32 %v8189_v24, %v9475_v39  ;;  %3166 = vmatprep.mubr.bf16.mxu1 %v3027_v0  ;;  %3659 = vmatprep.subr.bf16.mxu1 %v7897_v8 }
0x140a   :  { %v8193_v28 = vpop.eup %8192  ;;  %v3020_v19 = vmul.f32 %v3005_v63, %v9472_v14  ;;  %v3009_v59 = vmul.f32 %v8191_v30, %v9480_v50  ;;  %3167 = vmatmul.mubr.bf16.gmra.mrb[72].mxu1 %v3026_v3  ;;  %v7892_v14 = vld [vmem:[%s10540_s6 + $0x1b8] ss:$20 sps:$4 sm:$0xff]  }
0x140b   :  { %v3021_v51 = vmul.f32 %v3007_v48, %v9477_v42  ;;  %v3011_v18 = vmul.f32 %v8193_v28, %v9485_v54  ;;  %v7895_v42 = vld [vmem:[%s10540_s6 + $0x1c0] ss:$20 sps:$4 sm:$0xff]   ;;  %3597 = vmatpush1.bf16.msra.mxu0 %v7892_v14 }
0x140c   :  { %v3022_v39 = vmul.f32 %v3009_v59, %v9482_v27  ;;  %3660 = vmatpush1.bf16.msra.mxu1 %v7895_v42  ;;  %v7900_v27 = vld [vmem:[%s10540_s6 + $0x1e4] ss:$20 sps:$4 sm:$0xff]  }
0x140d   :  { %v3023_v50 = vmul.f32 %v3011_v18, %v9487_v56  ;;  %v7901_v56 = vld [vmem:[%s10540_s6 + $0x1e8] ss:$20 sps:$4 sm:$0xff]   ;;  %3598 = vmatprep.subr.bf16.mxu0 %v7900_v27  ;;  %3661 = vmatprep.subr.bf16.mxu1 %v7903_v60  ;;  %v7926_v27 = vld [vmem:[%s10540_s6 + $0x1f0] ss:$20 sps:$4 sm:$0xff]   ;;  %v7927_v60 = vld [vmem:[%s10540_s6 + $0x218] ss:$20 sps:$4 sm:$0xff]  }
0x140e   :  { %v3028_v54 = vpack.c.bf16 %v3022_v39, %v3020_v19 }
0x140f   :  { %v3029_v58 = vpack.c.bf16 %v3023_v50, %v3021_v51  ;;  %3599 = vmatpush1.bf16.msra.mxu0 %v7898_v57  ;;  %v7928_v57 = vld [vmem:[%s10540_s6 + $0x240] ss:$20 sps:$4 sm:$0xff]  }
0x1410   :  { %3662 = vmatpush1.bf16.msra.mxu1 %v7901_v56  ;;  %3600 = vmatprep.subr.bf16.mxu0 %v7906_v23  ;;  %v7929_v56 = vld [vmem:[%s10540_s6 + $0x268] ss:$20 sps:$4 sm:$0xff]  }
0x1411   :  { %3174 = vmatprep.mubr.bf16.mxu1 %v3029_v58  ;;  %3663 = vmatprep.subr.bf16.mxu1 %v7909_v53  ;;  %v7925_v58 = vld [vmem:[%s10540_s6 + $0x1c8] ss:$20 sps:$4 sm:$0xff]  }
0x1412   :  { %3175 = vmatmul.mubr.bf16.gmra.mrb[76].mxu1 %v3028_v54  ;;  %v7922_v54 = vld [vmem:[%s10540_s6 + $0x150] ss:$20 sps:$4 sm:$0xff]  }
0x1413   :  { %3685 = vmatprep.mubr.bf16.mxu1 %v8392_v43  ;;  %3601 = vmatpush1.bf16.msra.mxu0 %v7904_v9 }
0x1414   :  { %3664 = vmatpush1.bf16.msra.mxu1 %v7907_v15  ;;  %3602 = vmatprep.subr.bf16.mxu0 %v7912_v12  ;;  %v8380_v12 = vld [vmem:[%s10542_s2] sm:$0xff] }
0x1415   :  { %3665 = vmatprep.subr.bf16.mxu1 %v7915_v4 }
0x1417   :  { %3603 = vmatpush1.bf16.msra.mxu0 %v7910_v31 }
0x1418   :  { %3666 = vmatpush1.bf16.msra.mxu1 %v7913_v36  ;;  %3604 = vmatprep.subr.bf16.mxu0 %v7918_v35 }
0x1419   :  { %3667 = vmatprep.subr.bf16.mxu1 %v7921_v11  ;;  %v8381_v11 = vld [vmem:[%s10543_s3] sm:$0xff] }
0x141b   :  { %3605 = vmatpush1.bf16.msra.mxu0 %v7916_v26 }
0x141c   :  { %3668 = vmatpush1.bf16.msra.mxu1 %v7919_v7  ;;  %7471 = vmatprep.subr.bf16.mxu0 %v8393_v45 }
0x1488   :  { %v3332_v17 = vpop.xlane.xlu0 %3331 }
0x1489   :  { %v3343_v37 = vmul.f32 0.0078125, %v3332_v17 }
0x148a   :  { %v3334_v34 = vpop.xlane.xlu1 %3333 }
0x148b   :  { %v3349_v13 = vadd.f32 1e-06, %v3343_v37  ;;  %v3344_v20 = vmul.f32 0.0078125, %v3334_v34 }
0x148d   :  { %8194 = vrsqrt.f32 %v3349_v13  ;;  %v3350_v44 = vadd.f32 1e-06, %v3344_v20  ;;  %v8382_v20 = vld [vmem:[%s10542_s2 + $0x8] sm:$0xff] }
0x148f   :  { %8196 = vrsqrt.f32 %v3350_v44 }
0x1497   :  { %v8195_v5 = vpop.eup %8194 }
0x1498   :  { %v3361_v52 = vmul.f32 %v8195_v5, %v9491_v49 }
0x1499   :  { %v8197_v46 = vpop.eup %8196 }
0x149a   :  { %v3362_v61 = vmul.f32 %v8197_v46, %v9494_v40  ;;  %v3373_v21 = vmul.f32 %v9582_v55, %v3361_v52 }
0x149c   :  { %v3374_v16 = vmul.f32 %v9582_v55, %v3362_v61 }
0x149e   :  { %v9587_v62 = vpack.c.bf16 %v3374_v16, %v3373_v21 }
0x14a0   :  { %3623 = vmatmul.mubr.bf16.vlgmr.msra.gmra.mrb[88].mxu0 %v9587_v62  ;;  %3686 = vmatmul.mubr.bf16.vlgmr.msra.gmra.mrb[80].mxu1 %v9587_v62 }
0x14a1   :  { %3632 = vmatprep.mubr.bf16.mxu0 %v8392_v43  ;;  %3695 = vmatprep.mubr.bf16.mxu1 %v8392_v43 }
0x14a2   :  { %7472 = vmatpush3.bf16.msra.mxu0 %v7922_v54 }
0x14a3   :  { %7473 = vmatprep.subr.bf16.mxu0 %v8393_v45 }
0x14dd   :  { %v7098_v3 = vpop.f32.mrb[72].mxu1 }
0x14de   :  { %v7099_v41 = vpop.f32.mrb[73].mxu1 }
0x14df   :  { %v7100_v0 = vadd.f32 %v7099_v41, %v7098_v3  ;;  %v7101_v24 = vpop.f32.mrb[74].mxu1  ;;  %v8383_v41 = vld [vmem:[%s10543_s3 + $0x8] sm:$0xff] }
0x14e0   :  { %v7102_v63 = vpop.f32.mrb[75].mxu1 }
0x14e1   :  { %v9594_v30 = vadd.f32 %v7100_v0, %v9184_v47  ;;  %v7103_v48 = vadd.f32 %v7102_v63, %v7101_v24 }
0x14e3   :  { %v9597_v28 = vadd.f32 %v7103_v48, %v9326_v10  ;;  %v3327_v19 = vmul.f32 %v9594_v30, %v9594_v30 }
0x14e5   :  { %3335 = vadd.xlane.f32.xlu0 %v3327_v19  ;;  %v7104_v59 = vpop.f32.mrb[76].mxu1  ;;  %v3328_v51 = vmul.f32 %v9597_v28, %v9597_v28 }
0x14e6   :  { %v7105_v18 = vpop.f32.mrb[77].mxu1 }
0x14e7   :  { %v7106_v33 = vadd.f32 %v7105_v18, %v7104_v59  ;;  %3337 = vadd.xlane.f32.xlu1 %v3328_v51  ;;  %v7107_v8 = vpop.f32.mrb[78].mxu1 }
0x14e8   :  { %v7108_v39 = vpop.f32.mrb[79].mxu1 }
0x14e9   :  { %v9604_v47 = vadd.f32 %v7106_v33, %v9337_v38  ;;  %v7109_v14 = vadd.f32 %v7108_v39, %v7107_v8  ;;  %v7924_v38 = vld [vmem:[%s10540_s6 + $0x1a0] ss:$20 sps:$4 sm:$0xff]  }
0x14eb   :  { %v9607_v10 = vadd.f32 %v7109_v14, %v9332_v6  ;;  %v3329_v42 = vmul.f32 %v9604_v47, %v9604_v47  ;;  %v7923_v6 = vld [vmem:[%s10540_s6 + $0x178] ss:$20 sps:$4 sm:$0xff]  }
0x14ec   :  { %7474 = vmatpush3.bf16.msra.mxu0 %v7923_v6 }
0x14ed   :  { %3339 = vadd.xlane.f32.xlu0 %v3329_v42  ;;  %v3330_v50 = vmul.f32 %v9607_v10, %v9607_v10  ;;  %7475 = vmatprep.subr.bf16.mxu0 %v8393_v45 }
0x14ef   :  { %3341 = vadd.xlane.f32.xlu1 %v3330_v50 }
0x14f0   :  { %7476 = vmatpush3.bf16.msra.mxu0 %v7924_v38 }
0x14f1   :  { %7477 = vmatprep.subr.bf16.mxu0 %v8393_v45 }
0x14f4   :  { %7478 = vmatpush3.bf16.msra.mxu0 %v7925_v58 }
0x14f5   :  { %7479 = vmatprep.subr.bf16.mxu0 %v8393_v45 }
0x14f8   :  { %7480 = vmatpush3.bf16.msra.mxu0 %v7926_v27 }
0x14f9   :  { %7481 = vmatprep.subr.bf16.mxu0 %v8393_v45 }
0x14fc   :  { %7482 = vmatpush3.bf16.msra.mxu0 %v7927_v60 }
0x14fd   :  { %7483 = vmatprep.subr.bf16.mxu0 %v8393_v45 }
0x1500   :  { %7484 = vmatpush3.bf16.msra.mxu0 %v7928_v57 }
0x1501   :  { %7485 = vmatprep.subr.bf16.mxu0 %v8393_v45 }
0x1504   :  { %7486 = vmatpush3.bf16.msra.mxu0 %v7929_v56 }
0x1572   :  { %v3336_v23 = vpop.xlane.xlu0 %3335 }
0x1573   :  { %v3345_v53 = vmul.f32 0.0078125, %v3336_v23  ;;  %v3624_v9 = vpop.f32.mrb[88].mxu0  ;;  %v3687_v15 = vpop.f32.mrb[80].mxu1 }
0x1574   :  { %v3773_v4 = vmul.f32 %v8380_v12, %v3624_v9  ;;  %v3794_v31 = vmul.f32 %v8380_v12, %v3687_v15  ;;  %v3338_v36 = vpop.xlane.xlu1 %3337  ;;  %v3626_v35 = vpop.f32.mrb[89].mxu0 }
0x1575   :  { %v3351_v26 = vadd.f32 1e-06, %v3345_v53  ;;  %v3346_v7 = vmul.f32 0.0078125, %v3338_v36  ;;  %v3779_v17 = vmul.f32 %v8381_v11, %v3626_v35  ;;  %v3689_v37 = vpop.f32.mrb[81].mxu1  ;;  %v3628_v34 = vpop.f32.mrb[90].mxu0 }
0x1576   :  { %v3800_v13 = vmul.f32 %v8381_v11, %v3689_v37  ;;  %v3774_v44 = vmul.f32 %v8382_v20, %v3628_v34  ;;  %v3691_v5 = vpop.f32.mrb[82].mxu1  ;;  %v3630_v52 = vpop.f32.mrb[91].mxu0 }
0x1577   :  { %8198 = vrsqrt.f32 %v3351_v26  ;;  %v3352_v46 = vadd.f32 1e-06, %v3346_v7  ;;  %v3785_v61 = vadd.f32 %v3779_v17, %v3773_v4  ;;  %v3795_v21 = vmul.f32 %v8382_v20, %v3691_v5  ;;  %v3693_v16 = vpop.f32.mrb[83].mxu1 }
0x1578   :  { %v3806_v3 = vadd.f32 %v3800_v13, %v3794_v31  ;;  %v3780_v0 = vmul.f32 %v8383_v41, %v3630_v52  ;;  %v3801_v24 = vmul.f32 %v8383_v41, %v3693_v16  ;;  %v8384_v31 = vld [vmem:[%s10542_s2 + $0x10] sm:$0xff] }
0x1579   :  { %8200 = vrsqrt.f32 %v3352_v46 }
0x157a   :  { %v3786_v63 = vadd.f32 %v3780_v0, %v3774_v44  ;;  %v3807_v48 = vadd.f32 %v3801_v24, %v3795_v21  ;;  %v3340_v19 = vpop.xlane.xlu0 %3339 }
0x157b   :  { %v3347_v59 = vmul.f32 0.0078125, %v3340_v19 }
0x157c   :  { %v9656_v51 = vpack.c.bf16 %v3786_v63, %v3785_v61  ;;  %v9658_v18 = vpack.c.bf16 %v3807_v48, %v3806_v3  ;;  %v3342_v33 = vpop.xlane.xlu1 %3341  ;;  %v8387_v61 = vld [vmem:[%s10543_s3 + $0x18] sm:$0xff] }
0x157d   :  { %v3353_v8 = vadd.f32 1e-06, %v3347_v59  ;;  %v3348_v39 = vmul.f32 0.0078125, %v3342_v33  ;;  %v8388_v59 = vld [vmem:[%s10542_s2 + $0x20] sm:$0xff] }
0x157e   :  { %7715 = vmatprep.subr.msk.bf16.mxu1 %vm718_vm1, %v9658_v18  ;;  %3986 = vrot.lane.b32.xlu0 %v9658_v18, %s8396_s26  ;;  %v3825_v14 = vsel %vm718_vm1, %v9658_v18, 0 }
0x157f   :  { %8202 = vrsqrt.f32 %v3353_v8  ;;  %v3354_v42 = vadd.f32 1e-06, %v3348_v39  ;;  %7500 = vmatpush3.bf16.xpose.msra.mxu1 %v3825_v14 }
0x1581   :  { %v8199_v50 = vpop.eup %8198  ;;  %8204 = vrsqrt.f32 %v3354_v42  ;;  %v8389_v42 = vld [vmem:[%s10543_s3 + $0x20] sm:$0xff] }
0x1582   :  { %v3363_v54 = vmul.f32 %v8199_v50, %v9594_v30 }
0x1583   :  { %v8201_v6 = vpop.eup %8200 }
0x1584   :  { %v3364_v38 = vmul.f32 %v8201_v6, %v9597_v28  ;;  %v3375_v58 = vmul.f32 %v9582_v55, %v3363_v54 }
0x1586   :  { %v3376_v27 = vmul.f32 %v9582_v55, %v3364_v38 }
0x1588   :  { %v3380_v60 = vpack.c.bf16 %v3376_v27, %v3375_v58  ;;  %v8390_v27 = vld [vmem:[%s10542_s2 + $0x28] sm:$0xff] }
0x1589   :  { %v8203_v57 = vpop.eup %8202 }
0x158a   :  { %3633 = vmatmul.mubr.bf16.gmra.mrb[92].mxu0 %v3380_v60  ;;  %3696 = vmatmul.mubr.bf16.gmra.mrb[84].mxu1 %v3380_v60  ;;  %v3365_v56 = vmul.f32 %v8203_v57, %v9604_v47 }
0x158b   :  { %v8205_v23 = vpop.eup %8204  ;;  %3642 = vmatprep.mubr.bf16.mxu0 %v8392_v43  ;;  %3705 = vmatprep.mubr.bf16.mxu1 %v8392_v43 }
0x158c   :  { %v3366_v53 = vmul.f32 %v8205_v23, %v9607_v10  ;;  %v3377_v9 = vmul.f32 %v9582_v55, %v3365_v56 }
0x158e   :  { %v3378_v15 = vmul.f32 %v9582_v55, %v3366_v53 }
0x1590   :  { %v3381_v12 = vpack.c.bf16 %v3378_v15, %v3377_v9  ;;  %v8391_v15 = vld [vmem:[%s10543_s3 + $0x28] sm:$0xff] }
0x1592   :  { %3643 = vmatmul.mubr.bf16.gmra.mrb[96].mxu0 %v3381_v12  ;;  %3706 = vmatmul.mubr.bf16.gmra.mrb[88].mxu1 %v3381_v12 }
0x1593   :  { %7503 = vmatprep.mubr.msk.bf16.mxu1 %vm718_vm1, %v9656_v51  ;;  %7487 = vmatprep.mubr.msk.bf16.mxu0 %vm8394_vm0, %v8393_v45 }
0x159a   :  { %7488 = vmatmul.mubr.bf16.vlgmr.msra.gmra.mrb[100].mxu0 %v9587_v62  ;;  %v8385_v62 = vld [vmem:[%s10543_s3 + $0x10] sm:$0xff] }
0x159b   :  { %7491 = vmatprep.mubr.msk.bf16.mxu0 %vm8394_vm0, %v8393_v45 }
0x15a2   :  { %7492 = vmatmul.mubr.bf16.gmra.mrb[104].mxu0 %v3380_v60 }
0x15a3   :  { %7495 = vmatprep.mubr.msk.bf16.mxu0 %vm8394_vm0, %v8393_v45  ;;  %v8386_v45 = vld [vmem:[%s10542_s2 + $0x18] sm:$0xff] }
0x15aa   :  { %7496 = vmatmul.mubr.bf16.gmra.mrb[108].mxu0 %v3381_v12 }
0x15f0   :  { %v3987_v0 = vpop.permute.xlu0 %3986 }
0x165d   :  { %v3634_v55 = vpop.f32.mrb[92].mxu0  ;;  %v3697_v4 = vpop.f32.mrb[84].mxu1 }
0x165e   :  { %v3775_v36 = vmul.f32 %v8384_v31, %v3634_v55  ;;  %v3796_v35 = vmul.f32 %v8384_v31, %v3697_v4  ;;  %v3636_v26 = vpop.f32.mrb[93].mxu0  ;;  %v3699_v7 = vpop.f32.mrb[85].mxu1 }
0x165f   :  { %v3781_v11 = vmul.f32 %v8385_v62, %v3636_v26  ;;  %v3802_v17 = vmul.f32 %v8385_v62, %v3699_v7  ;;  %v3638_v37 = vpop.f32.mrb[94].mxu0  ;;  %v3701_v34 = vpop.f32.mrb[86].mxu1  ;;  %v3997_v62 = vsel %vm718_vm1, %v3987_v0, 0 }
0x1660   :  { %v3776_v13 = vmul.f32 %v8386_v45, %v3638_v37  ;;  %v3797_v20 = vmul.f32 %v8386_v45, %v3701_v34  ;;  %v3640_v44 = vpop.f32.mrb[95].mxu0  ;;  %v3703_v5 = vpop.f32.mrb[87].mxu1 }
0x1661   :  { %v3787_v52 = vadd.f32 %v3781_v11, %v3775_v36  ;;  %v3808_v46 = vadd.f32 %v3802_v17, %v3796_v35  ;;  %v3782_v21 = vmul.f32 %v8387_v61, %v3640_v44  ;;  %v3803_v16 = vmul.f32 %v8387_v61, %v3703_v5 }
0x1663   :  { %v3788_v3 = vadd.f32 %v3782_v21, %v3776_v13  ;;  %v3809_v41 = vadd.f32 %v3803_v16, %v3797_v20 }
0x1665   :  { %v9697_v24 = vpack.c.bf16 %v3788_v3, %v3787_v52  ;;  %v9699_v63 = vpack.c.bf16 %v3809_v41, %v3808_v46  ;;  %v3644_v48 = vpop.f32.mrb[96].mxu0  ;;  %v3707_v19 = vpop.f32.mrb[88].mxu1 }
0x1666   :  { %v3777_v33 = vmul.f32 %v8388_v59, %v3644_v48  ;;  %v3798_v8 = vmul.f32 %v8388_v59, %v3707_v19  ;;  %v3646_v39 = vpop.f32.mrb[97].mxu0  ;;  %v3709_v14 = vpop.f32.mrb[89].mxu1 }
0x1667   :  { %v3783_v50 = vmul.f32 %v8389_v42, %v3646_v39  ;;  %v3804_v54 = vmul.f32 %v8389_v42, %v3709_v14  ;;  %7716 = vmatprep.subr.msk.bf16.mxu1 %vm718_vm1, %v9699_v63  ;;  %3988 = vrot.lane.b32.xlu1 %v9699_v63, %s8396_s26  ;;  %v3648_v6 = vpop.f32.mrb[98].mxu0  ;;  %v3711_v38 = vpop.f32.mrb[90].mxu1  ;;  %v3828_v58 = vsel %vm718_vm1, %v9699_v63, 0 }
0x1668   :  { %v3778_v60 = vmul.f32 %v8390_v27, %v3648_v6  ;;  %v3799_v57 = vmul.f32 %v8390_v27, %v3711_v38  ;;  %v3650_v56 = vpop.f32.mrb[99].mxu0  ;;  %v3713_v23 = vpop.f32.mrb[91].mxu1  ;;  %7502 = vmatpush3.bf16.xpose.msra.mxu1 %v3828_v58 }
0x1669   :  { %v9716_v53 = vadd.f32 %v3783_v50, %v3777_v33  ;;  %v9718_v9 = vadd.f32 %v3804_v54, %v3798_v8  ;;  %v3784_v12 = vmul.f32 %v8391_v15, %v3650_v56  ;;  %v3805_v55 = vmul.f32 %v8391_v15, %v3713_v23  ;;  %7718 = vmatprep.subr.msk.bf16.mxu1 %vm718_vm1, %v3987_v0 }
0x166b   :  { %v9724_v4 = vadd.f32 %v3784_v12, %v3778_v60  ;;  %v9726_v31 = vadd.f32 %v3805_v55, %v3799_v57  ;;  %3980 = vrot.lane.b32.xlu1 %v9656_v51, %s8396_s26 }
0x166d   :  { %v3793_v36 = vpack.c.bf16 %v9724_v4, %v9716_v53  ;;  %v3814_v35 = vpack.c.bf16 %v9726_v31, %v9718_v9  ;;  %v3750_v26 = vpop.f32.mrb[100].mxu0  ;;  %v4774_v9 = vrot.slane %v9697_v24, 4 }
0x166e   :  { %v7489_v7 = vpop.f32.mrb[101].mxu0 }
0x166f   :  { %3982 = vrot.lane.b32.xlu1 %v9697_v24, %s8396_s26  ;;  %v3753_v11 = vpop.f32.mrb[102].mxu0  ;;  %7504 = vmatmul.mubr.msk.bf16.vlgmr.msra.gmra.mrb[92].mxu1 %vm718_vm1, %v9697_v24 }
0x1670   :  { %v9739_v17 = vpack.c.bf16 %v3753_v11, %v3750_v26  ;;  %v7490_v37 = vpop.f32.mrb[103].mxu0  ;;  %7516 = vmatpush3.bf16.xpose.msra.mxu1 %v3997_v62 }
0x1672   :  { %7507 = vmatprep.subr.bf16.mxu0 %v9739_v17 }
0x1673   :  { %7508 = vmatpush3.bf16.msra.mxu0 %v9739_v17 }
0x1675   :  { %v3758_v34 = vpop.f32.mrb[104].mxu0 }
0x1676   :  { %v7493_v45 = vpop.f32.mrb[105].mxu0 }
0x1677   :  { %v3761_v13 = vpop.f32.mrb[106].mxu0 }
0x1678   :  { %v9743_v20 = vpack.c.bf16 %v3761_v13, %v3758_v34  ;;  %v7494_v44 = vpop.f32.mrb[107].mxu0 }
0x167a   :  { %7717 = vmatprep.subr.msk.bf16.mxu0 %vm827_vm2, %v9743_v20  ;;  %v3926_v5 = vsel %vm827_vm2, %v9743_v20, 0 }
0x167b   :  { %7510 = vmatpush3.bf16.msra.mxu0 %v3926_v5 }
0x167d   :  { %v9749_v52 = vpop.f32.mrb[108].mxu0 }
0x167e   :  { %v7497_v46 = vpop.f32.mrb[109].mxu0 }
0x167f   :  { %v9751_v61 = vpop.f32.mrb[110].mxu0 }
0x1680   :  { %v3817_v21 = vpack.c.bf16 %v9751_v61, %v9749_v52  ;;  %v7498_v16 = vpop.f32.mrb[111].mxu0 }
0x16d9   :  { %v3989_v3 = vpop.permute.xlu1 %3988 }
0x16da   :  { %v4000_v41 = vsel %vm718_vm1, %v3989_v3, 0  ;;  %7719 = vmatprep.subr.msk.bf16.mxu1 %vm718_vm1, %v3989_v3 }
0x16db   :  { %7518 = vmatpush3.bf16.xpose.msra.mxu1 %v4000_v41 }
0x16dd   :  { %v3981_v0 = vpop.permute.xlu1 %3980 }
0x16de   :  { %7519 = vmatprep.mubr.msk.bf16.mxu1 %vm718_vm1, %v3981_v0 }
0x16e1   :  { %v3983_v48 = vpop.permute.xlu1 %3982 }
0x16e2   :  { %7520 = vmatmul.mubr.msk.bf16.vlgmr.msra.gmra.mrb[96].mxu1 %vm718_vm1, %v3983_v48 }
0x1742   :  { %v7505_v19 = vpop.f32.mrb[92].mxu1 }
0x1743   :  { %v3864_v59 = vpop.f32.mrb[93].mxu1  ;;  %v3880_v33 = vmul.f32 0.17677669, %v7505_v19 }
0x1744   :  { %v3878_v8 = vmul.f32 0.17677669, %v3864_v59  ;;  %v7506_v39 = vpop.f32.mrb[94].mxu1 }
0x1745   :  { %v3867_v14 = vpop.f32.mrb[95].mxu1  ;;  %v3883_v54 = vadd.f32 %v3880_v33, %v8760_v25 }
0x1746   :  { %v3881_v42 = vadd.f32 %v3878_v8, %v8754_v2  ;;  %v3879_v50 = vmul.f32 0.17677669, %v3867_v14 }
0x1747   :  { %v3890_v27 = vsel %vm785_vm6, %v3883_v54, -inf }
0x1748   :  { %v3882_v6 = vadd.f32 %v3879_v50, %v8757_v22  ;;  %v3884_v38 = vsel %vm785_vm6, %v3881_v42, -inf }
0x1749   :  { %3885 = vmax.xlane.f32.xlu0 %v3884_v38 }
0x174a   :  { %v3887_v58 = vsel %vm785_vm6, %v3882_v6, -inf }
0x174b   :  { %3888 = vmax.xlane.f32.xlu1 %v3887_v58 }
0x174d   :  { %3891 = vmax.xlane.f32.xlu0 %v3890_v27 }
0x17b5   :  { %v7521_v60 = vpop.f32.mrb[96].mxu1 }
0x17b6   :  { %v4052_v57 = vmul.f32 0.17677669, %v7521_v60  ;;  %v4036_v56 = vpop.f32.mrb[97].mxu1 }
0x17b7   :  { %v4050_v23 = vmul.f32 0.17677669, %v4036_v56  ;;  %v7522_v15 = vpop.f32.mrb[98].mxu1 }
0x17b8   :  { %v4055_v12 = vadd.f32 %v4052_v57, %v8760_v25  ;;  %v4039_v55 = vpop.f32.mrb[99].mxu1 }
0x17b9   :  { %v4053_v26 = vadd.f32 %v4050_v23, %v8754_v2  ;;  %v4051_v7 = vmul.f32 0.17677669, %v4039_v55 }
0x17ba   :  { %v4062_v62 = vsel %vm785_vm6, %v4055_v12, -inf }
0x17bb   :  { %v4054_v11 = vadd.f32 %v4051_v7, %v8757_v22  ;;  %4063 = vmax.xlane.f32.xlu1 %v4062_v62  ;;  %v4056_v37 = vsel %vm785_vm6, %v4053_v26, -inf }
0x17bc   :  { %4057 = vmax.xlane.f32.xlu0 %v4056_v37 }
0x17bd   :  { %v4059_v34 = vsel %vm785_vm6, %v4054_v11, -inf }
0x17c0   :  { %4060 = vmax.xlane.f32.xlu0 %v4059_v34 }
0x17d6   :  { %v3886_v45 = vpop.xlane.xlu0 %3885 }
0x17d7   :  { %v3893_v44 = vsub.f32 %v3881_v42, %v3886_v45 }
0x17d8   :  { %v3889_v13 = vpop.xlane.xlu1 %3888 }
0x17d9   :  { %v3894_v5 = vsub.f32 %v3882_v6, %v3889_v13  ;;  %v3896_v41 = vmul.f32 1.442695, %v3893_v44 }
0x17da   :  { %v3892_v46 = vpop.xlane.xlu0 %3891 }
0x17db   :  { %v3898_v16 = vmul.f32 1.442695, %v3894_v5  ;;  %v3895_v3 = vsub.f32 %v3883_v54, %v3892_v46  ;;  %v9809_v46 = vld [vmem:[%s10545_s7 + $0x48] sm:$0xff]  }
0x17dd   :  { %8206 = vpow2.f32 %v3898_v16  ;;  %v3900_v0 = vmul.f32 1.442695, %v3895_v3 }
0x17df   :  { %8208 = vpow2.f32 %v3900_v0 }
0x17e0   :  { %8210 = vpow2.f32 %v3896_v41 }
0x17e7   :  { %v8207_v48 = vpop.eup %8206 }
0x17e8   :  { %v3905_v19 = vsel %vm785_vm6, %v8207_v48, 0.0 }
0x17e9   :  { %v8209_v59 = vpop.eup %8208  ;;  %3906 = vadd.xlane.f32.xlu1 %v3905_v19  ;;  %v9817_v19 = vld [vmem:[%s10545_s7 + $0x50] sm:$0xff]  }
0x17ea   :  { %v3908_v33 = vsel %vm785_vm6, %v8209_v59, 0.0  ;;  %v8211_v8 = vpop.eup %8210 }
0x17eb   :  { %3909 = vadd.xlane.f32.xlu0 %v3908_v33  ;;  %v3902_v39 = vsel %vm785_vm6, %v8211_v8, 0.0 }
0x17ef   :  { %3903 = vadd.xlane.f32.xlu0 %v3902_v39 }
0x1848   :  { %v4064_v14 = vpop.xlane.xlu1 %4063 }
0x1849   :  { %v4067_v42 = vsub.f32 %v4055_v12, %v4064_v14  ;;  %v4058_v50 = vpop.xlane.xlu0 %4057 }
0x184a   :  { %v4065_v54 = vsub.f32 %v4053_v26, %v4058_v50 }
0x184b   :  { %v4072_v6 = vmul.f32 1.442695, %v4067_v42 }
0x184c   :  { %v4068_v38 = vmul.f32 1.442695, %v4065_v54 }
0x184d   :  { %8212 = vpow2.f32 %v4072_v6  ;;  %v4061_v58 = vpop.xlane.xlu0 %4060 }
0x184e   :  { %v4066_v27 = vsub.f32 %v4054_v11, %v4061_v58  ;;  %8214 = vpow2.f32 %v4068_v38  ;;  %v9800_v11 = vld [vmem:[%s10545_s7 + $0x40] sm:$0xff]   ;;  %v9824_v38 = vld [vmem:[%s10545_s7 + $0x58] sm:$0xff]  }
0x184f   :  { %7539 = vmatprep.subr.bf16.mxu1 %v9800_v11 }
0x1850   :  { %v4070_v60 = vmul.f32 1.442695, %v4066_v27  ;;  %7540 = vmatpush3.bf16.msra.mxu1 %v9800_v11 }
0x1851   :  { %7541 = vmatprep.subr.bf16.mxu1 %v9809_v46 }
0x1852   :  { %8216 = vpow2.f32 %v4070_v60 }
0x1854   :  { %7542 = vmatpush3.bf16.msra.mxu1 %v9809_v46 }
0x1857   :  { %v8213_v57 = vpop.eup %8212 }
0x1858   :  { %v4080_v56 = vsel %vm785_vm6, %v8213_v57, 0.0  ;;  %v8215_v23 = vpop.eup %8214 }
0x1859   :  { %4081 = vadd.xlane.f32.xlu1 %v4080_v56  ;;  %v4074_v55 = vsel %vm785_vm6, %v8215_v23, 0.0 }
0x185c   :  { %v8217_v15 = vpop.eup %8216 }
0x185d   :  { %4075 = vadd.xlane.f32.xlu1 %v4074_v55  ;;  %v4077_v12 = vsel %vm785_vm6, %v8217_v15, 0.0 }
0x185e   :  { %4078 = vadd.xlane.f32.xlu0 %v4077_v12 }
0x186e   :  { %4095 = vrot.lane.b32.xlu1 %v9743_v20, %s8396_s26 }
0x1872   :  { %4293 = vrot.lane.b32.xlu1 %v9658_v18, %s8397_s14 }
0x1874   :  { %4093 = vrot.lane.b32.xlu0 %v9739_v17, %s8396_s26 }
0x1876   :  { %4295 = vrot.lane.b32.xlu1 %v9699_v63, %s8397_s14  ;;  %v3907_v26 = vpop.xlane.xlu1 %3906 }
0x1878   :  { %4289 = vrot.lane.b32.xlu0 %v9656_v51, %s8397_s14  ;;  %v3910_v7 = vpop.xlane.xlu0 %3909 }
0x1879   :  { %8218 = vrcp.f32 %v3910_v7 }
0x187a   :  { %4291 = vrot.lane.b32.xlu1 %v9697_v24, %s8397_s14  ;;  %8220 = vrcp.f32 %v3907_v26 }
0x187c   :  { %4535 = vrot.lane.b32.xlu0 %v9658_v18, %s8398_s15  ;;  %v3904_v62 = vpop.xlane.xlu0 %3903 }
0x187d   :  { %8222 = vrcp.f32 %v3904_v62 }
0x187e   :  { %4537 = vrot.lane.b32.xlu1 %v9699_v63, %s8398_s15 }
0x1880   :  { %4531 = vrot.lane.b32.xlu0 %v9656_v51, %s8398_s15 }
0x1882   :  { %4533 = vrot.lane.b32.xlu1 %v9697_v24, %s8398_s15 }
0x1883   :  { %v8219_v37 = vpop.eup %8218 }
0x1884   :  { %v8221_v18 = vpop.eup %8220  ;;  %v3916_v45 = vmul.f32 %v8219_v37, %v8209_v59 }
0x1885   :  { %v3914_v44 = vmul.f32 %v8221_v18, %v8207_v48 }
0x1886   :  { %v3918_v51 = vpack.c.bf16 %v3916_v45, %v3916_v45 }
0x1887   :  { %v8223_v34 = vpop.eup %8222 }
0x1888   :  { %v3912_v13 = vmul.f32 %v8223_v34, %v8211_v8 }
0x188a   :  { %v3917_v5 = vpack.c.bf16 %v3914_v44, %v3912_v13 }
0x188c   :  { %7511 = vmatprep.mubr.msk.bf16.mxu0 %vm785_vm6, %v3917_v5 }
0x188d   :  { %7512 = vmatmul.mubr.msk.bf16.vlgmr.msra.gmra.mrb[112].mxu0 %vm785_vm6, %v3918_v51 }
0x18e6   :  { %v4082_v16 = vpop.xlane.xlu1 %4081 }
0x18e7   :  { %8224 = vrcp.f32 %v4082_v16 }
0x18ea   :  { %v4076_v3 = vpop.xlane.xlu1 %4075 }
0x18eb   :  { %8226 = vrcp.f32 %v4076_v3  ;;  %v4079_v41 = vpop.xlane.xlu0 %4078 }
0x18ec   :  { %8228 = vrcp.f32 %v4079_v41  ;;  %v9848_v41 = vrot.slane %v3814_v35, 4 }
0x18ee   :  { %v4096_v48 = vpop.permute.xlu1 %4095  ;;  %v4791_v24 = vsel %vm718_vm1, %v9848_v41, 0 }
0x18ef   :  { %v4094_v0 = vpop.permute.xlu0 %4093  ;;  %v4105_v33 = vsel %vm827_vm2, %v4096_v48, 0 }
0x18f0   :  { %7523 = vmatprep.subr.bf16.mxu0 %v4094_v0 }
0x18f1   :  { %7524 = vmatpush3.bf16.msra.mxu0 %v4094_v0  ;;  %v8225_v59 = vpop.eup %8224  ;;  %v4778_v0 = vrot.slane %v9699_v63, 4 }
0x18f2   :  { %7720 = vmatprep.subr.msk.bf16.mxu0 %vm827_vm2, %v4096_v48  ;;  %v4088_v14 = vmul.f32 %v8225_v59, %v8213_v57  ;;  %v4294_v58 = vpop.permute.xlu1 %4293 }
0x18f3   :  { %v4304_v18 = vsel %vm718_vm1, %v4294_v58, 0  ;;  %v4290_v34 = vpop.permute.xlu0 %4289  ;;  %v9854_v59 = vsel %vm827_vm2, %v4778_v0, %v9848_v41 }
0x18f4   :  { %v4090_v6 = vpack.c.bf16 %v4088_v14, %v4088_v14  ;;  %v4788_v63 = vsel %vm718_vm1, %v9854_v59, 0 }
0x18f5   :  { %v8227_v8 = vpop.eup %8226  ;;  %7526 = vmatpush3.bf16.msra.mxu0 %v4105_v33  ;;  %v9861_v33 = vrot.slane %v3793_v36, 4 }
0x18f6   :  { %v8229_v39 = vpop.eup %8228  ;;  %v4084_v42 = vmul.f32 %v8227_v8, %v8215_v23  ;;  %7531 = vmatprep.subr.bf16.mxu0 %v9817_v19  ;;  %v4296_v45 = vpop.permute.xlu1 %4295 }
0x18f7   :  { %v4086_v50 = vmul.f32 %v8229_v39, %v8217_v15  ;;  %v4307_v13 = vsel %vm718_vm1, %v4296_v45, 0  ;;  %v4536_v44 = vpop.permute.xlu0 %4535  ;;  %v9869_v35 = vsel %vm827_vm2, %v4774_v9, %v9861_v33 }
0x18f8   :  { %v4546_v51 = vsel %vm718_vm1, %v4536_v44, 0 }
0x18f9   :  { %v4089_v54 = vpack.c.bf16 %v4086_v50, %v4084_v42 }
0x18fa   :  { %v4292_v5 = vpop.permute.xlu1 %4291 }
0x18fb   :  { %7527 = vmatprep.mubr.msk.bf16.mxu0 %vm785_vm6, %v4089_v54  ;;  %v4532_v16 = vpop.permute.xlu0 %4531 }
0x18fc   :  { %7528 = vmatmul.mubr.msk.bf16.vlgmr.msra.gmra.mrb[116].mxu0 %vm785_vm6, %v4090_v6 }
0x18fd   :  { %7532 = vmatpush3.bf16.msra.mxu0 %v9817_v19 }
0x18fe   :  { %7533 = vmatprep.subr.bf16.mxu0 %v9824_v38  ;;  %v4538_v3 = vpop.permute.xlu1 %4537 }
0x18ff   :  { %v4549_v48 = vsel %vm718_vm1, %v4538_v3, 0 }
0x1901   :  { %7534 = vmatpush3.bf16.msra.mxu0 %v9824_v38 }
0x1902   :  { %7721 = vmatprep.subr.msk.bf16.mxu0 %vm718_vm1, %v4294_v58  ;;  %v4534_v31 = vpop.permute.xlu1 %4533 }
0x1960   :  { %v7513_v27 = vpop.f32.mrb[112].mxu0 }
0x1961   :  { %v3962_v60 = vpop.f32.mrb[113].mxu0  ;;  %v3977_v15 = vpack.c.bf16 %v7513_v27, %v7513_v27 }
0x1962   :  { %v7514_v57 = vpop.f32.mrb[114].mxu0 }
0x1963   :  { %v3965_v56 = vpop.f32.mrb[115].mxu0 }
0x1964   :  { %v3976_v23 = vpack.c.bf16 %v3965_v56, %v3962_v60 }
0x1966   :  { %7543 = vmatprep.mubr.msk.bf16.mxu1 %vm718_vm1, %v3976_v23 }
0x1967   :  { %7544 = vmatmul.mubr.msk.bf16.vlgmr.msra.gmra.mrb[100].mxu1 %vm718_vm1, %v3977_v15 }
0x19cf   :  { %v7529_v55 = vpop.f32.mrb[116].mxu0 }
0x19d0   :  { %v4141_v12 = vpop.f32.mrb[117].mxu0  ;;  %v4156_v37 = vpack.c.bf16 %v7529_v55, %v7529_v55 }
0x19d1   :  { %v7530_v26 = vpop.f32.mrb[118].mxu0 }
0x19d2   :  { %v4144_v7 = vpop.f32.mrb[119].mxu0 }
0x19d3   :  { %v4155_v62 = vpack.c.bf16 %v4144_v7, %v4141_v12 }
0x19d5   :  { %7535 = vmatprep.mubr.msk.bf16.mxu0 %vm718_vm1, %v4155_v62 }
0x19d6   :  { %7536 = vmatmul.mubr.msk.bf16.vlgmr.msra.gmra.mrb[120].mxu0 %vm718_vm1, %v4156_v37 }
0x19d7   :  { %7548 = vmatpush3.bf16.xpose.msra.mxu0 %v4304_v18  ;;  %7551 = vmatprep.mubr.msk.bf16.mxu0 %vm718_vm1, %v4290_v34 }
0x19d8   :  { %7722 = vmatprep.subr.msk.bf16.mxu0 %vm718_vm1, %v4296_v45 }
0x19df   :  { %7550 = vmatpush3.bf16.xpose.msra.mxu0 %v4307_v13 }
0x19e0   :  { %7724 = vmatprep.subr.msk.bf16.mxu0 %vm718_vm1, %v4536_v44 }
0x19e6   :  { %7552 = vmatmul.mubr.msk.bf16.vlgmr.msra.gmra.mrb[124].mxu0 %vm718_vm1, %v4292_v5 }
0x19e7   :  { %7572 = vmatpush3.bf16.xpose.msra.mxu0 %v4546_v51  ;;  %7575 = vmatprep.mubr.msk.bf16.mxu0 %vm718_vm1, %v4532_v16 }
0x19e8   :  { %7725 = vmatprep.subr.msk.bf16.mxu0 %vm718_vm1, %v4538_v3 }
0x19ef   :  { %7574 = vmatpush3.bf16.xpose.msra.mxu0 %v4549_v48 }
0x19f0   :  { %7727 = vmatprep.subr.msk.bf16.mxu0 %vm718_vm1, %v9854_v59 }
0x19f6   :  { %7576 = vmatmul.mubr.msk.bf16.vlgmr.msra.gmra.mrb[128].mxu0 %vm718_vm1, %v4534_v31 }
0x19f7   :  { %7596 = vmatpush3.bf16.xpose.msra.mxu0 %v4788_v63  ;;  %7599 = vmatprep.mubr.msk.bf16.mxu0 %vm718_vm1, %v9869_v35 }
0x19f8   :  { %7728 = vmatprep.subr.msk.bf16.mxu0 %vm718_vm1, %v9848_v41 }
0x19ff   :  { %7598 = vmatpush3.bf16.xpose.msra.mxu0 %v4791_v24 }
0x1a06   :  { %7600 = vmatmul.mubr.msk.bf16.vlgmr.msra.gmra.mrb[132].mxu0 %vm718_vm1, %v9861_v33 }
0x1a3a   :  { %v7545_v53 = vpop.f32.mrb[100].mxu1 }
0x1a3b   :  { %v4275_v4 = vpop.f32.mrb[101].mxu1 }
0x1a3c   :  { %v7546_v36 = vpop.f32.mrb[102].mxu1 }
0x1a3d   :  { %v4278_v8 = vpop.f32.mrb[103].mxu1 }
0x1aa9   :  { %v7537_v39 = vpop.f32.mrb[120].mxu0 }
0x1aaa   :  { %v9879_v14 = vadd.f32 %v7545_v53, %v7537_v39  ;;  %v4209_v42 = vpop.f32.mrb[121].mxu0 }
0x1aab   :  { %v9881_v50 = vadd.f32 %v4275_v4, %v4209_v42  ;;  %v7538_v54 = vpop.f32.mrb[122].mxu0 }
0x1aac   :  { %v4212_v6 = vpop.f32.mrb[123].mxu0 }
0x1aad   :  { %v9883_v58 = vadd.f32 %v4278_v8, %v4212_v6 }
0x1ab9   :  { %v7553_v27 = vpop.f32.mrb[124].mxu0 }
0x1aba   :  { %v4343_v60 = vpop.f32.mrb[125].mxu0  ;;  %v4359_v57 = vmul.f32 0.17677669, %v7553_v27 }
0x1abb   :  { %v4357_v56 = vmul.f32 0.17677669, %v4343_v60  ;;  %v7554_v23 = vpop.f32.mrb[126].mxu0 }
0x1abc   :  { %v4346_v15 = vpop.f32.mrb[127].mxu0  ;;  %v4362_v26 = vadd.f32 %v4359_v57, %v8760_v25 }
0x1abd   :  { %v4360_v55 = vadd.f32 %v4357_v56, %v8754_v2  ;;  %v4358_v12 = vmul.f32 0.17677669, %v4346_v15 }
0x1abe   :  { %v4369_v18 = vsel %vm785_vm6, %v4362_v26, -inf }
0x1abf   :  { %v4361_v7 = vadd.f32 %v4358_v12, %v8757_v22  ;;  %v4363_v62 = vsel %vm785_vm6, %v4360_v55, -inf }
0x1ac0   :  { %4364 = vmax.xlane.f32.xlu0 %v4363_v62 }
0x1ac1   :  { %v4366_v37 = vsel %vm785_vm6, %v4361_v7, -inf }
0x1ac2   :  { %4367 = vmax.xlane.f32.xlu1 %v4366_v37 }
0x1ac4   :  { %4370 = vmax.xlane.f32.xlu0 %v4369_v18 }
0x1ac9   :  { %v7577_v34 = vpop.f32.mrb[128].mxu0 }
0x1aca   :  { %v4585_v45 = vpop.f32.mrb[129].mxu0  ;;  %v4601_v56 = vmul.f32 0.17677669, %v7577_v34 }
0x1acb   :  { %v7578_v13 = vpop.f32.mrb[130].mxu0  ;;  %v4599_v60 = vmul.f32 0.17677669, %v4585_v45 }
0x1acc   :  { %v4588_v44 = vpop.f32.mrb[131].mxu0 }
0x1acd   :  { %v4600_v57 = vmul.f32 0.17677669, %v4588_v44  ;;  %v4602_v23 = vadd.f32 %v4599_v60, %v8754_v2 }
0x1acf   :  { %v4603_v15 = vadd.f32 %v4600_v57, %v8757_v22 }
0x1ad1   :  { %v4608_v12 = vsel %vm785_vm6, %v4603_v15, -inf }
0x1ad9   :  { %v9891_v5 = vpop.f32.mrb[132].mxu0 }
0x1ada   :  { %v9893_v51 = vpop.f32.mrb[133].mxu0 }
0x1adb   :  { %v7602_v16 = vpop.f32.mrb[134].mxu0 }
0x1adc   :  { %v9895_v3 = vpop.f32.mrb[135].mxu0 }
0x1b4d   :  { %v4365_v0 = vpop.xlane.xlu0 %4364 }
0x1b4e   :  { %v4372_v48 = vsub.f32 %v4360_v55, %v4365_v0  ;;  %v4604_v55 = vadd.f32 %v4601_v56, %v8760_v25  ;;  %v9914_v25 = vld [vmem:[%s10545_s7 + $0x60] sm:$0xff]  }
0x1b4f   :  { %v4368_v9 = vpop.xlane.xlu1 %4367 }
0x1b50   :  { %v4375_v31 = vmul.f32 1.442695, %v4372_v48  ;;  %v4373_v63 = vsub.f32 %v4361_v7, %v4368_v9  ;;  %v4611_v7 = vsel %vm785_vm6, %v4604_v55, -inf }
0x1b51   :  { %v4371_v24 = vpop.xlane.xlu0 %4370 }
0x1b52   :  { %8230 = vpow2.f32 %v4375_v31  ;;  %v4377_v53 = vmul.f32 1.442695, %v4373_v63  ;;  %v4374_v4 = vsub.f32 %v4362_v26, %v4371_v24  ;;  %v4605_v26 = vsel %vm785_vm6, %v4602_v23, -inf }
0x1b54   :  { %8232 = vpow2.f32 %v4377_v53  ;;  %v4379_v36 = vmul.f32 1.442695, %v4374_v4 }
0x1b56   :  { %8234 = vpow2.f32 %v4379_v36 }
0x1b5c   :  { %v8231_v8 = vpop.eup %8230 }
0x1b5d   :  { %v4381_v39 = vsel %vm785_vm6, %v8231_v8, 0.0 }
0x1b5e   :  { %v8233_v42 = vpop.eup %8232  ;;  %4382 = vadd.xlane.f32.xlu0 %v4381_v39 }
0x1b5f   :  { %v4384_v6 = vsel %vm785_vm6, %v8233_v42, 0.0 }
0x1b60   :  { %v8235_v54 = vpop.eup %8234 }
0x1b61   :  { %v4387_v27 = vsel %vm785_vm6, %v8235_v54, 0.0 }
0x1b62   :  { %4385 = vadd.xlane.f32.xlu0 %v4384_v6  ;;  %4388 = vadd.xlane.f32.xlu1 %v4387_v27 }
0x1b73   :  { %4400 = vrot.lane.b32.xlu1 %v9743_v20, %s8397_s14 }
0x1b78   :  { %4398 = vrot.lane.b32.xlu0 %v9739_v17, %s8397_s14 }
0x1b97   :  { %4609 = vmax.xlane.f32.xlu0 %v4608_v12  ;;  %4606 = vmax.xlane.f32.xlu1 %v4605_v26  ;;  %v4843_v12 = vmul.f32 0.17677669, %v9891_v5 }
0x1b9b   :  { %4612 = vmax.xlane.f32.xlu0 %v4611_v7  ;;  %v4841_v7 = vmul.f32 0.17677669, %v9893_v51 }
0x1beb   :  { %v4383_v62 = vpop.xlane.xlu0 %4382 }
0x1bec   :  { %8236 = vrcp.f32 %v4383_v62  ;;  %v4846_v62 = vadd.f32 %v4843_v12, %v8975_v29 }
0x1bef   :  { %v4389_v37 = vpop.xlane.xlu1 %4388  ;;  %v4386_v18 = vpop.xlane.xlu0 %4385 }
0x1bf0   :  { %8238 = vrcp.f32 %v4389_v37 }
0x1bf1   :  { %8240 = vrcp.f32 %v4386_v18  ;;  %v4844_v18 = vadd.f32 %v4841_v7, %v8981_v32 }
0x1bf3   :  { %v4399_v2 = vpop.permute.xlu0 %4398  ;;  %v4401_v22 = vpop.permute.xlu1 %4400 }
0x1bf4   :  { %7555 = vmatprep.subr.bf16.mxu1 %v4399_v2  ;;  %v4410_v34 = vsel %vm827_vm2, %v4401_v22, 0 }
0x1bf5   :  { %7556 = vmatpush3.bf16.msra.mxu1 %v4399_v2  ;;  %v4847_v2 = vsel %vm785_vm6, %v4844_v18, -inf }
0x1bf6   :  { %7723 = vmatprep.subr.msk.bf16.mxu1 %vm827_vm2, %v4401_v22  ;;  %v8237_v45 = vpop.eup %8236 }
0x1bf7   :  { %v4391_v0 = vmul.f32 %v8237_v45, %v8231_v8 }
0x1bf9   :  { %7558 = vmatpush3.bf16.msra.mxu1 %v4410_v34 }
0x1bfa   :  { %v8239_v13 = vpop.eup %8238  ;;  %7563 = vmatprep.subr.bf16.mxu1 %v9914_v25 }
0x1bfb   :  { %v8241_v44 = vpop.eup %8240  ;;  %v4395_v16 = vmul.f32 %v8239_v13, %v8235_v54 }
0x1bfc   :  { %v4393_v48 = vmul.f32 %v8241_v44, %v8233_v42 }
0x1bfd   :  { %v4397_v9 = vpack.c.bf16 %v4395_v16, %v4395_v16 }
0x1bfe   :  { %v4396_v31 = vpack.c.bf16 %v4393_v48, %v4391_v0 }
0x1c00   :  { %7559 = vmatprep.mubr.msk.bf16.mxu1 %vm785_vm6, %v4396_v31 }
0x1c01   :  { %7560 = vmatmul.mubr.msk.bf16.vlgmr.msra.gmra.mrb[104].mxu1 %vm785_vm6, %v4397_v9 }
0x1c02   :  { %7564 = vmatpush3.bf16.msra.mxu1 %v9914_v25 }
0x1c24   :  { %v4607_v63 = vpop.xlane.xlu1 %4606  ;;  %v4610_v24 = vpop.xlane.xlu0 %4609 }
0x1c25   :  { %v4615_v53 = vsub.f32 %v4603_v15, %v4610_v24  ;;  %v4614_v4 = vsub.f32 %v4602_v23, %v4607_v63  ;;  %v9927_v23 = vld [vmem:[%s10545_s7 + $0x68] sm:$0xff]  }
0x1c26   :  { %7565 = vmatprep.subr.bf16.mxu1 %v9927_v23 }
0x1c27   :  { %v4619_v36 = vmul.f32 1.442695, %v4615_v53  ;;  %v4617_v27 = vmul.f32 1.442695, %v4614_v4  ;;  %7566 = vmatpush3.bf16.msra.mxu1 %v9927_v23 }
0x1c28   :  { %v4613_v39 = vpop.xlane.xlu0 %4612 }
0x1c29   :  { %v4616_v6 = vsub.f32 %v4604_v55, %v4613_v39  ;;  %8242 = vpow2.f32 %v4619_v36  ;;  %v4842_v55 = vmul.f32 0.17677669, %v9895_v3  ;;  %v9951_v39 = vld [vmem:[%s10545_s7 + $0x70] sm:$0xff]  }
0x1c2b   :  { %v4621_v54 = vmul.f32 1.442695, %v4616_v6  ;;  %v4845_v26 = vadd.f32 %v4842_v55, %v8970_v1 }
0x1c2d   :  { %8244 = vpow2.f32 %v4621_v54  ;;  %v4850_v37 = vsel %vm785_vm6, %v4845_v26, -inf  ;;  %v9958_v54 = vld [vmem:[%s10545_s7 + $0x78] sm:$0xff]  }
0x1c2e   :  { %8246 = vpow2.f32 %v4617_v27 }
0x1c33   :  { %v8243_v8 = vpop.eup %8242 }
0x1c34   :  { %v4626_v42 = vsel %vm785_vm6, %v8243_v8, 0.0 }
0x1c35   :  { %4627 = vadd.xlane.f32.xlu0 %v4626_v42  ;;  %v4883_v42 = vrot.slane %v9743_v20, 4 }
0x1c37   :  { %v8245_v60 = vpop.eup %8244 }
0x1c38   :  { %v4629_v57 = vsel %vm785_vm6, %v8245_v60, 0.0  ;;  %v8247_v56 = vpop.eup %8246 }
0x1c39   :  { %4630 = vadd.xlane.f32.xlu1 %v4629_v57  ;;  %v4623_v15 = vsel %vm785_vm6, %v8247_v56, 0.0 }
0x1c3d   :  { %4624 = vadd.xlane.f32.xlu1 %v4623_v15 }
0x1c4b   :  { %4640 = vrot.lane.b32.xlu0 %v9739_v17, %s8398_s15  ;;  %v4853_v17 = vsel %vm785_vm6, %v4846_v62, -inf }
0x1c4e   :  { %4642 = vrot.lane.b32.xlu1 %v9743_v20, %s8398_s15 }
0x1c6a   :  { %4851 = vmax.xlane.f32.xlu0 %v4850_v37 }
0x1c6e   :  { %4854 = vmax.xlane.f32.xlu0 %v4853_v17 }
0x1c72   :  { %4848 = vmax.xlane.f32.xlu1 %v4847_v2 }
0x1cc2   :  { %v4628_v3 = vpop.xlane.xlu0 %4627 }
0x1cc3   :  { %8248 = vrcp.f32 %v4628_v3 }
0x1cc6   :  { %v4631_v22 = vpop.xlane.xlu1 %4630  ;;  %v4641_v5 = vpop.permute.xlu0 %4640 }
0x1cc7   :  { %7579 = vmatprep.subr.bf16.mxu1 %v4641_v5 }
0x1cca   :  { %v4625_v34 = vpop.xlane.xlu1 %4624 }
0x1ccb   :  { %8250 = vrcp.f32 %v4625_v34 }
0x1ccc   :  { %8252 = vrcp.f32 %v4631_v22 }
0x1ccd   :  { %v8249_v51 = vpop.eup %8248 }
0x1cce   :  { %v4635_v48 = vmul.f32 %v8249_v51, %v8243_v8  ;;  %v4643_v4 = vpop.permute.xlu1 %4642  ;;  %v9964_v8 = vrot.slane %v3817_v21, 4 }
0x1ccf   :  { %v4652_v6 = vsel %vm827_vm2, %v4643_v4, 0 }
0x1cd4   :  { %v7561_v45 = vpop.f32.mrb[104].mxu1 }
0x1cd5   :  { %v8251_v13 = vpop.eup %8250  ;;  %v4446_v44 = vpop.f32.mrb[105].mxu1  ;;  %v4461_v24 = vpack.c.bf16 %v7561_v45, %v7561_v45 }
0x1cd6   :  { %v7562_v16 = vpop.f32.mrb[106].mxu1  ;;  %v4633_v0 = vmul.f32 %v8251_v13, %v8247_v56  ;;  %v8253_v53 = vpop.eup %8252 }
0x1cd7   :  { %v4449_v9 = vpop.f32.mrb[107].mxu1  ;;  %v4637_v36 = vmul.f32 %v8253_v53, %v8245_v60  ;;  %v9972_v60 = vsel %vm827_vm2, %v4883_v42, %v9964_v8  ;;  %v4894_v42 = vsel %vm827_vm2, %v9964_v8, 0 }
0x1cd8   :  { %v4460_v31 = vpack.c.bf16 %v4449_v9, %v4446_v44  ;;  %v4638_v63 = vpack.c.bf16 %v4635_v48, %v4633_v0 }
0x1cd9   :  { %v4639_v27 = vpack.c.bf16 %v4637_v36, %v4637_v36 }
0x1cda   :  { %7567 = vmatprep.mubr.msk.bf16.mxu1 %vm718_vm1, %v4460_v31 }
0x1cdb   :  { %7568 = vmatmul.mubr.msk.bf16.vlgmr.msra.gmra.mrb[108].mxu1 %vm718_vm1, %v4461_v24 }
0x1cdc   :  { %7580 = vmatpush3.bf16.msra.mxu1 %v4641_v5  ;;  %7583 = vmatprep.mubr.msk.bf16.mxu1 %vm785_vm6, %v4638_v63 }
0x1cdd   :  { %7726 = vmatprep.subr.msk.bf16.mxu1 %vm827_vm2, %v4643_v4 }
0x1ce0   :  { %7582 = vmatpush3.bf16.msra.mxu1 %v4652_v6 }
0x1ce1   :  { %7587 = vmatprep.subr.bf16.mxu1 %v9951_v39 }
0x1ce3   :  { %7584 = vmatmul.mubr.msk.bf16.vlgmr.msra.gmra.mrb[112].mxu1 %vm785_vm6, %v4639_v27 }
0x1ce4   :  { %7588 = vmatpush3.bf16.msra.mxu1 %v9951_v39 }
0x1ce5   :  { %7589 = vmatprep.subr.bf16.mxu1 %v9958_v54 }
0x1ce8   :  { %7590 = vmatpush3.bf16.msra.mxu1 %v9958_v54 }
0x1ce9   :  { %7603 = vmatprep.subr.bf16.mxu1 %v9972_v60 }
0x1cf7   :  { %v4852_v57 = vpop.xlane.xlu0 %4851 }
0x1cf8   :  { %v4857_v56 = vsub.f32 %v4845_v26, %v4852_v57 }
0x1cfa   :  { %v4861_v15 = vmul.f32 1.442695, %v4857_v56 }
0x1cfb   :  { %v4855_v52 = vpop.xlane.xlu0 %4854 }
0x1cfc   :  { %8254 = vpow2.f32 %v4861_v15  ;;  %v4858_v61 = vsub.f32 %v4846_v62, %v4855_v52 }
0x1cfe   :  { %v4863_v12 = vmul.f32 1.442695, %v4858_v61 }
0x1cff   :  { %v4849_v21 = vpop.xlane.xlu1 %4848 }
0x1d00   :  { %v4856_v55 = vsub.f32 %v4844_v18, %v4849_v21 }
0x1d02   :  { %v4859_v7 = vmul.f32 1.442695, %v4856_v55 }
0x1d04   :  { %8256 = vpow2.f32 %v4859_v7 }
0x1d05   :  { %8258 = vpow2.f32 %v4863_v12 }
0x1d06   :  { %v8255_v20 = vpop.eup %8254 }
0x1d07   :  { %v4868_v37 = vsel %vm785_vm6, %v8255_v20, 0.0 }
0x1d08   :  { %4869 = vadd.xlane.f32.xlu0 %v4868_v37 }
0x1d0e   :  { %v8257_v17 = vpop.eup %8256 }
0x1d0f   :  { %v4865_v2 = vsel %vm785_vm6, %v8257_v17, 0.0  ;;  %v8259_v3 = vpop.eup %8258 }
0x1d10   :  { %4866 = vadd.xlane.f32.xlu1 %v4865_v2  ;;  %v4871_v26 = vsel %vm785_vm6, %v8259_v3, 0.0 }
0x1d14   :  { %4872 = vadd.xlane.f32.xlu1 %v4871_v26 }
0x1d1e   :  { %4950 = vrot.lane.b32.xlu0 %v9854_v59, %s8396_s26 }
0x1d25   :  { %4952 = vrot.lane.b32.xlu1 %v9848_v41, %s8396_s26 }
0x1d29   :  { %4946 = vrot.lane.b32.xlu1 %v9869_v35, %s8396_s26 }
0x1d2d   :  { %4948 = vrot.lane.b32.xlu1 %v9861_v33, %s8396_s26 }
0x1d95   :  { %v4870_v18 = vpop.xlane.xlu0 %4869 }
0x1d99   :  { %v4951_v57 = vpop.permute.xlu0 %4950 }
0x1d9a   :  { %v4961_v52 = vsel %vm718_vm1, %v4951_v57, 0 }
0x1d9d   :  { %v4867_v62 = vpop.xlane.xlu1 %4866 }
0x1d9e   :  { %8260 = vrcp.f32 %v4867_v62 }
0x1d9f   :  { %8262 = vrcp.f32 %v4870_v18 }
0x1da1   :  { %v4873_v5 = vpop.xlane.xlu1 %4872 }
0x1da2   :  { %8264 = vrcp.f32 %v4873_v5 }
0x1da8   :  { %v8261_v0 = vpop.eup %8260 }
0x1da9   :  { %v8263_v9 = vpop.eup %8262  ;;  %v4875_v24 = vmul.f32 %v8261_v0, %v8257_v17 }
0x1daa   :  { %v4877_v36 = vmul.f32 %v8263_v9, %v8255_v20 }
0x1dac   :  { %v8265_v27 = vpop.eup %8264 }
0x1dae   :  { %v7569_v22 = vpop.f32.mrb[108].mxu1 }
0x1daf   :  { %v4530_v34 = vadd.f32 %v7569_v22, %v9879_v14  ;;  %v4514_v51 = vpop.f32.mrb[109].mxu1  ;;  %v4880_v14 = vpack.c.bf16 %v4877_v36, %v4875_v24 }
0x1db0   :  { %v4528_v45 = vadd.f32 %v4514_v51, %v9881_v50  ;;  %v7570_v13 = vpop.f32.mrb[110].mxu1  ;;  %v4879_v50 = vmul.f32 %v8265_v27, %v8259_v3 }
0x1db1   :  { %v4517_v44 = vpop.f32.mrb[111].mxu1 }
0x1db2   :  { %v4529_v16 = vadd.f32 %v4517_v44, %v9883_v58  ;;  %v4953_v58 = vpop.permute.xlu1 %4952  ;;  %v4881_v56 = vpack.c.bf16 %v4879_v50, %v4879_v50 }
0x1db3   :  { %v4964_v61 = vsel %vm718_vm1, %v4953_v58, 0 }
0x1db6   :  { %v7585_v48 = vpop.f32.mrb[112].mxu1  ;;  %v4947_v15 = vpop.permute.xlu1 %4946 }
0x1db7   :  { %v4688_v31 = vpop.f32.mrb[113].mxu1  ;;  %v4703_v6 = vpack.c.bf16 %v7585_v48, %v7585_v48 }
0x1db8   :  { %v7586_v63 = vpop.f32.mrb[114].mxu1 }
0x1db9   :  { %v4691_v53 = vpop.f32.mrb[115].mxu1 }
0x1dba   :  { %v4702_v4 = vpack.c.bf16 %v4691_v53, %v4688_v31  ;;  %v4949_v21 = vpop.permute.xlu1 %4948 }
0x1dbc   :  { %7591 = vmatprep.mubr.msk.bf16.mxu1 %vm718_vm1, %v4702_v4 }
0x1dbd   :  { %7592 = vmatmul.mubr.msk.bf16.vlgmr.msra.gmra.mrb[116].mxu1 %vm718_vm1, %v4703_v6 }
0x1dbe   :  { %7604 = vmatpush3.bf16.msra.mxu1 %v9972_v60  ;;  %7607 = vmatprep.mubr.msk.bf16.mxu1 %vm785_vm6, %v4880_v14 }
0x1dbf   :  { %7729 = vmatprep.subr.msk.bf16.mxu1 %vm827_vm2, %v9964_v8 }
0x1dc2   :  { %7606 = vmatpush3.bf16.msra.mxu1 %v4894_v42 }
0x1dc3   :  { %7730 = vmatprep.subr.msk.bf16.mxu1 %vm718_vm1, %v4951_v57 }
0x1dc5   :  { %7608 = vmatmul.mubr.msk.bf16.vlgmr.msra.gmra.mrb[120].mxu1 %vm785_vm6, %v4881_v56 }
0x1dc6   :  { %7615 = vmatprep.mubr.msk.bf16.mxu1 %vm718_vm1, %v4947_v15 }
0x1dcb   :  { %7612 = vmatpush3.bf16.xpose.msra.mxu1 %v4961_v52 }
0x1dcc   :  { %7731 = vmatprep.subr.msk.bf16.mxu1 %vm718_vm1, %v4953_v58 }
0x1dd3   :  { %7614 = vmatpush3.bf16.xpose.msra.mxu1 %v4964_v61 }
0x1dd4   :  { %7635 = vmatprep.subr.bf16.mxu1 %v9800_v11 }
0x1dda   :  { %7616 = vmatmul.mubr.msk.bf16.vlgmr.msra.gmra.mrb[124].mxu1 %vm718_vm1, %v4949_v21 }
0x1ddb   :  { %7636 = vmatpush3.bf16.msra.mxu1 %v9800_v11 }
0x1ddc   :  { %7637 = vmatprep.subr.bf16.mxu1 %v9809_v46 }
0x1ddf   :  { %7638 = vmatpush3.bf16.msra.mxu1 %v9809_v46 }
0x1e90   :  { %v7593_v55 = vpop.f32.mrb[116].mxu1 }
0x1e91   :  { %v10008_v12 = vadd.f32 %v7593_v55, %v4530_v34  ;;  %v4756_v7 = vpop.f32.mrb[117].mxu1 }
0x1e92   :  { %v10010_v20 = vadd.f32 %v4756_v7, %v4528_v45  ;;  %v7594_v37 = vpop.f32.mrb[118].mxu1 }
0x1e93   :  { %v4759_v17 = vpop.f32.mrb[119].mxu1 }
0x1e94   :  { %v10012_v2 = vadd.f32 %v4759_v17, %v4529_v16 }
0x1e98   :  { %v7609_v3 = vpop.f32.mrb[120].mxu1 }
0x1e99   :  { %v4930_v26 = vpop.f32.mrb[121].mxu1  ;;  %v4945_v11 = vpack.c.bf16 %v7609_v3, %v7609_v3 }
0x1e9a   :  { %v7610_v62 = vpop.f32.mrb[122].mxu1 }
0x1e9b   :  { %v4933_v18 = vpop.f32.mrb[123].mxu1 }
0x1e9c   :  { %v4944_v22 = vpack.c.bf16 %v4933_v18, %v4930_v26 }
0x1e9e   :  { %7639 = vmatprep.mubr.msk.bf16.mxu1 %vm718_vm1, %v4944_v22 }
0x1e9f   :  { %7640 = vmatmul.mubr.msk.bf16.vlgmr.msra.gmra.mrb[128].mxu1 %vm718_vm1, %v4945_v11 }
0x1ead   :  { %v7617_v46 = vpop.f32.mrb[124].mxu1 }
0x1eae   :  { %v5000_v5 = vpop.f32.mrb[125].mxu1  ;;  %v5016_v34 = vmul.f32 0.17677669, %v7617_v46 }
0x1eaf   :  { %v5014_v51 = vmul.f32 0.17677669, %v5000_v5  ;;  %v7618_v45 = vpop.f32.mrb[126].mxu1 }
0x1eb0   :  { %v5003_v13 = vpop.f32.mrb[127].mxu1  ;;  %v5019_v0 = vadd.f32 %v5016_v34, %v8975_v29 }
0x1eb1   :  { %v5017_v44 = vadd.f32 %v5014_v51, %v8981_v32  ;;  %v5015_v16 = vmul.f32 0.17677669, %v5003_v13 }
0x1eb2   :  { %v5026_v63 = vsel %vm785_vm6, %v5019_v0, -inf }
0x1eb3   :  { %v5018_v48 = vadd.f32 %v5015_v16, %v8970_v1  ;;  %v5020_v9 = vsel %vm785_vm6, %v5017_v44, -inf }
0x1eb4   :  { %5021 = vmax.xlane.f32.xlu0 %v5020_v9 }
0x1eb5   :  { %v5023_v31 = vsel %vm785_vm6, %v5018_v48, -inf }
0x1eb6   :  { %5024 = vmax.xlane.f32.xlu1 %v5023_v31 }
0x1eb8   :  { %5027 = vmax.xlane.f32.xlu0 %v5026_v63 }
0x1f41   :  { %v5022_v24 = vpop.xlane.xlu0 %5021 }
0x1f42   :  { %v5029_v53 = vsub.f32 %v5017_v44, %v5022_v24 }
0x1f43   :  { %v5025_v4 = vpop.xlane.xlu1 %5024 }
0x1f44   :  { %v5032_v36 = vmul.f32 1.442695, %v5029_v53  ;;  %v5030_v6 = vsub.f32 %v5018_v48, %v5025_v4 }
0x1f45   :  { %v5028_v27 = vpop.xlane.xlu0 %5027 }
0x1f46   :  { %8266 = vpow2.f32 %v5032_v36  ;;  %v5034_v14 = vmul.f32 1.442695, %v5030_v6  ;;  %v5031_v50 = vsub.f32 %v5019_v0, %v5028_v27 }
0x1f48   :  { %8268 = vpow2.f32 %v5034_v14  ;;  %v5036_v58 = vmul.f32 1.442695, %v5031_v50 }
0x1f4a   :  { %8270 = vpow2.f32 %v5036_v58 }
0x1f50   :  { %v8267_v42 = vpop.eup %8266 }
0x1f51   :  { %v5038_v57 = vsel %vm785_vm6, %v8267_v42, 0.0 }
0x1f52   :  { %v8269_v56 = vpop.eup %8268  ;;  %5039 = vadd.xlane.f32.xlu0 %v5038_v57 }
0x1f53   :  { %v5041_v61 = vsel %vm785_vm6, %v8269_v56, 0.0 }
0x1f54   :  { %v8271_v15 = vpop.eup %8270 }
0x1f55   :  { %v5044_v52 = vsel %vm785_vm6, %v8271_v15, 0.0 }
0x1f56   :  { %5045 = vadd.xlane.f32.xlu1 %v5044_v52  ;;  %5042 = vadd.xlane.f32.xlu0 %v5041_v61 }
0x1f67   :  { %5057 = vrot.lane.b32.xlu1 %v9964_v8, %s8396_s26 }
0x1f6b   :  { %5231 = vrot.lane.b32.xlu1 %v9854_v59, %s8397_s14 }
0x1f6c   :  { %5055 = vrot.lane.b32.xlu0 %v9972_v60, %s8396_s26 }
0x1f6f   :  { %5233 = vrot.lane.b32.xlu1 %v9848_v41, %s8397_s14 }
0x1f70   :  { %5227 = vrot.lane.b32.xlu0 %v9869_v35, %s8397_s14 }
0x1f72   :  { %v10035_v21 = vpop.f32.mrb[128].mxu1 }
0x1f73   :  { %5229 = vrot.lane.b32.xlu1 %v9861_v33, %s8397_s14  ;;  %v10039_v55 = vpop.f32.mrb[129].mxu1 }
0x1f74   :  { %5461 = vrot.lane.b32.xlu0 %v9854_v59, %s8398_s15  ;;  %v7642_v7 = vpop.f32.mrb[130].mxu1 }
0x1f75   :  { %v10043_v37 = vpop.f32.mrb[131].mxu1 }
0x1f77   :  { %5463 = vrot.lane.b32.xlu1 %v9848_v41, %s8398_s15 }
0x1f78   :  { %5457 = vrot.lane.b32.xlu0 %v9869_v35, %s8398_s15 }
0x1f7b   :  { %5459 = vrot.lane.b32.xlu1 %v9861_v33, %s8398_s15 }
0x1fdf   :  { %v5040_v17 = vpop.xlane.xlu0 %5039 }
0x1fe0   :  { %8272 = vrcp.f32 %v5040_v17 }
0x1fe3   :  { %v5043_v3 = vpop.xlane.xlu0 %5042  ;;  %v5046_v26 = vpop.xlane.xlu1 %5045 }
0x1fe4   :  { %8274 = vrcp.f32 %v5043_v3 }
0x1fe5   :  { %8276 = vrcp.f32 %v5046_v26 }
0x1fe7   :  { %v5056_v62 = vpop.permute.xlu0 %5055  ;;  %v5058_v59 = vpop.permute.xlu1 %5057 }
0x1fe8   :  { %7619 = vmatprep.subr.bf16.mxu0 %v5056_v62  ;;  %v5067_v41 = vsel %vm827_vm2, %v5058_v59, 0 }
0x1fe9   :  { %7620 = vmatpush3.bf16.msra.mxu0 %v5056_v62 }
0x1fea   :  { %7732 = vmatprep.subr.msk.bf16.mxu0 %vm827_vm2, %v5058_v59  ;;  %v8273_v18 = vpop.eup %8272 }
0x1feb   :  { %v5048_v22 = vmul.f32 %v8273_v18, %v8267_v42  ;;  %v5232_v51 = vpop.permute.xlu1 %5231  ;;  %v5228_v9 = vpop.permute.xlu0 %5227 }
0x1fec   :  { %v5242_v31 = vsel %vm718_vm1, %v5232_v51, 0 }
0x1fed   :  { %7622 = vmatpush3.bf16.msra.mxu0 %v5067_v41 }
0x1fee   :  { %v8275_v35 = vpop.eup %8274  ;;  %7627 = vmatprep.subr.bf16.mxu0 %v9817_v19 }
0x1fef   :  { %v8277_v33 = vpop.eup %8276  ;;  %v5050_v11 = vmul.f32 %v8275_v35, %v8269_v56  ;;  %v5462_v63 = vpop.permute.xlu0 %5461 }
0x1ff0   :  { %v5052_v46 = vmul.f32 %v8277_v33, %v8271_v15  ;;  %v5472_v53 = vsel %vm718_vm1, %v5462_v63, 0 }
0x1ff1   :  { %v5053_v5 = vpack.c.bf16 %v5050_v11, %v5048_v22 }
0x1ff2   :  { %v5054_v34 = vpack.c.bf16 %v5052_v46, %v5052_v46 }
0x1ff3   :  { %7623 = vmatprep.mubr.msk.bf16.mxu0 %vm785_vm6, %v5053_v5  ;;  %v5458_v4 = vpop.permute.xlu0 %5457 }
0x1ff4   :  { %7624 = vmatmul.mubr.msk.bf16.vlgmr.msra.gmra.mrb[136].mxu0 %vm785_vm6, %v5054_v34 }
0x1ff5   :  { %7628 = vmatpush3.bf16.msra.mxu0 %v9817_v19  ;;  %v5234_v19 = vpop.permute.xlu1 %5233 }
0x1ff6   :  { %7629 = vmatprep.subr.bf16.mxu0 %v9824_v38 }
0x1ff9   :  { %7630 = vmatpush3.bf16.msra.mxu0 %v9824_v38  ;;  %v5245_v38 = vsel %vm718_vm1, %v5234_v19, 0  ;;  %v5230_v24 = vpop.permute.xlu1 %5229 }
0x1ffa   :  { %7733 = vmatprep.subr.msk.bf16.mxu0 %vm718_vm1, %v5232_v51 }
0x1ffd   :  { %v5464_v36 = vpop.permute.xlu1 %5463 }
0x1ffe   :  { %v5475_v6 = vsel %vm718_vm1, %v5464_v36, 0 }
0x2001   :  { %v5460_v27 = vpop.permute.xlu1 %5459 }
0x20c7   :  { %v7625_v45 = vpop.f32.mrb[136].mxu0 }
0x20c8   :  { %v5103_v13 = vpop.f32.mrb[137].mxu0  ;;  %v5118_v48 = vpack.c.bf16 %v7625_v45, %v7625_v45 }
0x20c9   :  { %v7626_v44 = vpop.f32.mrb[138].mxu0 }
0x20ca   :  { %v5106_v16 = vpop.f32.mrb[139].mxu0 }
0x20cb   :  { %v5117_v0 = vpack.c.bf16 %v5106_v16, %v5103_v13 }
0x20cd   :  { %7631 = vmatprep.mubr.msk.bf16.mxu0 %vm718_vm1, %v5117_v0 }
0x20ce   :  { %7632 = vmatmul.mubr.msk.bf16.vlgmr.msra.gmra.mrb[140].mxu0 %vm718_vm1, %v5118_v48 }
0x20cf   :  { %7644 = vmatpush3.bf16.xpose.msra.mxu0 %v5242_v31  ;;  %7647 = vmatprep.mubr.msk.bf16.mxu0 %vm718_vm1, %v5228_v9 }
0x20d0   :  { %7734 = vmatprep.subr.msk.bf16.mxu0 %vm718_vm1, %v5234_v19 }
0x20d7   :  { %7646 = vmatpush3.bf16.xpose.msra.mxu0 %v5245_v38 }
0x20d8   :  { %7736 = vmatprep.subr.msk.bf16.mxu0 %vm718_vm1, %v5462_v63 }
0x20de   :  { %7648 = vmatmul.mubr.msk.bf16.vlgmr.msra.gmra.mrb[144].mxu0 %vm718_vm1, %v5230_v24 }
0x20df   :  { %7668 = vmatpush3.bf16.xpose.msra.mxu0 %v5472_v53  ;;  %7671 = vmatprep.mubr.msk.bf16.mxu0 %vm718_vm1, %v5458_v4 }
0x20e0   :  { %7737 = vmatprep.subr.msk.bf16.mxu0 %vm718_vm1, %v5464_v36 }
0x20e7   :  { %7670 = vmatpush3.bf16.xpose.msra.mxu0 %v5475_v6 }
0x20ee   :  { %7672 = vmatmul.mubr.msk.bf16.vlgmr.msra.gmra.mrb[148].mxu0 %vm718_vm1, %v5460_v27 }
0x20ef   :  { %5942 = vmatprep.mubr.bf16.mxu0 %v8392_v43 }
0x21a1   :  { %v7633_v14 = vpop.f32.mrb[140].mxu0 }
0x21a2   :  { %v10075_v50 = vadd.f32 %v10035_v21, %v7633_v14  ;;  %v5159_v58 = vpop.f32.mrb[141].mxu0 }
0x21a3   :  { %v10078_v42 = vadd.f32 %v10039_v55, %v5159_v58  ;;  %v7634_v57 = vpop.f32.mrb[142].mxu0 }
0x21a4   :  { %v5162_v56 = vpop.f32.mrb[143].mxu0 }
0x21a5   :  { %v10081_v15 = vadd.f32 %v10043_v37, %v5162_v56 }
0x21b1   :  { %v7649_v52 = vpop.f32.mrb[144].mxu0 }
0x21b2   :  { %v5281_v61 = vpop.f32.mrb[145].mxu0  ;;  %v5297_v7 = vmul.f32 0.17677669, %v7649_v52 }
0x21b3   :  { %v5295_v17 = vmul.f32 0.17677669, %v5281_v61  ;;  %v7650_v3 = vpop.f32.mrb[146].mxu0 }
0x21b4   :  { %v5284_v26 = vpop.f32.mrb[147].mxu0  ;;  %v5300_v21 = vadd.f32 %v5297_v7, %v8975_v29 }
0x21b5   :  { %v5298_v62 = vadd.f32 %v5295_v17, %v8981_v32  ;;  %v5296_v59 = vmul.f32 0.17677669, %v5284_v26 }
0x21b6   :  { %v5307_v37 = vsel %vm785_vm6, %v5300_v21, -inf }
0x21b7   :  { %v5299_v18 = vadd.f32 %v5296_v59, %v8970_v1  ;;  %v5301_v55 = vsel %vm785_vm6, %v5298_v62, -inf }
0x21b8   :  { %5302 = vmax.xlane.f32.xlu0 %v5301_v55 }
0x21b9   :  { %v5304_v41 = vsel %vm785_vm6, %v5299_v18, -inf }
0x21ba   :  { %5305 = vmax.xlane.f32.xlu1 %v5304_v41 }
0x21bc   :  { %5308 = vmax.xlane.f32.xlu0 %v5307_v37 }
0x21c1   :  { %v7673_v35 = vpop.f32.mrb[148].mxu0 }
0x21c2   :  { %v5511_v33 = vpop.f32.mrb[149].mxu0  ;;  %v5527_v4 = vmul.f32 0.17677669, %v7673_v35 }
0x21c3   :  { %v7674_v22 = vpop.f32.mrb[150].mxu0  ;;  %v5525_v24 = vmul.f32 0.17677669, %v5511_v33 }
0x21c4   :  { %v5514_v11 = vpop.f32.mrb[151].mxu0  ;;  %v5530_v27 = vadd.f32 %v5527_v4, %v8975_v29  ;;  %v7956_v4 = vld [vmem:[%s10546_s8 + $0x1c0] ss:$16 sps:$4 sm:$0xff]  }
0x21c5   :  { %v5526_v53 = vmul.f32 0.17677669, %v5514_v11  ;;  %v5528_v36 = vadd.f32 %v5525_v24, %v8981_v32  ;;  %v7953_v24 = vld [vmem:[%s10546_s8 + $0x1a0] ss:$16 sps:$4 sm:$0xff]  }
0x21c6   :  { %v5537_v57 = vsel %vm785_vm6, %v5530_v27, -inf }
0x21c7   :  { %v5529_v6 = vadd.f32 %v5526_v53, %v8970_v1  ;;  %v5531_v14 = vsel %vm785_vm6, %v5528_v36, -inf  ;;  %v7958_v53 = vld [vmem:[%s10546_s8 + $0x1c4] ss:$16 sps:$4 sm:$0xff]  }
0x21c9   :  { %v5534_v58 = vsel %vm785_vm6, %v5529_v6, -inf }
0x2245   :  { %v5303_v46 = vpop.xlane.xlu0 %5302 }
0x2246   :  { %v5310_v5 = vsub.f32 %v5298_v62, %v5303_v46 }
0x2247   :  { %v5306_v34 = vpop.xlane.xlu1 %5305 }
0x2248   :  { %v5313_v51 = vmul.f32 1.442695, %v5310_v5  ;;  %v5311_v45 = vsub.f32 %v5299_v18, %v5306_v34 }
0x2249   :  { %v5309_v13 = vpop.xlane.xlu0 %5308 }
0x224a   :  { %8278 = vpow2.f32 %v5313_v51  ;;  %v5315_v44 = vmul.f32 1.442695, %v5311_v45  ;;  %v5312_v16 = vsub.f32 %v5300_v21, %v5309_v13 }
0x224c   :  { %8280 = vpow2.f32 %v5315_v44  ;;  %v5317_v0 = vmul.f32 1.442695, %v5312_v16  ;;  %v7938_v44 = vld [vmem:[%s10546_s8 + $0x100] ss:$16 sps:$4 sm:$0xff]   ;;  %v7940_v16 = vld [vmem:[%s10546_s8 + $0x104] ss:$16 sps:$4 sm:$0xff]  }
0x224d   :  { %5910 = vmatprep.subr.bf16.mxu0 %v7940_v16 }
0x224e   :  { %8282 = vpow2.f32 %v5317_v0  ;;  %v10131_v0 = vadd.f32 %v10012_v2, %v9494_v40  ;;  %5911 = vmatpush1.bf16.msra.mxu0 %v7938_v44  ;;  %v7949_v2 = vld [vmem:[%s10546_s8 + $0x164] ss:$16 sps:$4 sm:$0xff]  }
0x2254   :  { %v8279_v48 = vpop.eup %8278 }
0x2255   :  { %v5319_v9 = vsel %vm785_vm6, %v8279_v48, 0.0 }
0x2256   :  { %v8281_v31 = vpop.eup %8280  ;;  %5320 = vadd.xlane.f32.xlu0 %v5319_v9 }
0x2257   :  { %v5322_v63 = vsel %vm785_vm6, %v8281_v31, 0.0 }
0x2258   :  { %v8283_v19 = vpop.eup %8282 }
0x2259   :  { %v5325_v38 = vsel %vm785_vm6, %v8283_v19, 0.0 }
0x225a   :  { %5326 = vadd.xlane.f32.xlu1 %v5325_v38  ;;  %5323 = vadd.xlane.f32.xlu0 %v5322_v63  ;;  %v7952_v38 = vld [vmem:[%s10546_s8 + $0x184] ss:$16 sps:$4 sm:$0xff]  }
0x225b   :  { %v7955_v63 = vld [vmem:[%s10546_s8 + $0x1a4] ss:$16 sps:$4 sm:$0xff]  }
0x226b   :  { %5338 = vrot.lane.b32.xlu1 %v9964_v8, %s8397_s14 }
0x2270   :  { %5336 = vrot.lane.b32.xlu0 %v9972_v60, %s8397_s14 }
0x228f   :  { %5532 = vmax.xlane.f32.xlu1 %v5531_v14  ;;  %5535 = vmax.xlane.f32.xlu0 %v5534_v58 }
0x2293   :  { %5538 = vmax.xlane.f32.xlu0 %v5537_v57 }
0x22e3   :  { %v5321_v56 = vpop.xlane.xlu0 %5320 }
0x22e4   :  { %8284 = vrcp.f32 %v5321_v56 }
0x22e7   :  { %v5324_v52 = vpop.xlane.xlu0 %5323  ;;  %v5327_v61 = vpop.xlane.xlu1 %5326 }
0x22e8   :  { %8286 = vrcp.f32 %v5324_v52 }
0x22e9   :  { %8288 = vrcp.f32 %v5327_v61 }
0x22eb   :  { %v5337_v32 = vpop.permute.xlu0 %5336  ;;  %v5339_v1 = vpop.permute.xlu1 %5338 }
0x22ec   :  { %7651 = vmatprep.subr.bf16.mxu1 %v5337_v32  ;;  %v5348_v7 = vsel %vm827_vm2, %v5339_v1, 0 }
0x22ed   :  { %7652 = vmatpush3.bf16.msra.mxu1 %v5337_v32 }
0x22ee   :  { %7735 = vmatprep.subr.msk.bf16.mxu1 %vm827_vm2, %v5339_v1  ;;  %v8285_v29 = vpop.eup %8284 }
0x22ef   :  { %v5329_v26 = vmul.f32 %v8285_v29, %v8279_v48  ;;  %v10141_v48 = vadd.f32 %v10010_v20, %v9491_v49  ;;  %v7946_v49 = vld [vmem:[%s10546_s8 + $0x144] ss:$16 sps:$4 sm:$0xff]   ;;  %v7944_v20 = vld [vmem:[%s10546_s8 + $0x140] ss:$16 sps:$4 sm:$0xff]  }
0x22f1   :  { %7654 = vmatpush3.bf16.msra.mxu1 %v5348_v7  ;;  %v5693_v40 = vmul.f32 %v10141_v48, %v10141_v48 }
0x22f2   :  { %v8287_v17 = vpop.eup %8286  ;;  %7659 = vmatprep.subr.bf16.mxu1 %v9914_v25 }
0x22f3   :  { %v8289_v3 = vpop.eup %8288  ;;  %v5331_v62 = vmul.f32 %v8287_v17, %v8281_v31  ;;  %v7947_v31 = vld [vmem:[%s10546_s8 + $0x160] ss:$16 sps:$4 sm:$0xff]  }
0x22f4   :  { %v5333_v59 = vmul.f32 %v8289_v3, %v8283_v19  ;;  %v7950_v19 = vld [vmem:[%s10546_s8 + $0x180] ss:$16 sps:$4 sm:$0xff]  }
0x22f5   :  { %v5334_v21 = vpack.c.bf16 %v5331_v62, %v5329_v26 }
0x22f6   :  { %v5335_v18 = vpack.c.bf16 %v5333_v59, %v5333_v59 }
0x22f7   :  { %7655 = vmatprep.mubr.msk.bf16.mxu1 %vm785_vm6, %v5334_v21 }
0x22f8   :  { %7656 = vmatmul.mubr.msk.bf16.vlgmr.msra.gmra.mrb[132].mxu1 %vm785_vm6, %v5335_v18 }
0x22f9   :  { %7660 = vmatpush3.bf16.msra.mxu1 %v9914_v25 }
0x22fa   :  { %7661 = vmatprep.subr.bf16.mxu1 %v9927_v23 }
0x22fd   :  { %7662 = vmatpush3.bf16.msra.mxu1 %v9927_v23 }
0x231c   :  { %v5536_v55 = vpop.xlane.xlu0 %5535  ;;  %v5533_v41 = vpop.xlane.xlu1 %5532 }
0x231d   :  { %v5541_v37 = vsub.f32 %v5529_v6, %v5536_v55  ;;  %v5540_v33 = vsub.f32 %v5528_v36, %v5533_v41  ;;  %v7961_v36 = vld [vmem:[%s10546_s8 + $0x1e4] ss:$16 sps:$4 sm:$0xff]   ;;  %v7959_v6 = vld [vmem:[%s10546_s8 + $0x1e0] ss:$16 sps:$4 sm:$0xff]  }
0x231f   :  { %v5545_v35 = vmul.f32 1.442695, %v5541_v37  ;;  %v5543_v46 = vmul.f32 1.442695, %v5540_v33 }
0x2320   :  { %v5539_v22 = vpop.xlane.xlu0 %5538 }
0x2321   :  { %8290 = vpow2.f32 %v5545_v35  ;;  %v5542_v11 = vsub.f32 %v5530_v27, %v5539_v22 }
0x2323   :  { %v5547_v5 = vmul.f32 1.442695, %v5542_v11 }
0x2325   :  { %8292 = vpow2.f32 %v5547_v5 }
0x2326   :  { %8294 = vpow2.f32 %v5543_v46 }
0x232b   :  { %v10110_v34 = vpop.eup %8290 }
0x232c   :  { %v5552_v25 = vsel %vm785_vm6, %v10110_v34, 0.0 }
0x232d   :  { %5553 = vadd.xlane.f32.xlu0 %v5552_v25 }
0x232f   :  { %v10114_v51 = vpop.eup %8292 }
0x2330   :  { %v5555_v23 = vsel %vm785_vm6, %v10114_v51, 0.0  ;;  %v8295_v45 = vpop.eup %8294 }
0x2331   :  { %5556 = vadd.xlane.f32.xlu1 %v5555_v23  ;;  %v5549_v13 = vsel %vm785_vm6, %v8295_v45, 0.0 }
0x2335   :  { %5550 = vadd.xlane.f32.xlu1 %v5549_v13  ;;  %v7964_v13 = vld [vmem:[%s10546_s8 + $0x10c] ss:$16 sps:$4 sm:$0xff]  }
0x2343   :  { %5566 = vrot.lane.b32.xlu0 %v9972_v60, %s8398_s15  ;;  %v10135_v60 = vadd.f32 %v10008_v12, %v9594_v30  ;;  %v7943_v30 = vld [vmem:[%s10546_s8 + $0x124] ss:$16 sps:$4 sm:$0xff]   ;;  %v7941_v12 = vld [vmem:[%s10546_s8 + $0x120] ss:$16 sps:$4 sm:$0xff]  }
0x2344   :  { %5912 = vmatprep.subr.bf16.mxu0 %v7943_v30 }
0x2345   :  { %v5695_v9 = vmul.f32 %v10135_v60, %v10135_v60  ;;  %5913 = vmatpush1.bf16.msra.mxu0 %v7941_v12 }
0x2346   :  { %5568 = vrot.lane.b32.xlu1 %v9964_v8, %s8398_s15  ;;  %v5694_v8 = vmul.f32 %v10131_v0, %v10131_v0  ;;  %5914 = vmatprep.subr.bf16.mxu0 %v7946_v49 }
0x2349   :  { %5915 = vmatpush1.bf16.msra.mxu0 %v7944_v20 }
0x234a   :  { %5916 = vmatprep.subr.bf16.mxu0 %v7949_v2 }
0x234d   :  { %5917 = vmatpush1.bf16.msra.mxu0 %v7947_v31 }
0x234e   :  { %5918 = vmatprep.subr.bf16.mxu0 %v7952_v38  ;;  %v7962_v38 = vld [vmem:[%s10546_s8 + $0x108] ss:$16 sps:$4 sm:$0xff]  }
0x2351   :  { %5919 = vmatpush1.bf16.msra.mxu0 %v7950_v19 }
0x2352   :  { %5920 = vmatprep.subr.bf16.mxu0 %v7955_v63 }
0x2355   :  { %5921 = vmatpush1.bf16.msra.mxu0 %v7953_v24  ;;  %v7968_v24 = vld [vmem:[%s10546_s8 + $0x148] ss:$16 sps:$4 sm:$0xff]  }
0x2356   :  { %5922 = vmatprep.subr.bf16.mxu0 %v7958_v53  ;;  %v7973_v53 = vld [vmem:[%s10546_s8 + $0x16c] ss:$16 sps:$4 sm:$0xff]  }
0x2359   :  { %5923 = vmatpush1.bf16.msra.mxu0 %v7956_v4  ;;  %v7971_v4 = vld [vmem:[%s10546_s8 + $0x168] ss:$16 sps:$4 sm:$0xff]  }
0x235a   :  { %5924 = vmatprep.subr.bf16.mxu0 %v7961_v36  ;;  %v7976_v36 = vld [vmem:[%s10546_s8 + $0x18c] ss:$16 sps:$4 sm:$0xff]  }
0x235d   :  { %5925 = vmatpush1.bf16.msra.mxu0 %v7959_v6  ;;  %v7974_v6 = vld [vmem:[%s10546_s8 + $0x188] ss:$16 sps:$4 sm:$0xff]  }
0x2362   :  { %5701 = vadd.xlane.f32.xlu0 %v5694_v8 }
0x2366   :  { %5703 = vadd.xlane.f32.xlu0 %v5695_v9 }
0x236a   :  { %5699 = vadd.xlane.f32.xlu1 %v5693_v40 }
0x23ba   :  { %v5554_v27 = vpop.xlane.xlu0 %5553 }
0x23bb   :  { %8296 = vrcp.f32 %v5554_v27  ;;  %v7979_v27 = vld [vmem:[%s10546_s8 + $0x1ac] ss:$16 sps:$4 sm:$0xff]  }
0x23be   :  { %v5567_v14 = vpop.permute.xlu0 %5566  ;;  %v5557_v58 = vpop.xlane.xlu1 %5556 }
0x23bf   :  { %7675 = vmatprep.subr.bf16.mxu1 %v5567_v14 }
0x23c2   :  { %v5551_v57 = vpop.xlane.xlu1 %5550 }
0x23c3   :  { %8298 = vrcp.f32 %v5551_v57  ;;  %v7980_v57 = vld [vmem:[%s10546_s8 + $0x1c8] ss:$16 sps:$4 sm:$0xff]  }
0x23c4   :  { %8300 = vrcp.f32 %v5557_v58  ;;  %v7982_v58 = vld [vmem:[%s10546_s8 + $0x1cc] ss:$16 sps:$4 sm:$0xff]  }
0x23c5   :  { %v8297_v56 = vpop.eup %8296 }
0x23c6   :  { %v5561_v17 = vmul.f32 %v8297_v56, %v10110_v34  ;;  %v5569_v21 = vpop.permute.xlu1 %5568  ;;  %v7985_v56 = vld [vmem:[%s10546_s8 + $0x1ec] ss:$16 sps:$4 sm:$0xff]  }
0x23c7   :  { %v5578_v55 = vsel %vm827_vm2, %v5569_v21, 0 }
0x23cb   :  { %v7657_v52 = vpop.f32.mrb[132].mxu1 }
0x23cc   :  { %v5384_v61 = vpop.f32.mrb[133].mxu1  ;;  %v5399_v26 = vpack.c.bf16 %v7657_v52, %v7657_v52  ;;  %v7983_v52 = vld [vmem:[%s10546_s8 + $0x1e8] ss:$16 sps:$4 sm:$0xff]  }
0x23cd   :  { %v8299_v32 = vpop.eup %8298  ;;  %v7658_v1 = vpop.f32.mrb[134].mxu1 }
0x23ce   :  { %v5387_v29 = vpop.f32.mrb[135].mxu1  ;;  %v5559_v7 = vmul.f32 %v8299_v32, %v8295_v45  ;;  %v8301_v59 = vpop.eup %8300 }
0x23cf   :  { %v5398_v3 = vpack.c.bf16 %v5387_v29, %v5384_v61  ;;  %v5563_v18 = vmul.f32 %v8301_v59, %v10114_v51 }
0x23d0   :  { %v5564_v62 = vpack.c.bf16 %v5561_v17, %v5559_v7 }
0x23d1   :  { %7663 = vmatprep.mubr.msk.bf16.mxu1 %vm718_vm1, %v5398_v3  ;;  %v5565_v41 = vpack.c.bf16 %v5563_v18, %v5563_v18 }
0x23d2   :  { %7664 = vmatmul.mubr.msk.bf16.vlgmr.msra.gmra.mrb[136].mxu1 %vm718_vm1, %v5399_v26 }
0x23d3   :  { %7676 = vmatpush3.bf16.msra.mxu1 %v5567_v14  ;;  %7679 = vmatprep.mubr.msk.bf16.mxu1 %vm785_vm6, %v5564_v62  ;;  %v7977_v14 = vld [vmem:[%s10546_s8 + $0x1a8] ss:$16 sps:$4 sm:$0xff]  }
0x23d4   :  { %7738 = vmatprep.subr.msk.bf16.mxu1 %vm827_vm2, %v5569_v21 }
0x23d7   :  { %7678 = vmatpush3.bf16.msra.mxu1 %v5578_v55 }
0x23d8   :  { %7683 = vmatprep.subr.bf16.mxu1 %v9951_v39 }
0x23da   :  { %7680 = vmatmul.mubr.msk.bf16.vlgmr.msra.gmra.mrb[140].mxu1 %vm785_vm6, %v5565_v41 }
0x23db   :  { %7684 = vmatpush3.bf16.msra.mxu1 %v9951_v39  ;;  %v10205_v39 = vld [vmem:[%s10547_s5 + $0x1] ss:$0 sm:$0xff] }
0x23dc   :  { %7685 = vmatprep.subr.bf16.mxu1 %v9958_v54 }
0x23df   :  { %7686 = vmatpush3.bf16.msra.mxu1 %v9958_v54 }
0x23e0   :  { %5973 = vmatprep.subr.bf16.mxu1 %v7964_v13 }
0x23ef   :  { %v5702_v37 = vpop.xlane.xlu0 %5701 }
0x23f0   :  { %v5712_v35 = vmul.f32 0.0078125, %v5702_v37 }
0x23f2   :  { %v5718_v33 = vadd.f32 1e-06, %v5712_v35 }
0x23f4   :  { %8302 = vrsqrt.f32 %v5718_v33 }
0x23f7   :  { %v5700_v22 = vpop.xlane.xlu1 %5699 }
0x23f8   :  { %v5711_v11 = vmul.f32 0.0078125, %v5700_v22 }
0x23fa   :  { %v5717_v46 = vadd.f32 1e-06, %v5711_v11 }
0x23fc   :  { %8304 = vrsqrt.f32 %v5717_v46 }
0x23fe   :  { %v8303_v5 = vpop.eup %8302 }
0x23ff   :  { %v5730_v34 = vmul.f32 %v8303_v5, %v10131_v0 }
0x2401   :  { %v5742_v23 = vmul.f32 %v10205_v39, %v5730_v34 }
0x2406   :  { %v8305_v25 = vpop.eup %8304 }
0x2407   :  { %v5729_v51 = vmul.f32 %v8305_v25, %v10141_v48 }
0x2409   :  { %v5741_v54 = vmul.f32 %v10205_v39, %v5729_v51 }
0x240b   :  { %v5747_v45 = vpack.c.bf16 %v5742_v23, %v5741_v54 }
0x240d   :  { %5943 = vmatmul.mubr.bf16.vlgmr.msra.gmra.mrb[152].mxu0 %v5747_v45 }
0x240e   :  { %5952 = vmatprep.mubr.bf16.mxu0 %v8392_v43 }
0x24a5   :  { %v7665_v44 = vpop.f32.mrb[136].mxu1 }
0x24a6   :  { %v5456_v16 = vadd.f32 %v7665_v44, %v10075_v50  ;;  %v5440_v8 = vpop.f32.mrb[137].mxu1  ;;  %v7967_v50 = vld [vmem:[%s10546_s8 + $0x12c] ss:$16 sps:$4 sm:$0xff]  }
0x24a7   :  { %v5454_v9 = vadd.f32 %v5440_v8, %v10078_v42  ;;  %v7666_v40 = vpop.f32.mrb[138].mxu1  ;;  %v7965_v42 = vld [vmem:[%s10546_s8 + $0x128] ss:$16 sps:$4 sm:$0xff]   ;;  %v7986_v8 = vld [vmem:[%s10548_s9 + $0xc0] sm:$0xff]  }
0x24a8   :  { %v5443_v30 = vpop.f32.mrb[139].mxu1  ;;  %7217 = vmatprep.subr.bf16.mxu0 %v7986_v8 }
0x24a9   :  { %v10217_v12 = vadd.f32 %v5443_v30, %v10081_v15  ;;  %v7970_v15 = vld [vmem:[%s10546_s8 + $0x14c] ss:$16 sps:$4 sm:$0xff]  }
0x24ad   :  { %v7681_v49 = vpop.f32.mrb[140].mxu1 }
0x24ae   :  { %v5614_v20 = vpop.f32.mrb[141].mxu1  ;;  %v5629_v63 = vpack.c.bf16 %v7681_v49, %v7681_v49  ;;  %v7988_v49 = vld [vmem:[%s10548_s9 + $0xc8] sm:$0xff]  }
0x24af   :  { %v7682_v2 = vpop.f32.mrb[142].mxu1 }
0x24b0   :  { %v5617_v31 = vpop.f32.mrb[143].mxu1  ;;  %v7990_v2 = vld [vmem:[%s10548_s9 + $0xd0] sm:$0xff]  }
0x24b1   :  { %v5628_v19 = vpack.c.bf16 %v5617_v31, %v5614_v20  ;;  %v7989_v20 = vld [vmem:[%s10548_s9 + $0x88] sm:$0xff]  }
0x24b3   :  { %7687 = vmatprep.mubr.msk.bf16.mxu1 %vm718_vm1, %v5628_v19 }
0x24b4   :  { %7688 = vmatmul.mubr.msk.bf16.vlgmr.msra.gmra.mrb[144].mxu1 %vm718_vm1, %v5629_v63 }
0x24b5   :  { %5974 = vmatpush1.bf16.msra.mxu1 %v7962_v38  ;;  %6005 = vmatprep.mubr.bf16.mxu1 %v8392_v43 }
0x24b6   :  { %5975 = vmatprep.subr.bf16.mxu1 %v7967_v50 }
0x24b9   :  { %5976 = vmatpush1.bf16.msra.mxu1 %v7965_v42 }
0x24ba   :  { %5977 = vmatprep.subr.bf16.mxu1 %v7970_v15 }
0x24bd   :  { %5978 = vmatpush1.bf16.msra.mxu1 %v7968_v24  ;;  %v7991_v24 = vld [vmem:[%s10548_s9 + $0x90] sm:$0xff]  }
0x24be   :  { %5979 = vmatprep.subr.bf16.mxu1 %v7973_v53 }
0x24c1   :  { %5980 = vmatpush1.bf16.msra.mxu1 %v7971_v4 }
0x24c2   :  { %5981 = vmatprep.subr.bf16.mxu1 %v7976_v36 }
0x24c5   :  { %5982 = vmatpush1.bf16.msra.mxu1 %v7974_v6  ;;  %v7992_v6 = vld [vmem:[%s10548_s9 + $0xd8] sm:$0xff]  }
0x24c6   :  { %5983 = vmatprep.subr.bf16.mxu1 %v7979_v27 }
0x24c9   :  { %5984 = vmatpush1.bf16.msra.mxu1 %v7977_v14 }
0x24ca   :  { %5985 = vmatprep.subr.bf16.mxu1 %v7982_v58 }
0x24cd   :  { %5986 = vmatpush1.bf16.msra.mxu1 %v7980_v57 }
0x24ce   :  { %5987 = vmatprep.subr.bf16.mxu1 %v7985_v56  ;;  %v7993_v56 = vld [vmem:[%s10548_s9 + $0x98] sm:$0xff]  }
0x24d1   :  { %5988 = vmatpush1.bf16.msra.mxu1 %v7983_v52 }
0x24d4   :  { %6006 = vmatmul.mubr.bf16.vlgmr.msra.gmra.mrb[148].mxu1 %v5747_v45 }
0x24d5   :  { %6015 = vmatprep.mubr.bf16.mxu1 %v8392_v43 }
0x24e0   :  { %v5944_v61 = vpop.f32.mrb[152].mxu0 }
0x24e1   :  { %v5946_v32 = vpop.f32.mrb[153].mxu0  ;;  %v6036_v7 = vsub.f32 0.0, %v5944_v61 }
0x24e2   :  { %v5948_v1 = vpop.f32.mrb[154].mxu0  ;;  %v6037_v17 = vsub.f32 0.0, %v5946_v32 }
0x24e3   :  { %v5950_v29 = vpop.f32.mrb[155].mxu0  ;;  %v6038_v3 = vsub.f32 0.0, %v5948_v1  ;;  %v6048_v62 = vmul.f32 1.442695, %v6036_v7  ;;  %v7998_v7 = vld [vmem:[%s10548_s9 + $0xf0] sm:$0xff]  }
0x24e4   :  { %v6039_v26 = vsub.f32 0.0, %v5950_v29  ;;  %v6050_v59 = vmul.f32 1.442695, %v6037_v17  ;;  %v7999_v17 = vld [vmem:[%s10548_s9 + $0xb0] sm:$0xff]  }
0x24e5   :  { %v6052_v21 = vmul.f32 1.442695, %v6038_v3  ;;  %8306 = vpow2.f32 %v6048_v62  ;;  %v8000_v3 = vld [vmem:[%s10548_s9 + $0xf8] sm:$0xff]   ;;  %v5704_v62 = vpop.xlane.xlu0 %5703 }
0x24e6   :  { %v6054_v18 = vmul.f32 1.442695, %v6039_v26  ;;  %8308 = vpow2.f32 %v6050_v59  ;;  %v8001_v26 = vld [vmem:[%s10548_s9 + $0xb8] sm:$0xff]   ;;  %v5713_v59 = vmul.f32 0.0078125, %v5704_v62 }
0x24e7   :  { %8310 = vpow2.f32 %v6052_v21 }
0x24e8   :  { %8312 = vpow2.f32 %v6054_v18  ;;  %v5719_v21 = vadd.f32 1e-06, %v5713_v59 }
0x24ef   :  { %v8307_v54 = vpop.eup %8306 }
0x24f0   :  { %v8309_v23 = vpop.eup %8308  ;;  %v6072_v13 = vadd.f32 1.0, %v8307_v54 }
0x24f1   :  { %v8311_v45 = vpop.eup %8310  ;;  %v6073_v44 = vadd.f32 1.0, %v8309_v23 }
0x24f2   :  { %8314 = vrcp.f32 %v6072_v13 }
0x24f3   :  { %8316 = vrcp.f32 %v6073_v44 }
0x2587   :  { %v7689_v55 = vpop.f32.mrb[144].mxu1 }
0x2588   :  { %v5686_v41 = vadd.f32 %v7689_v55, %v5456_v16  ;;  %v5670_v37 = vpop.f32.mrb[145].mxu1 }
0x2589   :  { %v5684_v35 = vadd.f32 %v5670_v37, %v5454_v9  ;;  %v7690_v33 = vpop.f32.mrb[146].mxu1  ;;  %v7987_v9 = vld [vmem:[%s10548_s9 + $0x80] sm:$0xff]  }
0x258a   :  { %v5673_v22 = vpop.f32.mrb[147].mxu1  ;;  %v10273_v5 = vadd.f32 %v5686_v41, %v9607_v10  ;;  %v8313_v10 = vpop.eup %8312  ;;  %7218 = vmatpush3.bf16.msra.mxu0 %v7987_v9 }
0x258b   :  { %v10269_v11 = vadd.f32 %v5684_v35, %v9597_v28  ;;  %v5685_v46 = vadd.f32 %v5673_v22, %v10217_v12  ;;  %v6075_v16 = vadd.f32 1.0, %v8313_v10  ;;  %v8315_v40 = vpop.eup %8314  ;;  %7219 = vmatprep.subr.bf16.mxu0 %v7988_v49  ;;  %v8004_v49 = vld [vmem:[%s10549_s11 + $0x4] ss:$8 sps:$4 sm:$0xff]  }
0x258c   :  { %v5698_v28 = vmul.f32 %v10273_v5, %v10273_v5  ;;  %v8317_v30 = vpop.eup %8316  ;;  %v6085_v19 = vmul.f32 %v8315_v40, %v5944_v61  ;;  %v7994_v61 = vld [vmem:[%s10548_s9 + $0xe0] sm:$0xff]   ;;  %6445 = vmatprep.subr.bf16.mxu1 %v8004_v49 }
0x258d   :  { %v10276_v34 = vadd.f32 %v5685_v46, %v9604_v47  ;;  %v5696_v25 = vmul.f32 %v10269_v11, %v10269_v11  ;;  %v6074_v47 = vadd.f32 1.0, %v8311_v45  ;;  %v6087_v38 = vmul.f32 %v8317_v30, %v5946_v32  ;;  %v7995_v32 = vld [vmem:[%s10548_s9 + $0xa0] sm:$0xff]  }
0x258e   :  { %7220 = vmatpush3.bf16.msra.mxu0 %v7989_v20  ;;  %v8007_v20 = vld [vmem:[%s10549_s11 + $0x14] ss:$8 sps:$4 sm:$0xff]  }
0x258f   :  { %5705 = vadd.xlane.f32.xlu1 %v5696_v25  ;;  %v5697_v51 = vmul.f32 %v10276_v34, %v10276_v34  ;;  %8318 = vrcp.f32 %v6074_v47  ;;  %7221 = vmatprep.subr.bf16.mxu0 %v7990_v2  ;;  %v8010_v2 = vld [vmem:[%s10549_s11 + $0x24] ss:$8 sps:$4 sm:$0xff]  }
0x2590   :  { %8320 = vrcp.f32 %v6075_v16 }
0x2591   :  { %5707 = vadd.xlane.f32.xlu0 %v5697_v51  ;;  %8322 = vrsqrt.f32 %v5719_v21 }
0x2592   :  { %7222 = vmatpush3.bf16.msra.mxu0 %v7991_v24 }
0x2593   :  { %5709 = vadd.xlane.f32.xlu1 %v5698_v28  ;;  %7223 = vmatprep.subr.bf16.mxu0 %v7992_v6 }
0x2596   :  { %7224 = vmatpush3.bf16.msra.mxu0 %v7993_v56 }
0x2597   :  { %7225 = vmatprep.subr.bf16.mxu0 %v7994_v61 }
0x2599   :  { %v8319_v12 = vpop.eup %8318 }
0x259a   :  { %v8321_v31 = vpop.eup %8320  ;;  %v6089_v50 = vmul.f32 %v8319_v12, %v5948_v1  ;;  %v7996_v1 = vld [vmem:[%s10548_s9 + $0xe8] sm:$0xff]   ;;  %7226 = vmatpush3.bf16.msra.mxu0 %v7995_v32 }
0x259b   :  { %v6091_v53 = vmul.f32 %v8321_v31, %v5950_v29  ;;  %v7997_v29 = vld [vmem:[%s10548_s9 + $0xa8] sm:$0xff]   ;;  %7227 = vmatprep.subr.bf16.mxu0 %v7996_v1  ;;  %v8323_v51 = vpop.eup %8322 }
0x259c   :  { %v5731_v28 = vmul.f32 %v8323_v51, %v10135_v60  ;;  %v8002_v12 = vld [vmem:[%s10549_s11] ss:$8 sps:$4 sm:$0xff]  }
0x259d   :  { %6446 = vmatpush1.bf16.msra.mxu1 %v8002_v12  ;;  %v8008_v31 = vld [vmem:[%s10549_s11 + $0x20] ss:$8 sps:$4 sm:$0xff]  }
0x259e   :  { %7228 = vmatpush3.bf16.msra.mxu0 %v7997_v29  ;;  %v5743_v10 = vmul.f32 %v10205_v39, %v5731_v28  ;;  %6447 = vmatprep.subr.bf16.mxu1 %v8007_v20 }
0x259f   :  { %7229 = vmatprep.subr.bf16.mxu0 %v7998_v7 }
0x25a2   :  { %7230 = vmatpush3.bf16.msra.mxu0 %v7999_v17 }
0x25a3   :  { %7231 = vmatprep.subr.bf16.mxu0 %v8000_v3 }
0x25a6   :  { %7232 = vmatpush3.bf16.msra.mxu0 %v8001_v26 }
0x25a7   :  { %v6007_v63 = vpop.f32.mrb[148].mxu1 }
0x25a8   :  { %v10299_v42 = vmul.f32 %v6085_v19, %v6007_v63  ;;  %v6009_v15 = vpop.f32.mrb[149].mxu1 }
0x25a9   :  { %v10304_v4 = vmul.f32 %v6087_v38, %v6009_v15  ;;  %v6011_v36 = vpop.f32.mrb[150].mxu1 }
0x25aa   :  { %v10309_v27 = vmul.f32 %v6089_v50, %v6011_v36  ;;  %v6013_v14 = vpop.f32.mrb[151].mxu1 }
0x25ab   :  { %v6111_v58 = vmul.f32 %v6091_v53, %v6013_v14 }
0x25ac   :  { %v6120_v57 = vpack.c.bf16 %v10309_v27, %v10299_v42 }
0x25ad   :  { %v6121_v52 = vpack.c.bf16 %v6111_v58, %v10304_v4 }
0x261c   :  { %v5706_v18 = vpop.xlane.xlu1 %5705 }
0x261d   :  { %v5714_v55 = vmul.f32 0.0078125, %v5706_v18 }
0x261e   :  { %v5708_v41 = vpop.xlane.xlu0 %5707 }
0x261f   :  { %v5720_v37 = vadd.f32 1e-06, %v5714_v55  ;;  %v5715_v35 = vmul.f32 0.0078125, %v5708_v41 }
0x2620   :  { %v5710_v33 = vpop.xlane.xlu1 %5709 }
0x2621   :  { %8324 = vrsqrt.f32 %v5720_v37  ;;  %v5721_v22 = vadd.f32 1e-06, %v5715_v35  ;;  %v5716_v46 = vmul.f32 0.0078125, %v5710_v33 }
0x2623   :  { %v5722_v25 = vadd.f32 1e-06, %v5716_v46  ;;  %8326 = vrsqrt.f32 %v5721_v22 }
0x2625   :  { %8328 = vrsqrt.f32 %v5722_v25 }
0x262b   :  { %v8325_v54 = vpop.eup %8324 }
0x262c   :  { %v5732_v23 = vmul.f32 %v8325_v54, %v10269_v11 }
0x262d   :  { %v8327_v45 = vpop.eup %8326 }
0x262e   :  { %v5744_v13 = vmul.f32 %v10205_v39, %v5732_v23  ;;  %v5733_v8 = vmul.f32 %v8327_v45, %v10276_v34 }
0x262f   :  { %v8329_v44 = vpop.eup %8328 }
0x2630   :  { %v5748_v47 = vpack.c.bf16 %v5744_v13, %v5743_v10  ;;  %v5734_v16 = vmul.f32 %v8329_v44, %v10273_v5  ;;  %v5745_v40 = vmul.f32 %v10205_v39, %v5733_v8 }
0x2632   :  { %5953 = vmatmul.mubr.bf16.gmra.mrb[156].mxu0 %v5748_v47  ;;  %6016 = vmatmul.mubr.bf16.gmra.mrb[152].mxu1 %v5748_v47  ;;  %v5746_v9 = vmul.f32 %v10205_v39, %v5734_v16  ;;  %v8005_v39 = vld [vmem:[%s10549_s11 + $0x10] ss:$8 sps:$4 sm:$0xff]  }
0x2633   :  { %5962 = vmatprep.mubr.bf16.mxu0 %v8392_v43  ;;  %6025 = vmatprep.mubr.bf16.mxu1 %v8392_v43 }
0x2634   :  { %v5749_v30 = vpack.c.bf16 %v5746_v9, %v5745_v40  ;;  %6448 = vmatpush1.bf16.msra.mxu1 %v8005_v39 }
0x2635   :  { %6449 = vmatprep.subr.bf16.mxu1 %v8010_v2 }
0x2638   :  { %6450 = vmatpush1.bf16.msra.mxu1 %v8008_v31 }
0x263a   :  { %5963 = vmatmul.mubr.bf16.gmra.mrb[160].mxu0 %v5749_v30  ;;  %6026 = vmatmul.mubr.bf16.gmra.mrb[156].mxu1 %v5749_v30 }
0x263b   :  { %6254 = vmatprep.mubr.bf16.mxu0 %v6121_v52  ;;  %6477 = vmatprep.mubr.bf16.mxu1 %v8392_v43 }
0x2642   :  { %6255 = vmatmul.mubr.bf16.vlgmr.msra.gmra.mrb[164].mxu0 %v6120_v57 }
0x2705   :  { %v10370_v19 = vpop.f32.mrb[156].mxu0  ;;  %v10372_v38 = vpop.f32.mrb[152].mxu1 }
0x2706   :  { %v6040_v63 = vsub.f32 0.0, %v10370_v19  ;;  %v10375_v50 = vpop.f32.mrb[157].mxu0  ;;  %v10377_v42 = vpop.f32.mrb[153].mxu1 }
0x2707   :  { %v6041_v15 = vsub.f32 0.0, %v10375_v50  ;;  %v10380_v24 = vpop.f32.mrb[158].mxu0  ;;  %v10382_v53 = vpop.f32.mrb[154].mxu1 }
0x2708   :  { %v6056_v4 = vmul.f32 1.442695, %v6040_v63  ;;  %v6042_v36 = vsub.f32 0.0, %v10380_v24  ;;  %v10385_v6 = vpop.f32.mrb[159].mxu0  ;;  %v10387_v27 = vpop.f32.mrb[155].mxu1 }
0x2709   :  { %v6058_v14 = vmul.f32 1.442695, %v6041_v15  ;;  %v6043_v58 = vsub.f32 0.0, %v10385_v6 }
0x270a   :  { %8330 = vpow2.f32 %v6056_v4  ;;  %v6060_v57 = vmul.f32 1.442695, %v6042_v36 }
0x270b   :  { %8332 = vpow2.f32 %v6058_v14  ;;  %v6062_v56 = vmul.f32 1.442695, %v6043_v58 }
0x270c   :  { %8334 = vpow2.f32 %v6060_v57 }
0x270d   :  { %8336 = vpow2.f32 %v6062_v56  ;;  %v10390_v52 = vpop.f32.mrb[160].mxu0  ;;  %v10392_v61 = vpop.f32.mrb[156].mxu1 }
0x270e   :  { %v6044_v32 = vsub.f32 0.0, %v10390_v52  ;;  %v10395_v1 = vpop.f32.mrb[161].mxu0  ;;  %v10397_v29 = vpop.f32.mrb[157].mxu1 }
0x270f   :  { %v6045_v7 = vsub.f32 0.0, %v10395_v1  ;;  %v10400_v17 = vpop.f32.mrb[162].mxu0  ;;  %v10402_v3 = vpop.f32.mrb[158].mxu1 }
0x2710   :  { %v6064_v26 = vmul.f32 1.442695, %v6044_v32  ;;  %v6046_v62 = vsub.f32 0.0, %v10400_v17  ;;  %v10405_v59 = vpop.f32.mrb[163].mxu0  ;;  %v10407_v21 = vpop.f32.mrb[159].mxu1 }
0x2711   :  { %v6066_v18 = vmul.f32 1.442695, %v6045_v7  ;;  %v6047_v55 = vsub.f32 0.0, %v10405_v59 }
0x2712   :  { %8338 = vpow2.f32 %v6064_v26  ;;  %v6068_v41 = vmul.f32 1.442695, %v6046_v62 }
0x2713   :  { %8340 = vpow2.f32 %v6066_v18  ;;  %v6070_v37 = vmul.f32 1.442695, %v6047_v55 }
0x2714   :  { %v8331_v35 = vpop.eup %8330  ;;  %8342 = vpow2.f32 %v6068_v41 }
0x2715   :  { %v8333_v33 = vpop.eup %8332  ;;  %v6076_v22 = vadd.f32 1.0, %v8331_v35  ;;  %8344 = vpow2.f32 %v6070_v37  ;;  %v7233_v46 = vpop.f32.mrb[164].mxu0 }
0x2716   :  { %v8335_v25 = vpop.eup %8334  ;;  %v6077_v51 = vadd.f32 1.0, %v8333_v33  ;;  %v7234_v28 = vpop.f32.mrb[165].mxu0  ;;  %v8022_v33 = vld [vmem:[%s10549_s11 + $0x64] ss:$8 sps:$4 sm:$0xff]  }
0x2717   :  { %v8337_v54 = vpop.eup %8336  ;;  %8346 = vrcp.f32 %v6076_v22  ;;  %v6078_v23 = vadd.f32 1.0, %v8335_v25  ;;  %v7235_v45 = vadd.f32 %v7234_v28, %v7233_v46  ;;  %v7236_v10 = vpop.f32.mrb[166].mxu0  ;;  %v8020_v22 = vld [vmem:[%s10549_s11 + $0x60] ss:$8 sps:$4 sm:$0xff]   ;;  %v8023_v46 = vld [vmem:[%s10549_s11 + $0x70] ss:$8 sps:$4 sm:$0xff]  }
0x2718   :  { %8348 = vrcp.f32 %v6077_v51  ;;  %v6079_v13 = vadd.f32 1.0, %v8337_v54  ;;  %v7237_v44 = vpop.f32.mrb[167].mxu0  ;;  %v8025_v25 = vld [vmem:[%s10549_s11 + $0x74] ss:$8 sps:$4 sm:$0xff]  }
0x2719   :  { %8350 = vrcp.f32 %v6078_v23  ;;  %v10411_v47 = vadd.f32 %v7235_v45, %v10141_v48  ;;  %v7238_v16 = vadd.f32 %v7237_v44, %v7236_v10  ;;  %v10469_v44 = vld [vmem:[%s10550_s10] ss:$0 sm:$0xff] }
0x271a   :  { %8352 = vrcp.f32 %v6079_v13 }
0x271b   :  { %v10414_v8 = vadd.f32 %v7238_v16, %v10131_v0  ;;  %v6286_v9 = vmul.f32 %v10411_v47, %v10411_v47 }
0x271c   :  { %v8339_v40 = vpop.eup %8338 }
0x271d   :  { %v8341_v30 = vpop.eup %8340  ;;  %v6080_v12 = vadd.f32 1.0, %v8339_v40  ;;  %6292 = vadd.xlane.f32.xlu0 %v6286_v9  ;;  %v6287_v49 = vmul.f32 %v10414_v8, %v10414_v8 }
0x271e   :  { %v8343_v20 = vpop.eup %8342  ;;  %v6081_v39 = vadd.f32 1.0, %v8341_v30 }
0x271f   :  { %v8345_v2 = vpop.eup %8344  ;;  %8354 = vrcp.f32 %v6080_v12  ;;  %v6082_v48 = vadd.f32 1.0, %v8343_v20  ;;  %6294 = vadd.xlane.f32.xlu1 %v6287_v49 }
0x2720   :  { %8356 = vrcp.f32 %v6081_v39  ;;  %v6083_v31 = vadd.f32 1.0, %v8345_v2 }
0x2721   :  { %v8347_v0 = vpop.eup %8346  ;;  %8358 = vrcp.f32 %v6082_v48 }
0x2722   :  { %v8349_v63 = vpop.eup %8348  ;;  %v6093_v15 = vmul.f32 %v8347_v0, %v10370_v19  ;;  %8360 = vrcp.f32 %v6083_v31 }
0x2723   :  { %v8351_v4 = vpop.eup %8350  ;;  %v6095_v36 = vmul.f32 %v8349_v63, %v10375_v50 }
0x2724   :  { %v8353_v14 = vpop.eup %8352  ;;  %v6112_v58 = vmul.f32 %v6093_v15, %v10372_v38  ;;  %v6097_v57 = vmul.f32 %v8351_v4, %v10380_v24 }
0x2725   :  { %v6113_v56 = vmul.f32 %v6095_v36, %v10377_v42  ;;  %v6099_v32 = vmul.f32 %v8353_v14, %v10385_v6 }
0x2726   :  { %v6114_v7 = vmul.f32 %v6097_v57, %v10382_v53 }
0x2727   :  { %v6115_v26 = vmul.f32 %v6099_v32, %v10387_v27  ;;  %v8013_v27 = vld [vmem:[%s10549_s11 + $0x34] ss:$8 sps:$4 sm:$0xff]  }
0x2728   :  { %v6122_v62 = vpack.c.bf16 %v6114_v7, %v6112_v58  ;;  %6451 = vmatprep.subr.bf16.mxu1 %v8013_v27 }
0x2729   :  { %v8355_v18 = vpop.eup %8354  ;;  %v6123_v19 = vpack.c.bf16 %v6115_v26, %v6113_v56 }
0x272a   :  { %v8357_v55 = vpop.eup %8356  ;;  %v6101_v41 = vmul.f32 %v8355_v18, %v10390_v52 }
0x272b   :  { %v8359_v50 = vpop.eup %8358  ;;  %v6103_v37 = vmul.f32 %v8357_v55, %v10395_v1  ;;  %6262 = vmatprep.mubr.bf16.mxu0 %v6123_v19  ;;  %v8011_v1 = vld [vmem:[%s10549_s11 + $0x30] ss:$8 sps:$4 sm:$0xff]  }
0x272c   :  { %v8361_v38 = vpop.eup %8360  ;;  %v6116_v24 = vmul.f32 %v6101_v41, %v10392_v61  ;;  %v6105_v42 = vmul.f32 %v8359_v50, %v10400_v17  ;;  %6263 = vmatmul.mubr.bf16.gmra.mrb[168].mxu0 %v6122_v62  ;;  %6452 = vmatpush1.bf16.msra.mxu1 %v8011_v1 }
0x272d   :  { %v6117_v53 = vmul.f32 %v6103_v37, %v10397_v29  ;;  %v6107_v6 = vmul.f32 %v8361_v38, %v10405_v59  ;;  %v8016_v29 = vld [vmem:[%s10549_s11 + $0x44] ss:$8 sps:$4 sm:$0xff]   ;;  %v8014_v59 = vld [vmem:[%s10549_s11 + $0x40] ss:$8 sps:$4 sm:$0xff]  }
0x272e   :  { %v6118_v52 = vmul.f32 %v6105_v42, %v10402_v3  ;;  %6453 = vmatprep.subr.bf16.mxu1 %v8016_v29  ;;  %v8019_v3 = vld [vmem:[%s10549_s11 + $0x54] ss:$8 sps:$4 sm:$0xff]  }
0x272f   :  { %v6119_v35 = vmul.f32 %v6107_v6, %v10407_v21  ;;  %v8017_v21 = vld [vmem:[%s10549_s11 + $0x50] ss:$8 sps:$4 sm:$0xff]  }
0x2730   :  { %v6124_v61 = vpack.c.bf16 %v6118_v52, %v6116_v24  ;;  %6454 = vmatpush1.bf16.msra.mxu1 %v8014_v59 }
0x2731   :  { %v6125_v17 = vpack.c.bf16 %v6119_v35, %v6117_v53  ;;  %6455 = vmatprep.subr.bf16.mxu1 %v8019_v3 }
0x2733   :  { %6270 = vmatprep.mubr.bf16.mxu0 %v6125_v17 }
0x2734   :  { %6271 = vmatmul.mubr.bf16.gmra.mrb[172].mxu0 %v6124_v61  ;;  %6456 = vmatpush1.bf16.msra.mxu1 %v8017_v21 }
0x2735   :  { %6457 = vmatprep.subr.bf16.mxu1 %v8022_v33 }
0x2738   :  { %6458 = vmatpush1.bf16.msra.mxu1 %v8020_v22 }
0x2739   :  { %6459 = vmatprep.subr.bf16.mxu1 %v8025_v25 }
0x273c   :  { %6460 = vmatpush1.bf16.msra.mxu1 %v8023_v46 }
0x27aa   :  { %v6293_v51 = vpop.xlane.xlu0 %6292 }
0x27ab   :  { %v6304_v28 = vmul.f32 0.0078125, %v6293_v51 }
0x27ac   :  { %v6295_v54 = vpop.xlane.xlu1 %6294 }
0x27ad   :  { %v6310_v23 = vadd.f32 1e-06, %v6304_v28  ;;  %v6305_v45 = vmul.f32 0.0078125, %v6295_v54 }
0x27af   :  { %8362 = vrsqrt.f32 %v6310_v23  ;;  %v6311_v10 = vadd.f32 1e-06, %v6305_v45 }
0x27b1   :  { %8364 = vrsqrt.f32 %v6311_v10 }
0x27b9   :  { %v8363_v13 = vpop.eup %8362 }
0x27ba   :  { %v6322_v16 = vmul.f32 %v8363_v13, %v10411_v47 }
0x27bb   :  { %v8365_v9 = vpop.eup %8364 }
0x27bc   :  { %v6323_v40 = vmul.f32 %v8365_v9, %v10414_v8  ;;  %v6334_v30 = vmul.f32 %v10469_v44, %v6322_v16 }
0x27be   :  { %v6335_v12 = vmul.f32 %v10469_v44, %v6323_v40  ;;  %6340 = vst [vmem:[%s10551_s12] sm:$0xff] %v6334_v30 }
0x27c0   :  { %6341 = vst [vmem:[%s10551_s12 + $0x8] sm:$0xff] %v6335_v12  ;;  %v6346_v49 = vpack.c.bf16 %v6335_v12, %v6334_v30 }
0x27c2   :  { %6478 = vmatmul.mubr.bf16.vlgmr.msra.gmra.mrb[160].mxu1 %v6346_v49 }
0x27c3   :  { %6487 = vmatprep.mubr.bf16.mxu1 %v8392_v43 }
0x27ff   :  { %v7239_v47 = vpop.f32.mrb[168].mxu0 }
0x2800   :  { %v7240_v20 = vpop.f32.mrb[169].mxu0 }
0x2801   :  { %v7241_v39 = vadd.f32 %v7240_v20, %v7239_v47  ;;  %v7242_v8 = vpop.f32.mrb[170].mxu0 }
0x2802   :  { %v7243_v2 = vpop.f32.mrb[171].mxu0 }
0x2803   :  { %v6281_v48 = vadd.f32 %v7241_v39, %v10135_v60  ;;  %v7244_v31 = vadd.f32 %v7243_v2, %v7242_v8 }
0x2805   :  { %v6282_v0 = vadd.f32 %v7244_v31, %v10269_v11  ;;  %v6288_v63 = vmul.f32 %v6281_v48, %v6281_v48 }
0x2807   :  { %6296 = vadd.xlane.f32.xlu0 %v6288_v63  ;;  %v7245_v15 = vpop.f32.mrb[172].mxu0  ;;  %v6289_v4 = vmul.f32 %v6282_v0, %v6282_v0 }
0x2808   :  { %v7246_v36 = vpop.f32.mrb[173].mxu0 }
0x2809   :  { %v7247_v14 = vadd.f32 %v7246_v36, %v7245_v15  ;;  %6298 = vadd.xlane.f32.xlu1 %v6289_v4  ;;  %v7248_v58 = vpop.f32.mrb[174].mxu0 }
0x280a   :  { %v7249_v57 = vpop.f32.mrb[175].mxu0 }
0x280b   :  { %v6283_v56 = vadd.f32 %v7247_v14, %v10276_v34  ;;  %v7250_v32 = vadd.f32 %v7249_v57, %v7248_v58 }
0x280d   :  { %v6284_v7 = vadd.f32 %v7250_v32, %v10273_v5  ;;  %v6290_v26 = vmul.f32 %v6283_v56, %v6283_v56 }
0x280f   :  { %6300 = vadd.xlane.f32.xlu0 %v6290_v26  ;;  %v6291_v60 = vmul.f32 %v6284_v7, %v6284_v7 }
0x2811   :  { %6302 = vadd.xlane.f32.xlu1 %v6291_v60 }
0x2894   :  { %v6297_v62 = vpop.xlane.xlu0 %6296 }
0x2895   :  { %v6306_v11 = vmul.f32 0.0078125, %v6297_v62  ;;  %v6479_v18 = vpop.f32.mrb[160].mxu1 }
0x2896   :  { %6508 = vst [vmem:[%s10552_s13] sm:$0xff] %v6479_v18  ;;  %v6299_v19 = vpop.xlane.xlu1 %6298  ;;  %v6481_v55 = vpop.f32.mrb[161].mxu1 }
0x2897   :  { %v6312_v41 = vadd.f32 1e-06, %v6306_v11  ;;  %v6307_v50 = vmul.f32 0.0078125, %v6299_v19  ;;  %6509 = vst [vmem:[%s10552_s13 + $0x8] sm:$0xff] %v6481_v55  ;;  %v6483_v5 = vpop.f32.mrb[162].mxu1 }
0x2898   :  { %6510 = vst [vmem:[%s10552_s13 + $0x10] sm:$0xff] %v6483_v5  ;;  %v6485_v34 = vpop.f32.mrb[163].mxu1 }
0x2899   :  { %8366 = vrsqrt.f32 %v6312_v41  ;;  %v6313_v37 = vadd.f32 1e-06, %v6307_v50  ;;  %6511 = vst [vmem:[%s10552_s13 + $0x18] sm:$0xff] %v6485_v34 }
0x289b   :  { %8368 = vrsqrt.f32 %v6313_v37 }
0x289c   :  { %v6301_v38 = vpop.xlane.xlu0 %6300 }
0x289d   :  { %v6308_v24 = vmul.f32 0.0078125, %v6301_v38 }
0x289e   :  { %v6303_v42 = vpop.xlane.xlu1 %6302 }
0x289f   :  { %v6314_v53 = vadd.f32 1e-06, %v6308_v24  ;;  %v6309_v6 = vmul.f32 0.0078125, %v6303_v42 }
0x28a1   :  { %8370 = vrsqrt.f32 %v6314_v53  ;;  %v6315_v27 = vadd.f32 1e-06, %v6309_v6 }
0x28a3   :  { %v8367_v52 = vpop.eup %8366  ;;  %8372 = vrsqrt.f32 %v6315_v27 }
0x28a4   :  { %v6324_v1 = vmul.f32 %v8367_v52, %v6281_v48 }
0x28a5   :  { %v8369_v35 = vpop.eup %8368 }
0x28a6   :  { %v6325_v61 = vmul.f32 %v8369_v35, %v6282_v0  ;;  %v6336_v17 = vmul.f32 %v10469_v44, %v6324_v1 }
0x28a8   :  { %v6337_v29 = vmul.f32 %v10469_v44, %v6325_v61  ;;  %6342 = vst [vmem:[%s10551_s12 + $0x10] sm:$0xff] %v6336_v17 }
0x28aa   :  { %6343 = vst [vmem:[%s10551_s12 + $0x18] sm:$0xff] %v6337_v29  ;;  %v6347_v59 = vpack.c.bf16 %v6337_v29, %v6336_v17 }
0x28ab   :  { %v8371_v3 = vpop.eup %8370 }
0x28ac   :  { %6488 = vmatmul.mubr.bf16.gmra.mrb[164].mxu1 %v6347_v59  ;;  %v6326_v21 = vmul.f32 %v8371_v3, %v6283_v56 }
0x28ad   :  { %v8373_v33 = vpop.eup %8372  ;;  %6497 = vmatprep.mubr.bf16.mxu1 %v8392_v43 }
0x28ae   :  { %v6327_v22 = vmul.f32 %v8373_v33, %v6284_v7  ;;  %v6338_v46 = vmul.f32 %v10469_v44, %v6326_v21 }
0x28b0   :  { %v6339_v25 = vmul.f32 %v10469_v44, %v6327_v22  ;;  %6344 = vst [vmem:[%s10551_s12 + $0x20] sm:$0xff] %v6338_v46 }
0x28b2   :  { %6345 = vst [vmem:[%s10551_s12 + $0x28] sm:$0xff] %v6339_v25  ;;  %v6348_v51 = vpack.c.bf16 %v6339_v25, %v6338_v46 }
0x28b4   :  { %6498 = vmatmul.mubr.bf16.gmra.mrb[168].mxu1 %v6348_v51 }
0x297f   :  { %v6489_v28 = vpop.f32.mrb[164].mxu1 }
0x2980   :  { %6512 = vst [vmem:[%s10552_s13 + $0x20] sm:$0xff] %v6489_v28  ;;  %v6491_v43 = vpop.f32.mrb[165].mxu1 }
0x2981   :  { %6513 = vst [vmem:[%s10552_s13 + $0x28] sm:$0xff] %v6491_v43  ;;  %v6493_v54 = vpop.f32.mrb[166].mxu1 }
0x2982   :  { %6514 = vst [vmem:[%s10552_s13 + $0x30] sm:$0xff] %v6493_v54  ;;  %v6495_v23 = vpop.f32.mrb[167].mxu1 }
0x2983   :  { %6515 = vst [vmem:[%s10552_s13 + $0x38] sm:$0xff] %v6495_v23 }
0x2987   :  { %v6499_v45 = vpop.f32.mrb[168].mxu1 }
0x2988   :  { %6516 = vst [vmem:[%s10552_s13 + $0x40] sm:$0xff] %v6499_v45  ;;  %v6501_v10 = vpop.f32.mrb[169].mxu1 }
0x2989   :  { %6517 = vst [vmem:[%s10552_s13 + $0x48] sm:$0xff] %v6501_v10  ;;  %v6503_v13 = vpop.f32.mrb[170].mxu1 }
0x298a   :  { %6518 = vst [vmem:[%s10552_s13 + $0x50] sm:$0xff] %v6503_v13  ;;  %v6505_v44 = vpop.f32.mrb[171].mxu1 }
0x298b   :  { %6519 = vst [vmem:[%s10552_s13 + $0x58] sm:$0xff] %v6505_v44 }

</bundles_post_ra>
